<compile_context>
chip_gen: v6e
topology: v6e:2x2x1
jax: 0.10.0
libtpu: 0.0.40
codegen_flags: <defaults>
</compile_context>

<pallas_src>
import numpy as np
import jax
import jax.numpy as jnp
from jax.experimental import pallas as pl
from jax.experimental.pallas import tpu as pltpu


# ----------------------------------------------------------------------------
# Parameter initialisation (deterministic, synthetic; mirrors nn.Linear shapes,
# stored in (in, out) orientation so the kernel does x @ W + b).
# ----------------------------------------------------------------------------
def init_params(key, in_nf, out_nf, H, n_layers, inv_sublayers):
    params = []

    def lin(k, fi, fo, bias=True, gain=1.0):
        k1, k2 = jax.random.split(k)
        bound = gain / np.sqrt(fi)
        params.append(jax.random.uniform(k1, (fi, fo), jnp.float32, -bound, bound))
        if bias:
            params.append(jax.random.uniform(k2, (1, fo), jnp.float32, -bound, bound))

    keys = iter(jax.random.split(key, 64))
    # EGNN.embedding
    lin(next(keys), in_nf, H)
    for _ in range(n_layers):                       # EquivariantBlock
        for _ in range(inv_sublayers):              # GCL
            lin(next(keys), 2 * H + 2, H)           # edge_mlp[0]
            lin(next(keys), H, H)                   # edge_mlp[2]
            lin(next(keys), 2 * H, H)               # node_mlp[0]
            lin(next(keys), H, H)                   # node_mlp[2]
        # EquivariantUpdate.coord_mlp
        lin(next(keys), 2 * H + 2, H)
        lin(next(keys), H, H)
        lin(next(keys), H, 1, bias=False, gain=0.001)   # xavier gain=0.001, no bias
    # EGNN.embedding_out
    lin(next(keys), H, out_nf)
    return params


# ----------------------------------------------------------------------------
# Host-side parameter packing: one (rows, 128) f32 buffer, every tensor stored
# at an 8-row aligned offset; (2H+2, H) weights pre-split into aligned pieces.
# ----------------------------------------------------------------------------
def pack_params(params, H, n_layers, inv_sublayers):
    chunks = []
    offsets = []        # idx -> (row_offset, rows, cols)
    cur = 0

    def add(arr):
        nonlocal cur
        arr = np.asarray(arr, np.float32)
        r, c = arr.shape
        rp = ((r + 7) // 8) * 8
        buf = np.zeros((rp, 128), np.float32)
        buf[:r, :c] = arr
        chunks.append(buf)
        offsets.append((cur, r, c))
        cur += rp
        return len(offsets) - 1

    it = iter(params)
    idx = {}
    idx['emb'] = (add(next(it)), add(next(it)))
    idx['layers'] = []
    for _ in range(n_layers):
        subs = []
        for _ in range(inv_sublayers):
            we1 = np.asarray(next(it)); be1 = next(it)
            we2 = next(it); be2 = next(it)
            wn1 = next(it); bn1 = next(it)
            wn2 = next(it); bn2 = next(it)
            subs.append(dict(
                we1_ij=add(np.concatenate([we1[:H], we1[H:2 * H]], axis=1)),  # (H, 2H)
                we1_r=add(we1[2 * H:2 * H + 2]),                              # (2, H)
                be1=add(be1), we2=add(we2), be2=add(be2),
                wn1=add(wn1), bn1=add(bn1), wn2=add(wn2), bn2=add(bn2)))
        wc1 = np.asarray(next(it)); bc1 = next(it)
        wc2 = next(it); bc2 = next(it); wc3 = next(it)
        coord = dict(
            wc1_ij=add(np.concatenate([wc1[:H], wc1[H:2 * H]], axis=1)),
            wc1_r=add(wc1[2 * H:2 * H + 2]),
            bc1=add(bc1), wc2=add(wc2), bc2=add(bc2), wc3=add(wc3))
        idx['layers'].append((subs, coord))
    idx['emb_out'] = (add(next(it)), add(next(it)))
    packed = jnp.asarray(np.concatenate(chunks, axis=0))
    return packed, offsets, idx


# ----------------------------------------------------------------------------
# Grid-invariant selection / segment matrices for a block of B molecules.
#   G    (B*E, 2*B*n) : row e has 1 at node i(e) and at B*n + node j(e)
#                       -> G @ [A; B] = A[i(e)] + B[j(e)]
#   S    (B*n, B*E)   : segment-sum over i with 1/norm_factor folded in
#   POOL (B*n, B*n)   : per-molecule pooling (1 if same molecule)
# ----------------------------------------------------------------------------
def build_selection_matrices(B, n, norm_factor):
    E = n * n
    BN, BE = B * n, B * E
    e = np.arange(BE)
    b = e // E
    i = (e % E) // n
    j = e % n
    node_i = b * n + i
    node_j = b * n + j
    G = np.zeros((BE, 2 * BN), np.float32)
    G[e, node_i] = 1.0
    G[e, BN + node_j] = 1.0
    S = np.zeros((BN, BE), np.float32)
    S[node_i, e] = 1.0 / float(norm_factor)
    u = np.arange(BN)
    POOL = (u[:, None] // n == u[None, :] // n).astype(np.float32)
    return jnp.asarray(G), jnp.asarray(S), jnp.asarray(POOL)


# ----------------------------------------------------------------------------
# Pallas kernel: B_TILE molecules per grid step, fully 2-D node/edge layout.
# ----------------------------------------------------------------------------
def make_kernel(BN, BE, n_dims, out_nf, H, norm_constant, offsets, idx):
    f32 = jnp.float32

    def kernel(xh_ref, nm_ref, em_ref, g_ref, s_ref, pool_ref, pk_ref, o_ref):
        def P(i):
            off, r, c = offsets[i]
            return pk_ref[off:off + r, 0:c]

        def dot(a, b):
            return jnp.dot(a, b, preferred_element_type=f32)

        G = g_ref[...]            # (BE, 2*BN)
        S = s_ref[...]            # (BN, BE)   includes 1/norm_factor
        POOL = pool_ref[...]      # (BN, BN)

        nm = nm_ref[...]          # (BN, 1)
        em = em_ref[...]          # (BE, 1)
        xh = xh_ref[...] * nm     # (BN, n_dims + in_nf)  (decoder does xh * node_mask)
        x = xh[:, :n_dims]        # (BN, 3)
        h0 = xh[:, n_dims:]       # (BN, in_nf)

        def silu(v):              # v * sigmoid(v), EUP exp + approx reciprocal
            return v * pl.reciprocal(1.0 + jnp.exp(-v), approx=True)

        def gather_sum(a_i, a_j):  # (BN,F),(BN,F) -> (BE,F): a_i[i(e)] + a_j[j(e)]
            return dot(G, jnp.concatenate([a_i, a_j], axis=0))

        def coord2diff(xc, nc):
            cd = gather_sum(xc, -xc)                               # (BE, 3)
            radial = jnp.sum(cd * cd, axis=-1, keepdims=True)      # (BE, 1)
            inv = pl.reciprocal(jnp.sqrt(radial + 1e-8) + nc, approx=True)
            return radial, cd * inv

        # Initial distances (edge_attr fed to every block).
        radial0, _ = coord2diff(x, 1.0)

        # EGNN.embedding
        ew, eb = idx['emb']
        h = dot(h0, P(ew)) + P(eb)

        for subs, coord in idx['layers']:                          # EquivariantBlock
            radial, cd = coord2diff(x, norm_constant)
            radial_cat = jnp.concatenate([radial, radial0], axis=1)  # (BE, 2)
            for sp in subs:                                        # GCL
                # edge_mlp on cat([h[i], h[j], radial, radial0]) without concat at edge level
                hw = dot(h, P(sp['we1_ij']))                       # (BN, 2H)
                pre = (gather_sum(hw[:, :H], hw[:, H:])
                       + dot(radial_cat, P(sp['we1_r'])) + P(sp['be1']))
                m = silu(pre)
                m = silu(dot(m, P(sp['we2'])) + P(sp['be2']))
                m = m * em                                         # edge_mask (attention=False)
                agg = dot(S, m)                                    # segment_sum / norm_factor
                # node_mlp on cat([h, agg])  -- single K=2H matmul
                z = silu(dot(jnp.concatenate([h, agg], axis=-1), P(sp['wn1'])) + P(sp['bn1']))
                z = dot(z, P(sp['wn2'])) + P(sp['bn2'])
                h = (h + z) * nm
            # EquivariantUpdate (tanh=False)
            hw = dot(h, P(coord['wc1_ij']))
            pre = (gather_sum(hw[:, :H], hw[:, H:])
                   + dot(radial_cat, P(coord['wc1_r'])) + P(coord['bc1']))
            z = silu(pre)
            z = silu(dot(z, P(coord['wc2'])) + P(coord['bc2']))
            s = dot(z, P(coord['wc3']))                            # (BE, 1)
            trans = cd * s * em
            x = (x + dot(S, trans)) * nm
            h = h * nm                                             # block-level node mask

        # EGNN.embedding_out + node mask
        ow, ob = idx['emb_out']
        h = (dot(h, P(ow)) + P(ob)) * nm

        # Decoder epilogue: vel = x_final * node_mask, remove_mean_with_mask per molecule
        vel = x * nm
        n_valid = jnp.maximum(dot(POOL, nm), 1.0)                  # (BN, 1) guard n_valid==0
        mean = dot(POOL, vel) * pl.reciprocal(n_valid, approx=True)
        vel = vel - mean * nm

        o_ref[...] = jnp.concatenate([vel, h], axis=-1)            # (BN, n_dims + out_nf)

    return kernel


# ----------------------------------------------------------------------------
# Wrapper: flatten to node/edge rows, block the batch dimension, grid=(batches,)
# ----------------------------------------------------------------------------
def egnn_decoder_forward(xh, node_mask, edge_mask, params, *, n_dims, hidden, n_layers,
                         inv_sublayers, norm_factor, norm_constant, out_node_nf,
                         batch_tile=16):
    bs, n, dims = xh.shape
    E = n * n
    B = max(1, min(int(batch_tile), bs))
    bs_pad = ((bs + B - 1) // B) * B
    if bs_pad != bs:   # pad batch with fully-masked molecules (all-zero, NaN-safe)
        pad = bs_pad - bs
        xh = jnp.concatenate([xh, jnp.zeros((pad, n, dims), xh.dtype)], axis=0)
        node_mask = jnp.concatenate([node_mask, jnp.zeros((pad, n, 1), node_mask.dtype)], axis=0)
        edge_mask = jnp.concatenate(
            [edge_mask, jnp.zeros((pad,) + tuple(edge_mask.shape[1:]), edge_mask.dtype)], axis=0)

    BN, BE = B * n, B * E
    xh_f = xh.reshape(bs_pad * n, dims)
    nm_f = node_mask.reshape(bs_pad * n, 1)
    em_f = edge_mask.reshape(bs_pad * E, 1)

    G, S, POOL = build_selection_matrices(B, n, norm_factor)
    packed, offsets, idx = pack_params(params, hidden, n_layers, inv_sublayers)

    kernel = make_kernel(BN=BN, BE=BE, n_dims=n_dims, out_nf=out_node_nf, H=hidden,
                         norm_constant=norm_constant, offsets=offsets, idx=idx)

    out_flat = pl.pallas_call(
        kernel,
        grid=(bs_pad // B,),
        in_specs=[
            pl.BlockSpec((BN, dims), lambda b: (b, 0)),
            pl.BlockSpec((BN, 1), lambda b: (b, 0)),
            pl.BlockSpec((BE, 1), lambda b: (b, 0)),
            pl.BlockSpec(G.shape, lambda b: (0, 0)),       # grid-invariant, stays resident
            pl.BlockSpec(S.shape, lambda b: (0, 0)),
            pl.BlockSpec(POOL.shape, lambda b: (0, 0)),
            pl.BlockSpec(packed.shape, lambda b: (0, 0)),
        ],
        out_specs=pl.BlockSpec((BN, n_dims + out_node_nf), lambda b: (b, 0)),
        out_shape=jax.ShapeDtypeStruct((bs_pad * n, n_dims + out_node_nf), jnp.float32),
        compiler_params=pltpu.CompilerParams(dimension_semantics=("parallel",)),
    )(xh_f, nm_f, em_f, G, S, POOL, packed)

    out = out_flat.reshape(bs_pad, n, n_dims + out_node_nf)[:bs]
    vel = out[..., :n_dims]
    h_final = out[..., n_dims:]
    # Whole-batch NaN reset (matches the torch module: any NaN anywhere -> zero all vel).
    has_nan = jnp.any(jnp.isnan(vel))
    vel = jnp.where(has_nan, jnp.zeros_like(vel), vel)
    return vel, h_final
    # TODO(synk): forward hooks / autocast / _edges_dict caching / verbose prints have
    # no kernel equivalent.


# ----------------------------------------------------------------------------
# Pure-JAX reference that mirrors the PyTorch graph (gather + concat + segment_sum)
# ----------------------------------------------------------------------------
def reference_forward(xh, node_mask, edge_mask, params, *, n_dims, hidden, n_layers,
                      inv_sublayers, norm_factor, norm_constant):
    bs, n, dims = xh.shape
    rows, cols = [], []
    for b in range(bs):
        for i in range(n):
            for j in range(n):
                rows.append(i + b * n)
                cols.append(j + b * n)
    rows = jnp.array(rows)
    cols = jnp.array(cols)

    nm = node_mask.reshape(bs * n, 1)
    em = edge_mask.reshape(bs * n * n, 1)
    xh = xh.reshape(bs * n, dims) * nm
    x = xh[:, :n_dims]
    h = xh[:, n_dims:]

    def silu(v):
        return v * jax.nn.sigmoid(v)

    def coord2diff(xc, nc):
        cd = xc[rows] - xc[cols]
        radial = jnp.sum(cd ** 2, axis=1, keepdims=True)
        norm = jnp.sqrt(radial + 1e-8)
        return radial, cd / (norm + nc)

    it = iter(params)
    radial0, _ = coord2diff(x, 1.0)
    h = h @ next(it) + next(it)
    for _ in range(n_layers):
        radial, cd = coord2diff(x, norm_constant)
        edge_attr = jnp.concatenate([radial, radial0], axis=1)
        for _ in range(inv_sublayers):
            we1, be1, we2, be2, wn1, bn1, wn2, bn2 = (next(it) for _ in range(8))
            inp = jnp.concatenate([h[rows], h[cols], edge_attr], axis=1)
            m = silu(inp @ we1 + be1)
            m = silu(m @ we2 + be2)
            m = m * em
            agg = jax.ops.segment_sum(m, rows, bs * n) / norm_factor
            z = jnp.concatenate([h, agg], axis=1)
            z = silu(z @ wn1 + bn1)
            z = z @ wn2 + bn2
            h = (h + z) * nm
        wc1, bc1, wc2, bc2, wc3 = (next(it) for _ in range(5))
        inp = jnp.concatenate([h[rows], h[cols], edge_attr], axis=1)
        z = silu(inp @ wc1 + bc1)
        z = silu(z @ wc2 + bc2)
        s = z @ wc3
        trans = cd * s * em
        agg = jax.ops.segment_sum(trans, rows, bs * n) / norm_factor
        x = (x + agg) * nm
        h = h * nm
    h = h @ next(it) + next(it)
    h = h * nm

    vel = (x * nm).reshape(bs, n, n_dims)
    nm3 = node_mask.reshape(bs, n, 1)
    n_valid = nm3.sum(1, keepdims=True)
    mean = vel.sum(1, keepdims=True) / n_valid
    vel = vel - mean * nm3
    h_final = (h * nm).reshape(bs, n, -1)
    return vel, h_final


# ----------------------------------------------------------------------------
if __name__ == "__main__":
    # Decoder config (small but consistent with the module):
    bs, n_nodes, n_dims = 4, 8, 3
    in_node_nf = 2            # latent node features fed to the decoder
    context_node_nf = 0       # context=None path
    include_charges = 1
    num_classes = 5
    out_node_nf = num_classes + include_charges       # 6
    hidden_nf = 32
    n_layers = 2              # EGNN blocks
    inv_sublayers = 2         # GCLs per block
    norm_factor = 100.0       # normalization_factor, aggregation_method='sum'
    norm_constant = 0.0

    key = jax.random.PRNGKey(0)
    k_xh, k_p = jax.random.split(key)
    dims = n_dims + in_node_nf
    xh = jax.random.normal(k_xh, (bs, n_nodes, dims), jnp.float32)

    node_counts = jnp.array([8, 6, 5, 7])
    node_mask = (jnp.arange(n_nodes)[None, :] < node_counts[:, None]).astype(jnp.float32)[:, :, None]
    eye = jnp.eye(n_nodes, dtype=jnp.float32)
    edge_mask = node_mask * jnp.transpose(node_mask, (0, 2, 1)) * (1.0 - eye)[None]   # (bs, n, n)

    params = init_params(k_p, in_node_nf + context_node_nf, out_node_nf, hidden_nf,
                         n_layers, inv_sublayers)

    # batch_tile=2 keeps grid length 2 at this tiny demo batch; use 16 (v5e, M=128)
    # or 32 (v6e / v7x, M=256) for real batch sizes.
    vel, h_final = egnn_decoder_forward(
        xh, node_mask, edge_mask, params,
        n_dims=n_dims, hidden=hidden_nf, n_layers=n_layers, inv_sublayers=inv_sublayers,
        norm_factor=norm_factor, norm_constant=norm_constant, out_node_nf=out_node_nf,
        batch_tile=2)
    jax.block_until_ready((vel, h_final))

    vel_ref, h_ref = reference_forward(
        xh, node_mask, edge_mask, params,
        n_dims=n_dims, hidden=hidden_nf, n_layers=n_layers, inv_sublayers=inv_sublayers,
        norm_factor=norm_factor, norm_constant=norm_constant)

    np.testing.assert_allclose(np.asarray(vel), np.asarray(vel_ref), atol=2e-2, rtol=2e-2)
    np.testing.assert_allclose(np.asarray(h_final), np.asarray(h_ref), atol=2e-2, rtol=2e-2)
    print("KERNEL_OK")
</pallas_src>

<mosaic_0001>
module attributes {stable_mosaic.version = 11 : i64} {
  func.func @kernel(%arg0: i32, %arg1: memref<16x5xf32, #tpu.memory_space<vmem>>, %arg2: memref<16x1xf32, #tpu.memory_space<vmem>>, %arg3: memref<128x1xf32, #tpu.memory_space<vmem>>, %arg4: memref<128x32xf32, #tpu.memory_space<vmem>>, %arg5: memref<16x128xf32, #tpu.memory_space<vmem>>, %arg6: memref<16x16xf32, #tpu.memory_space<vmem>>, %arg7: memref<1096x128xf32, #tpu.memory_space<vmem>>, %arg8: memref<16x9xf32, #tpu.memory_space<vmem>>) attributes {dimension_semantics = [#tpu.dimension_semantics<parallel>], iteration_bounds = array<i64: 2>, scalar_prefetch = 0 : i64, scratch_operands = 0 : i64, tpu.core_type = #tpu.core_type<tc>, window_params = [{transform_indices = @transform_0, window_bounds = array<i64: 16, 5>}, {transform_indices = @transform_1, window_bounds = array<i64: 16, 1>}, {transform_indices = @transform_2, window_bounds = array<i64: 128, 1>}, {pipeline_mode = #tpu.pipeline_mode<synchronous>, transform_indices = @transform_3, window_bounds = array<i64: 128, 32>}, {pipeline_mode = #tpu.pipeline_mode<synchronous>, transform_indices = @transform_4, window_bounds = array<i64: 16, 128>}, {pipeline_mode = #tpu.pipeline_mode<synchronous>, transform_indices = @transform_5, window_bounds = array<i64: 16, 16>}, {pipeline_mode = #tpu.pipeline_mode<synchronous>, transform_indices = @transform_6, window_bounds = array<i64: 1096, 128>}, {transform_indices = @transform_7, window_bounds = array<i64: 16, 9>}]} {
    %c0 = arith.constant 0 : index
    %c0_0 = arith.constant 0 : index
    %0 = vector.load %arg4[%c0, %c0_0] : memref<128x32xf32, #tpu.memory_space<vmem>>, vector<128x32xf32>
    %c0_1 = arith.constant 0 : index
    %c0_2 = arith.constant 0 : index
    %1 = vector.load %arg5[%c0_1, %c0_2] : memref<16x128xf32, #tpu.memory_space<vmem>>, vector<16x128xf32>
    %c0_3 = arith.constant 0 : index
    %c0_4 = arith.constant 0 : index
    %2 = vector.load %arg6[%c0_3, %c0_4] : memref<16x16xf32, #tpu.memory_space<vmem>>, vector<16x16xf32>
    %c0_5 = arith.constant 0 : index
    %c0_6 = arith.constant 0 : index
    %3 = vector.load %arg2[%c0_5, %c0_6] : memref<16x1xf32, #tpu.memory_space<vmem>>, vector<16x1xf32>
    %c0_7 = arith.constant 0 : index
    %c0_8 = arith.constant 0 : index
    %4 = vector.load %arg3[%c0_7, %c0_8] : memref<128x1xf32, #tpu.memory_space<vmem>>, vector<128x1xf32>
    %c0_9 = arith.constant 0 : index
    %c0_10 = arith.constant 0 : index
    %5 = vector.load %arg1[%c0_9, %c0_10] : memref<16x5xf32, #tpu.memory_space<vmem>>, vector<16x5xf32>
    %6 = vector.broadcast %3 : vector<16x1xf32> to vector<16x5xf32>
    %7 = arith.mulf %5, %6 : vector<16x5xf32>
    %8 = vector.extract_strided_slice %7 {offsets = [0, 0], sizes = [16, 3], strides = [1, 1]} : vector<16x5xf32> to vector<16x3xf32>
    %9 = vector.extract_strided_slice %7 {offsets = [0, 3], sizes = [16, 2], strides = [1, 1]} : vector<16x5xf32> to vector<16x2xf32>
    %cst = arith.constant 0.000000e+00 : f32
    %10 = vector.broadcast %cst : f32 to vector<16x3xf32>
    %11 = arith.subf %10, %8 : vector<16x3xf32>
    %12 = tpu.concatenate %8, %11 in 0 : vector<16x3xf32>, vector<16x3xf32> -> vector<32x3xf32>
    %cst_11 = arith.constant dense<0.000000e+00> : vector<128x3xf32>
    %13 = tpu.matmul %0, %12, %cst_11 {dimension_numbers = #tpu.dot_dimension_numbers<[1], [0], [0], [1], [0, 0, 1, 1], [], []>} : vector<128x32xf32>, vector<32x3xf32>, vector<128x3xf32> -> vector<128x3xf32>
    %14 = arith.mulf %13, %13 : vector<128x3xf32>
    %cst_12 = arith.constant dense<0.000000e+00> : vector<128xf32>
    %15 = vector.multi_reduction <add>, %14, %cst_12 [1] : vector<128x3xf32> to vector<128xf32>
    %16 = vector.shape_cast %15 : vector<128xf32> to vector<128x1xf32>
    %c0_13 = arith.constant 0 : index
    %c0_14 = arith.constant 0 : index
    %17 = vector.load %arg7[%c0_13, %c0_14] : memref<1096x128xf32, #tpu.memory_space<vmem>>, vector<2x32xf32>
    %cst_15 = arith.constant dense<0.000000e+00> : vector<16x32xf32>
    %18 = tpu.matmul %9, %17, %cst_15 {dimension_numbers = #tpu.dot_dimension_numbers<[1], [0], [0], [1], [0, 0, 1, 1], [], []>} : vector<16x2xf32>, vector<2x32xf32>, vector<16x32xf32> -> vector<16x32xf32>
    %c8 = arith.constant 8 : index
    %c0_16 = arith.constant 0 : index
    %19 = vector.load %arg7[%c8, %c0_16] : memref<1096x128xf32, #tpu.memory_space<vmem>>, vector<1x32xf32>
    %20 = vector.broadcast %19 : vector<1x32xf32> to vector<16x32xf32>
    %21 = arith.addf %18, %20 : vector<16x32xf32>
    %cst_17 = arith.constant 0.000000e+00 : f32
    %22 = vector.broadcast %cst_17 : f32 to vector<16x3xf32>
    %23 = arith.subf %22, %8 : vector<16x3xf32>
    %24 = tpu.concatenate %8, %23 in 0 : vector<16x3xf32>, vector<16x3xf32> -> vector<32x3xf32>
    %cst_18 = arith.constant dense<0.000000e+00> : vector<128x3xf32>
    %25 = tpu.matmul %0, %24, %cst_18 {dimension_numbers = #tpu.dot_dimension_numbers<[1], [0], [0], [1], [0, 0, 1, 1], [], []>} : vector<128x32xf32>, vector<32x3xf32>, vector<128x3xf32> -> vector<128x3xf32>
    %26 = arith.mulf %25, %25 : vector<128x3xf32>
    %cst_19 = arith.constant dense<0.000000e+00> : vector<128xf32>
    %27 = vector.multi_reduction <add>, %26, %cst_19 [1] : vector<128x3xf32> to vector<128xf32>
    %28 = vector.shape_cast %27 : vector<128xf32> to vector<128x1xf32>
    %cst_20 = arith.constant 9.99999993E-9 : f32
    %29 = vector.broadcast %cst_20 : f32 to vector<128x1xf32>
    %30 = arith.addf %28, %29 : vector<128x1xf32>
    %31 = math.sqrt %30 : vector<128x1xf32>
    %cst_21 = arith.constant 0.000000e+00 : f32
    %32 = vector.broadcast %cst_21 : f32 to vector<128x1xf32>
    %33 = arith.addf %31, %32 : vector<128x1xf32>
    %34 = tpu.reciprocal %33 {approx = true} : vector<128x1xf32> -> vector<128x1xf32>
    %35 = vector.broadcast %34 : vector<128x1xf32> to vector<128x3xf32>
    %36 = arith.mulf %25, %35 : vector<128x3xf32>
    %37 = tpu.concatenate %28, %16 in 1 : vector<128x1xf32>, vector<128x1xf32> -> vector<128x2xf32>
    %c16 = arith.constant 16 : index
    %c0_22 = arith.constant 0 : index
    %38 = vector.load %arg7[%c16, %c0_22] : memref<1096x128xf32, #tpu.memory_space<vmem>>, vector<32x64xf32>
    %cst_23 = arith.constant dense<0.000000e+00> : vector<16x64xf32>
    %39 = tpu.matmul %21, %38, %cst_23 {dimension_numbers = #tpu.dot_dimension_numbers<[1], [0], [0], [1], [0, 0, 1, 1], [], []>} : vector<16x32xf32>, vector<32x64xf32>, vector<16x64xf32> -> vector<16x64xf32>
    %40 = vector.extract_strided_slice %39 {offsets = [0, 0], sizes = [16, 32], strides = [1, 1]} : vector<16x64xf32> to vector<16x32xf32>
    %41 = vector.extract_strided_slice %39 {offsets = [0, 32], sizes = [16, 32], strides = [1, 1]} : vector<16x64xf32> to vector<16x32xf32>
    %42 = tpu.concatenate %40, %41 in 0 : vector<16x32xf32>, vector<16x32xf32> -> vector<32x32xf32>
    %cst_24 = arith.constant dense<0.000000e+00> : vector<128x32xf32>
    %43 = tpu.matmul %0, %42, %cst_24 {dimension_numbers = #tpu.dot_dimension_numbers<[1], [0], [0], [1], [0, 0, 1, 1], [], []>} : vector<128x32xf32>, vector<32x32xf32>, vector<128x32xf32> -> vector<128x32xf32>
    %c48 = arith.constant 48 : index
    %c0_25 = arith.constant 0 : index
    %44 = vector.load %arg7[%c48, %c0_25] : memref<1096x128xf32, #tpu.memory_space<vmem>>, vector<2x32xf32>
    %cst_26 = arith.constant dense<0.000000e+00> : vector<128x32xf32>
    %45 = tpu.matmul %37, %44, %cst_26 {dimension_numbers = #tpu.dot_dimension_numbers<[1], [0], [0], [1], [0, 0, 1, 1], [], []>} : vector<128x2xf32>, vector<2x32xf32>, vector<128x32xf32> -> vector<128x32xf32>
    %46 = arith.addf %43, %45 : vector<128x32xf32>
    %c56 = arith.constant 56 : index
    %c0_27 = arith.constant 0 : index
    %47 = vector.load %arg7[%c56, %c0_27] : memref<1096x128xf32, #tpu.memory_space<vmem>>, vector<1x32xf32>
    %48 = vector.broadcast %47 : vector<1x32xf32> to vector<128x32xf32>
    %49 = arith.addf %46, %48 : vector<128x32xf32>
    %cst_28 = arith.constant 0.000000e+00 : f32
    %50 = vector.broadcast %cst_28 : f32 to vector<128x32xf32>
    %51 = arith.subf %50, %49 : vector<128x32xf32>
    %52 = math.exp %51 : vector<128x32xf32>
    %cst_29 = arith.constant 1.000000e+00 : f32
    %53 = vector.broadcast %cst_29 : f32 to vector<128x32xf32>
    %54 = arith.addf %53, %52 : vector<128x32xf32>
    %55 = tpu.reciprocal %54 {approx = true} : vector<128x32xf32> -> vector<128x32xf32>
    %56 = arith.mulf %49, %55 : vector<128x32xf32>
    %c64 = arith.constant 64 : index
    %c0_30 = arith.constant 0 : index
    %57 = vector.load %arg7[%c64, %c0_30] : memref<1096x128xf32, #tpu.memory_space<vmem>>, vector<32x32xf32>
    %cst_31 = arith.constant dense<0.000000e+00> : vector<128x32xf32>
    %58 = tpu.matmul %56, %57, %cst_31 {dimension_numbers = #tpu.dot_dimension_numbers<[1], [0], [0], [1], [0, 0, 1, 1], [], []>} : vector<128x32xf32>, vector<32x32xf32>, vector<128x32xf32> -> vector<128x32xf32>
    %c96 = arith.constant 96 : index
    %c0_32 = arith.constant 0 : index
    %59 = vector.load %arg7[%c96, %c0_32] : memref<1096x128xf32, #tpu.memory_space<vmem>>, vector<1x32xf32>
    %60 = vector.broadcast %59 : vector<1x32xf32> to vector<128x32xf32>
    %61 = arith.addf %58, %60 : vector<128x32xf32>
    %cst_33 = arith.constant 0.000000e+00 : f32
    %62 = vector.broadcast %cst_33 : f32 to vector<128x32xf32>
    %63 = arith.subf %62, %61 : vector<128x32xf32>
    %64 = math.exp %63 : vector<128x32xf32>
    %cst_34 = arith.constant 1.000000e+00 : f32
    %65 = vector.broadcast %cst_34 : f32 to vector<128x32xf32>
    %66 = arith.addf %65, %64 : vector<128x32xf32>
    %67 = tpu.reciprocal %66 {approx = true} : vector<128x32xf32> -> vector<128x32xf32>
    %68 = arith.mulf %61, %67 : vector<128x32xf32>
    %69 = vector.broadcast %4 : vector<128x1xf32> to vector<128x32xf32>
    %70 = arith.mulf %68, %69 : vector<128x32xf32>
    %cst_35 = arith.constant dense<0.000000e+00> : vector<16x32xf32>
    %71 = tpu.matmul %1, %70, %cst_35 {dimension_numbers = #tpu.dot_dimension_numbers<[1], [0], [0], [1], [0, 0, 1, 1], [], []>} : vector<16x128xf32>, vector<128x32xf32>, vector<16x32xf32> -> vector<16x32xf32>
    %72 = tpu.concatenate %21, %71 in 1 : vector<16x32xf32>, vector<16x32xf32> -> vector<16x64xf32>
    %c104 = arith.constant 104 : index
    %c0_36 = arith.constant 0 : index
    %73 = vector.load %arg7[%c104, %c0_36] : memref<1096x128xf32, #tpu.memory_space<vmem>>, vector<64x32xf32>
    %cst_37 = arith.constant dense<0.000000e+00> : vector<16x32xf32>
    %74 = tpu.matmul %72, %73, %cst_37 {dimension_numbers = #tpu.dot_dimension_numbers<[1], [0], [0], [1], [0, 0, 1, 1], [], []>} : vector<16x64xf32>, vector<64x32xf32>, vector<16x32xf32> -> vector<16x32xf32>
    %c168 = arith.constant 168 : index
    %c0_38 = arith.constant 0 : index
    %75 = vector.load %arg7[%c168, %c0_38] : memref<1096x128xf32, #tpu.memory_space<vmem>>, vector<1x32xf32>
    %76 = vector.broadcast %75 : vector<1x32xf32> to vector<16x32xf32>
    %77 = arith.addf %74, %76 : vector<16x32xf32>
    %cst_39 = arith.constant 0.000000e+00 : f32
    %78 = vector.broadcast %cst_39 : f32 to vector<16x32xf32>
    %79 = arith.subf %78, %77 : vector<16x32xf32>
    %80 = math.exp %79 : vector<16x32xf32>
    %cst_40 = arith.constant 1.000000e+00 : f32
    %81 = vector.broadcast %cst_40 : f32 to vector<16x32xf32>
    %82 = arith.addf %81, %80 : vector<16x32xf32>
    %83 = tpu.reciprocal %82 {approx = true} : vector<16x32xf32> -> vector<16x32xf32>
    %84 = arith.mulf %77, %83 : vector<16x32xf32>
    %c176 = arith.constant 176 : index
    %c0_41 = arith.constant 0 : index
    %85 = vector.load %arg7[%c176, %c0_41] : memref<1096x128xf32, #tpu.memory_space<vmem>>, vector<32x32xf32>
    %cst_42 = arith.constant dense<0.000000e+00> : vector<16x32xf32>
    %86 = tpu.matmul %84, %85, %cst_42 {dimension_numbers = #tpu.dot_dimension_numbers<[1], [0], [0], [1], [0, 0, 1, 1], [], []>} : vector<16x32xf32>, vector<32x32xf32>, vector<16x32xf32> -> vector<16x32xf32>
    %c208 = arith.constant 208 : index
    %c0_43 = arith.constant 0 : index
    %87 = vector.load %arg7[%c208, %c0_43] : memref<1096x128xf32, #tpu.memory_space<vmem>>, vector<1x32xf32>
    %88 = vector.broadcast %87 : vector<1x32xf32> to vector<16x32xf32>
    %89 = arith.addf %86, %88 : vector<16x32xf32>
    %90 = arith.addf %21, %89 : vector<16x32xf32>
    %91 = vector.broadcast %3 : vector<16x1xf32> to vector<16x32xf32>
    %92 = arith.mulf %90, %91 : vector<16x32xf32>
    %c216 = arith.constant 216 : index
    %c0_44 = arith.constant 0 : index
    %93 = vector.load %arg7[%c216, %c0_44] : memref<1096x128xf32, #tpu.memory_space<vmem>>, vector<32x64xf32>
    %cst_45 = arith.constant dense<0.000000e+00> : vector<16x64xf32>
    %94 = tpu.matmul %92, %93, %cst_45 {dimension_numbers = #tpu.dot_dimension_numbers<[1], [0], [0], [1], [0, 0, 1, 1], [], []>} : vector<16x32xf32>, vector<32x64xf32>, vector<16x64xf32> -> vector<16x64xf32>
    %95 = vector.extract_strided_slice %94 {offsets = [0, 0], sizes = [16, 32], strides = [1, 1]} : vector<16x64xf32> to vector<16x32xf32>
    %96 = vector.extract_strided_slice %94 {offsets = [0, 32], sizes = [16, 32], strides = [1, 1]} : vector<16x64xf32> to vector<16x32xf32>
    %97 = tpu.concatenate %95, %96 in 0 : vector<16x32xf32>, vector<16x32xf32> -> vector<32x32xf32>
    %cst_46 = arith.constant dense<0.000000e+00> : vector<128x32xf32>
    %98 = tpu.matmul %0, %97, %cst_46 {dimension_numbers = #tpu.dot_dimension_numbers<[1], [0], [0], [1], [0, 0, 1, 1], [], []>} : vector<128x32xf32>, vector<32x32xf32>, vector<128x32xf32> -> vector<128x32xf32>
    %c248 = arith.constant 248 : index
    %c0_47 = arith.constant 0 : index
    %99 = vector.load %arg7[%c248, %c0_47] : memref<1096x128xf32, #tpu.memory_space<vmem>>, vector<2x32xf32>
    %cst_48 = arith.constant dense<0.000000e+00> : vector<128x32xf32>
    %100 = tpu.matmul %37, %99, %cst_48 {dimension_numbers = #tpu.dot_dimension_numbers<[1], [0], [0], [1], [0, 0, 1, 1], [], []>} : vector<128x2xf32>, vector<2x32xf32>, vector<128x32xf32> -> vector<128x32xf32>
    %101 = arith.addf %98, %100 : vector<128x32xf32>
    %c256 = arith.constant 256 : index
    %c0_49 = arith.constant 0 : index
    %102 = vector.load %arg7[%c256, %c0_49] : memref<1096x128xf32, #tpu.memory_space<vmem>>, vector<1x32xf32>
    %103 = vector.broadcast %102 : vector<1x32xf32> to vector<128x32xf32>
    %104 = arith.addf %101, %103 : vector<128x32xf32>
    %cst_50 = arith.constant 0.000000e+00 : f32
    %105 = vector.broadcast %cst_50 : f32 to vector<128x32xf32>
    %106 = arith.subf %105, %104 : vector<128x32xf32>
    %107 = math.exp %106 : vector<128x32xf32>
    %cst_51 = arith.constant 1.000000e+00 : f32
    %108 = vector.broadcast %cst_51 : f32 to vector<128x32xf32>
    %109 = arith.addf %108, %107 : vector<128x32xf32>
    %110 = tpu.reciprocal %109 {approx = true} : vector<128x32xf32> -> vector<128x32xf32>
    %111 = arith.mulf %104, %110 : vector<128x32xf32>
    %c264 = arith.constant 264 : index
    %c0_52 = arith.constant 0 : index
    %112 = vector.load %arg7[%c264, %c0_52] : memref<1096x128xf32, #tpu.memory_space<vmem>>, vector<32x32xf32>
    %cst_53 = arith.constant dense<0.000000e+00> : vector<128x32xf32>
    %113 = tpu.matmul %111, %112, %cst_53 {dimension_numbers = #tpu.dot_dimension_numbers<[1], [0], [0], [1], [0, 0, 1, 1], [], []>} : vector<128x32xf32>, vector<32x32xf32>, vector<128x32xf32> -> vector<128x32xf32>
    %c296 = arith.constant 296 : index
    %c0_54 = arith.constant 0 : index
    %114 = vector.load %arg7[%c296, %c0_54] : memref<1096x128xf32, #tpu.memory_space<vmem>>, vector<1x32xf32>
    %115 = vector.broadcast %114 : vector<1x32xf32> to vector<128x32xf32>
    %116 = arith.addf %113, %115 : vector<128x32xf32>
    %cst_55 = arith.constant 0.000000e+00 : f32
    %117 = vector.broadcast %cst_55 : f32 to vector<128x32xf32>
    %118 = arith.subf %117, %116 : vector<128x32xf32>
    %119 = math.exp %118 : vector<128x32xf32>
    %cst_56 = arith.constant 1.000000e+00 : f32
    %120 = vector.broadcast %cst_56 : f32 to vector<128x32xf32>
    %121 = arith.addf %120, %119 : vector<128x32xf32>
    %122 = tpu.reciprocal %121 {approx = true} : vector<128x32xf32> -> vector<128x32xf32>
    %123 = arith.mulf %116, %122 : vector<128x32xf32>
    %124 = vector.broadcast %4 : vector<128x1xf32> to vector<128x32xf32>
    %125 = arith.mulf %123, %124 : vector<128x32xf32>
    %cst_57 = arith.constant dense<0.000000e+00> : vector<16x32xf32>
    %126 = tpu.matmul %1, %125, %cst_57 {dimension_numbers = #tpu.dot_dimension_numbers<[1], [0], [0], [1], [0, 0, 1, 1], [], []>} : vector<16x128xf32>, vector<128x32xf32>, vector<16x32xf32> -> vector<16x32xf32>
    %127 = tpu.concatenate %92, %126 in 1 : vector<16x32xf32>, vector<16x32xf32> -> vector<16x64xf32>
    %c304 = arith.constant 304 : index
    %c0_58 = arith.constant 0 : index
    %128 = vector.load %arg7[%c304, %c0_58] : memref<1096x128xf32, #tpu.memory_space<vmem>>, vector<64x32xf32>
    %cst_59 = arith.constant dense<0.000000e+00> : vector<16x32xf32>
    %129 = tpu.matmul %127, %128, %cst_59 {dimension_numbers = #tpu.dot_dimension_numbers<[1], [0], [0], [1], [0, 0, 1, 1], [], []>} : vector<16x64xf32>, vector<64x32xf32>, vector<16x32xf32> -> vector<16x32xf32>
    %c368 = arith.constant 368 : index
    %c0_60 = arith.constant 0 : index
    %130 = vector.load %arg7[%c368, %c0_60] : memref<1096x128xf32, #tpu.memory_space<vmem>>, vector<1x32xf32>
    %131 = vector.broadcast %130 : vector<1x32xf32> to vector<16x32xf32>
    %132 = arith.addf %129, %131 : vector<16x32xf32>
    %cst_61 = arith.constant 0.000000e+00 : f32
    %133 = vector.broadcast %cst_61 : f32 to vector<16x32xf32>
    %134 = arith.subf %133, %132 : vector<16x32xf32>
    %135 = math.exp %134 : vector<16x32xf32>
    %cst_62 = arith.constant 1.000000e+00 : f32
    %136 = vector.broadcast %cst_62 : f32 to vector<16x32xf32>
    %137 = arith.addf %136, %135 : vector<16x32xf32>
    %138 = tpu.reciprocal %137 {approx = true} : vector<16x32xf32> -> vector<16x32xf32>
    %139 = arith.mulf %132, %138 : vector<16x32xf32>
    %c376 = arith.constant 376 : index
    %c0_63 = arith.constant 0 : index
    %140 = vector.load %arg7[%c376, %c0_63] : memref<1096x128xf32, #tpu.memory_space<vmem>>, vector<32x32xf32>
    %cst_64 = arith.constant dense<0.000000e+00> : vector<16x32xf32>
    %141 = tpu.matmul %139, %140, %cst_64 {dimension_numbers = #tpu.dot_dimension_numbers<[1], [0], [0], [1], [0, 0, 1, 1], [], []>} : vector<16x32xf32>, vector<32x32xf32>, vector<16x32xf32> -> vector<16x32xf32>
    %c408 = arith.constant 408 : index
    %c0_65 = arith.constant 0 : index
    %142 = vector.load %arg7[%c408, %c0_65] : memref<1096x128xf32, #tpu.memory_space<vmem>>, vector<1x32xf32>
    %143 = vector.broadcast %142 : vector<1x32xf32> to vector<16x32xf32>
    %144 = arith.addf %141, %143 : vector<16x32xf32>
    %145 = arith.addf %92, %144 : vector<16x32xf32>
    %146 = vector.broadcast %3 : vector<16x1xf32> to vector<16x32xf32>
    %147 = arith.mulf %145, %146 : vector<16x32xf32>
    %c416 = arith.constant 416 : index
    %c0_66 = arith.constant 0 : index
    %148 = vector.load %arg7[%c416, %c0_66] : memref<1096x128xf32, #tpu.memory_space<vmem>>, vector<32x64xf32>
    %cst_67 = arith.constant dense<0.000000e+00> : vector<16x64xf32>
    %149 = tpu.matmul %147, %148, %cst_67 {dimension_numbers = #tpu.dot_dimension_numbers<[1], [0], [0], [1], [0, 0, 1, 1], [], []>} : vector<16x32xf32>, vector<32x64xf32>, vector<16x64xf32> -> vector<16x64xf32>
    %150 = vector.extract_strided_slice %149 {offsets = [0, 0], sizes = [16, 32], strides = [1, 1]} : vector<16x64xf32> to vector<16x32xf32>
    %151 = vector.extract_strided_slice %149 {offsets = [0, 32], sizes = [16, 32], strides = [1, 1]} : vector<16x64xf32> to vector<16x32xf32>
    %152 = tpu.concatenate %150, %151 in 0 : vector<16x32xf32>, vector<16x32xf32> -> vector<32x32xf32>
    %cst_68 = arith.constant dense<0.000000e+00> : vector<128x32xf32>
    %153 = tpu.matmul %0, %152, %cst_68 {dimension_numbers = #tpu.dot_dimension_numbers<[1], [0], [0], [1], [0, 0, 1, 1], [], []>} : vector<128x32xf32>, vector<32x32xf32>, vector<128x32xf32> -> vector<128x32xf32>
    %c448 = arith.constant 448 : index
    %c0_69 = arith.constant 0 : index
    %154 = vector.load %arg7[%c448, %c0_69] : memref<1096x128xf32, #tpu.memory_space<vmem>>, vector<2x32xf32>
    %cst_70 = arith.constant dense<0.000000e+00> : vector<128x32xf32>
    %155 = tpu.matmul %37, %154, %cst_70 {dimension_numbers = #tpu.dot_dimension_numbers<[1], [0], [0], [1], [0, 0, 1, 1], [], []>} : vector<128x2xf32>, vector<2x32xf32>, vector<128x32xf32> -> vector<128x32xf32>
    %156 = arith.addf %153, %155 : vector<128x32xf32>
    %c456 = arith.constant 456 : index
    %c0_71 = arith.constant 0 : index
    %157 = vector.load %arg7[%c456, %c0_71] : memref<1096x128xf32, #tpu.memory_space<vmem>>, vector<1x32xf32>
    %158 = vector.broadcast %157 : vector<1x32xf32> to vector<128x32xf32>
    %159 = arith.addf %156, %158 : vector<128x32xf32>
    %cst_72 = arith.constant 0.000000e+00 : f32
    %160 = vector.broadcast %cst_72 : f32 to vector<128x32xf32>
    %161 = arith.subf %160, %159 : vector<128x32xf32>
    %162 = math.exp %161 : vector<128x32xf32>
    %cst_73 = arith.constant 1.000000e+00 : f32
    %163 = vector.broadcast %cst_73 : f32 to vector<128x32xf32>
    %164 = arith.addf %163, %162 : vector<128x32xf32>
    %165 = tpu.reciprocal %164 {approx = true} : vector<128x32xf32> -> vector<128x32xf32>
    %166 = arith.mulf %159, %165 : vector<128x32xf32>
    %c464 = arith.constant 464 : index
    %c0_74 = arith.constant 0 : index
    %167 = vector.load %arg7[%c464, %c0_74] : memref<1096x128xf32, #tpu.memory_space<vmem>>, vector<32x32xf32>
    %cst_75 = arith.constant dense<0.000000e+00> : vector<128x32xf32>
    %168 = tpu.matmul %166, %167, %cst_75 {dimension_numbers = #tpu.dot_dimension_numbers<[1], [0], [0], [1], [0, 0, 1, 1], [], []>} : vector<128x32xf32>, vector<32x32xf32>, vector<128x32xf32> -> vector<128x32xf32>
    %c496 = arith.constant 496 : index
    %c0_76 = arith.constant 0 : index
    %169 = vector.load %arg7[%c496, %c0_76] : memref<1096x128xf32, #tpu.memory_space<vmem>>, vector<1x32xf32>
    %170 = vector.broadcast %169 : vector<1x32xf32> to vector<128x32xf32>
    %171 = arith.addf %168, %170 : vector<128x32xf32>
    %cst_77 = arith.constant 0.000000e+00 : f32
    %172 = vector.broadcast %cst_77 : f32 to vector<128x32xf32>
    %173 = arith.subf %172, %171 : vector<128x32xf32>
    %174 = math.exp %173 : vector<128x32xf32>
    %cst_78 = arith.constant 1.000000e+00 : f32
    %175 = vector.broadcast %cst_78 : f32 to vector<128x32xf32>
    %176 = arith.addf %175, %174 : vector<128x32xf32>
    %177 = tpu.reciprocal %176 {approx = true} : vector<128x32xf32> -> vector<128x32xf32>
    %178 = arith.mulf %171, %177 : vector<128x32xf32>
    %c504 = arith.constant 504 : index
    %c0_79 = arith.constant 0 : index
    %179 = vector.load %arg7[%c504, %c0_79] : memref<1096x128xf32, #tpu.memory_space<vmem>>, vector<32x1xf32>
    %cst_80 = arith.constant dense<0.000000e+00> : vector<128x1xf32>
    %180 = tpu.matmul %178, %179, %cst_80 {dimension_numbers = #tpu.dot_dimension_numbers<[1], [0], [0], [1], [0, 0, 1, 1], [], []>} : vector<128x32xf32>, vector<32x1xf32>, vector<128x1xf32> -> vector<128x1xf32>
    %181 = vector.broadcast %180 : vector<128x1xf32> to vector<128x3xf32>
    %182 = arith.mulf %36, %181 : vector<128x3xf32>
    %183 = vector.broadcast %4 : vector<128x1xf32> to vector<128x3xf32>
    %184 = arith.mulf %182, %183 : vector<128x3xf32>
    %cst_81 = arith.constant dense<0.000000e+00> : vector<16x3xf32>
    %185 = tpu.matmul %1, %184, %cst_81 {dimension_numbers = #tpu.dot_dimension_numbers<[1], [0], [0], [1], [0, 0, 1, 1], [], []>} : vector<16x128xf32>, vector<128x3xf32>, vector<16x3xf32> -> vector<16x3xf32>
    %186 = arith.addf %8, %185 : vector<16x3xf32>
    %187 = vector.broadcast %3 : vector<16x1xf32> to vector<16x3xf32>
    %188 = arith.mulf %186, %187 : vector<16x3xf32>
    %189 = vector.broadcast %3 : vector<16x1xf32> to vector<16x32xf32>
    %190 = arith.mulf %147, %189 : vector<16x32xf32>
    %cst_82 = arith.constant 0.000000e+00 : f32
    %191 = vector.broadcast %cst_82 : f32 to vector<16x3xf32>
    %192 = arith.subf %191, %188 : vector<16x3xf32>
    %193 = tpu.concatenate %188, %192 in 0 : vector<16x3xf32>, vector<16x3xf32> -> vector<32x3xf32>
    %cst_83 = arith.constant dense<0.000000e+00> : vector<128x3xf32>
    %194 = tpu.matmul %0, %193, %cst_83 {dimension_numbers = #tpu.dot_dimension_numbers<[1], [0], [0], [1], [0, 0, 1, 1], [], []>} : vector<128x32xf32>, vector<32x3xf32>, vector<128x3xf32> -> vector<128x3xf32>
    %195 = arith.mulf %194, %194 : vector<128x3xf32>
    %cst_84 = arith.constant dense<0.000000e+00> : vector<128xf32>
    %196 = vector.multi_reduction <add>, %195, %cst_84 [1] : vector<128x3xf32> to vector<128xf32>
    %197 = vector.shape_cast %196 : vector<128xf32> to vector<128x1xf32>
    %cst_85 = arith.constant 9.99999993E-9 : f32
    %198 = vector.broadcast %cst_85 : f32 to vector<128x1xf32>
    %199 = arith.addf %197, %198 : vector<128x1xf32>
    %200 = math.sqrt %199 : vector<128x1xf32>
    %cst_86 = arith.constant 0.000000e+00 : f32
    %201 = vector.broadcast %cst_86 : f32 to vector<128x1xf32>
    %202 = arith.addf %200, %201 : vector<128x1xf32>
    %203 = tpu.reciprocal %202 {approx = true} : vector<128x1xf32> -> vector<128x1xf32>
    %204 = vector.broadcast %203 : vector<128x1xf32> to vector<128x3xf32>
    %205 = arith.mulf %194, %204 : vector<128x3xf32>
    %206 = tpu.concatenate %197, %16 in 1 : vector<128x1xf32>, vector<128x1xf32> -> vector<128x2xf32>
    %c536 = arith.constant 536 : index
    %c0_87 = arith.constant 0 : index
    %207 = vector.load %arg7[%c536, %c0_87] : memref<1096x128xf32, #tpu.memory_space<vmem>>, vector<32x64xf32>
    %cst_88 = arith.constant dense<0.000000e+00> : vector<16x64xf32>
    %208 = tpu.matmul %190, %207, %cst_88 {dimension_numbers = #tpu.dot_dimension_numbers<[1], [0], [0], [1], [0, 0, 1, 1], [], []>} : vector<16x32xf32>, vector<32x64xf32>, vector<16x64xf32> -> vector<16x64xf32>
    %209 = vector.extract_strided_slice %208 {offsets = [0, 0], sizes = [16, 32], strides = [1, 1]} : vector<16x64xf32> to vector<16x32xf32>
    %210 = vector.extract_strided_slice %208 {offsets = [0, 32], sizes = [16, 32], strides = [1, 1]} : vector<16x64xf32> to vector<16x32xf32>
    %211 = tpu.concatenate %209, %210 in 0 : vector<16x32xf32>, vector<16x32xf32> -> vector<32x32xf32>
    %cst_89 = arith.constant dense<0.000000e+00> : vector<128x32xf32>
    %212 = tpu.matmul %0, %211, %cst_89 {dimension_numbers = #tpu.dot_dimension_numbers<[1], [0], [0], [1], [0, 0, 1, 1], [], []>} : vector<128x32xf32>, vector<32x32xf32>, vector<128x32xf32> -> vector<128x32xf32>
    %c568 = arith.constant 568 : index
    %c0_90 = arith.constant 0 : index
    %213 = vector.load %arg7[%c568, %c0_90] : memref<1096x128xf32, #tpu.memory_space<vmem>>, vector<2x32xf32>
    %cst_91 = arith.constant dense<0.000000e+00> : vector<128x32xf32>
    %214 = tpu.matmul %206, %213, %cst_91 {dimension_numbers = #tpu.dot_dimension_numbers<[1], [0], [0], [1], [0, 0, 1, 1], [], []>} : vector<128x2xf32>, vector<2x32xf32>, vector<128x32xf32> -> vector<128x32xf32>
    %215 = arith.addf %212, %214 : vector<128x32xf32>
    %c576 = arith.constant 576 : index
    %c0_92 = arith.constant 0 : index
    %216 = vector.load %arg7[%c576, %c0_92] : memref<1096x128xf32, #tpu.memory_space<vmem>>, vector<1x32xf32>
    %217 = vector.broadcast %216 : vector<1x32xf32> to vector<128x32xf32>
    %218 = arith.addf %215, %217 : vector<128x32xf32>
    %cst_93 = arith.constant 0.000000e+00 : f32
    %219 = vector.broadcast %cst_93 : f32 to vector<128x32xf32>
    %220 = arith.subf %219, %218 : vector<128x32xf32>
    %221 = math.exp %220 : vector<128x32xf32>
    %cst_94 = arith.constant 1.000000e+00 : f32
    %222 = vector.broadcast %cst_94 : f32 to vector<128x32xf32>
    %223 = arith.addf %222, %221 : vector<128x32xf32>
    %224 = tpu.reciprocal %223 {approx = true} : vector<128x32xf32> -> vector<128x32xf32>
    %225 = arith.mulf %218, %224 : vector<128x32xf32>
    %c584 = arith.constant 584 : index
    %c0_95 = arith.constant 0 : index
    %226 = vector.load %arg7[%c584, %c0_95] : memref<1096x128xf32, #tpu.memory_space<vmem>>, vector<32x32xf32>
    %cst_96 = arith.constant dense<0.000000e+00> : vector<128x32xf32>
    %227 = tpu.matmul %225, %226, %cst_96 {dimension_numbers = #tpu.dot_dimension_numbers<[1], [0], [0], [1], [0, 0, 1, 1], [], []>} : vector<128x32xf32>, vector<32x32xf32>, vector<128x32xf32> -> vector<128x32xf32>
    %c616 = arith.constant 616 : index
    %c0_97 = arith.constant 0 : index
    %228 = vector.load %arg7[%c616, %c0_97] : memref<1096x128xf32, #tpu.memory_space<vmem>>, vector<1x32xf32>
    %229 = vector.broadcast %228 : vector<1x32xf32> to vector<128x32xf32>
    %230 = arith.addf %227, %229 : vector<128x32xf32>
    %cst_98 = arith.constant 0.000000e+00 : f32
    %231 = vector.broadcast %cst_98 : f32 to vector<128x32xf32>
    %232 = arith.subf %231, %230 : vector<128x32xf32>
    %233 = math.exp %232 : vector<128x32xf32>
    %cst_99 = arith.constant 1.000000e+00 : f32
    %234 = vector.broadcast %cst_99 : f32 to vector<128x32xf32>
    %235 = arith.addf %234, %233 : vector<128x32xf32>
    %236 = tpu.reciprocal %235 {approx = true} : vector<128x32xf32> -> vector<128x32xf32>
    %237 = arith.mulf %230, %236 : vector<128x32xf32>
    %238 = vector.broadcast %4 : vector<128x1xf32> to vector<128x32xf32>
    %239 = arith.mulf %237, %238 : vector<128x32xf32>
    %cst_100 = arith.constant dense<0.000000e+00> : vector<16x32xf32>
    %240 = tpu.matmul %1, %239, %cst_100 {dimension_numbers = #tpu.dot_dimension_numbers<[1], [0], [0], [1], [0, 0, 1, 1], [], []>} : vector<16x128xf32>, vector<128x32xf32>, vector<16x32xf32> -> vector<16x32xf32>
    %241 = tpu.concatenate %190, %240 in 1 : vector<16x32xf32>, vector<16x32xf32> -> vector<16x64xf32>
    %c624 = arith.constant 624 : index
    %c0_101 = arith.constant 0 : index
    %242 = vector.load %arg7[%c624, %c0_101] : memref<1096x128xf32, #tpu.memory_space<vmem>>, vector<64x32xf32>
    %cst_102 = arith.constant dense<0.000000e+00> : vector<16x32xf32>
    %243 = tpu.matmul %241, %242, %cst_102 {dimension_numbers = #tpu.dot_dimension_numbers<[1], [0], [0], [1], [0, 0, 1, 1], [], []>} : vector<16x64xf32>, vector<64x32xf32>, vector<16x32xf32> -> vector<16x32xf32>
    %c688 = arith.constant 688 : index
    %c0_103 = arith.constant 0 : index
    %244 = vector.load %arg7[%c688, %c0_103] : memref<1096x128xf32, #tpu.memory_space<vmem>>, vector<1x32xf32>
    %245 = vector.broadcast %244 : vector<1x32xf32> to vector<16x32xf32>
    %246 = arith.addf %243, %245 : vector<16x32xf32>
    %cst_104 = arith.constant 0.000000e+00 : f32
    %247 = vector.broadcast %cst_104 : f32 to vector<16x32xf32>
    %248 = arith.subf %247, %246 : vector<16x32xf32>
    %249 = math.exp %248 : vector<16x32xf32>
    %cst_105 = arith.constant 1.000000e+00 : f32
    %250 = vector.broadcast %cst_105 : f32 to vector<16x32xf32>
    %251 = arith.addf %250, %249 : vector<16x32xf32>
    %252 = tpu.reciprocal %251 {approx = true} : vector<16x32xf32> -> vector<16x32xf32>
    %253 = arith.mulf %246, %252 : vector<16x32xf32>
    %c696 = arith.constant 696 : index
    %c0_106 = arith.constant 0 : index
    %254 = vector.load %arg7[%c696, %c0_106] : memref<1096x128xf32, #tpu.memory_space<vmem>>, vector<32x32xf32>
    %cst_107 = arith.constant dense<0.000000e+00> : vector<16x32xf32>
    %255 = tpu.matmul %253, %254, %cst_107 {dimension_numbers = #tpu.dot_dimension_numbers<[1], [0], [0], [1], [0, 0, 1, 1], [], []>} : vector<16x32xf32>, vector<32x32xf32>, vector<16x32xf32> -> vector<16x32xf32>
    %c728 = arith.constant 728 : index
    %c0_108 = arith.constant 0 : index
    %256 = vector.load %arg7[%c728, %c0_108] : memref<1096x128xf32, #tpu.memory_space<vmem>>, vector<1x32xf32>
    %257 = vector.broadcast %256 : vector<1x32xf32> to vector<16x32xf32>
    %258 = arith.addf %255, %257 : vector<16x32xf32>
    %259 = arith.addf %190, %258 : vector<16x32xf32>
    %260 = vector.broadcast %3 : vector<16x1xf32> to vector<16x32xf32>
    %261 = arith.mulf %259, %260 : vector<16x32xf32>
    %c736 = arith.constant 736 : index
    %c0_109 = arith.constant 0 : index
    %262 = vector.load %arg7[%c736, %c0_109] : memref<1096x128xf32, #tpu.memory_space<vmem>>, vector<32x64xf32>
    %cst_110 = arith.constant dense<0.000000e+00> : vector<16x64xf32>
    %263 = tpu.matmul %261, %262, %cst_110 {dimension_numbers = #tpu.dot_dimension_numbers<[1], [0], [0], [1], [0, 0, 1, 1], [], []>} : vector<16x32xf32>, vector<32x64xf32>, vector<16x64xf32> -> vector<16x64xf32>
    %264 = vector.extract_strided_slice %263 {offsets = [0, 0], sizes = [16, 32], strides = [1, 1]} : vector<16x64xf32> to vector<16x32xf32>
    %265 = vector.extract_strided_slice %263 {offsets = [0, 32], sizes = [16, 32], strides = [1, 1]} : vector<16x64xf32> to vector<16x32xf32>
    %266 = tpu.concatenate %264, %265 in 0 : vector<16x32xf32>, vector<16x32xf32> -> vector<32x32xf32>
    %cst_111 = arith.constant dense<0.000000e+00> : vector<128x32xf32>
    %267 = tpu.matmul %0, %266, %cst_111 {dimension_numbers = #tpu.dot_dimension_numbers<[1], [0], [0], [1], [0, 0, 1, 1], [], []>} : vector<128x32xf32>, vector<32x32xf32>, vector<128x32xf32> -> vector<128x32xf32>
    %c768 = arith.constant 768 : index
    %c0_112 = arith.constant 0 : index
    %268 = vector.load %arg7[%c768, %c0_112] : memref<1096x128xf32, #tpu.memory_space<vmem>>, vector<2x32xf32>
    %cst_113 = arith.constant dense<0.000000e+00> : vector<128x32xf32>
    %269 = tpu.matmul %206, %268, %cst_113 {dimension_numbers = #tpu.dot_dimension_numbers<[1], [0], [0], [1], [0, 0, 1, 1], [], []>} : vector<128x2xf32>, vector<2x32xf32>, vector<128x32xf32> -> vector<128x32xf32>
    %270 = arith.addf %267, %269 : vector<128x32xf32>
    %c776 = arith.constant 776 : index
    %c0_114 = arith.constant 0 : index
    %271 = vector.load %arg7[%c776, %c0_114] : memref<1096x128xf32, #tpu.memory_space<vmem>>, vector<1x32xf32>
    %272 = vector.broadcast %271 : vector<1x32xf32> to vector<128x32xf32>
    %273 = arith.addf %270, %272 : vector<128x32xf32>
    %cst_115 = arith.constant 0.000000e+00 : f32
    %274 = vector.broadcast %cst_115 : f32 to vector<128x32xf32>
    %275 = arith.subf %274, %273 : vector<128x32xf32>
    %276 = math.exp %275 : vector<128x32xf32>
    %cst_116 = arith.constant 1.000000e+00 : f32
    %277 = vector.broadcast %cst_116 : f32 to vector<128x32xf32>
    %278 = arith.addf %277, %276 : vector<128x32xf32>
    %279 = tpu.reciprocal %278 {approx = true} : vector<128x32xf32> -> vector<128x32xf32>
    %280 = arith.mulf %273, %279 : vector<128x32xf32>
    %c784 = arith.constant 784 : index
    %c0_117 = arith.constant 0 : index
    %281 = vector.load %arg7[%c784, %c0_117] : memref<1096x128xf32, #tpu.memory_space<vmem>>, vector<32x32xf32>
    %cst_118 = arith.constant dense<0.000000e+00> : vector<128x32xf32>
    %282 = tpu.matmul %280, %281, %cst_118 {dimension_numbers = #tpu.dot_dimension_numbers<[1], [0], [0], [1], [0, 0, 1, 1], [], []>} : vector<128x32xf32>, vector<32x32xf32>, vector<128x32xf32> -> vector<128x32xf32>
    %c816 = arith.constant 816 : index
    %c0_119 = arith.constant 0 : index
    %283 = vector.load %arg7[%c816, %c0_119] : memref<1096x128xf32, #tpu.memory_space<vmem>>, vector<1x32xf32>
    %284 = vector.broadcast %283 : vector<1x32xf32> to vector<128x32xf32>
    %285 = arith.addf %282, %284 : vector<128x32xf32>
    %cst_120 = arith.constant 0.000000e+00 : f32
    %286 = vector.broadcast %cst_120 : f32 to vector<128x32xf32>
    %287 = arith.subf %286, %285 : vector<128x32xf32>
    %288 = math.exp %287 : vector<128x32xf32>
    %cst_121 = arith.constant 1.000000e+00 : f32
    %289 = vector.broadcast %cst_121 : f32 to vector<128x32xf32>
    %290 = arith.addf %289, %288 : vector<128x32xf32>
    %291 = tpu.reciprocal %290 {approx = true} : vector<128x32xf32> -> vector<128x32xf32>
    %292 = arith.mulf %285, %291 : vector<128x32xf32>
    %293 = vector.broadcast %4 : vector<128x1xf32> to vector<128x32xf32>
    %294 = arith.mulf %292, %293 : vector<128x32xf32>
    %cst_122 = arith.constant dense<0.000000e+00> : vector<16x32xf32>
    %295 = tpu.matmul %1, %294, %cst_122 {dimension_numbers = #tpu.dot_dimension_numbers<[1], [0], [0], [1], [0, 0, 1, 1], [], []>} : vector<16x128xf32>, vector<128x32xf32>, vector<16x32xf32> -> vector<16x32xf32>
    %296 = tpu.concatenate %261, %295 in 1 : vector<16x32xf32>, vector<16x32xf32> -> vector<16x64xf32>
    %c824 = arith.constant 824 : index
    %c0_123 = arith.constant 0 : index
    %297 = vector.load %arg7[%c824, %c0_123] : memref<1096x128xf32, #tpu.memory_space<vmem>>, vector<64x32xf32>
    %cst_124 = arith.constant dense<0.000000e+00> : vector<16x32xf32>
    %298 = tpu.matmul %296, %297, %cst_124 {dimension_numbers = #tpu.dot_dimension_numbers<[1], [0], [0], [1], [0, 0, 1, 1], [], []>} : vector<16x64xf32>, vector<64x32xf32>, vector<16x32xf32> -> vector<16x32xf32>
    %c888 = arith.constant 888 : index
    %c0_125 = arith.constant 0 : index
    %299 = vector.load %arg7[%c888, %c0_125] : memref<1096x128xf32, #tpu.memory_space<vmem>>, vector<1x32xf32>
    %300 = vector.broadcast %299 : vector<1x32xf32> to vector<16x32xf32>
    %301 = arith.addf %298, %300 : vector<16x32xf32>
    %cst_126 = arith.constant 0.000000e+00 : f32
    %302 = vector.broadcast %cst_126 : f32 to vector<16x32xf32>
    %303 = arith.subf %302, %301 : vector<16x32xf32>
    %304 = math.exp %303 : vector<16x32xf32>
    %cst_127 = arith.constant 1.000000e+00 : f32
    %305 = vector.broadcast %cst_127 : f32 to vector<16x32xf32>
    %306 = arith.addf %305, %304 : vector<16x32xf32>
    %307 = tpu.reciprocal %306 {approx = true} : vector<16x32xf32> -> vector<16x32xf32>
    %308 = arith.mulf %301, %307 : vector<16x32xf32>
    %c896 = arith.constant 896 : index
    %c0_128 = arith.constant 0 : index
    %309 = vector.load %arg7[%c896, %c0_128] : memref<1096x128xf32, #tpu.memory_space<vmem>>, vector<32x32xf32>
    %cst_129 = arith.constant dense<0.000000e+00> : vector<16x32xf32>
    %310 = tpu.matmul %308, %309, %cst_129 {dimension_numbers = #tpu.dot_dimension_numbers<[1], [0], [0], [1], [0, 0, 1, 1], [], []>} : vector<16x32xf32>, vector<32x32xf32>, vector<16x32xf32> -> vector<16x32xf32>
    %c928 = arith.constant 928 : index
    %c0_130 = arith.constant 0 : index
    %311 = vector.load %arg7[%c928, %c0_130] : memref<1096x128xf32, #tpu.memory_space<vmem>>, vector<1x32xf32>
    %312 = vector.broadcast %311 : vector<1x32xf32> to vector<16x32xf32>
    %313 = arith.addf %310, %312 : vector<16x32xf32>
    %314 = arith.addf %261, %313 : vector<16x32xf32>
    %315 = vector.broadcast %3 : vector<16x1xf32> to vector<16x32xf32>
    %316 = arith.mulf %314, %315 : vector<16x32xf32>
    %c936 = arith.constant 936 : index
    %c0_131 = arith.constant 0 : index
    %317 = vector.load %arg7[%c936, %c0_131] : memref<1096x128xf32, #tpu.memory_space<vmem>>, vector<32x64xf32>
    %cst_132 = arith.constant dense<0.000000e+00> : vector<16x64xf32>
    %318 = tpu.matmul %316, %317, %cst_132 {dimension_numbers = #tpu.dot_dimension_numbers<[1], [0], [0], [1], [0, 0, 1, 1], [], []>} : vector<16x32xf32>, vector<32x64xf32>, vector<16x64xf32> -> vector<16x64xf32>
    %319 = vector.extract_strided_slice %318 {offsets = [0, 0], sizes = [16, 32], strides = [1, 1]} : vector<16x64xf32> to vector<16x32xf32>
    %320 = vector.extract_strided_slice %318 {offsets = [0, 32], sizes = [16, 32], strides = [1, 1]} : vector<16x64xf32> to vector<16x32xf32>
    %321 = tpu.concatenate %319, %320 in 0 : vector<16x32xf32>, vector<16x32xf32> -> vector<32x32xf32>
    %cst_133 = arith.constant dense<0.000000e+00> : vector<128x32xf32>
    %322 = tpu.matmul %0, %321, %cst_133 {dimension_numbers = #tpu.dot_dimension_numbers<[1], [0], [0], [1], [0, 0, 1, 1], [], []>} : vector<128x32xf32>, vector<32x32xf32>, vector<128x32xf32> -> vector<128x32xf32>
    %c968 = arith.constant 968 : index
    %c0_134 = arith.constant 0 : index
    %323 = vector.load %arg7[%c968, %c0_134] : memref<1096x128xf32, #tpu.memory_space<vmem>>, vector<2x32xf32>
    %cst_135 = arith.constant dense<0.000000e+00> : vector<128x32xf32>
    %324 = tpu.matmul %206, %323, %cst_135 {dimension_numbers = #tpu.dot_dimension_numbers<[1], [0], [0], [1], [0, 0, 1, 1], [], []>} : vector<128x2xf32>, vector<2x32xf32>, vector<128x32xf32> -> vector<128x32xf32>
    %325 = arith.addf %322, %324 : vector<128x32xf32>
    %c976 = arith.constant 976 : index
    %c0_136 = arith.constant 0 : index
    %326 = vector.load %arg7[%c976, %c0_136] : memref<1096x128xf32, #tpu.memory_space<vmem>>, vector<1x32xf32>
    %327 = vector.broadcast %326 : vector<1x32xf32> to vector<128x32xf32>
    %328 = arith.addf %325, %327 : vector<128x32xf32>
    %cst_137 = arith.constant 0.000000e+00 : f32
    %329 = vector.broadcast %cst_137 : f32 to vector<128x32xf32>
    %330 = arith.subf %329, %328 : vector<128x32xf32>
    %331 = math.exp %330 : vector<128x32xf32>
    %cst_138 = arith.constant 1.000000e+00 : f32
    %332 = vector.broadcast %cst_138 : f32 to vector<128x32xf32>
    %333 = arith.addf %332, %331 : vector<128x32xf32>
    %334 = tpu.reciprocal %333 {approx = true} : vector<128x32xf32> -> vector<128x32xf32>
    %335 = arith.mulf %328, %334 : vector<128x32xf32>
    %c984 = arith.constant 984 : index
    %c0_139 = arith.constant 0 : index
    %336 = vector.load %arg7[%c984, %c0_139] : memref<1096x128xf32, #tpu.memory_space<vmem>>, vector<32x32xf32>
    %cst_140 = arith.constant dense<0.000000e+00> : vector<128x32xf32>
    %337 = tpu.matmul %335, %336, %cst_140 {dimension_numbers = #tpu.dot_dimension_numbers<[1], [0], [0], [1], [0, 0, 1, 1], [], []>} : vector<128x32xf32>, vector<32x32xf32>, vector<128x32xf32> -> vector<128x32xf32>
    %c1016 = arith.constant 1016 : index
    %c0_141 = arith.constant 0 : index
    %338 = vector.load %arg7[%c1016, %c0_141] : memref<1096x128xf32, #tpu.memory_space<vmem>>, vector<1x32xf32>
    %339 = vector.broadcast %338 : vector<1x32xf32> to vector<128x32xf32>
    %340 = arith.addf %337, %339 : vector<128x32xf32>
    %cst_142 = arith.constant 0.000000e+00 : f32
    %341 = vector.broadcast %cst_142 : f32 to vector<128x32xf32>
    %342 = arith.subf %341, %340 : vector<128x32xf32>
    %343 = math.exp %342 : vector<128x32xf32>
    %cst_143 = arith.constant 1.000000e+00 : f32
    %344 = vector.broadcast %cst_143 : f32 to vector<128x32xf32>
    %345 = arith.addf %344, %343 : vector<128x32xf32>
    %346 = tpu.reciprocal %345 {approx = true} : vector<128x32xf32> -> vector<128x32xf32>
    %347 = arith.mulf %340, %346 : vector<128x32xf32>
    %c1024 = arith.constant 1024 : index
    %c0_144 = arith.constant 0 : index
    %348 = vector.load %arg7[%c1024, %c0_144] : memref<1096x128xf32, #tpu.memory_space<vmem>>, vector<32x1xf32>
    %cst_145 = arith.constant dense<0.000000e+00> : vector<128x1xf32>
    %349 = tpu.matmul %347, %348, %cst_145 {dimension_numbers = #tpu.dot_dimension_numbers<[1], [0], [0], [1], [0, 0, 1, 1], [], []>} : vector<128x32xf32>, vector<32x1xf32>, vector<128x1xf32> -> vector<128x1xf32>
    %350 = vector.broadcast %349 : vector<128x1xf32> to vector<128x3xf32>
    %351 = arith.mulf %205, %350 : vector<128x3xf32>
    %352 = vector.broadcast %4 : vector<128x1xf32> to vector<128x3xf32>
    %353 = arith.mulf %351, %352 : vector<128x3xf32>
    %cst_146 = arith.constant dense<0.000000e+00> : vector<16x3xf32>
    %354 = tpu.matmul %1, %353, %cst_146 {dimension_numbers = #tpu.dot_dimension_numbers<[1], [0], [0], [1], [0, 0, 1, 1], [], []>} : vector<16x128xf32>, vector<128x3xf32>, vector<16x3xf32> -> vector<16x3xf32>
    %355 = arith.addf %188, %354 : vector<16x3xf32>
    %356 = vector.broadcast %3 : vector<16x1xf32> to vector<16x3xf32>
    %357 = arith.mulf %355, %356 : vector<16x3xf32>
    %358 = vector.broadcast %3 : vector<16x1xf32> to vector<16x32xf32>
    %359 = arith.mulf %316, %358 : vector<16x32xf32>
    %c1056 = arith.constant 1056 : index
    %c0_147 = arith.constant 0 : index
    %360 = vector.load %arg7[%c1056, %c0_147] : memref<1096x128xf32, #tpu.memory_space<vmem>>, vector<32x6xf32>
    %cst_148 = arith.constant dense<0.000000e+00> : vector<16x6xf32>
    %361 = tpu.matmul %359, %360, %cst_148 {dimension_numbers = #tpu.dot_dimension_numbers<[1], [0], [0], [1], [0, 0, 1, 1], [], []>} : vector<16x32xf32>, vector<32x6xf32>, vector<16x6xf32> -> vector<16x6xf32>
    %c1088 = arith.constant 1088 : index
    %c0_149 = arith.constant 0 : index
    %362 = vector.load %arg7[%c1088, %c0_149] : memref<1096x128xf32, #tpu.memory_space<vmem>>, vector<1x6xf32>
    %363 = vector.broadcast %362 : vector<1x6xf32> to vector<16x6xf32>
    %364 = arith.addf %361, %363 : vector<16x6xf32>
    %365 = vector.broadcast %3 : vector<16x1xf32> to vector<16x6xf32>
    %366 = arith.mulf %364, %365 : vector<16x6xf32>
    %367 = vector.broadcast %3 : vector<16x1xf32> to vector<16x3xf32>
    %368 = arith.mulf %357, %367 : vector<16x3xf32>
    %cst_150 = arith.constant dense<0.000000e+00> : vector<16x1xf32>
    %369 = tpu.matmul %2, %3, %cst_150 {dimension_numbers = #tpu.dot_dimension_numbers<[1], [0], [0], [1], [0, 0, 1, 1], [], []>} : vector<16x16xf32>, vector<16x1xf32>, vector<16x1xf32> -> vector<16x1xf32>
    %cst_151 = arith.constant 1.000000e+00 : f32
    %370 = vector.broadcast %cst_151 : f32 to vector<16x1xf32>
    %371 = arith.maximumf %369, %370 : vector<16x1xf32>
    %cst_152 = arith.constant dense<0.000000e+00> : vector<16x3xf32>
    %372 = tpu.matmul %2, %368, %cst_152 {dimension_numbers = #tpu.dot_dimension_numbers<[1], [0], [0], [1], [0, 0, 1, 1], [], []>} : vector<16x16xf32>, vector<16x3xf32>, vector<16x3xf32> -> vector<16x3xf32>
    %373 = tpu.reciprocal %371 {approx = true} : vector<16x1xf32> -> vector<16x1xf32>
    %374 = vector.broadcast %373 : vector<16x1xf32> to vector<16x3xf32>
    %375 = arith.mulf %372, %374 : vector<16x3xf32>
    %376 = vector.broadcast %3 : vector<16x1xf32> to vector<16x3xf32>
    %377 = arith.mulf %375, %376 : vector<16x3xf32>
    %378 = arith.subf %368, %377 : vector<16x3xf32>
    %379 = tpu.concatenate %378, %366 in 1 : vector<16x3xf32>, vector<16x6xf32> -> vector<16x9xf32>
    %c0_153 = arith.constant 0 : index
    %c0_154 = arith.constant 0 : index
    %380 = vector.load %arg8[%c0_153, %c0_154] : memref<16x9xf32, #tpu.memory_space<vmem>>, vector<16x9xf32>
    tpu.vector_store %arg8[%c0_153, %c0_154], %379 {strides = array<i32>} : memref<16x9xf32, #tpu.memory_space<vmem>>, vector<16x9xf32>,
    return
  }
  func.func @transform_0(%arg0: i32) -> (i32, i32) {
    %c0_i32 = arith.constant 0 : i32
    %c0_i32_0 = arith.constant 0 : i32
    return %arg0, %c0_i32 : i32, i32
  }
  func.func @transform_1(%arg0: i32) -> (i32, i32) {
    %c0_i32 = arith.constant 0 : i32
    %c0_i32_0 = arith.constant 0 : i32
    return %arg0, %c0_i32 : i32, i32
  }
  func.func @transform_2(%arg0: i32) -> (i32, i32) {
    %c0_i32 = arith.constant 0 : i32
    %c0_i32_0 = arith.constant 0 : i32
    return %arg0, %c0_i32 : i32, i32
  }
  func.func @transform_3(%arg0: i32) -> (i32, i32) {
    %c0_i32 = arith.constant 0 : i32
    %c0_i32_0 = arith.constant 0 : i32
    %c0_i32_1 = arith.constant 0 : i32
    return %c0_i32, %c0_i32_0 : i32, i32
  }
  func.func @transform_4(%arg0: i32) -> (i32, i32) {
    %c0_i32 = arith.constant 0 : i32
    %c0_i32_0 = arith.constant 0 : i32
    %c0_i32_1 = arith.constant 0 : i32
    return %c0_i32, %c0_i32_0 : i32, i32
  }
  func.func @transform_5(%arg0: i32) -> (i32, i32) {
    %c0_i32 = arith.constant 0 : i32
    %c0_i32_0 = arith.constant 0 : i32
    %c0_i32_1 = arith.constant 0 : i32
    return %c0_i32, %c0_i32_0 : i32, i32
  }
  func.func @transform_6(%arg0: i32) -> (i32, i32) {
    %c0_i32 = arith.constant 0 : i32
    %c0_i32_0 = arith.constant 0 : i32
    %c0_i32_1 = arith.constant 0 : i32
    return %c0_i32, %c0_i32_0 : i32, i32
  }
  func.func @transform_7(%arg0: i32) -> (i32, i32) {
    %c0_i32 = arith.constant 0 : i32
    %c0_i32_0 = arith.constant 0 : i32
    return %arg0, %c0_i32 : i32, i32
  }
}

</mosaic_0001>

<bundles_post_ra>
// kernel: tpu_custom_call.1
= control target key start
LH: loop header
LB: loop body
LE: loop exit
PB: predicated region body
PF: predicated region fallthrough
CT: control target
= control target key end

     0   :  { %12 = vsyncpa [#allocation3], 0  ;;  %s11991_s24 = smov 0   ;;  %s14842_s0 = inlined_call_operand.vmem [shape: f32[32,5], index: 0, kind: input, shape index: {}]   ;;  %s14843_s1 = inlined_call_operand.vmem [shape: f32[32,1], index: 1, kind: input, shape index: {}]   ;;  %s14844_s2 = inlined_call_operand.vmem [shape: f32[256,1], index: 2, kind: input, shape index: {}]   ;;  %s14845_s3 = inlined_call_operand.vmem [shape: f32[128,32], index: 3, kind: input, shape index: {}]   ;;  %s14846_s4 = inlined_call_operand.vmem [shape: f32[16,128], index: 4, kind: input, shape index: {}]   ;;  %s14847_s5 = inlined_call_operand.vmem [shape: f32[16,16], index: 5, kind: input, shape index: {}]   ;;  %s14848_s6 = inlined_call_operand.hbm [shape: f32[1096,128], index: 6, kind: input, shape index: {}]   ;;  %s14849_s7 = inlined_call_operand.vmem [shape: f32[32,9], index: 7, kind: output, shape index: {}]  }
   0x1 LB: > { %s11997_s25 = sadd.s32 4294967295, %s11941_s24   ;;  %p8681_p0 = scmp.ge.s32.totalorder %s11941_s24, 1  ;;  %s11941_s24 = sphi %s11991_s24, %s18_s24  }
   0x2   : > { %p211_p1 = scmp.lt.s32.totalorder %s11941_s24, 3  ;;  %s11943_s26 = smov [#allocation2]  }
   0x3   : > { %s232_s27 = sshll.u32 %s11943_s26, 4  ;;  %p10862_p3 = scmp.eq.s32.totalorder %s11997_s25, 0  ;;  %s233_s27 = int_to_ptr.vmem [resolvable:$true] %s232_s27 }
   0x4   : > { %p12001_p2 = pnand %p8681_p0, %p211_p1  ;;  %s11916_s29 = scalar_lea.vmem %s233_s27, 17536 }
   0x5   : > { %p11917_p7 = scmp.ne.s32.totalorder %s233_s27, %s11916_s29  ;;  %p11924_p10 = scmp.lt.s32.totalorder %s233_s27, %s233_s27 }
   0x6   : > { %p10858_p4 = pneg %p12001_p2  ;;  %p11925_p11 = scmp.lt.s32.totalorder %s11916_s29, %s11916_s29 }
   0x8   : > { %p10859_p5 = pnand %p10862_p3, %p10858_p4  ;;  %p11926_p12 = por %p11925_p11, %p11924_p10 }
   0xa   : > { %p11907_p6 = pneg %p10859_p5 }
   0xc   : > { %p11919_p8 = pnand %p11917_p7, %p11907_p6 }
   0xe   : > { %p11920_p9 = pneg %p11919_p8 }
  0x10   : > { %p11927_p13 = pnand %p11926_p12, %p11920_p9 }
  0x12   : > { %11930 = shalt.err (!%p11927_p13)
}
  0x13   : > { %s11944_s30 = smov 128   ;;  %s11945_s8 = smov 8  }
  0x14   : > { %10861 = dma.hbm_to_vmem [thread:$0]  (!%p10859_p5), %s14848_s6, 17536, %s233_s27, [#allocation3], %s11944_s30, %s11944_s30, %s11945_s8  }
  0x15   : > { %275 = sbr.rel (%p12001_p2) target bundleno = 9902 (0x26ae), region = 48 }
  0x1a   : > { %11936 = dma.done.wait (%p10862_p3), [#allocation3], 17536  }
  0x1b   : > { %11938 = vsyncadd (%p10862_p3), [#allocation3], 4294949760  ;;  %s8686_s11 = sshll.u32 %s11997_s25, 1  ;;  %v11946_v0 = vmov 0   ;;  %v12033_v3 = vld [vmem:[%s14845_s3] sm:$0xff]  ;;  %vm395_vm0 = vcmask 261120  }
  0x1c   : > { %10880 = vset.pattern.permute.xlu0 %v11946_v0  ;;  %p318_p0 = scmp.lt.s32.totalorder %s8686_s11, 3  ;;  %10881 = vset.pattern.permute.xlu1 %v11946_v0  ;;  %v654_v4 = vld [vmem:[#allocation2] sm:$0x3]  ;;  %vm671_vm1 = vcmask 1041408   ;;  %s11947_s21 = smov 125   ;;  %v12062_v13 = vld [vmem:[%s14845_s3 + $0x8] sm:$0xff] }
  0x1d   : > { %9768 = vmatprep.mubr.msk.f32.mxu0 %vm395_vm0, %v12033_v3  ;;  %9792 = vmatprep.subr.msk.mxu1 %vm671_vm1, %v654_v4  ;;  %v12068_v14 = vld [vmem:[%s14845_s3 + $0x10] sm:$0xff]  ;;  %v12078_v15 = vld [vmem:[%s14845_s3 + $0x18] sm:$0xff]  ;;  %v12083_v16 = vld [vmem:[%s14845_s3 + $0x20] sm:$0xff]  ;;  %vm666_vm2 = vcmask 15360   ;;  %vm605_vm3 = vcmask 23552   ;;  %s11948_s13 = smov 96  }
  0x1e   : > { %s15094_s11 = smov (!%p318_p0, %s8686_s11), 3  ;;  %9793 = vmatpush3.msk.msra.mxu1 %vm671_vm1, %v654_v4  ;;  %v12092_v17 = vld [vmem:[%s14845_s3 + $0x28] sm:$0xff]  ;;  %v12097_v18 = vld [vmem:[%s14845_s3 + $0x30] sm:$0xff]  ;;  %v12106_v19 = vld [vmem:[%s14845_s3 + $0x38] sm:$0xff]  ;;  %s8690_s14 = sshll.u32 %s11997_s25, 4  ;;  %vm1970_vm4 = vcmask 523264  }
  0x1f   : > { %s12020_s12 = sshll.u32 %s15094_s11, 3  ;;  %v12111_v20 = vld [vmem:[%s14845_s3 + $0x40] sm:$0xff]  ;;  %v12120_v21 = vld [vmem:[%s14845_s3 + $0x48] sm:$0xff]  ;;  %v12125_v22 = vld [vmem:[%s14845_s3 + $0x50] sm:$0xff]  ;;  %p330_p1 = scmp.lt.s32.totalorder %s8690_s14, 31 }
  0x20   : > { %s12026_s15 = scalar_lea.vmem %s14843_s1, %s12020_s12  ;;  %s321_s20 = scalar_lea.vmem %s14842_s0, %s12020_s12  ;;  %v12134_v23 = vld [vmem:[%s14845_s3 + $0x58] sm:$0xff]  ;;  %v12139_v24 = vld [vmem:[%s14845_s3 + $0x60] sm:$0xff]  ;;  %v12148_v25 = vld [vmem:[%s14845_s3 + $0x68] sm:$0xff] }
  0x21   : > { %v361_v1 = vld [vmem:[%s12026_s15] sm:$0xff]  ;;  %v362_v2 = vld [vmem:[%s12026_s15 + $0x8] sm:$0xff]  ;;  %v927_v30 = vld [vmem:[#allocation2 + $0x18] sm:$0xff]  ;;  %s15096_s14 = smov (!%p330_p1, %s8690_s14), 31  ;;  %s11949_s23 = smov 32  }
  0x22   : > { %383 = vperm.xlu0 %10880, %v361_v1   ;;  %v379_v5 = vld [vmem:[%s321_s20] sm:$0xff]  ;;  %v380_v8 = vld [vmem:[%s321_s20 + $0x8] sm:$0xff]  ;;  %v926_v31 = vld [vmem:[#allocation2 + $0x10] sm:$0xff]  ;;  %s8691_s16 = sshll.u32 %s15096_s14, 3  ;;  %s339_s22 = scalar_lea.vmem %s14849_s7, %s12020_s12 }
  0x23   : > { %v929_v26 = vld [vmem:[#allocation2 + $0x28] sm:$0xff]  ;;  %v928_v29 = vld [vmem:[#allocation2 + $0x20] sm:$0xff]  ;;  %v12157_v32 = vld [vmem:[%s14845_s3 + $0x70] sm:$0xff]  ;;  %s12306_s19 = scalar_lea.vmem %s14844_s2, %s8691_s16 }
  0x24   : > { %9797 = vmatprep.subr.mxu1 %v929_v26  ;;  %v12162_v33 = vld [vmem:[%s14845_s3 + $0x78] sm:$0xff] }
  0x26   : > { %388 = vperm.xlu0 %10880, %v362_v2  }
  0x9d   : > { %v12043_v6 = vpop.permute.xlu0 %383 }
  0x9e   : > { %14940 = vst [vmem:[#allocation5_spill] sm:$0xff] %v12043_v6  ;;  %v12046_v7 = vmul.f32 %v12043_v6, %v379_v5 }
  0xa0   : > { %14941 = vst [vmem:[#allocation6_spill] sm:$0xff] %v12046_v7  ;;  %662 = vrot.lane.b32.xlu1 %v12046_v7, %s11947_s21  ;;  %v393_v12 = vsub.f32 0.0, %v12046_v7 }
  0xa1   : > { %v12049_v9 = vpop.permute.xlu0 %388 }
  0xa2   : > { %14942 = vst [vmem:[#allocation7_spill] sm:$0xff] %v12049_v9  ;;  %v12052_v10 = vmul.f32 %v12049_v9, %v380_v8 }
  0xa4   : > { %14943 = vst [vmem:[#allocation8_spill] sm:$0xff] %v12052_v10  ;;  %664 = vrot.lane.b32.xlu1 %v12052_v10, %s11947_s21  ;;  %v394_v11 = vsub.f32 0.0, %v12052_v10 }
  0xa6   : > { %9760 = vmatprep.subr.mxu0 %v394_v11 }
  0xa7   : > { %9761 = vmatpush3.msra.mxu0 %v394_v11 }
  0xa8   : > { %9762 = vmatprep.subr.mxu0 %v393_v12 }
  0xa9   : > { %9763 = vmatpush3.msra.mxu0 %v393_v12  ;;  %v8710_v12 = vld [vmem:[#allocation2 + $0x8] ss:$0 sm:$0xff] }
  0xaa   : > { %9764 = vmatprep.subr.mxu0 %v12052_v10 }
  0xab   : > { %9765 = vmatpush3.msra.mxu0 %v12052_v10 }
  0xac   : > { %9766 = vmatprep.subr.mxu0 %v12046_v7 }
  0xad   : > { %9767 = vmatpush3.msra.mxu0 %v12046_v7 }
  0xae   : > { %9769 = vmatmul.mubr.msk.f32.vlgmr.msra.gmra.mxu0 %vm395_vm0, %v12062_v13 }
  0xaf   : > { %9771 = vmatprep.mubr.msk.f32.mxu0 %vm395_vm0, %v12068_v14 }
  0xb2   : > { %9772 = vmatmul.mubr.msk.f32.gmra.mxu0 %vm395_vm0, %v12078_v15 }
  0xb3   : > { %9774 = vmatprep.mubr.msk.f32.mxu0 %vm395_vm0, %v12083_v16 }
  0xb6   : > { %9775 = vmatmul.mubr.msk.f32.gmra.mxu0 %vm395_vm0, %v12092_v17 }
  0xb7   : > { %9777 = vmatprep.mubr.msk.f32.mxu0 %vm395_vm0, %v12097_v18 }
  0xba   : > { %9778 = vmatmul.mubr.msk.f32.gmra.mxu0 %vm395_vm0, %v12106_v19 }
  0xbb   : > { %9780 = vmatprep.mubr.msk.f32.mxu0 %vm395_vm0, %v12111_v20 }
  0xbe   : > { %9781 = vmatmul.mubr.msk.f32.gmra.mxu0 %vm395_vm0, %v12120_v21 }
  0xbf   : > { %9783 = vmatprep.mubr.msk.f32.mxu0 %vm395_vm0, %v12125_v22 }
  0xc2   : > { %9784 = vmatmul.mubr.msk.f32.gmra.mxu0 %vm395_vm0, %v12134_v23 }
  0xc3   : > { %9786 = vmatprep.mubr.msk.f32.mxu0 %vm395_vm0, %v12139_v24 }
  0xc6   : > { %9787 = vmatmul.mubr.msk.f32.gmra.mxu0 %vm395_vm0, %v12148_v25 }
  0xc7   : > { %9789 = vmatprep.mubr.msk.f32.mxu0 %vm395_vm0, %v12157_v32 }
  0xca   : > { %9790 = vmatmul.mubr.msk.f32.gmra.mxu0 %vm395_vm0, %v12162_v33 }
  0xcb   : > { %9842 = vmatprep.mubr.msk.f32.mxu0 %vm395_vm0, %v12033_v3 }
 0x112   : > { %v663_v27 = vpop.permute.xlu1 %662 }
 0x113   : > { %9794 = vmatprep.mubr.msk.f32.mxu1 %vm666_vm2, %v663_v27 }
 0x116   : > { %v665_v28 = vpop.permute.xlu1 %664 }
 0x117   : > { %9795 = vmatmul.mubr.msk.f32.vlgmr.msra.gmra.mxu1 %vm666_vm2, %v665_v28 }
 0x118   : > { %9798 = vmatpush3.msra.mxu1 %v929_v26 }
 0x119   : > { %9799 = vmatprep.subr.mxu1 %v928_v29 }
 0x11a   : > { %9800 = vmatpush3.msra.mxu1 %v928_v29 }
 0x11b   : > { %9801 = vmatprep.subr.mxu1 %v927_v30 }
 0x11c   : > { %9802 = vmatpush3.msra.mxu1 %v927_v30 }
 0x11d   : > { %9803 = vmatprep.subr.mxu1 %v926_v31 }
 0x11e   : > { %9804 = vmatpush3.msra.mxu1 %v926_v31 }
 0x16e   : > { %v12170_v34 = vpop.f32.mrf.mxu0 }
 0x16f   : > { %14944 = vst [vmem:[#allocation9_spill] sm:$0xff] %v12170_v34  ;;  %v590_v35 = vmul.f32 %v12170_v34, %v12170_v34 }
 0x170   : > { %v12174_v36 = vpop.f32.mrf.mxu0 }
 0x171   : > { %14945 = vst [vmem:[#allocation10_spill] sm:$0xff] %v12174_v36  ;;  %v589_v37 = vmul.f32 %v12174_v36, %v12174_v36  ;;  %v609_v38 = vsel %vm605_vm3, %v590_v35, 0.0 }
 0x172   : > { %v12179_v39 = vpop.f32.mrf.mxu0  ;;  %610 = vadd.xlane.f32.xlu1 %v609_v38 }
 0x173   : > { %14946 = vst [vmem:[#allocation11_spill] sm:$0xff] %v12179_v39  ;;  %v606_v40 = vsel %vm605_vm3, %v589_v37, 0.0  ;;  %v592_v41 = vmul.f32 %v12179_v39, %v12179_v39  ;;  %v1019_v37 = vld [vmem:[#allocation2 + $0x30] sm:$0x3] }
 0x174   : > { %607 = vadd.xlane.f32.xlu0 %v606_v40  ;;  %v12184_v42 = vpop.f32.mrf.mxu0  ;;  %9808 = vmatprep.subr.msk.mxu1 %vm671_vm1, %v1019_v37 }
 0x175   : > { %14947 = vst [vmem:[#allocation12_spill] sm:$0xff] %v12184_v42  ;;  %v615_v43 = vsel %vm605_vm3, %v592_v41, 0.0  ;;  %v591_v44 = vmul.f32 %v12184_v42, %v12184_v42 }
 0x176   : > { %v12189_v45 = vpop.f32.mrf.mxu0 }
 0x177   : > { %14948 = vst [vmem:[#allocation13_spill] sm:$0xff] %v12189_v45  ;;  %v594_v47 = vmul.f32 %v12189_v45, %v12189_v45  ;;  %v612_v48 = vsel %vm605_vm3, %v591_v44, 0.0 }
 0x178   : > { %616 = vadd.xlane.f32.xlu0 %v615_v43  ;;  %v12191_v46 = vpop.f32.mrf.mxu0 }
 0x179   : > { %14949 = vst [vmem:[#allocation14_spill] sm:$0xff] %v12191_v46  ;;  %v593_v49 = vmul.f32 %v12191_v46, %v12191_v46  ;;  %v621_v54 = vsel %vm605_vm3, %v594_v47, 0.0 }
 0x17a   : > { %v12198_v50 = vpop.f32.mrf.mxu0 }
 0x17b   : > { %14950 = vst [vmem:[#allocation15_spill] sm:$0xff] %v12198_v50  ;;  %v618_v51 = vsel %vm605_vm3, %v593_v49, 0.0  ;;  %v596_v53 = vmul.f32 %v12198_v50, %v12198_v50 }
 0x17c   : > { %613 = vadd.xlane.f32.xlu0 %v612_v48  ;;  %619 = vadd.xlane.f32.xlu1 %v618_v51  ;;  %v12201_v52 = vpop.f32.mrf.mxu0 }
 0x17d   : > { %14951 = vst [vmem:[#allocation16_spill] sm:$0xff] %v12201_v52  ;;  %v595_v55 = vmul.f32 %v12201_v52, %v12201_v52  ;;  %v627_v60 = vsel %vm605_vm3, %v596_v53, 0.0 }
 0x17e   : > { %v12208_v56 = vpop.f32.mrf.mxu0 }
 0x17f   : > { %14952 = vst [vmem:[#allocation17_spill] sm:$0xff] %v12208_v56  ;;  %v624_v57 = vsel %vm605_vm3, %v595_v55, 0.0  ;;  %v598_v59 = vmul.f32 %v12208_v56, %v12208_v56 }
 0x180   : > { %622 = vadd.xlane.f32.xlu0 %v621_v54  ;;  %625 = vadd.xlane.f32.xlu1 %v624_v57  ;;  %v12211_v58 = vpop.f32.mrf.mxu0 }
 0x181   : > { %14953 = vst [vmem:[#allocation18_spill] sm:$0xff] %v12211_v58  ;;  %v597_v61 = vmul.f32 %v12211_v58, %v12211_v58  ;;  %v633_v1 = vsel %vm605_vm3, %v598_v59, 0.0 }
 0x182   : > { %v12218_v62 = vpop.f32.mrf.mxu0 }
 0x183   : > { %14954 = vst [vmem:[#allocation19_spill] sm:$0xff] %v12218_v62  ;;  %v630_v63 = vsel %vm605_vm3, %v597_v61, 0.0  ;;  %v600_v2 = vmul.f32 %v12218_v62, %v12218_v62 }
 0x184   : > { %628 = vadd.xlane.f32.xlu0 %v627_v60  ;;  %631 = vadd.xlane.f32.xlu1 %v630_v63  ;;  %v12221_v0 = vpop.f32.mrf.mxu0 }
 0x185   : > { %14955 = vst [vmem:[#allocation20_spill] sm:$0xff] %v12221_v0  ;;  %v639_v4 = vsel %vm605_vm3, %v600_v2, 0.0  ;;  %v599_v57 = vmul.f32 %v12221_v0, %v12221_v0 }
 0x186   : > { %v12226_v3 = vpop.f32.mrf.mxu0 }
 0x187   : > { %14956 = vst [vmem:[#allocation21_spill] sm:$0xff] %v12226_v3  ;;  %v602_v5 = vmul.f32 %v12226_v3, %v12226_v3  ;;  %v636_v59 = vsel %vm605_vm3, %v599_v57, 0.0 }
 0x188   : > { %634 = vadd.xlane.f32.xlu0 %v633_v1  ;;  %v12284_v51 = vpop.f32.mrf.mxu0 }
 0x189   : > { %v645_v8 = vsel %vm605_vm3, %v602_v5, 0.0  ;;  %14957 = vst [vmem:[#allocation22_spill] sm:$0xff] %v12284_v51  ;;  %v601_v60 = vmul.f32 %v12284_v51, %v12284_v51  ;;  %v374_v5 = vld [vmem:[%s12306_s19 + $0x58] sm:$0xff] }
 0x18a   : > { %v12286_v53 = vpop.f32.mrf.mxu0 }
 0x18b   : > { %14958 = vst [vmem:[#allocation23_spill] sm:$0xff] %v12286_v53  ;;  %v604_v54 = vmul.f32 %v12286_v53, %v12286_v53  ;;  %v642_v63 = vsel %vm605_vm3, %v601_v60, 0.0 }
 0x18c   : > { %640 = vadd.xlane.f32.xlu0 %v639_v4  ;;  %v12297_v61 = vpop.f32.mrf.mxu0  ;;  %v377_v4 = vld [vmem:[%s12306_s19 + $0x70] sm:$0xff] }
 0x18d   : > { %v651_v55 = vsel %vm605_vm3, %v604_v54, 0.0  ;;  %14959 = vst [vmem:[#allocation24_spill] sm:$0xff] %v12297_v61  ;;  %v603_v1 = vmul.f32 %v12297_v61, %v12297_v61 }
 0x18f   : > { %v648_v2 = vsel %vm605_vm3, %v603_v1, 0.0 }
 0x190   : > { %646 = vadd.xlane.f32.xlu0 %v645_v8  ;;  %v372_v8 = vld [vmem:[%s12306_s19 + $0x48] sm:$0xff] }
 0x1d7   : > { %v9796_v11 = vpop.f32.mrf.mxu1 }
 0x1d8   : > { %v12234_v28 = vadd.f32 %v9796_v11, %v8710_v12  ;;  %v370_v11 = vld [vmem:[%s12306_s19 + $0x38] sm:$0xff] }
 0x1d9   : > { %v741_v26 = vpop.f32.mrf.mxu1 }
 0x1da   : > { %v12232_v27 = vadd.f32 %v8710_v12, %v741_v26  ;;  %v368_v12 = vld [vmem:[%s12306_s19 + $0x28] sm:$0xff]  ;;  %v366_v26 = vld [vmem:[%s12306_s19 + $0x18] sm:$0xff] }
 0x1dc   : > { %9805 = vmatprep.mubr.msk.f32.mxu1 %vm395_vm0, %v12232_v27 }
 0x1dd   : > { %9806 = vmatmul.mubr.msk.f32.vlgmr.msra.gmra.mxu1 %vm395_vm0, %v12234_v28 }
 0x1de   : > { %9809 = vmatpush3.msk.msra.mxu1 %vm671_vm1, %v1019_v37  ;;  %v364_v37 = vld [vmem:[%s12306_s19 + $0x8] sm:$0xff] }
 0x1fb   : > { %v12246_v31 = vpop.xlane.xlu1 %610 }
 0x1fd   : > { %v12240_v29 = vpop.xlane.xlu0 %607 }
 0x1fe   : > { %9810 = vmatprep.mubr.msk.f32.mxu1 %vm666_vm2, %v12240_v29 }
 0x1ff   : > { %9811 = vmatmul.mubr.msk.f32.vlgmr.msra.gmra.mxu1 %vm666_vm2, %v12246_v31 }
 0x201   : > { %v12244_v30 = vpop.xlane.xlu0 %616 }
 0x205   : > { %v12248_v35 = vpop.xlane.xlu0 %613  ;;  %v12252_v38 = vpop.xlane.xlu1 %619 }
 0x206   : > { %9813 = vmatprep.mubr.msk.f32.mxu1 %vm666_vm2, %v12248_v35 }
 0x207   : > { %9814 = vmatmul.mubr.msk.f32.gmra.mxu1 %vm666_vm2, %v12244_v30 }
 0x208   : > { %9816 = vmatprep.mubr.msk.f32.mxu1 %vm666_vm2, %v12252_v38 }
 0x209   : > { %v12258_v40 = vpop.xlane.xlu0 %622  ;;  %v12264_v41 = vpop.xlane.xlu1 %625 }
 0x20b   : > { %9817 = vmatmul.mubr.msk.f32.gmra.mxu1 %vm666_vm2, %v12258_v40 }
 0x20c   : > { %9819 = vmatprep.mubr.msk.f32.mxu1 %vm666_vm2, %v12264_v41 }
 0x20d   : > { %v12268_v43 = vpop.xlane.xlu0 %628  ;;  %v12272_v44 = vpop.xlane.xlu1 %631 }
 0x20f   : > { %9820 = vmatmul.mubr.msk.f32.gmra.mxu1 %vm666_vm2, %v12268_v43 }
 0x210   : > { %9822 = vmatprep.mubr.msk.f32.mxu1 %vm666_vm2, %v12272_v44 }
 0x211   : > { %v12278_v47 = vpop.xlane.xlu0 %634 }
 0x213   : > { %9823 = vmatmul.mubr.msk.f32.gmra.mxu1 %vm666_vm2, %v12278_v47 }
 0x215   : > { %v12315_v54 = vpop.xlane.xlu0 %640 }
 0x216   : > { %14960 = vst [vmem:[#allocation25_spill] sm:$0xff] %v12315_v54 }
 0x29d   : > { %v9807_v48 = vpop.f32.mrf.mxu1 }
 0x29e   : > { %1015 = vrot.lane.b32.xlu1 %v9807_v48, %s11948_s13 }
 0x29f   : > { %v1002_v49 = vpop.f32.mrf.mxu1 }
 0x2a0   : > { %1013 = vrot.lane.b32.xlu0 %v1002_v49, %s11948_s13 }
 0x2bf   : > { %652 = vadd.xlane.f32.xlu0 %v651_v55  ;;  %v12317_v55 = vpop.xlane.xlu0 %646 }
 0x2c0   : > { %14961 = vst [vmem:[#allocation26_spill] sm:$0xff] %v12317_v55 }
 0x2c2   : > { %637 = vadd.xlane.f32.xlu1 %v636_v59 }
 0x2c6   : > { %643 = vadd.xlane.f32.xlu1 %v642_v63  ;;  %v367_v63 = vld [vmem:[%s12306_s19 + $0x20] sm:$0xff] }
 0x2ca   : > { %649 = vadd.xlane.f32.xlu1 %v648_v2 }
 0x2d5   : > { %1848 = vperm.xlu0 %10880, %v377_v4   ;;  %v12376_v4 = vld [vmem:[#allocation2 + $0x38] ss:$0 sm:$0xff] }
 0x2d9   : > { %1833 = vperm.xlu0 %10880, %v374_v5  }
 0x2dd   : > { %1823 = vperm.xlu0 %10880, %v372_v8  }
 0x2e1   : > { %1813 = vperm.xlu0 %10880, %v370_v11   ;;  %v365_v11 = vld [vmem:[%s12306_s19 + $0x10] sm:$0xff] }
 0x2e5   : > { %1803 = vperm.xlu0 %10880, %v368_v12  }
 0x2e9   : > { %1793 = vperm.xlu0 %10880, %v366_v26  }
 0x2ed   : > { %1783 = vperm.xlu0 %10880, %v364_v37  }
 0x310   : > { %v1016_v57 = vpop.permute.xlu1 %1015 }
 0x311   : > { %9834 = vmatprep.subr.mxu0 %v1016_v57 }
 0x312   : > { %9835 = vmatpush3.msra.mxu0 %v1016_v57  ;;  %v1014_v59 = vpop.permute.xlu0 %1013 }
 0x313   : > { %9836 = vmatprep.subr.mxu0 %v1014_v59 }
 0x314   : > { %9837 = vmatpush3.msra.mxu0 %v1014_v59 }
 0x315   : > { %9838 = vmatprep.subr.mxu0 %v9807_v48 }
 0x316   : > { %9839 = vmatpush3.msra.mxu0 %v9807_v48 }
 0x317   : > { %9840 = vmatprep.subr.mxu0 %v1002_v49 }
 0x318   : > { %9841 = vmatpush3.msra.mxu0 %v1002_v49  ;;  %v369_v49 = vld [vmem:[%s12306_s19 + $0x30] sm:$0xff] }
 0x319   : > { %9843 = vmatmul.mubr.msk.f32.vlgmr.msra.gmra.mxu0 %vm395_vm0, %v12062_v13 }
 0x31a   : > { %9845 = vmatprep.mubr.msk.f32.mxu0 %vm395_vm0, %v12068_v14 }
 0x31d   : > { %9846 = vmatmul.mubr.msk.f32.gmra.mxu0 %vm395_vm0, %v12078_v15 }
 0x31e   : > { %9848 = vmatprep.mubr.msk.f32.mxu0 %vm395_vm0, %v12083_v16 }
 0x321   : > { %9849 = vmatmul.mubr.msk.f32.gmra.mxu0 %vm395_vm0, %v12092_v17  ;;  %v1481_v17 = vld [vmem:[#allocation2 + $0x58] sm:$0xff] }
 0x322   : > { %9851 = vmatprep.mubr.msk.f32.mxu0 %vm395_vm0, %v12097_v18  ;;  %9866 = vmatprep.subr.mxu1 %v1481_v17  ;;  %v1480_v18 = vld [vmem:[#allocation2 + $0x50] sm:$0xff] }
 0x323   : > { %9867 = vmatpush3.msra.mxu1 %v1481_v17 }
 0x324   : > { %9868 = vmatprep.subr.mxu1 %v1480_v18 }
 0x325   : > { %9852 = vmatmul.mubr.msk.f32.gmra.mxu0 %vm395_vm0, %v12106_v19  ;;  %9869 = vmatpush3.msra.mxu1 %v1480_v18  ;;  %v1479_v19 = vld [vmem:[#allocation2 + $0x48] sm:$0xff] }
 0x326   : > { %9854 = vmatprep.mubr.msk.f32.mxu0 %vm395_vm0, %v12111_v20  ;;  %9870 = vmatprep.subr.mxu1 %v1479_v19  ;;  %v1478_v20 = vld [vmem:[#allocation2 + $0x40] sm:$0xff] }
 0x327   : > { %9871 = vmatpush3.msra.mxu1 %v1479_v19 }
 0x328   : > { %9872 = vmatprep.subr.mxu1 %v1478_v20 }
 0x329   : > { %9855 = vmatmul.mubr.msk.f32.gmra.mxu0 %vm395_vm0, %v12120_v21  ;;  %9873 = vmatpush3.msra.mxu1 %v1478_v20  ;;  %v378_v21 = vld [vmem:[%s12306_s19 + $0x78] sm:$0xff]  ;;  %v363_v20 = vld [vmem:[%s12306_s19] sm:$0xff] }
 0x32a   : > { %9857 = vmatprep.mubr.msk.f32.mxu0 %vm395_vm0, %v12125_v22  ;;  %1853 = vperm.xlu1 %10881, %v378_v21   ;;  %v376_v22 = vld [vmem:[%s12306_s19 + $0x68] sm:$0xff] }
 0x32d   : > { %9858 = vmatmul.mubr.msk.f32.gmra.mxu0 %vm395_vm0, %v12134_v23  ;;  %v375_v23 = vld [vmem:[%s12306_s19 + $0x60] sm:$0xff] }
 0x32e   : > { %9860 = vmatprep.mubr.msk.f32.mxu0 %vm395_vm0, %v12139_v24  ;;  %1843 = vperm.xlu1 %10881, %v376_v22   ;;  %v9812_v24 = vpop.f32.mrf.mxu1 }
 0x331   : > { %9861 = vmatmul.mubr.msk.f32.gmra.mxu0 %vm395_vm0, %v12148_v25  ;;  %v373_v25 = vld [vmem:[%s12306_s19 + $0x50] sm:$0xff] }
 0x332   : > { %9863 = vmatprep.mubr.msk.f32.mxu0 %vm395_vm0, %v12157_v32  ;;  %1838 = vperm.xlu1 %10881, %v375_v23   ;;  %v1137_v32 = vpop.f32.mrf.mxu1 }
 0x334   : > { %v9815_v48 = vpop.f32.mrf.mxu1 }
 0x335   : > { %9864 = vmatmul.mubr.msk.f32.gmra.mxu0 %vm395_vm0, %v12162_v33  ;;  %v371_v33 = vld [vmem:[%s12306_s19 + $0x40] sm:$0xff] }
 0x336   : > { %1828 = vperm.xlu1 %10881, %v373_v25   ;;  %v1147_v60 = vpop.f32.mrf.mxu1 }
 0x338   : > { %v9818_v1 = vpop.f32.mrf.mxu1 }
 0x33a   : > { %1818 = vperm.xlu1 %10881, %v371_v33   ;;  %v1157_v12 = vpop.f32.mrf.mxu1 }
 0x33c   : > { %v9821_v21 = vpop.f32.mrf.mxu1 }
 0x33e   : > { %1808 = vperm.xlu1 %10881, %v369_v49  }
 0x342   : > { %1798 = vperm.xlu1 %10881, %v367_v63  }
 0x346   : > { %1788 = vperm.xlu1 %10881, %v365_v11  }
 0x348   : > { %v12363_v16 = vpop.xlane.xlu0 %652 }
 0x349   : > { %14965 = vst [vmem:[#allocation30_spill] sm:$0xff] %v12363_v16 }
 0x34a   : > { %1778 = vperm.xlu1 %10881, %v363_v20  }
 0x34b   : > { %v12349_v13 = vpop.xlane.xlu1 %637 }
 0x34c   : > { %14962 = vst [vmem:[#allocation27_spill] sm:$0xff] %v12349_v13  ;;  %9825 = vmatprep.mubr.msk.f32.mxu1 %vm666_vm2, %v12349_v13 }
 0x34d   : > { %9826 = vmatmul.mubr.msk.f32.gmra.mxu1 %vm666_vm2, %v12315_v54 }
 0x34f   : > { %v12355_v14 = vpop.xlane.xlu1 %643 }
 0x350   : > { %14963 = vst [vmem:[#allocation28_spill] sm:$0xff] %v12355_v14  ;;  %9828 = vmatprep.mubr.msk.f32.mxu1 %vm666_vm2, %v12355_v14 }
 0x351   : > { %9829 = vmatmul.mubr.msk.f32.gmra.mxu1 %vm666_vm2, %v12317_v55 }
 0x353   : > { %v12361_v15 = vpop.xlane.xlu1 %649 }
 0x354   : > { %14964 = vst [vmem:[#allocation29_spill] sm:$0xff] %v12361_v15  ;;  %9831 = vmatprep.mubr.msk.f32.mxu1 %vm666_vm2, %v12361_v15 }
 0x355   : > { %9832 = vmatmul.mubr.msk.f32.gmra.mxu1 %vm666_vm2, %v12363_v16 }
 0x3a5   : > { %v12515_v50 = vpop.permute.xlu1 %1853 }
 0x3a9   : > { %v12518_v56 = vpop.permute.xlu1 %1843 }
 0x3d9   : > { %v9844_v2 = vpop.f32.mrf.mxu0 }
 0x3da   : > { %v1288_v5 = vadd.f32 %v9844_v2, %v9812_v24 }
 0x3db   : > { %v1282_v8 = vpop.f32.mrf.mxu0 }
 0x3dc   : > { %v12380_v26 = vadd.f32 %v12376_v4, %v1288_v5  ;;  %v1283_v37 = vadd.f32 %v1282_v8, %v1137_v32  ;;  %v1167_v5 = vpop.f32.mrf.mxu1 }
 0x3dd   : > { %v9847_v57 = vpop.f32.mrf.mxu0 }
 0x3de   : > { %v1383_v59 = vsub.f32 0.0, %v12380_v26  ;;  %v12384_v17 = vadd.f32 %v12376_v4, %v1283_v37  ;;  %v1298_v18 = vadd.f32 %v9847_v57, %v9815_v48 }
 0x3df   : > { %v1292_v19 = vpop.f32.mrf.mxu0 }
 0x3e0   : > { %v1400_v22 = vmul.f32 1.442695, %v1383_v59  ;;  %v1382_v23 = vsub.f32 0.0, %v12384_v17  ;;  %v12389_v24 = vadd.f32 %v12376_v4, %v1298_v18  ;;  %v1293_v25 = vadd.f32 %v1292_v19, %v1147_v60 }
 0x3e1   : > { %v9850_v33 = vpop.f32.mrf.mxu0 }
 0x3e2   : > { %10882 = vpow2.f32 %v1400_v22  ;;  %v1398_v32 = vmul.f32 1.442695, %v1382_v23  ;;  %v1385_v49 = vsub.f32 0.0, %v12389_v24  ;;  %v12393_v63 = vadd.f32 %v12376_v4, %v1293_v25  ;;  %v9824_v22 = vpop.f32.mrf.mxu1 }
 0x3e3   : > { %v1308_v48 = vadd.f32 %v9850_v33, %v9818_v1  ;;  %v1302_v2 = vpop.f32.mrf.mxu0 }
 0x3e4   : > { %10884 = vpow2.f32 %v1398_v32  ;;  %v1404_v8 = vmul.f32 1.442695, %v1385_v49  ;;  %v1384_v11 = vsub.f32 0.0, %v12393_v63  ;;  %v1303_v37 = vadd.f32 %v1302_v2, %v1157_v12 }
 0x3e5   : > { %v12397_v57 = vadd.f32 %v12376_v4, %v1308_v48  ;;  %v9853_v60 = vpop.f32.mrf.mxu0 }
 0x3e6   : > { %10886 = vpow2.f32 %v1404_v8  ;;  %v1402_v59 = vmul.f32 1.442695, %v1384_v11  ;;  %v12400_v18 = vadd.f32 %v12376_v4, %v1303_v37  ;;  %v1318_v19 = vadd.f32 %v9853_v60, %v9821_v21  ;;  %v1177_v11 = vpop.f32.mrf.mxu1 }
 0x3e7   : > { %v1387_v20 = vsub.f32 0.0, %v12397_v57  ;;  %v1312_v1 = vpop.f32.mrf.mxu0 }
 0x3e8   : > { %10888 = vpow2.f32 %v1402_v59  ;;  %v1386_v23 = vsub.f32 0.0, %v12400_v18  ;;  %v12405_v25 = vadd.f32 %v12376_v4, %v1318_v19  ;;  %v1313_v12 = vadd.f32 %v1312_v1, %v1167_v5 }
 0x3e9   : > { %v1408_v33 = vmul.f32 1.442695, %v1387_v20  ;;  %v9856_v32 = vpop.f32.mrf.mxu0 }
 0x3ea   : > { %v1406_v49 = vmul.f32 1.442695, %v1386_v23  ;;  %v1389_v48 = vsub.f32 0.0, %v12405_v25  ;;  %v12409_v2 = vadd.f32 %v12376_v4, %v1313_v12  ;;  %v1328_v21 = vadd.f32 %v9856_v32, %v9824_v22 }
 0x3eb   : > { %10890 = vpow2.f32 %v1408_v33  ;;  %v1322_v8 = vpop.f32.mrf.mxu0 }
 0x3ec   : > { %10892 = vpow2.f32 %v1406_v49  ;;  %v1412_v37 = vmul.f32 1.442695, %v1389_v48  ;;  %v1388_v60 = vsub.f32 0.0, %v12409_v2  ;;  %v12413_v59 = vadd.f32 %v12376_v4, %v1328_v21 }
 0x3ed   : > { %v1323_v5 = vadd.f32 %v1322_v8, %v1177_v11 }
 0x3ee   : > { %10894 = vpow2.f32 %v1412_v37  ;;  %v1410_v19 = vmul.f32 1.442695, %v1388_v60  ;;  %v1391_v20 = vsub.f32 0.0, %v12413_v59 }
 0x3ef   : > { %v10883_v1 = vpop.eup %10882  ;;  %v12417_v23 = vadd.f32 %v12376_v4, %v1323_v5 }
 0x3f0   : > { %v1431_v22 = vadd.f32 1.0, %v10883_v1  ;;  %10896 = vpow2.f32 %v1410_v19  ;;  %v1416_v12 = vmul.f32 1.442695, %v1391_v20 }
 0x3f1   : > { %v10885_v33 = vpop.eup %10884  ;;  %v1390_v32 = vsub.f32 0.0, %v12417_v23 }
 0x3f2   : > { %10898 = vrcp.f32 %v1431_v22  ;;  %v1430_v49 = vadd.f32 1.0, %v10885_v33 }
 0x3f3   : > { %v10887_v48 = vpop.eup %10886  ;;  %10900 = vpow2.f32 %v1416_v12  ;;  %v1414_v21 = vmul.f32 1.442695, %v1390_v32 }
 0x3f4   : > { %10902 = vrcp.f32 %v1430_v49  ;;  %v1433_v8 = vadd.f32 1.0, %v10887_v48 }
 0x3f5   : > { %v10889_v11 = vpop.eup %10888  ;;  %10904 = vpow2.f32 %v1414_v21 }
 0x3f6   : > { %v1432_v37 = vadd.f32 1.0, %v10889_v11  ;;  %10906 = vrcp.f32 %v1433_v8 }
 0x3f8   : > { %v10891_v60 = vpop.eup %10890  ;;  %10908 = vrcp.f32 %v1432_v37  ;;  %v9859_v37 = vpop.f32.mrf.mxu0 }
 0x3f9   : > { %v10893_v5 = vpop.eup %10892  ;;  %v1435_v1 = vadd.f32 1.0, %v10891_v60 }
 0x3fa   : > { %v1434_v19 = vadd.f32 1.0, %v10893_v5 }
 0x3fb   : > { %v10895_v20 = vpop.eup %10894  ;;  %10910 = vrcp.f32 %v1435_v1 }
 0x3fc   : > { %10912 = vrcp.f32 %v1434_v19  ;;  %v1437_v7 = vadd.f32 1.0, %v10895_v20  ;;  %v1332_v19 = vpop.f32.mrf.mxu0 }
 0x3fd   : > { %v10897_v22 = vpop.eup %10896 }
 0x3fe   : > { %v1436_v33 = vadd.f32 1.0, %v10897_v22  ;;  %10914 = vrcp.f32 %v1437_v7  ;;  %v9862_v22 = vpop.f32.mrf.mxu0 }
 0x3ff   : > { %v10899_v10 = vpop.eup %10898 }
 0x400   : > { %v10901_v12 = vpop.eup %10900  ;;  %10916 = vrcp.f32 %v1436_v33  ;;  %v1463_v8 = vmul.f32 %v10899_v10, %v12380_v26 }
 0x401   : > { %v10903_v32 = vpop.eup %10902  ;;  %v1439_v49 = vadd.f32 1.0, %v10901_v12 }
 0x402   : > { %v10905_v48 = vpop.eup %10904  ;;  %v1462_v21 = vmul.f32 %v10903_v32, %v12384_v17 }
 0x403   : > { %10918 = vrcp.f32 %v1439_v49  ;;  %v1438_v11 = vadd.f32 1.0, %v10905_v48  ;;  %v10907_v60 = vpop.eup %10906 }
 0x404   : > { %9874 = vmatprep.mubr.msk.f32.mxu1 %vm395_vm0, %v1462_v21  ;;  %v1465_v1 = vmul.f32 %v10907_v60, %v12389_v24  ;;  %v1342_v21 = vpop.f32.mrf.mxu0 }
 0x405   : > { %v10909_v5 = vpop.eup %10908  ;;  %10920 = vrcp.f32 %v1438_v11  ;;  %9875 = vmatmul.mubr.msk.f32.vlgmr.msra.gmra.mxu1 %vm395_vm0, %v1463_v8 }
 0x406   : > { %v1464_v7 = vmul.f32 %v10909_v5, %v12393_v63 }
 0x408   : > { %v10911_v20 = vpop.eup %10910  ;;  %9877 = vmatprep.mubr.msk.f32.mxu1 %vm395_vm0, %v1464_v7 }
 0x409   : > { %v10913_v17 = vpop.eup %10912  ;;  %9878 = vmatmul.mubr.msk.f32.gmra.mxu1 %vm395_vm0, %v1465_v1  ;;  %v1467_v26 = vmul.f32 %v10911_v20, %v12397_v57  ;;  %v9865_v20 = vpop.f32.mrf.mxu0 }
 0x40a   : > { %v1466_v10 = vmul.f32 %v10913_v17, %v12400_v18 }
 0x40b   : > { %v10915_v33 = vpop.eup %10914 }
 0x40c   : > { %9880 = vmatprep.mubr.msk.f32.mxu1 %vm395_vm0, %v1466_v10  ;;  %v1469_v49 = vmul.f32 %v10915_v33, %v12405_v25 }
 0x40d   : > { %v10917_v12 = vpop.eup %10916  ;;  %v9827_v32 = vpop.f32.mrf.mxu1  ;;  %9881 = vmatmul.mubr.msk.f32.gmra.mxu1 %vm395_vm0, %v1467_v26 }
 0x40e   : > { %v1468_v24 = vmul.f32 %v10917_v12, %v12409_v2  ;;  %v1338_v63 = vadd.f32 %v9859_v37, %v9827_v32 }
 0x40f   : > { %v1187_v48 = vpop.f32.mrf.mxu1 }
 0x410   : > { %v10919_v8 = vpop.eup %10918  ;;  %v12435_v18 = vadd.f32 %v12376_v4, %v1338_v63  ;;  %v1333_v57 = vadd.f32 %v1332_v19, %v1187_v48  ;;  %9883 = vmatprep.mubr.msk.f32.mxu1 %vm395_vm0, %v1468_v24 }
 0x411   : > { %v9830_v11 = vpop.f32.mrf.mxu1  ;;  %9884 = vmatmul.mubr.msk.f32.gmra.mxu1 %vm395_vm0, %v1469_v49  ;;  %v1471_v25 = vmul.f32 %v10919_v8, %v12413_v59 }
 0x412   : > { %v10921_v60 = vpop.eup %10920  ;;  %v1393_v5 = vsub.f32 0.0, %v12435_v18  ;;  %v1376_v2 = vadd.f32 %v12376_v4, %v1333_v57  ;;  %v1348_v37 = vadd.f32 %v9862_v22, %v9830_v11  ;;  %v1352_v22 = vpop.f32.mrf.mxu0 }
 0x413   : > { %v1470_v7 = vmul.f32 %v10921_v60, %v12417_v23  ;;  %v1197_v1 = vpop.f32.mrf.mxu1 }
 0x414   : > { %v1420_v17 = vmul.f32 1.442695, %v1393_v5  ;;  %v1392_v10 = vsub.f32 0.0, %v1376_v2  ;;  %v1379_v19 = vadd.f32 %v12376_v4, %v1348_v37  ;;  %v1343_v26 = vadd.f32 %v1342_v21, %v1197_v1 }
 0x415   : > { %9886 = vmatprep.mubr.msk.f32.mxu1 %vm395_vm0, %v1470_v7  ;;  %v9833_v33 = vpop.f32.mrf.mxu1 }
 0x416   : > { %10922 = vpow2.f32 %v1420_v17  ;;  %v1418_v12 = vmul.f32 1.442695, %v1392_v10  ;;  %v1395_v32 = vsub.f32 0.0, %v1379_v19  ;;  %v1378_v24 = vadd.f32 %v12376_v4, %v1343_v26  ;;  %9887 = vmatmul.mubr.msk.f32.gmra.mxu1 %vm395_vm0, %v1471_v25 }
 0x417   : > { %v1358_v59 = vadd.f32 %v9865_v20, %v9833_v33  ;;  %v1207_v23 = vpop.f32.mrf.mxu1 }
 0x418   : > { %10924 = vpow2.f32 %v1418_v12  ;;  %v1424_v63 = vmul.f32 1.442695, %v1395_v32  ;;  %v1394_v49 = vsub.f32 0.0, %v1378_v24  ;;  %v1353_v48 = vadd.f32 %v1352_v22, %v1207_v23 }
 0x419   : > { %v1381_v8 = vadd.f32 %v12376_v4, %v1358_v59 }
 0x41a   : > { %10926 = vpow2.f32 %v1424_v63  ;;  %v1422_v21 = vmul.f32 1.442695, %v1394_v49  ;;  %v1380_v57 = vadd.f32 %v12376_v4, %v1353_v48 }
 0x41b   : > { %v1397_v11 = vsub.f32 0.0, %v1381_v8 }
 0x41c   : > { %10928 = vpow2.f32 %v1422_v21  ;;  %v1396_v60 = vsub.f32 0.0, %v1380_v57 }
 0x41d   : > { %v1428_v5 = vmul.f32 1.442695, %v1397_v11 }
 0x41e   : > { %v1426_v37 = vmul.f32 1.442695, %v1396_v60 }
 0x41f   : > { %10930 = vpow2.f32 %v1428_v5 }
 0x420   : > { %10932 = vpow2.f32 %v1426_v37 }
 0x423   : > { %v10923_v25 = vpop.eup %10922 }
 0x424   : > { %v1441_v7 = vadd.f32 1.0, %v10923_v25 }
 0x425   : > { %v10925_v1 = vpop.eup %10924 }
 0x426   : > { %v1440_v20 = vadd.f32 1.0, %v10925_v1  ;;  %10934 = vrcp.f32 %v1441_v7 }
 0x427   : > { %v10927_v17 = vpop.eup %10926 }
 0x428   : > { %10936 = vrcp.f32 %v1440_v20  ;;  %v1443_v10 = vadd.f32 1.0, %v10927_v17 }
 0x429   : > { %v10929_v26 = vpop.eup %10928 }
 0x42a   : > { %v1442_v33 = vadd.f32 1.0, %v10929_v26  ;;  %10938 = vrcp.f32 %v1443_v10 }
 0x42c   : > { %v10931_v12 = vpop.eup %10930  ;;  %10940 = vrcp.f32 %v1442_v33 }
 0x42d   : > { %v10933_v4 = vpop.eup %10932  ;;  %v1445_v32 = vadd.f32 1.0, %v10931_v12  ;;  %v8750_v12 = vld [vmem:[#allocation2 + $0x60] ss:$0 sm:$0xff] }
 0x42e   : > { %v1444_v59 = vadd.f32 1.0, %v10933_v4 }
 0x42f   : > { %10942 = vrcp.f32 %v1445_v32 }
 0x430   : > { %10944 = vrcp.f32 %v1444_v59 }
 0x433   : > { %v10935_v22 = vpop.eup %10934 }
 0x434   : > { %v1473_v49 = vmul.f32 %v10935_v22, %v12435_v18  ;;  %v12459_v18 = vld [vmem:[%s14846_s4] sm:$0xff] }
 0x435   : > { %v10937_v23 = vpop.eup %10936  ;;  %9930 = vmatprep.mubr.f32.mxu0 %v12459_v18 }
 0x436   : > { %v1472_v63 = vmul.f32 %v10937_v23, %v1376_v2 }
 0x437   : > { %v10939_v48 = vpop.eup %10938 }
 0x438   : > { %9889 = vmatprep.mubr.msk.f32.mxu1 %vm395_vm0, %v1472_v63  ;;  %v1475_v60 = vmul.f32 %v10939_v48, %v1379_v19 }
 0x439   : > { %v10941_v21 = vpop.eup %10940  ;;  %9890 = vmatmul.mubr.msk.f32.gmra.mxu1 %vm395_vm0, %v1473_v49 }
 0x43a   : > { %v1474_v11 = vmul.f32 %v10941_v21, %v1378_v24 }
 0x43c   : > { %v10943_v5 = vpop.eup %10942  ;;  %9892 = vmatprep.mubr.msk.f32.mxu1 %vm395_vm0, %v1474_v11 }
 0x43d   : > { %v10945_v37 = vpop.eup %10944  ;;  %9893 = vmatmul.mubr.msk.f32.gmra.mxu1 %vm395_vm0, %v1475_v60  ;;  %v1477_v7 = vmul.f32 %v10943_v5, %v1381_v8 }
 0x43e   : > { %v1476_v25 = vmul.f32 %v10945_v37, %v1380_v57 }
 0x440   : > { %9895 = vmatprep.mubr.msk.f32.mxu1 %vm395_vm0, %v1476_v25 }
 0x441   : > { %9896 = vmatmul.mubr.msk.f32.gmra.mxu1 %vm395_vm0, %v1477_v7 }
 0x4c5   : > { %v12462_v2 = vpop.f32.mrf.mxu1 }
 0x4c7   : > { %v12464_v19 = vpop.f32.mrf.mxu1 }
 0x4c9   : > { %v9879_v24 = vpop.f32.mrf.mxu1 }
 0x4ca   : > { %v12494_v46 = vadd.f32 %v9879_v24, %v8750_v12 }
 0x4cb   : > { %v1611_v1 = vpop.f32.mrf.mxu1 }
 0x4cc   : > { %v1683_v24 = vsub.f32 0.0, %v12494_v46 }
 0x4cd   : > { %v9882_v20 = vpop.f32.mrf.mxu1 }
 0x4ce   : > { %v12496_v45 = vadd.f32 %v9882_v20, %v8750_v12 }
 0x4cf   : > { %v1621_v57 = vpop.f32.mrf.mxu1 }
 0x4d0   : > { %v1685_v20 = vsub.f32 0.0, %v12496_v45 }
 0x4d1   : > { %v9885_v8 = vpop.f32.mrf.mxu1 }
 0x4d3   : > { %v1631_v17 = vpop.f32.mrf.mxu1 }
 0x4d4   : > { %v12490_v39 = vadd.f32 %v8750_v12, %v1631_v17  ;;  %v12501_v17 = vadd.f32 %v8750_v12, %v1621_v57  ;;  %v1702_v57 = vmul.f32 1.442695, %v1683_v24 }
 0x4d6   : > { %v9888_v10 = vpop.f32.mrf.mxu1 }
 0x4d7   : > { %v12472_v63 = vadd.f32 %v9888_v10, %v8750_v12 }
 0x4d8   : > { %v1641_v26 = vpop.f32.mrf.mxu1 }
 0x4d9   : > { %v12479_v37 = vadd.f32 %v8750_v12, %v1641_v26  ;;  %v1689_v10 = vsub.f32 0.0, %v12472_v63 }
 0x4f9   : > { %v9891_v33 = vpop.f32.mrf.mxu1 }
 0x4fa   : > { %v12466_v4 = vadd.f32 %v9891_v33, %v8750_v12 }
 0x4fb   : > { %v1651_v32 = vpop.f32.mrf.mxu1 }
 0x4fc   : > { %v12468_v59 = vadd.f32 %v8750_v12, %v1651_v32  ;;  %v1691_v49 = vsub.f32 0.0, %v12466_v4  ;;  %v12484_v32 = vadd.f32 %v9885_v8, %v8750_v12 }
 0x4fd   : > { %v9894_v22 = vpop.f32.mrf.mxu1 }
 0x4fe   : > { %v12470_v23 = vadd.f32 %v9894_v22, %v8750_v12  ;;  %v1690_v60 = vsub.f32 0.0, %v12468_v59  ;;  %v1718_v22 = vmul.f32 1.442695, %v1691_v49  ;;  %v1687_v49 = vsub.f32 0.0, %v12484_v32 }
 0x4ff   : > { %v1661_v48 = vpop.f32.mrf.mxu1 }
 0x500   : > { %v1693_v21 = vsub.f32 0.0, %v12470_v23  ;;  %v12476_v11 = vadd.f32 %v8750_v12, %v1661_v48  ;;  %v1716_v26 = vmul.f32 1.442695, %v1690_v60 }
 0x501   : > { %v9897_v5 = vpop.f32.mrf.mxu1 }
 0x502   : > { %v1722_v25 = vmul.f32 1.442695, %v1693_v21  ;;  %v1692_v7 = vsub.f32 0.0, %v12476_v11  ;;  %v12482_v33 = vadd.f32 %v9897_v5, %v8750_v12  ;;  %v1688_v21 = vsub.f32 0.0, %v12479_v37 }
 0x503   : > { %v1671_v36 = vpop.f32.mrf.mxu1 }
 0x504   : > { %10946 = vpow2.f32 %v1722_v25  ;;  %v1720_v34 = vmul.f32 1.442695, %v1692_v7  ;;  %v1695_v48 = vsub.f32 0.0, %v12482_v33  ;;  %v12488_v42 = vadd.f32 %v8750_v12, %v1671_v36 }
 0x505   : > { %v1714_v25 = vmul.f32 1.442695, %v1689_v10  ;;  %v12499_v7 = vadd.f32 %v8750_v12, %v1611_v1  ;;  %v1712_v60 = vmul.f32 1.442695, %v1688_v21  ;;  %v1684_v10 = vsub.f32 0.0, %v12501_v17 }
 0x506   : > { %10948 = vpow2.f32 %v1720_v34  ;;  %v1726_v5 = vmul.f32 1.442695, %v1695_v48  ;;  %v1694_v8 = vsub.f32 0.0, %v12488_v42  ;;  %v1686_v34 = vsub.f32 0.0, %v12490_v39 }
 0x507   : > { %10950 = vpow2.f32 %v1718_v22  ;;  %v1710_v48 = vmul.f32 1.442695, %v1687_v49  ;;  %v1682_v22 = vsub.f32 0.0, %v12499_v7  ;;  %v12509_v1 = vadd.f32 %v12462_v2, %v8750_v12 }
 0x508   : > { %10952 = vpow2.f32 %v1726_v5  ;;  %v1724_v36 = vmul.f32 1.442695, %v1694_v8  ;;  %v1708_v5 = vmul.f32 1.442695, %v1686_v34  ;;  %v12512_v8 = vadd.f32 %v8750_v12, %v12464_v19 }
 0x509   : > { %10954 = vpow2.f32 %v1716_v26  ;;  %v1706_v26 = vmul.f32 1.442695, %v1685_v20  ;;  %v1704_v52 = vmul.f32 1.442695, %v1684_v10 }
 0x50a   : > { %10956 = vpow2.f32 %v1724_v36  ;;  %v1700_v36 = vmul.f32 1.442695, %v1682_v22  ;;  %v1680_v24 = vsub.f32 0.0, %v12512_v8 }
 0x50b   : > { %10958 = vpow2.f32 %v1714_v25  ;;  %v1681_v25 = vsub.f32 0.0, %v12509_v1 }
 0x50c   : > { %10960 = vpow2.f32 %v1712_v60  ;;  %v1696_v58 = vmul.f32 1.442695, %v1680_v24 }
 0x50d   : > { %10962 = vpow2.f32 %v1710_v48  ;;  %v1698_v22 = vmul.f32 1.442695, %v1681_v25 }
 0x50e   : > { %10964 = vpow2.f32 %v1708_v5 }
 0x50f   : > { %10966 = vpow2.f32 %v1702_v57 }
 0x510   : > { %10968 = vpow2.f32 %v1706_v26 }
 0x511   : > { %v10947_v21 = vpop.eup %10946  ;;  %10970 = vpow2.f32 %v1700_v36 }
 0x512   : > { %v1741_v34 = vadd.f32 1.0, %v10947_v21  ;;  %10972 = vpow2.f32 %v1704_v52 }
 0x513   : > { %v10949_v49 = vpop.eup %10948 }
 0x514   : > { %v10951_v60 = vpop.eup %10950  ;;  %v1740_v20 = vadd.f32 1.0, %v10949_v49  ;;  %10974 = vrcp.f32 %v1741_v34  ;;  %v12520_v34 = vpop.permute.xlu0 %1848 }
 0x515   : > { %v10953_v2 = vpop.eup %10952  ;;  %v1739_v10 = vadd.f32 1.0, %v10951_v60  ;;  %v12522_v60 = vpop.permute.xlu1 %1838 }
 0x516   : > { %v10955_v48 = vpop.eup %10954  ;;  %v1743_v19 = vadd.f32 1.0, %v10953_v2 }
 0x517   : > { %v10957_v12 = vpop.eup %10956  ;;  %v1738_v26 = vadd.f32 1.0, %v10955_v48 }
 0x518   : > { %10976 = vrcp.f32 %v1743_v19  ;;  %v1742_v5 = vadd.f32 1.0, %v10957_v12  ;;  %v10959_v57 = vpop.eup %10958 }
 0x519   : > { %10978 = vrcp.f32 %v1740_v20  ;;  %v10961_v21 = vpop.eup %10960  ;;  %v1737_v36 = vadd.f32 1.0, %v10959_v57  ;;  %v12526_v57 = vpop.permute.xlu1 %1828 }
 0x51a   : > { %10980 = vrcp.f32 %v1742_v5  ;;  %v10963_v49 = vpop.eup %10962  ;;  %v1736_v52 = vadd.f32 1.0, %v10961_v21 }
 0x51b   : > { %10982 = vpow2.f32 %v1698_v22  ;;  %v10965_v25 = vpop.eup %10964  ;;  %v1735_v24 = vadd.f32 1.0, %v10963_v49 }
 0x51c   : > { %10984 = vrcp.f32 %v1739_v10  ;;  %v10967_v2 = vpop.eup %10966  ;;  %v1734_v48 = vadd.f32 1.0, %v10965_v25 }
 0x51d   : > { %10986 = vpow2.f32 %v1696_v58  ;;  %v10969_v19 = vpop.eup %10968  ;;  %v12524_v58 = vpop.permute.xlu0 %1833 }
 0x51e   : > { %10988 = vrcp.f32 %v1738_v26  ;;  %v10971_v20 = vpop.eup %10970  ;;  %v1733_v5 = vadd.f32 1.0, %v10969_v19 }
 0x51f   : > { %10990 = vrcp.f32 %v1737_v36  ;;  %v10973_v12 = vpop.eup %10972  ;;  %v1731_v36 = vadd.f32 1.0, %v10967_v2  ;;  %v1730_v3 = vadd.f32 1.0, %v10971_v20  ;;  %v12536_v2 = vpop.permute.xlu1 %1818 }
 0x520   : > { %10992 = vrcp.f32 %v1736_v52  ;;  %v1732_v21 = vadd.f32 1.0, %v10973_v12 }
 0x521   : > { %v10975_v22 = vpop.eup %10974  ;;  %10994 = vrcp.f32 %v1735_v24  ;;  %v12534_v12 = vpop.permute.xlu0 %1823 }
 0x522   : > { %10996 = vrcp.f32 %v1734_v48  ;;  %v1773_v52 = vmul.f32 %v10975_v22, %v12470_v23 }
 0x523   : > { %10998 = vrcp.f32 %v1733_v5 }
 0x524   : > { %11000 = vrcp.f32 %v1732_v21 }
 0x525   : > { %v10977_v10 = vpop.eup %10976  ;;  %11002 = vrcp.f32 %v1731_v36  ;;  %v12544_v21 = vpop.permute.xlu0 %1813 }
 0x526   : > { %v10979_v26 = vpop.eup %10978  ;;  %v1775_v0 = vmul.f32 %v10977_v10, %v12482_v33  ;;  %11004 = vrcp.f32 %v1730_v3 }
 0x527   : > { %v10981_v49 = vpop.eup %10980  ;;  %v1772_v61 = vmul.f32 %v10979_v26, %v12476_v11 }
 0x528   : > { %v10983_v62 = vpop.eup %10982  ;;  %v1774_v25 = vmul.f32 %v10981_v49, %v12488_v42  ;;  %v1871_v24 = vmul.f32 %v12515_v50, %v1775_v0  ;;  %v1869_v0 = vmul.f32 %v12518_v56, %v1773_v52  ;;  %v12546_v49 = vpop.permute.xlu1 %1808 }
 0x529   : > { %v10985_v19 = vpop.eup %10984  ;;  %v1729_v23 = vadd.f32 1.0, %v10983_v62  ;;  %v1868_v5 = vmul.f32 %v12522_v60, %v1772_v61 }
 0x52a   : > { %v10987_v51 = vpop.eup %10986  ;;  %9898 = vmatprep.subr.mxu0 %v1871_v24  ;;  %v1870_v48 = vmul.f32 %v12520_v34, %v1774_v25  ;;  %v1771_v42 = vmul.f32 %v10985_v19, %v12466_v4  ;;  %v12554_v19 = vpop.permute.xlu0 %1803 }
 0x52b   : > { %v10989_v33 = vpop.eup %10988  ;;  %9899 = vmatpush3.msra.mxu0 %v1871_v24  ;;  %v1728_v22 = vadd.f32 1.0, %v10987_v51  ;;  %11006 = vrcp.f32 %v1729_v23 }
 0x52c   : > { %9900 = vmatprep.subr.mxu0 %v1870_v48  ;;  %v10991_v20 = vpop.eup %10990  ;;  %v1770_v11 = vmul.f32 %v10989_v33, %v12468_v59  ;;  %v1867_v4 = vmul.f32 %v12524_v58, %v1771_v42 }
 0x52d   : > { %9901 = vmatpush3.msra.mxu0 %v1870_v48  ;;  %v10993_v10 = vpop.eup %10992  ;;  %v1769_v62 = vmul.f32 %v10991_v20, %v12472_v63  ;;  %11008 = vrcp.f32 %v1728_v22 }
 0x52e   : > { %9902 = vmatprep.subr.mxu0 %v1869_v0  ;;  %v10995_v26 = vpop.eup %10994  ;;  %v1768_v3 = vmul.f32 %v10993_v10, %v12479_v37  ;;  %v1866_v51 = vmul.f32 %v12526_v57, %v1770_v11  ;;  %v12556_v37 = vpop.permute.xlu1 %1798 }
 0x52f   : > { %9903 = vmatpush3.msra.mxu0 %v1869_v0  ;;  %v10997_v61 = vpop.eup %10996  ;;  %v1767_v59 = vmul.f32 %v10995_v26, %v12484_v32  ;;  %v1865_v63 = vmul.f32 %v12534_v12, %v1769_v62  ;;  %v12564_v11 = vpop.permute.xlu0 %1793 }
 0x530   : > { %9904 = vmatprep.subr.mxu0 %v1868_v5  ;;  %v10999_v36 = vpop.eup %10998  ;;  %v1766_v52 = vmul.f32 %v10997_v61, %v12490_v39  ;;  %v1864_v25 = vmul.f32 %v12536_v2, %v1768_v3  ;;  %v1964_v61 = vld [vmem:[#allocation2 + $0xa0] sm:$0xff] }
 0x531   : > { %9905 = vmatpush3.msra.mxu0 %v1868_v5  ;;  %v11001_v24 = vpop.eup %11000  ;;  %v1765_v48 = vmul.f32 %v10999_v36, %v12496_v45  ;;  %v1863_v32 = vmul.f32 %v12544_v21, %v1767_v59  ;;  %v1963_v59 = vld [vmem:[#allocation2 + $0x98] sm:$0xff]  ;;  %9933 = vmatprep.subr.mxu1 %v1964_v61  ;;  %v1961_v36 = vld [vmem:[#allocation2 + $0x88] sm:$0xff] }
 0x532   : > { %9906 = vmatprep.subr.mxu0 %v1867_v4  ;;  %v11003_v33 = vpop.eup %11002  ;;  %v1764_v23 = vmul.f32 %v11001_v24, %v12501_v17  ;;  %v1862_v39 = vmul.f32 %v12546_v49, %v1766_v52  ;;  %v12566_v45 = vpop.permute.xlu1 %1788  ;;  %9934 = vmatpush3.msra.mxu1 %v1964_v61  ;;  %v1960_v52 = vld [vmem:[#allocation2 + $0x80] sm:$0xff]  ;;  %v1958_v24 = vld [vmem:[#allocation2 + $0x70] sm:$0xff] }
 0x533   : > { %9907 = vmatpush3.msra.mxu0 %v1867_v4  ;;  %v11005_v42 = vpop.eup %11004  ;;  %v1763_v0 = vmul.f32 %v11003_v33, %v12494_v46  ;;  %v1861_v20 = vmul.f32 %v12554_v19, %v1765_v48  ;;  %v12574_v3 = vpop.permute.xlu0 %1783  ;;  %9935 = vmatprep.subr.mxu1 %v1963_v59  ;;  %v1957_v48 = vld [vmem:[#allocation2 + $0x68] sm:$0xff] }
 0x534   : > { %9908 = vmatprep.subr.mxu0 %v1866_v51  ;;  %v1762_v5 = vmul.f32 %v11005_v42, %v12499_v7  ;;  %v1860_v17 = vmul.f32 %v12556_v37, %v1764_v23  ;;  %14966 = vst [vmem:[#allocation31_spill] sm:$0xff] %v12574_v3  ;;  %9936 = vmatpush3.msra.mxu1 %v1963_v59 }
 0x535   : > { %9909 = vmatpush3.msra.mxu0 %v1866_v51  ;;  %v1859_v46 = vmul.f32 %v12564_v11, %v1763_v0 }
 0x536   : > { %9910 = vmatprep.subr.mxu0 %v1865_v63  ;;  %v1858_v26 = vmul.f32 %v12566_v45, %v1762_v5  ;;  %v12576_v51 = vpop.permute.xlu1 %1778  ;;  %v2065_v5 = vld [vmem:[#allocation2 + $0xb8] sm:$0xff] }
 0x537   : > { %9911 = vmatpush3.msra.mxu0 %v1865_v63  ;;  %14967 = vst [vmem:[#allocation32_spill] sm:$0xff] %v12576_v51  ;;  %v1962_v63 = vld [vmem:[#allocation2 + $0x90] sm:$0xff] }
 0x538   : > { %9912 = vmatprep.subr.mxu0 %v1864_v25  ;;  %v11007_v22 = vpop.eup %11006  ;;  %9937 = vmatprep.subr.mxu1 %v1962_v63 }
 0x539   : > { %9913 = vmatpush3.msra.mxu0 %v1864_v25  ;;  %v1761_v62 = vmul.f32 %v11007_v22, %v12509_v1  ;;  %9938 = vmatpush3.msra.mxu1 %v1962_v63  ;;  %v1959_v25 = vld [vmem:[#allocation2 + $0x78] sm:$0xff]  ;;  %v2066_v22 = vld [vmem:[#allocation2 + $0xc0] sm:$0xff] }
 0x53a   : > { %9914 = vmatprep.subr.mxu0 %v1863_v32  ;;  %v11009_v10 = vpop.eup %11008  ;;  %9939 = vmatprep.subr.mxu1 %v1961_v36 }
 0x53b   : > { %9915 = vmatpush3.msra.mxu0 %v1863_v32  ;;  %v1760_v4 = vmul.f32 %v11009_v10, %v12512_v8  ;;  %v1857_v7 = vmul.f32 %v12574_v3, %v1761_v62  ;;  %v358_v8 = vld [vmem:[%s14846_s4 + $0x8] sm:$0xff]  ;;  %9940 = vmatpush3.msra.mxu1 %v1961_v36  ;;  %v2251_v10 = vld [vmem:[#allocation2 + $0xf8] sm:$0x3] }
 0x53c   : > { %9916 = vmatprep.subr.mxu0 %v1862_v39  ;;  %9941 = vmatprep.subr.mxu1 %v1960_v52  ;;  %v8767_v62 = vld [vmem:[#allocation2 + $0xa8] ss:$0 sm:$0xff] }
 0x53d   : > { %9917 = vmatpush3.msra.mxu0 %v1862_v39  ;;  %v1856_v1 = vmul.f32 %v12576_v51, %v1760_v4  ;;  %9942 = vmatpush3.msra.mxu1 %v1960_v52 }
 0x53e   : > { %9918 = vmatprep.subr.mxu0 %v1861_v20  ;;  %9943 = vmatprep.subr.mxu1 %v1959_v25 }
 0x53f   : > { %9919 = vmatpush3.msra.mxu0 %v1861_v20  ;;  %9944 = vmatpush3.msra.mxu1 %v1959_v25  ;;  %v2067_v20 = vld [vmem:[#allocation2 + $0xc8] sm:$0xff] }
 0x540   : > { %9920 = vmatprep.subr.mxu0 %v1860_v17  ;;  %9945 = vmatprep.subr.mxu1 %v1958_v24 }
 0x541   : > { %9921 = vmatpush3.msra.mxu0 %v1860_v17  ;;  %9946 = vmatpush3.msra.mxu1 %v1958_v24  ;;  %v2064_v17 = vld [vmem:[#allocation2 + $0xb0] sm:$0xff] }
 0x542   : > { %9922 = vmatprep.subr.mxu0 %v1859_v46  ;;  %9947 = vmatprep.subr.mxu1 %v1957_v48 }
 0x543   : > { %9923 = vmatpush3.msra.mxu0 %v1859_v46  ;;  %9948 = vmatpush3.msra.mxu1 %v1957_v48 }
 0x544   : > { %9924 = vmatprep.subr.mxu0 %v1858_v26 }
 0x545   : > { %9925 = vmatpush3.msra.mxu0 %v1858_v26 }
 0x546   : > { %9926 = vmatprep.subr.mxu0 %v1857_v7 }
 0x547   : > { %9927 = vmatpush3.msra.mxu0 %v1857_v7 }
 0x548   : > { %9928 = vmatprep.subr.mxu0 %v1856_v1 }
 0x549   : > { %9929 = vmatpush3.msra.mxu0 %v1856_v1 }
 0x54a   : > { %9931 = vmatmul.mubr.f32.vlgmr.msra.gmra.mxu0 %v358_v8  ;;  %9952 = vmatprep.subr.mxu0 %v2067_v20 }
 0x54b   : > { %9953 = vmatpush3.msra.mxu0 %v2067_v20  ;;  %v8770_v20 = vld [vmem:[#allocation2 + $0xd0] ss:$0 sm:$0xff] }
 0x54c   : > { %9954 = vmatprep.subr.mxu0 %v2066_v22 }
 0x54d   : > { %9955 = vmatpush3.msra.mxu0 %v2066_v22 }
 0x54e   : > { %9956 = vmatprep.subr.mxu0 %v2065_v5 }
 0x54f   : > { %9957 = vmatpush3.msra.mxu0 %v2065_v5 }
 0x550   : > { %9958 = vmatprep.subr.mxu0 %v2064_v17 }
 0x551   : > { %9959 = vmatpush3.msra.mxu0 %v2064_v17 }
 0x552   : > { %9974 = vmatprep.subr.msk.mxu0 %vm671_vm1, %v2251_v10 }
 0x60a   : > { %v9932_v32 = vpop.f32.mrf.mxu0 }
 0x60b   : > { %1951 = vrot.lane.b32.xlu1 %v9932_v32, %s11949_s23 }
 0x60c   : > { %v1938_v33 = vpop.f32.mrf.mxu0 }
 0x60d   : > { %1949 = vrot.lane.b32.xlu0 %v1938_v33, %s11949_s23 }
 0x67d   : > { %v1952_v23 = vpop.permute.xlu1 %1951 }
 0x67e   : > { %v1956_v0 = vsel %vm395_vm0, %v12234_v28, %v1952_v23  ;;  %v2161_v23 = vld [vmem:[#allocation2 + $0xf0] sm:$0xff] }
 0x67f   : > { %v1950_v39 = vpop.permute.xlu0 %1949  ;;  %9963 = vmatprep.subr.mxu1 %v2161_v23 }
 0x680   : > { %v1955_v42 = vsel %vm395_vm0, %v12232_v27, %v1950_v39  ;;  %v2160_v39 = vld [vmem:[#allocation2 + $0xe8] sm:$0xff] }
 0x681   : > { %9949 = vmatprep.mubr.msk.f32.mxu1 %vm1970_vm4, %v1955_v42  ;;  %v2159_v42 = vld [vmem:[#allocation2 + $0xe0] sm:$0xff] }
 0x682   : > { %9950 = vmatmul.mubr.msk.f32.vlgmr.msra.gmra.mxu1 %vm1970_vm4, %v1956_v0  ;;  %v2158_v0 = vld [vmem:[#allocation2 + $0xd8] sm:$0xff] }
 0x683   : > { %9964 = vmatpush3.msra.mxu1 %v2161_v23  ;;  %v11825_v23 = vld [vmem:[%s14845_s3 + $0x58] sm:$0xff] }
 0x684   : > { %9965 = vmatprep.subr.mxu1 %v2160_v39 }
 0x685   : > { %9966 = vmatpush3.msra.mxu1 %v2160_v39  ;;  %v11826_v39 = vld [vmem:[%s14845_s3 + $0x60] sm:$0xff] }
 0x686   : > { %9967 = vmatprep.subr.mxu1 %v2159_v42 }
 0x687   : > { %9968 = vmatpush3.msra.mxu1 %v2159_v42  ;;  %v11827_v42 = vld [vmem:[%s14845_s3 + $0x68] sm:$0xff] }
 0x688   : > { %9969 = vmatprep.subr.mxu1 %v2158_v0 }
 0x689   : > { %9970 = vmatpush3.msra.mxu1 %v2158_v0  ;;  %v11828_v0 = vld [vmem:[%s14845_s3 + $0x70] sm:$0xff] }
 0x742   : > { %v9951_v46 = vpop.f32.mrf.mxu1 }
 0x743   : > { %v2049_v4 = vadd.f32 %v9951_v46, %v8767_v62 }
 0x744   : > { %v2043_v26 = vpop.f32.mrf.mxu1 }
 0x745   : > { %v2053_v7 = vsub.f32 0.0, %v2049_v4  ;;  %v2044_v1 = vadd.f32 %v8767_v62, %v2043_v26 }
 0x747   : > { %v2056_v8 = vmul.f32 1.442695, %v2053_v7  ;;  %v2052_v61 = vsub.f32 0.0, %v2044_v1  ;;  %v11814_v7 = vld [vmem:[%s14845_s3] sm:$0xff] }
 0x749   : > { %11010 = vpow2.f32 %v2056_v8  ;;  %v2054_v59 = vmul.f32 1.442695, %v2052_v61  ;;  %v11815_v61 = vld [vmem:[%s14845_s3 + $0x8] sm:$0xff] }
 0x74b   : > { %11012 = vpow2.f32 %v2054_v59  ;;  %v11816_v59 = vld [vmem:[%s14845_s3 + $0x10] sm:$0xff] }
 0x756   : > { %v11011_v63 = vpop.eup %11010 }
 0x757   : > { %v2059_v36 = vadd.f32 1.0, %v11011_v63  ;;  %v11817_v63 = vld [vmem:[%s14845_s3 + $0x18] sm:$0xff] }
 0x758   : > { %v11013_v52 = vpop.eup %11012 }
 0x759   : > { %v2058_v25 = vadd.f32 1.0, %v11013_v52  ;;  %11014 = vrcp.f32 %v2059_v36  ;;  %v11818_v36 = vld [vmem:[%s14845_s3 + $0x20] sm:$0xff]  ;;  %v11819_v52 = vld [vmem:[%s14845_s3 + $0x28] sm:$0xff] }
 0x75b   : > { %11016 = vrcp.f32 %v2058_v25  ;;  %v11820_v25 = vld [vmem:[%s14845_s3 + $0x30] sm:$0xff] }
 0x766   : > { %v11015_v24 = vpop.eup %11014 }
 0x767   : > { %v2063_v33 = vmul.f32 %v11015_v24, %v2049_v4  ;;  %v11821_v24 = vld [vmem:[%s14845_s3 + $0x38] sm:$0xff] }
 0x768   : > { %v11017_v48 = vpop.eup %11016 }
 0x769   : > { %v2062_v32 = vmul.f32 %v11017_v48, %v2044_v1  ;;  %v11822_v48 = vld [vmem:[%s14845_s3 + $0x40] sm:$0xff] }
 0x76b   : > { %9960 = vmatprep.mubr.msk.f32.mxu0 %vm395_vm0, %v2062_v32  ;;  %v11823_v32 = vld [vmem:[%s14845_s3 + $0x48] sm:$0xff] }
 0x76c   : > { %9961 = vmatmul.mubr.msk.f32.vlgmr.msra.gmra.mxu0 %vm395_vm0, %v2063_v33  ;;  %v11824_v33 = vld [vmem:[%s14845_s3 + $0x50] sm:$0xff] }
 0x76d   : > { %9976 = vmatprep.mubr.msk.f32.mxu0 %vm666_vm2, %v12240_v29  ;;  %9975 = vmatpush3.msk.msra.mxu0 %vm671_vm1, %v2251_v10 }
 0x770   : > { %9977 = vmatmul.mubr.msk.f32.vlgmr.msra.gmra.mxu0 %vm666_vm2, %v12246_v31 }
 0x771   : > { %9979 = vmatprep.mubr.msk.f32.mxu0 %vm666_vm2, %v12248_v35 }
 0x774   : > { %9980 = vmatmul.mubr.msk.f32.gmra.mxu0 %vm666_vm2, %v12244_v30 }
 0x775   : > { %9982 = vmatprep.mubr.msk.f32.mxu0 %vm666_vm2, %v12252_v38 }
 0x778   : > { %9983 = vmatmul.mubr.msk.f32.gmra.mxu0 %vm666_vm2, %v12258_v40 }
 0x779   : > { %9985 = vmatprep.mubr.msk.f32.mxu0 %vm666_vm2, %v12264_v41 }
 0x77c   : > { %9986 = vmatmul.mubr.msk.f32.gmra.mxu0 %vm666_vm2, %v12268_v43 }
 0x77d   : > { %9988 = vmatprep.mubr.msk.f32.mxu0 %vm666_vm2, %v12272_v44 }
 0x780   : > { %9989 = vmatmul.mubr.msk.f32.gmra.mxu0 %vm666_vm2, %v12278_v47 }
 0x781   : > { %9991 = vmatprep.mubr.msk.f32.mxu0 %vm666_vm2, %v12349_v13 }
 0x784   : > { %9992 = vmatmul.mubr.msk.f32.gmra.mxu0 %vm666_vm2, %v12315_v54 }
 0x785   : > { %9994 = vmatprep.mubr.msk.f32.mxu0 %vm666_vm2, %v12355_v14 }
 0x788   : > { %9995 = vmatmul.mubr.msk.f32.gmra.mxu0 %vm666_vm2, %v12317_v55 }
 0x789   : > { %9997 = vmatprep.mubr.msk.f32.mxu0 %vm666_vm2, %v12361_v15 }
 0x78c   : > { %9998 = vmatmul.mubr.msk.f32.gmra.mxu0 %vm666_vm2, %v12363_v16 }
 0x82c   : > { %v9962_v22 = vpop.f32.mrf.mxu0 }
 0x82d   : > { %v2151_v5 = vadd.f32 %v9962_v22, %v8770_v20  ;;  %v2665_v22 = vld [vmem:[#allocation2 + $0x120] sm:$0xff] }
 0x82e   : > { %v2145_v17 = vpop.f32.mrf.mxu0  ;;  %10032 = vmatprep.subr.mxu0 %v2665_v22 }
 0x82f   : > { %v2146_v10 = vadd.f32 %v8770_v20, %v2145_v17  ;;  %v2155_v62 = vadd.f32 %v2151_v5, %v12234_v28  ;;  %v11829_v20 = vld [vmem:[%s14845_s3 + $0x78] sm:$0xff]  ;;  %10033 = vmatpush3.msra.mxu0 %v2665_v22  ;;  %v2663_v17 = vld [vmem:[#allocation2 + $0x110] sm:$0xff] }
 0x830   : > { %v2664_v5 = vld [vmem:[#allocation2 + $0x118] sm:$0xff] }
 0x831   : > { %v2154_v46 = vadd.f32 %v2146_v10, %v12232_v27  ;;  %v12633_v26 = vmul.f32 %v2155_v62, %v12049_v9  ;;  %10034 = vmatprep.subr.mxu0 %v2664_v5  ;;  %v2662_v10 = vld [vmem:[#allocation2 + $0x108] sm:$0xff]  ;;  %v9978_v62 = vpop.f32.mrf.mxu0 }
 0x832   : > { %10035 = vmatpush3.msra.mxu0 %v2664_v5 }
 0x833   : > { %v12630_v4 = vmul.f32 %v2154_v46, %v12043_v6  ;;  %10036 = vmatprep.subr.mxu0 %v2663_v17  ;;  %v2321_v46 = vpop.f32.mrf.mxu0 }
 0x834   : > { %10037 = vmatpush3.msra.mxu0 %v2663_v17 }
 0x835   : > { %9971 = vmatprep.mubr.msk.f32.mxu1 %vm395_vm0, %v12630_v4  ;;  %10038 = vmatprep.subr.mxu0 %v2662_v10 }
 0x836   : > { %9972 = vmatmul.mubr.msk.f32.vlgmr.msra.gmra.mxu1 %vm395_vm0, %v12633_v26  ;;  %10039 = vmatpush3.msra.mxu0 %v2662_v10 }
 0x837   : > { %10008 = vmatprep.mubr.msk.f32.mxu1 %vm395_vm0, %v11814_v7  ;;  %v9981_v7 = vpop.f32.mrf.mxu0 }
 0x8f6   : > { %v9973_v28 = vpop.f32.mrf.mxu1 }
 0x8f7   : > { %2247 = vrot.lane.b32.xlu0 %v9973_v28, %s11948_s13 }
 0x8f8   : > { %v2234_v27 = vpop.f32.mrf.mxu1 }
 0x8f9   : > { %2245 = vrot.lane.b32.xlu1 %v2234_v27, %s11948_s13 }
 0x969   : > { %v2248_v1 = vpop.permute.xlu0 %2247 }
 0x96a   : > { %10000 = vmatprep.subr.mxu1 %v2248_v1 }
 0x96b   : > { %10001 = vmatpush3.msra.mxu1 %v2248_v1  ;;  %v2246_v8 = vpop.permute.xlu1 %2245 }
 0x96c   : > { %10002 = vmatprep.subr.mxu1 %v2246_v8 }
 0x96d   : > { %10003 = vmatpush3.msra.mxu1 %v2246_v8 }
 0x96e   : > { %10004 = vmatprep.subr.mxu1 %v9973_v28 }
 0x96f   : > { %10005 = vmatpush3.msra.mxu1 %v9973_v28  ;;  %v2331_v28 = vpop.f32.mrf.mxu0 }
 0x970   : > { %10006 = vmatprep.subr.mxu1 %v2234_v27 }
 0x971   : > { %10007 = vmatpush3.msra.mxu1 %v2234_v27  ;;  %v9984_v27 = vpop.f32.mrf.mxu0 }
 0x972   : > { %10009 = vmatmul.mubr.msk.f32.vlgmr.msra.gmra.mxu1 %vm395_vm0, %v11815_v61 }
 0x973   : > { %10011 = vmatprep.mubr.msk.f32.mxu1 %vm395_vm0, %v11816_v59  ;;  %v2341_v1 = vpop.f32.mrf.mxu0  ;;  %v12706_v59 = vld [vmem:[#allocation2 + $0x100] ss:$0 sm:$0xff] }
 0x975   : > { %v9987_v8 = vpop.f32.mrf.mxu0 }
 0x976   : > { %10012 = vmatmul.mubr.msk.f32.gmra.mxu1 %vm395_vm0, %v11817_v63 }
 0x977   : > { %10014 = vmatprep.mubr.msk.f32.mxu1 %vm395_vm0, %v11818_v36 }
 0x97a   : > { %10015 = vmatmul.mubr.msk.f32.gmra.mxu1 %vm395_vm0, %v11819_v52 }
 0x97b   : > { %10017 = vmatprep.mubr.msk.f32.mxu1 %vm395_vm0, %v11820_v25 }
 0x97e   : > { %10018 = vmatmul.mubr.msk.f32.gmra.mxu1 %vm395_vm0, %v11821_v24 }
 0x97f   : > { %10020 = vmatprep.mubr.msk.f32.mxu1 %vm395_vm0, %v11822_v48 }
 0x982   : > { %10021 = vmatmul.mubr.msk.f32.gmra.mxu1 %vm395_vm0, %v11823_v32 }
 0x983   : > { %10023 = vmatprep.mubr.msk.f32.mxu1 %vm395_vm0, %v11824_v33 }
 0x986   : > { %10024 = vmatmul.mubr.msk.f32.gmra.mxu1 %vm395_vm0, %v11825_v23 }
 0x987   : > { %10026 = vmatprep.mubr.msk.f32.mxu1 %vm395_vm0, %v11826_v39 }
 0x98a   : > { %10027 = vmatmul.mubr.msk.f32.gmra.mxu1 %vm395_vm0, %v11827_v42 }
 0x98b   : > { %10029 = vmatprep.mubr.msk.f32.mxu1 %vm395_vm0, %v11828_v0 }
 0x98e   : > { %10030 = vmatmul.mubr.msk.f32.gmra.mxu1 %vm395_vm0, %v11829_v20 }
 0x98f   : > { %10096 = vmatprep.mubr.f32.mxu1 %v12459_v18  ;;  %v2351_v18 = vpop.f32.mrf.mxu0 }
 0x991   : > { %v9990_v36 = vpop.f32.mrf.mxu0 }
 0x993   : > { %v2361_v39 = vpop.f32.mrf.mxu0 }
 0xa32   : > { %v10010_v61 = vpop.f32.mrf.mxu1 }
 0xa33   : > { %v2472_v63 = vadd.f32 %v10010_v61, %v9978_v62  ;;  %v9993_v61 = vpop.f32.mrf.mxu0 }
 0xa34   : > { %v2466_v52 = vpop.f32.mrf.mxu1 }
 0xa35   : > { %v12709_v25 = vadd.f32 %v12706_v59, %v2472_v63  ;;  %v2467_v24 = vadd.f32 %v2466_v52, %v2321_v46 }
 0xa36   : > { %v10013_v48 = vpop.f32.mrf.mxu1 }
 0xa37   : > { %v2567_v32 = vsub.f32 0.0, %v12709_v25  ;;  %v12713_v33 = vadd.f32 %v12706_v59, %v2467_v24  ;;  %v2482_v23 = vadd.f32 %v10013_v48, %v9981_v7 }
 0xa38   : > { %v2476_v42 = vpop.f32.mrf.mxu1 }
 0xa39   : > { %v2584_v0 = vmul.f32 1.442695, %v2567_v32  ;;  %v2566_v20 = vsub.f32 0.0, %v12713_v33  ;;  %v12717_v22 = vadd.f32 %v12706_v59, %v2482_v23  ;;  %v2477_v5 = vadd.f32 %v2476_v42, %v2331_v28 }
 0xa3a   : > { %v10016_v17 = vpop.f32.mrf.mxu1 }
 0xa3b   : > { %11018 = vpow2.f32 %v2584_v0  ;;  %v2582_v10 = vmul.f32 1.442695, %v2566_v20  ;;  %v2569_v62 = vsub.f32 0.0, %v12717_v22  ;;  %v12721_v46 = vadd.f32 %v12706_v59, %v2477_v5  ;;  %v2371_v20 = vpop.f32.mrf.mxu0 }
 0xa3c   : > { %v2492_v63 = vadd.f32 %v10016_v17, %v9984_v27  ;;  %v2486_v7 = vpop.f32.mrf.mxu1 }
 0xa3d   : > { %11020 = vpow2.f32 %v2582_v10  ;;  %v2588_v52 = vmul.f32 1.442695, %v2569_v62  ;;  %v2568_v24 = vsub.f32 0.0, %v12721_v46  ;;  %v2487_v48 = vadd.f32 %v2486_v7, %v2341_v1 }
 0xa3e   : > { %v12725_v32 = vadd.f32 %v12706_v59, %v2492_v63  ;;  %v10019_v28 = vpop.f32.mrf.mxu1 }
 0xa3f   : > { %11022 = vpow2.f32 %v2588_v52  ;;  %v2586_v23 = vmul.f32 1.442695, %v2568_v24  ;;  %v12728_v42 = vadd.f32 %v12706_v59, %v2487_v48  ;;  %v2502_v0 = vadd.f32 %v10019_v28, %v9987_v8  ;;  %v9996_v48 = vpop.f32.mrf.mxu0 }
 0xa40   : > { %v2571_v5 = vsub.f32 0.0, %v12725_v32  ;;  %v2496_v27 = vpop.f32.mrf.mxu1 }
 0xa41   : > { %11024 = vpow2.f32 %v2586_v23  ;;  %v2570_v17 = vsub.f32 0.0, %v12728_v42  ;;  %v12733_v10 = vadd.f32 %v12706_v59, %v2502_v0  ;;  %v2497_v1 = vadd.f32 %v2496_v27, %v2351_v18  ;;  %v2381_v6 = vpop.f32.mrf.mxu0 }
 0xa42   : > { %v2592_v62 = vmul.f32 1.442695, %v2571_v5  ;;  %v10022_v63 = vpop.f32.mrf.mxu1 }
 0xa43   : > { %v2590_v7 = vmul.f32 1.442695, %v2570_v17  ;;  %v2573_v52 = vsub.f32 0.0, %v12733_v10  ;;  %v12737_v24 = vadd.f32 %v12706_v59, %v2497_v1  ;;  %v2512_v8 = vadd.f32 %v10022_v63, %v9990_v36 }
 0xa44   : > { %11026 = vpow2.f32 %v2592_v62  ;;  %v2506_v28 = vpop.f32.mrf.mxu1 }
 0xa45   : > { %11028 = vpow2.f32 %v2590_v7  ;;  %v2596_v23 = vmul.f32 1.442695, %v2573_v52  ;;  %v2572_v53 = vsub.f32 0.0, %v12737_v24  ;;  %v12741_v0 = vadd.f32 %v12706_v59, %v2512_v8 }
 0xa46   : > { %v2507_v18 = vadd.f32 %v2506_v28, %v2361_v39  ;;  %v10025_v5 = vpop.f32.mrf.mxu1 }
 0xa47   : > { %11030 = vpow2.f32 %v2596_v23  ;;  %v2594_v27 = vmul.f32 1.442695, %v2572_v53  ;;  %v2575_v17 = vsub.f32 0.0, %v12741_v0  ;;  %v2522_v9 = vadd.f32 %v10025_v5, %v9993_v61 }
 0xa48   : > { %v11019_v1 = vpop.eup %11018  ;;  %v12745_v36 = vadd.f32 %v12706_v59, %v2507_v18  ;;  %v2516_v62 = vpop.f32.mrf.mxu1 }
 0xa49   : > { %v2615_v63 = vadd.f32 1.0, %v11019_v1  ;;  %11032 = vpow2.f32 %v2594_v27  ;;  %v2600_v7 = vmul.f32 1.442695, %v2575_v17  ;;  %v12748_v52 = vadd.f32 %v12706_v59, %v2522_v9  ;;  %v9999_v18 = vpop.f32.mrf.mxu0 }
 0xa4a   : > { %v11021_v8 = vpop.eup %11020  ;;  %v2574_v39 = vsub.f32 0.0, %v12745_v36  ;;  %v2517_v28 = vadd.f32 %v2516_v62, %v2371_v20  ;;  %v10028_v53 = vpop.f32.mrf.mxu1 }
 0xa4b   : > { %11034 = vrcp.f32 %v2615_v63  ;;  %v2614_v23 = vadd.f32 1.0, %v11021_v8  ;;  %v2577_v61 = vsub.f32 0.0, %v12748_v52  ;;  %v2532_v5 = vadd.f32 %v10028_v53, %v9996_v48 }
 0xa4c   : > { %v11023_v16 = vpop.eup %11022  ;;  %11036 = vpow2.f32 %v2600_v7  ;;  %v2598_v15 = vmul.f32 1.442695, %v2574_v39  ;;  %v12753_v27 = vadd.f32 %v12706_v59, %v2517_v28  ;;  %v2526_v17 = vpop.f32.mrf.mxu1 }
 0xa4d   : > { %11038 = vrcp.f32 %v2614_v23  ;;  %v2617_v9 = vadd.f32 1.0, %v11023_v16  ;;  %v2604_v1 = vmul.f32 1.442695, %v2577_v61  ;;  %v12756_v55 = vadd.f32 %v12706_v59, %v2532_v5  ;;  %v2391_v28 = vpop.f32.mrf.mxu0 }
 0xa4e   : > { %v11025_v20 = vpop.eup %11024  ;;  %11040 = vpow2.f32 %v2598_v15  ;;  %v2576_v62 = vsub.f32 0.0, %v12753_v27  ;;  %v2527_v63 = vadd.f32 %v2526_v17, %v2381_v6  ;;  %v10031_v48 = vpop.f32.mrf.mxu1 }
 0xa4f   : > { %11042 = vrcp.f32 %v2617_v9  ;;  %v2616_v8 = vadd.f32 1.0, %v11025_v20  ;;  %v2579_v7 = vsub.f32 0.0, %v12756_v55  ;;  %v2542_v39 = vadd.f32 %v10031_v48, %v9999_v18 }
 0xa50   : > { %11044 = vpow2.f32 %v2604_v1  ;;  %v2602_v53 = vmul.f32 1.442695, %v2576_v62  ;;  %v12761_v16 = vadd.f32 %v12706_v59, %v2527_v63  ;;  %v2536_v23 = vpop.f32.mrf.mxu1 }
 0xa51   : > { %v11027_v61 = vpop.eup %11026  ;;  %11046 = vrcp.f32 %v2616_v8  ;;  %v2608_v5 = vmul.f32 1.442695, %v2579_v7  ;;  %v12764_v15 = vadd.f32 %v12706_v59, %v2542_v39  ;;  %v2537_v6 = vadd.f32 %v2536_v23, %v2391_v28 }
 0xa52   : > { %v11029_v17 = vpop.eup %11028  ;;  %v2619_v9 = vadd.f32 1.0, %v11027_v61  ;;  %11048 = vpow2.f32 %v2602_v53  ;;  %v2578_v20 = vsub.f32 0.0, %v12761_v16 }
 0xa53   : > { %v2618_v18 = vadd.f32 1.0, %v11029_v17  ;;  %11050 = vpow2.f32 %v2608_v5  ;;  %v2581_v1 = vsub.f32 0.0, %v12764_v15  ;;  %v12769_v62 = vadd.f32 %v12706_v59, %v2537_v6 }
 0xa54   : > { %v11031_v63 = vpop.eup %11030  ;;  %11052 = vrcp.f32 %v2619_v9  ;;  %v2606_v48 = vmul.f32 1.442695, %v2578_v20 }
 0xa55   : > { %11054 = vrcp.f32 %v2618_v18  ;;  %v2621_v8 = vadd.f32 1.0, %v11031_v63  ;;  %v2612_v7 = vmul.f32 1.442695, %v2581_v1  ;;  %v2580_v39 = vsub.f32 0.0, %v12769_v62 }
 0xa56   : > { %v11033_v28 = vpop.eup %11032  ;;  %11056 = vpow2.f32 %v2606_v48 }
 0xa57   : > { %11058 = vrcp.f32 %v2621_v8  ;;  %v2620_v53 = vadd.f32 1.0, %v11033_v28  ;;  %v2610_v23 = vmul.f32 1.442695, %v2580_v39 }
 0xa58   : > { %v11035_v61 = vpop.eup %11034  ;;  %11060 = vpow2.f32 %v2612_v7 }
 0xa59   : > { %v11037_v5 = vpop.eup %11036  ;;  %11062 = vrcp.f32 %v2620_v53  ;;  %v2647_v18 = vmul.f32 %v11035_v61, %v12709_v25 }
 0xa5a   : > { %v11039_v17 = vpop.eup %11038  ;;  %v2623_v59 = vadd.f32 1.0, %v11037_v5  ;;  %11064 = vpow2.f32 %v2610_v23 }
 0xa5b   : > { %v11041_v6 = vpop.eup %11040  ;;  %v2646_v9 = vmul.f32 %v11039_v17, %v12713_v33 }
 0xa5c   : > { %v11043_v20 = vpop.eup %11042  ;;  %v2622_v1 = vadd.f32 1.0, %v11041_v6  ;;  %11066 = vrcp.f32 %v2623_v59 }
 0xa5d   : > { %v11045_v63 = vpop.eup %11044  ;;  %10040 = vmatprep.mubr.msk.f32.mxu0 %vm395_vm0, %v2646_v9  ;;  %v2649_v53 = vmul.f32 %v11043_v20, %v12717_v22 }
 0xa5e   : > { %v11047_v48 = vpop.eup %11046  ;;  %11068 = vrcp.f32 %v2622_v1  ;;  %v2625_v8 = vadd.f32 1.0, %v11045_v63  ;;  %10041 = vmatmul.mubr.msk.f32.vlgmr.msra.gmra.mxu0 %vm395_vm0, %v2647_v18 }
 0xa5f   : > { %v11049_v7 = vpop.eup %11048  ;;  %v2648_v39 = vmul.f32 %v11047_v48, %v12721_v46 }
 0xa60   : > { %v11051_v28 = vpop.eup %11050  ;;  %v2624_v33 = vadd.f32 1.0, %v11049_v7  ;;  %11070 = vrcp.f32 %v2625_v8 }
 0xa61   : > { %v11053_v23 = vpop.eup %11052  ;;  %v2627_v25 = vadd.f32 1.0, %v11051_v28  ;;  %10043 = vmatprep.mubr.msk.f32.mxu0 %vm395_vm0, %v2648_v39 }
 0xa62   : > { %v11055_v61 = vpop.eup %11054  ;;  %11072 = vrcp.f32 %v2624_v33  ;;  %10044 = vmatmul.mubr.msk.f32.gmra.mxu0 %vm395_vm0, %v2649_v53  ;;  %v2651_v6 = vmul.f32 %v11053_v23, %v12725_v32 }
 0xa63   : > { %v11057_v5 = vpop.eup %11056  ;;  %v2650_v17 = vmul.f32 %v11055_v61, %v12728_v42  ;;  %11074 = vrcp.f32 %v2627_v25 }
 0xa64   : > { %v11059_v59 = vpop.eup %11058  ;;  %v2626_v46 = vadd.f32 1.0, %v11057_v5 }
 0xa65   : > { %v11061_v9 = vpop.eup %11060  ;;  %10046 = vmatprep.mubr.msk.f32.mxu0 %vm395_vm0, %v2650_v17  ;;  %v2653_v63 = vmul.f32 %v11059_v59, %v12733_v10 }
 0xa66   : > { %v11063_v22 = vpop.eup %11062  ;;  %11076 = vrcp.f32 %v2626_v46  ;;  %v2629_v20 = vadd.f32 1.0, %v11061_v9  ;;  %10047 = vmatmul.mubr.msk.f32.gmra.mxu0 %vm395_vm0, %v2651_v6 }
 0xa67   : > { %v11065_v18 = vpop.eup %11064  ;;  %v2652_v1 = vmul.f32 %v11063_v22, %v12737_v24 }
 0xa68   : > { %v2628_v48 = vadd.f32 1.0, %v11065_v18  ;;  %11078 = vrcp.f32 %v2629_v20 }
 0xa69   : > { %10049 = vmatprep.mubr.msk.f32.mxu0 %vm395_vm0, %v2652_v1  ;;  %v11067_v32 = vpop.eup %11066 }
 0xa6a   : > { %11080 = vrcp.f32 %v2628_v48  ;;  %10050 = vmatmul.mubr.msk.f32.gmra.mxu0 %vm395_vm0, %v2653_v63  ;;  %v2655_v7 = vmul.f32 %v11067_v32, %v12741_v0 }
 0xa6b   : > { %v11069_v42 = vpop.eup %11068 }
 0xa6c   : > { %v2654_v8 = vmul.f32 %v11069_v42, %v12745_v36 }
 0xa6d   : > { %v11071_v39 = vpop.eup %11070 }
 0xa6e   : > { %10052 = vmatprep.mubr.msk.f32.mxu0 %vm395_vm0, %v2654_v8  ;;  %v2657_v24 = vmul.f32 %v11071_v39, %v12748_v52 }
 0xa6f   : > { %v11073_v28 = vpop.eup %11072  ;;  %10053 = vmatmul.mubr.msk.f32.gmra.mxu0 %vm395_vm0, %v2655_v7 }
 0xa70   : > { %v2656_v10 = vmul.f32 %v11073_v28, %v12753_v27  ;;  %v11075_v53 = vpop.eup %11074 }
 0xa71   : > { %v2659_v0 = vmul.f32 %v11075_v53, %v12756_v55 }
 0xa72   : > { %10055 = vmatprep.mubr.msk.f32.mxu0 %vm395_vm0, %v2656_v10 }
 0xa73   : > { %v11077_v33 = vpop.eup %11076  ;;  %10056 = vmatmul.mubr.msk.f32.gmra.mxu0 %vm395_vm0, %v2657_v24 }
 0xa74   : > { %v2658_v36 = vmul.f32 %v11077_v33, %v12761_v16 }
 0xa75   : > { %v11079_v23 = vpop.eup %11078 }
 0xa76   : > { %10058 = vmatprep.mubr.msk.f32.mxu0 %vm395_vm0, %v2658_v36  ;;  %v2661_v52 = vmul.f32 %v11079_v23, %v12764_v15 }
 0xa77   : > { %v11081_v25 = vpop.eup %11080  ;;  %10059 = vmatmul.mubr.msk.f32.gmra.mxu0 %vm395_vm0, %v2659_v0 }
 0xa78   : > { %v2660_v27 = vmul.f32 %v11081_v25, %v12769_v62  ;;  %v8809_v62 = vld [vmem:[#allocation2 + $0x128] ss:$0 sm:$0xff] }
 0xa7a   : > { %10061 = vmatprep.mubr.msk.f32.mxu0 %vm395_vm0, %v2660_v27 }
 0xa7b   : > { %10062 = vmatmul.mubr.msk.f32.gmra.mxu0 %vm395_vm0, %v2661_v52 }
 0xb1e   : > { %v12804_v61 = vpop.f32.mrf.mxu0 }
 0xb20   : > { %v12806_v5 = vpop.f32.mrf.mxu0 }
 0xb22   : > { %v10045_v16 = vpop.f32.mrf.mxu0 }
 0xb24   : > { %v2795_v55 = vpop.f32.mrf.mxu0 }
 0xb26   : > { %v10048_v17 = vpop.f32.mrf.mxu0 }
 0xb28   : > { %v2805_v59 = vpop.f32.mrf.mxu0 }
 0xb2a   : > { %v10051_v6 = vpop.f32.mrf.mxu0 }
 0xb2b   : > { %v12826_v0 = vadd.f32 %v10051_v6, %v8809_v62 }
 0xb2c   : > { %v2815_v46 = vpop.f32.mrf.mxu0 }
 0xb2f   : > { %v10054_v9 = vpop.f32.mrf.mxu0 }
 0xb30   : > { %v12814_v32 = vadd.f32 %v10054_v9, %v8809_v62 }
 0xb31   : > { %v2825_v22 = vpop.f32.mrf.mxu0 }
 0xb32   : > { %v12821_v24 = vadd.f32 %v8809_v62, %v2825_v22  ;;  %v2873_v23 = vsub.f32 0.0, %v12814_v32 }
 0xb33   : > { %v10057_v20 = vpop.f32.mrf.mxu0 }
 0xb34   : > { %v12808_v18 = vadd.f32 %v10057_v20, %v8809_v62 }
 0xb35   : > { %v2835_v15 = vpop.f32.mrf.mxu0 }
 0xb36   : > { %v12810_v1 = vadd.f32 %v8809_v62, %v2835_v15  ;;  %v2875_v42 = vsub.f32 0.0, %v12808_v18  ;;  %v12832_v15 = vadd.f32 %v8809_v62, %v2815_v46  ;;  %v12843_v46 = vadd.f32 %v8809_v62, %v2805_v59 }
 0xb37   : > { %v10060_v63 = vpop.f32.mrf.mxu0 }
 0xb38   : > { %v12812_v48 = vadd.f32 %v10060_v63, %v8809_v62  ;;  %v2874_v28 = vsub.f32 0.0, %v12810_v1  ;;  %v2902_v25 = vmul.f32 1.442695, %v2875_v42  ;;  %v2872_v63 = vsub.f32 0.0, %v12821_v24 }
 0xb39   : > { %v2845_v8 = vpop.f32.mrf.mxu0  ;;  %v2871_v42 = vsub.f32 0.0, %v12826_v0 }
 0xb3a   : > { %v2877_v7 = vsub.f32 0.0, %v12812_v48  ;;  %v12818_v39 = vadd.f32 %v8809_v62, %v2845_v8  ;;  %v2900_v22 = vmul.f32 1.442695, %v2874_v28  ;;  %v2870_v28 = vsub.f32 0.0, %v12832_v15 }
 0xb3b   : > { %v10063_v10 = vpop.f32.mrf.mxu0 }
 0xb3c   : > { %v2906_v53 = vmul.f32 1.442695, %v2877_v7  ;;  %v2876_v33 = vsub.f32 0.0, %v12818_v39  ;;  %v12824_v36 = vadd.f32 %v10063_v10, %v8809_v62  ;;  %v12836_v7 = vadd.f32 %v10045_v16, %v8809_v62 }
 0xb3d   : > { %v2855_v27 = vpop.f32.mrf.mxu0  ;;  %v12838_v10 = vadd.f32 %v10048_v17, %v8809_v62 }
 0xb3e   : > { %11082 = vpow2.f32 %v2906_v53  ;;  %v2904_v52 = vmul.f32 1.442695, %v2876_v33  ;;  %v2879_v9 = vsub.f32 0.0, %v12824_v36  ;;  %v12830_v20 = vadd.f32 %v8809_v62, %v2855_v27 }
 0xb3f   : > { %v2898_v53 = vmul.f32 1.442695, %v2873_v23  ;;  %v12841_v27 = vadd.f32 %v8809_v62, %v2795_v55  ;;  %v2867_v16 = vsub.f32 0.0, %v12836_v7  ;;  %v2869_v17 = vsub.f32 0.0, %v12838_v10 }
 0xb40   : > { %11084 = vpow2.f32 %v2904_v52  ;;  %v2910_v8 = vmul.f32 1.442695, %v2879_v9  ;;  %v2878_v6 = vsub.f32 0.0, %v12830_v20  ;;  %v2896_v52 = vmul.f32 1.442695, %v2872_v63 }
 0xb41   : > { %11086 = vpow2.f32 %v2902_v25  ;;  %v2894_v9 = vmul.f32 1.442695, %v2871_v42  ;;  %v2866_v25 = vsub.f32 0.0, %v12841_v27  ;;  %v2868_v23 = vsub.f32 0.0, %v12843_v46 }
 0xb42   : > { %11088 = vpow2.f32 %v2910_v8  ;;  %v2908_v33 = vmul.f32 1.442695, %v2878_v6  ;;  %v2892_v8 = vmul.f32 1.442695, %v2870_v28  ;;  %v12851_v55 = vadd.f32 %v12804_v61, %v8809_v62 }
 0xb43   : > { %11090 = vpow2.f32 %v2900_v22  ;;  %v2886_v59 = vmul.f32 1.442695, %v2867_v16  ;;  %v2890_v22 = vmul.f32 1.442695, %v2869_v17  ;;  %v12854_v6 = vadd.f32 %v8809_v62, %v12806_v5 }
 0xb44   : > { %11092 = vpow2.f32 %v2908_v33  ;;  %v2884_v33 = vmul.f32 1.442695, %v2866_v25  ;;  %v2888_v14 = vmul.f32 1.442695, %v2868_v23 }
 0xb45   : > { %11094 = vpow2.f32 %v2898_v53  ;;  %v2865_v53 = vsub.f32 0.0, %v12851_v55  ;;  %v2864_v61 = vsub.f32 0.0, %v12854_v6 }
 0xb46   : > { %11096 = vpow2.f32 %v2896_v52 }
 0xb47   : > { %11098 = vpow2.f32 %v2894_v9  ;;  %v2882_v62 = vmul.f32 1.442695, %v2865_v53  ;;  %v2880_v13 = vmul.f32 1.442695, %v2864_v61 }
 0xb48   : > { %11100 = vpow2.f32 %v2892_v8 }
 0xb49   : > { %11102 = vpow2.f32 %v2886_v59 }
 0xb4a   : > { %11104 = vpow2.f32 %v2890_v22 }
 0xb4b   : > { %v11083_v63 = vpop.eup %11082  ;;  %11106 = vpow2.f32 %v2884_v33 }
 0xb4c   : > { %v2925_v54 = vadd.f32 1.0, %v11083_v63  ;;  %11108 = vpow2.f32 %v2888_v14 }
 0xb4d   : > { %v11085_v42 = vpop.eup %11084 }
 0xb4e   : > { %v11087_v28 = vpop.eup %11086  ;;  %v2924_v16 = vadd.f32 1.0, %v11085_v42  ;;  %11110 = vrcp.f32 %v2925_v54 }
 0xb4f   : > { %v11089_v52 = vpop.eup %11088  ;;  %v2923_v25 = vadd.f32 1.0, %v11087_v28 }
 0xb50   : > { %v11091_v17 = vpop.eup %11090  ;;  %v2927_v9 = vadd.f32 1.0, %v11089_v52 }
 0xb51   : > { %v11093_v5 = vpop.eup %11092  ;;  %v2922_v59 = vadd.f32 1.0, %v11091_v17 }
 0xb52   : > { %11112 = vrcp.f32 %v2927_v9  ;;  %v2926_v23 = vadd.f32 1.0, %v11093_v5  ;;  %v11095_v8 = vpop.eup %11094 }
 0xb53   : > { %11114 = vrcp.f32 %v2924_v16  ;;  %v11097_v22 = vpop.eup %11096  ;;  %v2921_v63 = vadd.f32 1.0, %v11095_v8 }
 0xb54   : > { %11116 = vrcp.f32 %v2926_v23  ;;  %v11099_v33 = vpop.eup %11098  ;;  %v2920_v42 = vadd.f32 1.0, %v11097_v22 }
 0xb55   : > { %11118 = vpow2.f32 %v2882_v62  ;;  %v11101_v14 = vpop.eup %11100  ;;  %v2919_v53 = vadd.f32 1.0, %v11099_v33 }
 0xb56   : > { %11120 = vrcp.f32 %v2923_v25  ;;  %v11103_v52 = vpop.eup %11102  ;;  %v2918_v9 = vadd.f32 1.0, %v11101_v14 }
 0xb57   : > { %11122 = vpow2.f32 %v2880_v13  ;;  %v11105_v54 = vpop.eup %11104  ;;  %v2915_v8 = vadd.f32 1.0, %v11103_v52 }
 0xb58   : > { %11124 = vrcp.f32 %v2922_v59  ;;  %v11107_v28 = vpop.eup %11106  ;;  %v2917_v17 = vadd.f32 1.0, %v11105_v54 }
 0xb59   : > { %11126 = vrcp.f32 %v2921_v63  ;;  %v11109_v61 = vpop.eup %11108  ;;  %v2914_v54 = vadd.f32 1.0, %v11107_v28 }
 0xb5a   : > { %11128 = vrcp.f32 %v2920_v42  ;;  %v2916_v23 = vadd.f32 1.0, %v11109_v61 }
 0xb5b   : > { %v11111_v16 = vpop.eup %11110  ;;  %11130 = vrcp.f32 %v2919_v53 }
 0xb5c   : > { %11132 = vrcp.f32 %v2918_v9  ;;  %v2957_v22 = vmul.f32 %v11111_v16, %v12812_v48 }
 0xb5d   : > { %11134 = vrcp.f32 %v2917_v17 }
 0xb5e   : > { %11136 = vrcp.f32 %v2916_v23  ;;  %v2973_v48 = vmul.f32 %v2957_v22, %v12518_v56 }
 0xb5f   : > { %v11113_v5 = vpop.eup %11112  ;;  %11138 = vrcp.f32 %v2915_v8 }
 0xb60   : > { %v11115_v62 = vpop.eup %11114  ;;  %v2959_v13 = vmul.f32 %v11113_v5, %v12824_v36  ;;  %11140 = vrcp.f32 %v2914_v54 }
 0xb61   : > { %v11117_v25 = vpop.eup %11116  ;;  %v2956_v53 = vmul.f32 %v11115_v62, %v12818_v39 }
 0xb62   : > { %v11119_v59 = vpop.eup %11118  ;;  %v2958_v63 = vmul.f32 %v11117_v25, %v12830_v20  ;;  %v2975_v33 = vmul.f32 %v2959_v13, %v12515_v50 }
 0xb63   : > { %v11121_v42 = vpop.eup %11120  ;;  %v2913_v52 = vadd.f32 1.0, %v11119_v59  ;;  %v2972_v39 = vmul.f32 %v2956_v53, %v12522_v60 }
 0xb64   : > { %v11123_v14 = vpop.eup %11122  ;;  %10064 = vmatprep.subr.mxu1 %v2975_v33  ;;  %v2974_v9 = vmul.f32 %v2958_v63, %v12520_v34  ;;  %v2955_v61 = vmul.f32 %v11121_v42, %v12808_v18 }
 0xb65   : > { %v11125_v36 = vpop.eup %11124  ;;  %10065 = vmatpush3.msra.mxu1 %v2975_v33  ;;  %v2912_v16 = vadd.f32 1.0, %v11123_v14  ;;  %11142 = vrcp.f32 %v2913_v52 }
 0xb66   : > { %10066 = vmatprep.subr.mxu1 %v2974_v9  ;;  %v11127_v20 = vpop.eup %11126  ;;  %v2954_v28 = vmul.f32 %v11125_v36, %v12810_v1  ;;  %v2971_v18 = vmul.f32 %v2955_v61, %v12524_v58 }
 0xb67   : > { %10067 = vmatpush3.msra.mxu1 %v2974_v9  ;;  %v11129_v17 = vpop.eup %11128  ;;  %v2953_v5 = vmul.f32 %v11127_v20, %v12814_v32  ;;  %11144 = vrcp.f32 %v2912_v16  ;;  %v3067_v16 = vld [vmem:[#allocation2 + $0x160] sm:$0xff] }
 0xb68   : > { %10068 = vmatprep.subr.mxu1 %v2973_v48  ;;  %v11131_v62 = vpop.eup %11130  ;;  %v2952_v23 = vmul.f32 %v11129_v17, %v12821_v24  ;;  %v2970_v13 = vmul.f32 %v2954_v28, %v12526_v57  ;;  %v3066_v28 = vld [vmem:[#allocation2 + $0x158] sm:$0xff]  ;;  %v3064_v17 = vld [vmem:[#allocation2 + $0x148] sm:$0xff] }
 0xb69   : > { %10069 = vmatpush3.msra.mxu1 %v2973_v48  ;;  %v11133_v1 = vpop.eup %11132  ;;  %v2951_v25 = vmul.f32 %v11131_v62, %v12826_v0  ;;  %v2969_v8 = vmul.f32 %v2953_v5, %v12534_v12  ;;  %v3063_v5 = vld [vmem:[#allocation2 + $0x140] sm:$0xff]  ;;  %v3061_v62 = vld [vmem:[#allocation2 + $0x130] sm:$0xff] }
 0xb6a   : > { %10070 = vmatprep.subr.mxu1 %v2972_v39  ;;  %v11135_v59 = vpop.eup %11134  ;;  %v2950_v32 = vmul.f32 %v11133_v1, %v12832_v15  ;;  %v2968_v22 = vmul.f32 %v2952_v23, %v12536_v2 }
 0xb6b   : > { %10071 = vmatpush3.msra.mxu1 %v2972_v39  ;;  %v11137_v63 = vpop.eup %11136  ;;  %v2949_v24 = vmul.f32 %v11135_v59, %v12838_v10  ;;  %v2967_v33 = vmul.f32 %v2951_v25, %v12544_v21  ;;  %v3065_v39 = vld [vmem:[#allocation2 + $0x150] sm:$0xff] }
 0xb6c   : > { %10072 = vmatprep.subr.mxu1 %v2971_v18  ;;  %v11139_v42 = vpop.eup %11138  ;;  %v2948_v0 = vmul.f32 %v11137_v63, %v12843_v46  ;;  %v2966_v14 = vmul.f32 %v2950_v32, %v12546_v49  ;;  %v3170_v32 = vld [vmem:[#allocation2 + $0x190] sm:$0xff]  ;;  %v3168_v63 = vld [vmem:[#allocation2 + $0x180] sm:$0xff] }
 0xb6d   : > { %10073 = vmatpush3.msra.mxu1 %v2971_v18  ;;  %v11141_v54 = vpop.eup %11140  ;;  %v2947_v15 = vmul.f32 %v11139_v42, %v12836_v7  ;;  %v2965_v53 = vmul.f32 %v2949_v24, %v12554_v19  ;;  %v3062_v18 = vld [vmem:[#allocation2 + $0x138] sm:$0xff]  ;;  %10118 = vmatprep.subr.mxu0 %v3170_v32  ;;  %v8826_v42 = vld [vmem:[#allocation2 + $0x170] ss:$0 sm:$0xff] }
 0xb6e   : > { %10074 = vmatprep.subr.mxu1 %v2970_v13  ;;  %v2946_v10 = vmul.f32 %v11141_v54, %v12841_v27  ;;  %v2964_v36 = vmul.f32 %v2948_v0, %v12556_v37  ;;  %10119 = vmatpush3.msra.mxu0 %v3170_v32  ;;  %v3167_v24 = vld [vmem:[#allocation2 + $0x178] sm:$0xff] }
 0xb6f   : > { %10075 = vmatpush3.msra.mxu1 %v2970_v13  ;;  %v2963_v61 = vmul.f32 %v2947_v15, %v12564_v11 }
 0xb70   : > { %10076 = vmatprep.subr.mxu1 %v2969_v8  ;;  %v2962_v48 = vmul.f32 %v2946_v10, %v12566_v45 }
 0xb71   : > { %10077 = vmatpush3.msra.mxu1 %v2969_v8 }
 0xb72   : > { %10078 = vmatprep.subr.mxu1 %v2968_v22  ;;  %v11143_v9 = vpop.eup %11142 }
 0xb73   : > { %10079 = vmatpush3.msra.mxu1 %v2968_v22  ;;  %v2945_v46 = vmul.f32 %v11143_v9, %v12851_v55  ;;  %v11830_v55 = vld [vmem:[%s14846_s4 + $0x8] sm:$0xff] }
 0xb74   : > { %10080 = vmatprep.subr.mxu1 %v2967_v33  ;;  %v11145_v52 = vpop.eup %11144  ;;  %v3169_v22 = vld [vmem:[#allocation2 + $0x188] sm:$0xff] }
 0xb75   : > { %10081 = vmatpush3.msra.mxu1 %v2967_v33  ;;  %v2944_v7 = vmul.f32 %v11145_v52, %v12854_v6  ;;  %v2961_v27 = vmul.f32 %v2945_v46, %v12574_v3  ;;  %v3068_v6 = vld [vmem:[#allocation2 + $0x168] sm:$0xff]  ;;  %10120 = vmatprep.subr.mxu0 %v3169_v22  ;;  %v3354_v33 = vld [vmem:[#allocation2 + $0x1c0] sm:$0x3] }
 0xb76   : > { %10082 = vmatprep.subr.mxu1 %v2966_v14  ;;  %10121 = vmatpush3.msra.mxu0 %v3169_v22 }
 0xb77   : > { %10083 = vmatpush3.msra.mxu1 %v2966_v14  ;;  %v2960_v20 = vmul.f32 %v2944_v7, %v12576_v51  ;;  %10122 = vmatprep.subr.mxu0 %v3168_v63 }
 0xb78   : > { %10084 = vmatprep.subr.mxu1 %v2965_v53  ;;  %10123 = vmatpush3.msra.mxu0 %v3168_v63 }
 0xb79   : > { %10085 = vmatpush3.msra.mxu1 %v2965_v53  ;;  %10124 = vmatprep.subr.mxu0 %v3167_v24 }
 0xb7a   : > { %10086 = vmatprep.subr.mxu1 %v2964_v36  ;;  %10125 = vmatpush3.msra.mxu0 %v3167_v24  ;;  %v14974_v24 = vld [vmem:[#allocation5_spill] sm:$0xff] }
 0xb7b   : > { %10087 = vmatpush3.msra.mxu1 %v2964_v36  ;;  %10140 = vmatprep.subr.msk.mxu0 %vm671_vm1, %v3354_v33 }
 0xb7c   : > { %10088 = vmatprep.subr.mxu1 %v2963_v61 }
 0xb7d   : > { %10089 = vmatpush3.msra.mxu1 %v2963_v61 }
 0xb7e   : > { %10090 = vmatprep.subr.mxu1 %v2962_v48 }
 0xb7f   : > { %10091 = vmatpush3.msra.mxu1 %v2962_v48 }
 0xb80   : > { %10092 = vmatprep.subr.mxu1 %v2961_v27 }
 0xb81   : > { %10093 = vmatpush3.msra.mxu1 %v2961_v27 }
 0xb82   : > { %10094 = vmatprep.subr.mxu1 %v2960_v20 }
 0xb83   : > { %10095 = vmatpush3.msra.mxu1 %v2960_v20 }
 0xb84   : > { %10097 = vmatmul.mubr.f32.vlgmr.msra.gmra.mxu1 %v11830_v55  ;;  %10099 = vmatprep.subr.mxu1 %v3068_v6 }
 0xb85   : > { %10100 = vmatpush3.msra.mxu1 %v3068_v6  ;;  %v14968_v6 = vld [vmem:[#allocation27_spill] sm:$0xff] }
 0xb86   : > { %10101 = vmatprep.subr.mxu1 %v3067_v16 }
 0xb87   : > { %10102 = vmatpush3.msra.mxu1 %v3067_v16  ;;  %v14969_v16 = vld [vmem:[#allocation25_spill] sm:$0xff] }
 0xb88   : > { %10103 = vmatprep.subr.mxu1 %v3066_v28 }
 0xb89   : > { %10104 = vmatpush3.msra.mxu1 %v3066_v28  ;;  %v14970_v28 = vld [vmem:[#allocation28_spill] sm:$0xff] }
 0xb8a   : > { %10105 = vmatprep.subr.mxu1 %v3065_v39 }
 0xb8b   : > { %10106 = vmatpush3.msra.mxu1 %v3065_v39  ;;  %v14971_v39 = vld [vmem:[#allocation26_spill] sm:$0xff] }
 0xb8c   : > { %10107 = vmatprep.subr.mxu1 %v3064_v17 }
 0xb8d   : > { %10108 = vmatpush3.msra.mxu1 %v3064_v17  ;;  %v14972_v17 = vld [vmem:[#allocation29_spill] sm:$0xff] }
 0xb8e   : > { %10109 = vmatprep.subr.mxu1 %v3063_v5 }
 0xb8f   : > { %10110 = vmatpush3.msra.mxu1 %v3063_v5  ;;  %v14973_v5 = vld [vmem:[#allocation30_spill] sm:$0xff] }
 0xb90   : > { %10111 = vmatprep.subr.mxu1 %v3062_v18 }
 0xb91   : > { %10112 = vmatpush3.msra.mxu1 %v3062_v18  ;;  %v3264_v18 = vld [vmem:[#allocation2 + $0x1b8] sm:$0xff] }
 0xb92   : > { %10113 = vmatprep.subr.mxu1 %v3061_v62 }
 0xb93   : > { %10114 = vmatpush3.msra.mxu1 %v3061_v62  ;;  %v3263_v62 = vld [vmem:[#allocation2 + $0x1b0] sm:$0xff] }
 0xb94   : > { %10129 = vmatprep.subr.mxu1 %v3264_v18 }
 0xc44   : > { %v10098_v23 = vpop.f32.mrf.mxu1 }
 0xc45   : > { %3055 = vrot.lane.b32.xlu1 %v10098_v23, %s11949_s23  ;;  %v3262_v23 = vld [vmem:[#allocation2 + $0x1a8] sm:$0xff] }
 0xc46   : > { %v3042_v13 = vpop.f32.mrf.mxu1 }
 0xc47   : > { %3053 = vrot.lane.b32.xlu0 %v3042_v13, %s11949_s23  ;;  %v3261_v13 = vld [vmem:[#allocation2 + $0x1a0] sm:$0xff] }
 0xcb7   : > { %v3056_v1 = vpop.permute.xlu1 %3055 }
 0xcb8   : > { %v3060_v59 = vsel %vm395_vm0, %v12633_v26, %v3056_v1  ;;  %v8829_v1 = vld [vmem:[#allocation2 + $0x198] ss:$0 sm:$0xff] }
 0xcb9   : > { %v3054_v25 = vpop.permute.xlu0 %3053 }
 0xcba   : > { %v3059_v8 = vsel %vm395_vm0, %v12630_v4, %v3054_v25 }
 0xcbb   : > { %10115 = vmatprep.mubr.msk.f32.mxu1 %vm1970_vm4, %v3059_v8 }
 0xcbc   : > { %10116 = vmatmul.mubr.msk.f32.vlgmr.msra.gmra.mxu1 %vm1970_vm4, %v3060_v59 }
 0xcbd   : > { %10130 = vmatpush3.msra.mxu1 %v3264_v18  ;;  %v11844_v18 = vld [vmem:[%s14845_s3 + $0x68] sm:$0xff] }
 0xcbe   : > { %10131 = vmatprep.subr.mxu1 %v3263_v62 }
 0xcbf   : > { %10132 = vmatpush3.msra.mxu1 %v3263_v62  ;;  %v11845_v62 = vld [vmem:[%s14845_s3 + $0x70] sm:$0xff] }
 0xcc0   : > { %10133 = vmatprep.subr.mxu1 %v3262_v23 }
 0xcc1   : > { %10134 = vmatpush3.msra.mxu1 %v3262_v23  ;;  %v11846_v23 = vld [vmem:[%s14845_s3 + $0x78] sm:$0xff] }
 0xcc2   : > { %10135 = vmatprep.subr.mxu1 %v3261_v13 }
 0xcc3   : > { %10136 = vmatpush3.msra.mxu1 %v3261_v13  ;;  %v3768_v13 = vld [vmem:[#allocation2 + $0x1e8] sm:$0xff] }
 0xd7c   : > { %v10117_v0 = vpop.f32.mrf.mxu1 }
 0xd7d   : > { %v3152_v14 = vadd.f32 %v10117_v0, %v8826_v42 }
 0xd7e   : > { %v3146_v54 = vpop.f32.mrf.mxu1 }
 0xd7f   : > { %v3156_v15 = vsub.f32 0.0, %v3152_v14  ;;  %v3147_v53 = vadd.f32 %v8826_v42, %v3146_v54  ;;  %v14976_v42 = vld [vmem:[#allocation7_spill] sm:$0xff] }
 0xd81   : > { %v3159_v9 = vmul.f32 1.442695, %v3156_v15  ;;  %v3155_v10 = vsub.f32 0.0, %v3147_v53 }
 0xd83   : > { %11146 = vpow2.f32 %v3159_v9  ;;  %v3157_v36 = vmul.f32 1.442695, %v3155_v10  ;;  %v11833_v9 = vld [vmem:[%s14845_s3 + $0x10] sm:$0xff]  ;;  %v11834_v10 = vld [vmem:[%s14845_s3 + $0x18] sm:$0xff] }
 0xd85   : > { %11148 = vpow2.f32 %v3157_v36  ;;  %v11835_v36 = vld [vmem:[%s14845_s3 + $0x20] sm:$0xff] }
 0xd90   : > { %v11147_v52 = vpop.eup %11146 }
 0xd91   : > { %v3162_v46 = vadd.f32 1.0, %v11147_v52  ;;  %v11836_v52 = vld [vmem:[%s14845_s3 + $0x28] sm:$0xff] }
 0xd92   : > { %v11149_v61 = vpop.eup %11148 }
 0xd93   : > { %v3161_v7 = vadd.f32 1.0, %v11149_v61  ;;  %11150 = vrcp.f32 %v3162_v46  ;;  %v11837_v46 = vld [vmem:[%s14845_s3 + $0x30] sm:$0xff]  ;;  %v11838_v61 = vld [vmem:[%s14845_s3 + $0x38] sm:$0xff] }
 0xd95   : > { %11152 = vrcp.f32 %v3161_v7  ;;  %v11839_v7 = vld [vmem:[%s14845_s3 + $0x40] sm:$0xff] }
 0xda0   : > { %v11151_v48 = vpop.eup %11150 }
 0xda1   : > { %v3166_v55 = vmul.f32 %v11151_v48, %v3152_v14  ;;  %v12952_v14 = vld [vmem:[%s14845_s3] sm:$0xff]  ;;  %v11840_v48 = vld [vmem:[%s14845_s3 + $0x48] sm:$0xff] }
 0xda2   : > { %v11153_v27 = vpop.eup %11152 }
 0xda3   : > { %v3165_v20 = vmul.f32 %v11153_v27, %v3147_v53  ;;  %v11832_v53 = vld [vmem:[%s14845_s3 + $0x8] sm:$0xff]  ;;  %v11841_v27 = vld [vmem:[%s14845_s3 + $0x50] sm:$0xff] }
 0xda5   : > { %10126 = vmatprep.mubr.msk.f32.mxu0 %vm395_vm0, %v3165_v20  ;;  %v11842_v20 = vld [vmem:[%s14845_s3 + $0x58] sm:$0xff] }
 0xda6   : > { %10127 = vmatmul.mubr.msk.f32.vlgmr.msra.gmra.mxu0 %vm395_vm0, %v3166_v55  ;;  %v11843_v55 = vld [vmem:[%s14845_s3 + $0x60] sm:$0xff] }
 0xda7   : > { %10142 = vmatprep.mubr.msk.f32.mxu0 %vm666_vm2, %v12240_v29  ;;  %10141 = vmatpush3.msk.msra.mxu0 %vm671_vm1, %v3354_v33 }
 0xda8   : > { %10198 = vmatprep.subr.mxu0 %v3768_v13 }
 0xdaa   : > { %10143 = vmatmul.mubr.msk.f32.vlgmr.msra.gmra.mxu0 %vm666_vm2, %v12246_v31 }
 0xdab   : > { %10145 = vmatprep.mubr.msk.f32.mxu0 %vm666_vm2, %v12248_v35  ;;  %10199 = vmatpush3.msra.mxu0 %v3768_v13 }
 0xdae   : > { %10146 = vmatmul.mubr.msk.f32.gmra.mxu0 %vm666_vm2, %v12244_v30 }
 0xdaf   : > { %10148 = vmatprep.mubr.msk.f32.mxu0 %vm666_vm2, %v12252_v38 }
 0xdb2   : > { %10149 = vmatmul.mubr.msk.f32.gmra.mxu0 %vm666_vm2, %v12258_v40 }
 0xdb3   : > { %10151 = vmatprep.mubr.msk.f32.mxu0 %vm666_vm2, %v12264_v41 }
 0xdb6   : > { %10152 = vmatmul.mubr.msk.f32.gmra.mxu0 %vm666_vm2, %v12268_v43 }
 0xdb7   : > { %10154 = vmatprep.mubr.msk.f32.mxu0 %vm666_vm2, %v12272_v44 }
 0xdba   : > { %10155 = vmatmul.mubr.msk.f32.gmra.mxu0 %vm666_vm2, %v12278_v47 }
 0xdbb   : > { %10157 = vmatprep.mubr.msk.f32.mxu0 %vm666_vm2, %v14968_v6 }
 0xdbe   : > { %10158 = vmatmul.mubr.msk.f32.gmra.mxu0 %vm666_vm2, %v14969_v16 }
 0xdbf   : > { %10160 = vmatprep.mubr.msk.f32.mxu0 %vm666_vm2, %v14970_v28 }
 0xdc2   : > { %10161 = vmatmul.mubr.msk.f32.gmra.mxu0 %vm666_vm2, %v14971_v39 }
 0xdc3   : > { %10163 = vmatprep.mubr.msk.f32.mxu0 %vm666_vm2, %v14972_v17 }
 0xdc6   : > { %10164 = vmatmul.mubr.msk.f32.gmra.mxu0 %vm666_vm2, %v14973_v5 }
 0xe66   : > { %v10128_v25 = vpop.f32.mrf.mxu0 }
 0xe67   : > { %v3254_v8 = vadd.f32 %v10128_v25, %v8829_v1  ;;  %v3766_v25 = vld [vmem:[#allocation2 + $0x1d8] sm:$0xff] }
 0xe68   : > { %v3248_v59 = vpop.f32.mrf.mxu0 }
 0xe69   : > { %v3249_v32 = vadd.f32 %v8829_v1, %v3248_v59  ;;  %v3258_v22 = vadd.f32 %v3254_v8, %v12633_v26  ;;  %v3767_v1 = vld [vmem:[#allocation2 + $0x1e0] sm:$0xff]  ;;  %v3765_v8 = vld [vmem:[#allocation2 + $0x1d0] sm:$0xff] }
 0xe6a   : > { %10200 = vmatprep.subr.mxu0 %v3767_v1  ;;  %v10144_v59 = vpop.f32.mrf.mxu0 }
 0xe6b   : > { %v3257_v63 = vadd.f32 %v3249_v32, %v12630_v4  ;;  %v12943_v0 = vmul.f32 %v3258_v22, %v14976_v42  ;;  %10201 = vmatpush3.msra.mxu0 %v3767_v1 }
 0xe6c   : > { %10202 = vmatprep.subr.mxu0 %v3766_v25  ;;  %v3424_v32 = vpop.f32.mrf.mxu0 }
 0xe6d   : > { %v12940_v33 = vmul.f32 %v3257_v63, %v14974_v24  ;;  %14977 = vst [vmem:[#allocation25_spill] sm:$0xff] %v12943_v0  ;;  %10203 = vmatpush3.msra.mxu0 %v3766_v25 }
 0xe6e   : > { %10204 = vmatprep.subr.mxu0 %v3765_v8  ;;  %v10147_v22 = vpop.f32.mrf.mxu0 }
 0xe6f   : > { %14975 = vst [vmem:[#allocation27_spill] sm:$0xff] %v12940_v33  ;;  %10137 = vmatprep.mubr.msk.f32.mxu1 %vm395_vm0, %v12940_v33  ;;  %10205 = vmatpush3.msra.mxu0 %v3765_v8 }
 0xe70   : > { %10138 = vmatmul.mubr.msk.f32.vlgmr.msra.gmra.mxu1 %vm395_vm0, %v12943_v0  ;;  %v3434_v63 = vpop.f32.mrf.mxu0 }
 0xe71   : > { %10174 = vmatprep.mubr.msk.f32.mxu1 %vm395_vm0, %v12952_v14 }
 0xf30   : > { %v10139_v4 = vpop.f32.mrf.mxu1 }
 0xf31   : > { %3350 = vrot.lane.b32.xlu0 %v10139_v4, %s11948_s13 }
 0xf32   : > { %v3337_v26 = vpop.f32.mrf.mxu1 }
 0xf33   : > { %3348 = vrot.lane.b32.xlu1 %v3337_v26, %s11948_s13 }
 0xfa3   : > { %v3351_v54 = vpop.permute.xlu0 %3350 }
 0xfa4   : > { %10166 = vmatprep.subr.mxu1 %v3351_v54 }
 0xfa5   : > { %10167 = vmatpush3.msra.mxu1 %v3351_v54  ;;  %v3349_v15 = vpop.permute.xlu1 %3348 }
 0xfa6   : > { %10168 = vmatprep.subr.mxu1 %v3349_v15 }
 0xfa7   : > { %10169 = vmatpush3.msra.mxu1 %v3349_v15 }
 0xfa8   : > { %10170 = vmatprep.subr.mxu1 %v10139_v4 }
 0xfa9   : > { %10171 = vmatpush3.msra.mxu1 %v10139_v4  ;;  %v10150_v4 = vpop.f32.mrf.mxu0 }
 0xfaa   : > { %10172 = vmatprep.subr.mxu1 %v3337_v26 }
 0xfab   : > { %10173 = vmatpush3.msra.mxu1 %v3337_v26  ;;  %v3444_v26 = vpop.f32.mrf.mxu0 }
 0xfac   : > { %10175 = vmatmul.mubr.msk.f32.vlgmr.msra.gmra.mxu1 %vm395_vm0, %v11832_v53 }
 0xfad   : > { %10177 = vmatprep.mubr.msk.f32.mxu1 %vm395_vm0, %v11833_v9  ;;  %v10153_v54 = vpop.f32.mrf.mxu0  ;;  %v13018_v9 = vld [vmem:[#allocation2 + $0x1c8] ss:$0 sm:$0xff] }
 0xfaf   : > { %v3454_v15 = vpop.f32.mrf.mxu0 }
 0xfb0   : > { %10178 = vmatmul.mubr.msk.f32.gmra.mxu1 %vm395_vm0, %v11834_v10 }
 0xfb1   : > { %10180 = vmatprep.mubr.msk.f32.mxu1 %vm395_vm0, %v11835_v36  ;;  %v10156_v36 = vpop.f32.mrf.mxu0 }
 0xfb4   : > { %10181 = vmatmul.mubr.msk.f32.gmra.mxu1 %vm395_vm0, %v11836_v52 }
 0xfb5   : > { %10183 = vmatprep.mubr.msk.f32.mxu1 %vm395_vm0, %v11837_v46 }
 0xfb8   : > { %10184 = vmatmul.mubr.msk.f32.gmra.mxu1 %vm395_vm0, %v11838_v61 }
 0xfb9   : > { %10186 = vmatprep.mubr.msk.f32.mxu1 %vm395_vm0, %v11839_v7 }
 0xfbc   : > { %10187 = vmatmul.mubr.msk.f32.gmra.mxu1 %vm395_vm0, %v11840_v48 }
 0xfbd   : > { %10189 = vmatprep.mubr.msk.f32.mxu1 %vm395_vm0, %v11841_v27 }
 0xfc0   : > { %10190 = vmatmul.mubr.msk.f32.gmra.mxu1 %vm395_vm0, %v11842_v20 }
 0xfc1   : > { %10192 = vmatprep.mubr.msk.f32.mxu1 %vm395_vm0, %v11843_v55  ;;  %v3464_v55 = vpop.f32.mrf.mxu0 }
 0xfc4   : > { %10193 = vmatmul.mubr.msk.f32.gmra.mxu1 %vm395_vm0, %v11844_v18 }
 0xfc5   : > { %10195 = vmatprep.mubr.msk.f32.mxu1 %vm395_vm0, %v11845_v62 }
 0xfc8   : > { %10196 = vmatmul.mubr.msk.f32.gmra.mxu1 %vm395_vm0, %v11846_v23 }
0x106c   : > { %v10176_v53 = vpop.f32.mrf.mxu1 }
0x106d   : > { %v3575_v10 = vadd.f32 %v10176_v53, %v10144_v59  ;;  %v10159_v53 = vpop.f32.mrf.mxu0 }
0x106e   : > { %v3569_v52 = vpop.f32.mrf.mxu1 }
0x106f   : > { %v13021_v46 = vadd.f32 %v13018_v9, %v3575_v10  ;;  %v3570_v61 = vadd.f32 %v3569_v52, %v3424_v32 }
0x1070   : > { %v10179_v7 = vpop.f32.mrf.mxu1 }
0x1071   : > { %v3670_v48 = vsub.f32 0.0, %v13021_v46  ;;  %v13025_v27 = vadd.f32 %v13018_v9, %v3570_v61  ;;  %v3585_v20 = vadd.f32 %v10179_v7, %v10147_v22 }
0x1072   : > { %v3579_v18 = vpop.f32.mrf.mxu1 }
0x1073   : > { %v3687_v62 = vmul.f32 1.442695, %v3670_v48  ;;  %v3669_v23 = vsub.f32 0.0, %v13025_v27  ;;  %v13029_v13 = vadd.f32 %v13018_v9, %v3585_v20  ;;  %v3580_v1 = vadd.f32 %v3579_v18, %v3434_v63 }
0x1074   : > { %v10182_v25 = vpop.f32.mrf.mxu1 }
0x1075   : > { %11154 = vpow2.f32 %v3687_v62  ;;  %v3685_v8 = vmul.f32 1.442695, %v3669_v23  ;;  %v3672_v59 = vsub.f32 0.0, %v13029_v13  ;;  %v13033_v32 = vadd.f32 %v13018_v9, %v3580_v1  ;;  %v3474_v23 = vpop.f32.mrf.mxu0 }
0x1076   : > { %v3595_v10 = vadd.f32 %v10182_v25, %v10150_v4  ;;  %v3589_v22 = vpop.f32.mrf.mxu1 }
0x1077   : > { %11156 = vpow2.f32 %v3685_v8  ;;  %v3691_v52 = vmul.f32 1.442695, %v3672_v59  ;;  %v3671_v61 = vsub.f32 0.0, %v13033_v32  ;;  %v3590_v7 = vadd.f32 %v3589_v22, %v3444_v26 }
0x1078   : > { %v13037_v48 = vadd.f32 %v13018_v9, %v3595_v10  ;;  %v10185_v63 = vpop.f32.mrf.mxu1 }
0x1079   : > { %11158 = vpow2.f32 %v3691_v52  ;;  %v3689_v20 = vmul.f32 1.442695, %v3671_v61  ;;  %v13040_v18 = vadd.f32 %v13018_v9, %v3590_v7  ;;  %v3605_v62 = vadd.f32 %v10185_v63, %v10153_v54  ;;  %v10162_v7 = vpop.f32.mrf.mxu0 }
0x107a   : > { %v3674_v1 = vsub.f32 0.0, %v13037_v48  ;;  %v3599_v4 = vpop.f32.mrf.mxu1 }
0x107b   : > { %11160 = vpow2.f32 %v3689_v20  ;;  %v3673_v25 = vsub.f32 0.0, %v13040_v18  ;;  %v13045_v8 = vadd.f32 %v13018_v9, %v3605_v62  ;;  %v3600_v26 = vadd.f32 %v3599_v4, %v3454_v15  ;;  %v3484_v33 = vpop.f32.mrf.mxu0 }
0x107c   : > { %v3695_v59 = vmul.f32 1.442695, %v3674_v1  ;;  %v10188_v10 = vpop.f32.mrf.mxu1 }
0x107d   : > { %v3693_v22 = vmul.f32 1.442695, %v3673_v25  ;;  %v3676_v52 = vsub.f32 0.0, %v13045_v8  ;;  %v13049_v61 = vadd.f32 %v13018_v9, %v3600_v26  ;;  %v3615_v54 = vadd.f32 %v10188_v10, %v10156_v36 }
0x107e   : > { %11162 = vpow2.f32 %v3695_v59  ;;  %v3609_v63 = vpop.f32.mrf.mxu1 }
0x107f   : > { %11164 = vpow2.f32 %v3693_v22  ;;  %v3699_v20 = vmul.f32 1.442695, %v3676_v52  ;;  %v3675_v0 = vsub.f32 0.0, %v13049_v61  ;;  %v13053_v62 = vadd.f32 %v13018_v9, %v3615_v54 }
0x1080   : > { %v3610_v15 = vadd.f32 %v3609_v63, %v3464_v55  ;;  %v10191_v1 = vpop.f32.mrf.mxu1 }
0x1081   : > { %11166 = vpow2.f32 %v3699_v20  ;;  %v3697_v4 = vmul.f32 1.442695, %v3675_v0  ;;  %v3678_v25 = vsub.f32 0.0, %v13053_v62  ;;  %v3625_v42 = vadd.f32 %v10191_v1, %v10159_v53 }
0x1082   : > { %v11155_v26 = vpop.eup %11154  ;;  %v13057_v36 = vadd.f32 %v13018_v9, %v3610_v15  ;;  %v3619_v59 = vpop.f32.mrf.mxu1 }
0x1083   : > { %v3718_v10 = vadd.f32 1.0, %v11155_v26  ;;  %11168 = vpow2.f32 %v3697_v4  ;;  %v3703_v22 = vmul.f32 1.442695, %v3678_v25  ;;  %v13060_v52 = vadd.f32 %v13018_v9, %v3625_v42  ;;  %v10165_v15 = vpop.f32.mrf.mxu0 }
0x1084   : > { %v11157_v54 = vpop.eup %11156  ;;  %v3677_v55 = vsub.f32 0.0, %v13057_v36  ;;  %v3620_v63 = vadd.f32 %v3619_v59, %v3474_v23  ;;  %v10194_v0 = vpop.f32.mrf.mxu1 }
0x1085   : > { %11170 = vrcp.f32 %v3718_v10  ;;  %v3717_v20 = vadd.f32 1.0, %v11157_v54  ;;  %v3680_v53 = vsub.f32 0.0, %v13060_v52  ;;  %v3635_v1 = vadd.f32 %v10194_v0, %v10162_v7 }
0x1086   : > { %v11159_v24 = vpop.eup %11158  ;;  %11172 = vpow2.f32 %v3703_v22  ;;  %v3701_v51 = vmul.f32 1.442695, %v3677_v55  ;;  %v13065_v4 = vadd.f32 %v13018_v9, %v3620_v63  ;;  %v3629_v25 = vpop.f32.mrf.mxu1 }
0x1087   : > { %11174 = vrcp.f32 %v3717_v20  ;;  %v3720_v42 = vadd.f32 1.0, %v11159_v24  ;;  %v3707_v26 = vmul.f32 1.442695, %v3680_v53  ;;  %v13068_v3 = vadd.f32 %v13018_v9, %v3635_v1  ;;  %v3494_v63 = vpop.f32.mrf.mxu0 }
0x1088   : > { %v11161_v23 = vpop.eup %11160  ;;  %11176 = vpow2.f32 %v3701_v51  ;;  %v3679_v59 = vsub.f32 0.0, %v13065_v4  ;;  %v3630_v10 = vadd.f32 %v3629_v25, %v3484_v33  ;;  %v10197_v7 = vpop.f32.mrf.mxu1 }
0x1089   : > { %11178 = vrcp.f32 %v3720_v42  ;;  %v3719_v54 = vadd.f32 1.0, %v11161_v23  ;;  %v3682_v22 = vsub.f32 0.0, %v13068_v3  ;;  %v3645_v55 = vadd.f32 %v10197_v7, %v10165_v15 }
0x108a   : > { %11180 = vpow2.f32 %v3707_v26  ;;  %v3705_v0 = vmul.f32 1.442695, %v3679_v59  ;;  %v13073_v24 = vadd.f32 %v13018_v9, %v3630_v10  ;;  %v3639_v20 = vpop.f32.mrf.mxu1 }
0x108b   : > { %v11163_v53 = vpop.eup %11162  ;;  %11182 = vrcp.f32 %v3719_v54  ;;  %v3711_v1 = vmul.f32 1.442695, %v3682_v22  ;;  %v13076_v51 = vadd.f32 %v13018_v9, %v3645_v55  ;;  %v3640_v33 = vadd.f32 %v3639_v20, %v3494_v63 }
0x108c   : > { %v11165_v25 = vpop.eup %11164  ;;  %v3722_v42 = vadd.f32 1.0, %v11163_v53  ;;  %11184 = vpow2.f32 %v3705_v0  ;;  %v3681_v23 = vsub.f32 0.0, %v13073_v24 }
0x108d   : > { %v3721_v15 = vadd.f32 1.0, %v11165_v25  ;;  %11186 = vpow2.f32 %v3711_v1  ;;  %v3684_v26 = vsub.f32 0.0, %v13076_v51  ;;  %v13081_v59 = vadd.f32 %v13018_v9, %v3640_v33 }
0x108e   : > { %v11167_v10 = vpop.eup %11166  ;;  %11188 = vrcp.f32 %v3722_v42  ;;  %v3709_v7 = vmul.f32 1.442695, %v3681_v23 }
0x108f   : > { %11190 = vrcp.f32 %v3721_v15  ;;  %v3724_v54 = vadd.f32 1.0, %v11167_v10  ;;  %v3715_v22 = vmul.f32 1.442695, %v3684_v26  ;;  %v3683_v55 = vsub.f32 0.0, %v13081_v59 }
0x1090   : > { %v11169_v63 = vpop.eup %11168  ;;  %11192 = vpow2.f32 %v3709_v7 }
0x1091   : > { %11194 = vrcp.f32 %v3724_v54  ;;  %v3723_v0 = vadd.f32 1.0, %v11169_v63  ;;  %v3713_v20 = vmul.f32 1.442695, %v3683_v55 }
0x1092   : > { %v11171_v53 = vpop.eup %11170  ;;  %11196 = vpow2.f32 %v3715_v22 }
0x1093   : > { %v11173_v1 = vpop.eup %11172  ;;  %11198 = vrcp.f32 %v3723_v0  ;;  %v3750_v15 = vmul.f32 %v11171_v53, %v13021_v46 }
0x1094   : > { %v11175_v25 = vpop.eup %11174  ;;  %v3726_v9 = vadd.f32 1.0, %v11173_v1  ;;  %11200 = vpow2.f32 %v3713_v20 }
0x1095   : > { %v11177_v33 = vpop.eup %11176  ;;  %v3749_v42 = vmul.f32 %v11175_v25, %v13025_v27 }
0x1096   : > { %v11179_v23 = vpop.eup %11178  ;;  %v3725_v26 = vadd.f32 1.0, %v11177_v33  ;;  %11202 = vrcp.f32 %v3726_v9 }
0x1097   : > { %v11181_v10 = vpop.eup %11180  ;;  %10206 = vmatprep.mubr.msk.f32.mxu0 %vm395_vm0, %v3749_v42  ;;  %v3752_v0 = vmul.f32 %v11179_v23, %v13029_v13 }
0x1098   : > { %v11183_v7 = vpop.eup %11182  ;;  %11204 = vrcp.f32 %v3725_v26  ;;  %v3728_v54 = vadd.f32 1.0, %v11181_v10  ;;  %10207 = vmatmul.mubr.msk.f32.vlgmr.msra.gmra.mxu0 %vm395_vm0, %v3750_v15 }
0x1099   : > { %v11185_v22 = vpop.eup %11184  ;;  %v3751_v55 = vmul.f32 %v11183_v7, %v13033_v32 }
0x109a   : > { %v11187_v63 = vpop.eup %11186  ;;  %v3727_v27 = vadd.f32 1.0, %v11185_v22  ;;  %11206 = vrcp.f32 %v3728_v54 }
0x109b   : > { %v11189_v20 = vpop.eup %11188  ;;  %v3730_v46 = vadd.f32 1.0, %v11187_v63  ;;  %10209 = vmatprep.mubr.msk.f32.mxu0 %vm395_vm0, %v3751_v55 }
0x109c   : > { %v11191_v53 = vpop.eup %11190  ;;  %11208 = vrcp.f32 %v3727_v27  ;;  %10210 = vmatmul.mubr.msk.f32.gmra.mxu0 %vm395_vm0, %v3752_v0  ;;  %v3754_v33 = vmul.f32 %v11189_v20, %v13037_v48 }
0x109d   : > { %v11193_v1 = vpop.eup %11192  ;;  %v3753_v25 = vmul.f32 %v11191_v53, %v13040_v18  ;;  %11210 = vrcp.f32 %v3730_v46  ;;  %v4065_v53 = vld [vmem:[#allocation2 + $0x208] sm:$0xff] }
0x109e   : > { %v11195_v9 = vpop.eup %11194  ;;  %v3729_v32 = vadd.f32 1.0, %v11193_v1  ;;  %v4064_v1 = vld [vmem:[#allocation2 + $0x200] sm:$0xff] }
0x109f   : > { %v11197_v42 = vpop.eup %11196  ;;  %10212 = vmatprep.mubr.msk.f32.mxu0 %vm395_vm0, %v3753_v25  ;;  %v3756_v10 = vmul.f32 %v11195_v9, %v13045_v8 }
0x10a0   : > { %v11199_v13 = vpop.eup %11198  ;;  %11212 = vrcp.f32 %v3729_v32  ;;  %v3732_v23 = vadd.f32 1.0, %v11197_v42  ;;  %10213 = vmatmul.mubr.msk.f32.gmra.mxu0 %vm395_vm0, %v3754_v33 }
0x10a1   : > { %v11201_v15 = vpop.eup %11200  ;;  %v3755_v26 = vmul.f32 %v11199_v13, %v13049_v61 }
0x10a2   : > { %v3731_v7 = vadd.f32 1.0, %v11201_v15  ;;  %11214 = vrcp.f32 %v3732_v23 }
0x10a3   : > { %10215 = vmatprep.mubr.msk.f32.mxu0 %vm395_vm0, %v3755_v26  ;;  %v11203_v48 = vpop.eup %11202 }
0x10a4   : > { %11216 = vrcp.f32 %v3731_v7  ;;  %10216 = vmatmul.mubr.msk.f32.gmra.mxu0 %vm395_vm0, %v3756_v10  ;;  %v3758_v22 = vmul.f32 %v11203_v48, %v13053_v62 }
0x10a5   : > { %v11205_v18 = vpop.eup %11204 }
0x10a6   : > { %v3757_v54 = vmul.f32 %v11205_v18, %v13057_v36 }
0x10a7   : > { %v11207_v55 = vpop.eup %11206 }
0x10a8   : > { %10218 = vmatprep.mubr.msk.f32.mxu0 %vm395_vm0, %v3757_v54  ;;  %v3760_v61 = vmul.f32 %v11207_v55, %v13060_v52 }
0x10a9   : > { %v11209_v63 = vpop.eup %11208  ;;  %10219 = vmatmul.mubr.msk.f32.gmra.mxu0 %vm395_vm0, %v3758_v22 }
0x10aa   : > { %v3759_v8 = vmul.f32 %v11209_v63, %v13065_v4  ;;  %v11211_v0 = vpop.eup %11210 }
0x10ab   : > { %v3762_v62 = vmul.f32 %v11211_v0, %v13068_v3  ;;  %v4066_v3 = vld [vmem:[#allocation2 + $0x210] sm:$0xff] }
0x10ac   : > { %10221 = vmatprep.mubr.msk.f32.mxu0 %vm395_vm0, %v3759_v8  ;;  %10230 = vmatprep.subr.mxu1 %v4066_v3 }
0x10ad   : > { %v11213_v27 = vpop.eup %11212  ;;  %10222 = vmatmul.mubr.msk.f32.gmra.mxu0 %vm395_vm0, %v3760_v61  ;;  %10231 = vmatpush3.msra.mxu1 %v4066_v3 }
0x10ae   : > { %v3761_v36 = vmul.f32 %v11213_v27, %v13073_v24  ;;  %v11847_v24 = vld [vmem:[%s14846_s4] sm:$0xff]  ;;  %10232 = vmatprep.subr.mxu1 %v4065_v53 }
0x10af   : > { %v11215_v20 = vpop.eup %11214  ;;  %10233 = vmatpush3.msra.mxu1 %v4065_v53 }
0x10b0   : > { %10224 = vmatprep.mubr.msk.f32.mxu0 %vm395_vm0, %v3761_v36  ;;  %v3764_v52 = vmul.f32 %v11215_v20, %v13076_v51  ;;  %10234 = vmatprep.subr.mxu1 %v4064_v1  ;;  %v13119_v51 = vld [vmem:[#allocation2 + $0x1f0] ss:$0 sm:$0xff] }
0x10b1   : > { %v11217_v46 = vpop.eup %11216  ;;  %10225 = vmatmul.mubr.msk.f32.gmra.mxu0 %vm395_vm0, %v3762_v62  ;;  %10235 = vmatpush3.msra.mxu1 %v4064_v1 }
0x10b2   : > { %v3763_v4 = vmul.f32 %v11217_v46, %v13081_v59  ;;  %v4063_v59 = vld [vmem:[#allocation2 + $0x1f8] sm:$0xff] }
0x10b3   : > { %10236 = vmatprep.subr.mxu1 %v4063_v59 }
0x10b4   : > { %10227 = vmatprep.mubr.msk.f32.mxu0 %vm395_vm0, %v3763_v4  ;;  %10237 = vmatpush3.msra.mxu1 %v4063_v59 }
0x10b5   : > { %10228 = vmatmul.mubr.msk.f32.gmra.mxu0 %vm395_vm0, %v3764_v52 }
0x10b6   : > { %10294 = vmatprep.mubr.f32.mxu0 %v11847_v24 }
0x1158   : > { %v10208_v25 = vpop.f32.mrf.mxu0 }
0x1159   : > { %v13122_v9 = vadd.f32 %v10208_v25, %v13119_v51 }
0x115a   : > { %v3888_v33 = vpop.f32.mrf.mxu0 }
0x115b   : > { %v3968_v32 = vsub.f32 0.0, %v13122_v9  ;;  %v13126_v42 = vadd.f32 %v13119_v51, %v3888_v33 }
0x115c   : > { %v10211_v13 = vpop.f32.mrf.mxu0 }
0x115d   : > { %v3985_v23 = vmul.f32 1.442695, %v3968_v32  ;;  %v3967_v15 = vsub.f32 0.0, %v13126_v42  ;;  %v13130_v26 = vadd.f32 %v10211_v13, %v13119_v51 }
0x115e   : > { %v3898_v10 = vpop.f32.mrf.mxu0 }
0x115f   : > { %11218 = vpow2.f32 %v3985_v23  ;;  %v3983_v7 = vmul.f32 1.442695, %v3967_v15  ;;  %v3970_v48 = vsub.f32 0.0, %v13130_v26  ;;  %v13134_v18 = vadd.f32 %v13119_v51, %v3898_v10 }
0x1160   : > { %v10214_v54 = vpop.f32.mrf.mxu0 }
0x1161   : > { %11220 = vpow2.f32 %v3983_v7  ;;  %v3989_v22 = vmul.f32 1.442695, %v3970_v48  ;;  %v3969_v55 = vsub.f32 0.0, %v13134_v18  ;;  %v13138_v63 = vadd.f32 %v10214_v54, %v13119_v51 }
0x1162   : > { %v3908_v8 = vpop.f32.mrf.mxu0 }
0x1163   : > { %11222 = vpow2.f32 %v3989_v22  ;;  %v3987_v61 = vmul.f32 1.442695, %v3969_v55  ;;  %v3972_v0 = vsub.f32 0.0, %v13138_v63  ;;  %v13142_v27 = vadd.f32 %v13119_v51, %v3908_v8 }
0x1164   : > { %v10217_v36 = vpop.f32.mrf.mxu0 }
0x1165   : > { %11224 = vpow2.f32 %v3987_v61  ;;  %v3993_v62 = vmul.f32 1.442695, %v3972_v0  ;;  %v3971_v20 = vsub.f32 0.0, %v13142_v27  ;;  %v13146_v46 = vadd.f32 %v10217_v36, %v13119_v51 }
0x1166   : > { %v3918_v4 = vpop.f32.mrf.mxu0 }
0x1167   : > { %11226 = vpow2.f32 %v3993_v62  ;;  %v3991_v52 = vmul.f32 1.442695, %v3971_v20  ;;  %v3974_v24 = vsub.f32 0.0, %v13146_v46  ;;  %v13150_v3 = vadd.f32 %v13119_v51, %v3918_v4 }
0x1169   : > { %11228 = vpow2.f32 %v3991_v52  ;;  %v3997_v53 = vmul.f32 1.442695, %v3974_v24  ;;  %v3973_v1 = vsub.f32 0.0, %v13150_v3  ;;  %v10220_v59 = vpop.f32.mrf.mxu0 }
0x116a   : > { %v13154_v25 = vadd.f32 %v10220_v59, %v13119_v51 }
0x116b   : > { %11230 = vpow2.f32 %v3997_v53  ;;  %v3995_v33 = vmul.f32 1.442695, %v3973_v1  ;;  %v3928_v32 = vpop.f32.mrf.mxu0 }
0x116c   : > { %v11219_v13 = vpop.eup %11218  ;;  %v3976_v23 = vsub.f32 0.0, %v13154_v25  ;;  %v13158_v15 = vadd.f32 %v13119_v51, %v3928_v32 }
0x116d   : > { %v4016_v10 = vadd.f32 1.0, %v11219_v13  ;;  %11232 = vpow2.f32 %v3995_v33  ;;  %v10223_v7 = vpop.f32.mrf.mxu0 }
0x116e   : > { %v11221_v48 = vpop.eup %11220  ;;  %v4001_v54 = vmul.f32 1.442695, %v3976_v23  ;;  %v3975_v22 = vsub.f32 0.0, %v13158_v15  ;;  %v13162_v55 = vadd.f32 %v10223_v7, %v13119_v51 }
0x116f   : > { %11234 = vrcp.f32 %v4016_v10  ;;  %v4015_v8 = vadd.f32 1.0, %v11221_v48  ;;  %v3938_v61 = vpop.f32.mrf.mxu0 }
0x1170   : > { %v11223_v0 = vpop.eup %11222  ;;  %11236 = vpow2.f32 %v4001_v54  ;;  %v3999_v36 = vmul.f32 1.442695, %v3975_v22  ;;  %v3978_v62 = vsub.f32 0.0, %v13162_v55  ;;  %v13166_v20 = vadd.f32 %v13119_v51, %v3938_v61 }
0x1171   : > { %11238 = vrcp.f32 %v4015_v8  ;;  %v4018_v4 = vadd.f32 1.0, %v11223_v0  ;;  %v10226_v52 = vpop.f32.mrf.mxu0 }
0x1172   : > { %v11225_v24 = vpop.eup %11224  ;;  %11240 = vpow2.f32 %v3999_v36  ;;  %v4005_v53 = vmul.f32 1.442695, %v3978_v62  ;;  %v3977_v1 = vsub.f32 0.0, %v13166_v20  ;;  %v13170_v59 = vadd.f32 %v10226_v52, %v13119_v51 }
0x1173   : > { %11242 = vrcp.f32 %v4018_v4  ;;  %v4017_v33 = vadd.f32 1.0, %v11225_v24  ;;  %v3948_v32 = vpop.f32.mrf.mxu0 }
0x1174   : > { %v11227_v13 = vpop.eup %11226  ;;  %11244 = vpow2.f32 %v4005_v53  ;;  %v4003_v23 = vmul.f32 1.442695, %v3977_v1  ;;  %v3980_v10 = vsub.f32 0.0, %v13170_v59  ;;  %v13174_v7 = vadd.f32 %v13119_v51, %v3948_v32 }
0x1175   : > { %11246 = vrcp.f32 %v4017_v33  ;;  %v4020_v48 = vadd.f32 1.0, %v11227_v13  ;;  %v10229_v54 = vpop.f32.mrf.mxu0 }
0x1176   : > { %v11229_v22 = vpop.eup %11228  ;;  %11248 = vpow2.f32 %v4003_v23  ;;  %v4009_v8 = vmul.f32 1.442695, %v3980_v10  ;;  %v3979_v61 = vsub.f32 0.0, %v13174_v7  ;;  %v13178_v0 = vadd.f32 %v10229_v54, %v13119_v51 }
0x1177   : > { %11250 = vrcp.f32 %v4020_v48  ;;  %v4019_v36 = vadd.f32 1.0, %v11229_v22  ;;  %v3958_v62 = vpop.f32.mrf.mxu0 }
0x1178   : > { %v11231_v4 = vpop.eup %11230  ;;  %11252 = vpow2.f32 %v4009_v8  ;;  %v4007_v52 = vmul.f32 1.442695, %v3979_v61  ;;  %v3982_v24 = vsub.f32 0.0, %v13178_v0  ;;  %v13182_v53 = vadd.f32 %v13119_v51, %v3958_v62 }
0x1179   : > { %11254 = vrcp.f32 %v4019_v36  ;;  %v4022_v1 = vadd.f32 1.0, %v11231_v4 }
0x117a   : > { %v11233_v33 = vpop.eup %11232  ;;  %11256 = vpow2.f32 %v4007_v52  ;;  %v4013_v32 = vmul.f32 1.442695, %v3982_v24  ;;  %v3981_v13 = vsub.f32 0.0, %v13182_v53 }
0x117b   : > { %11258 = vrcp.f32 %v4022_v1  ;;  %v4021_v23 = vadd.f32 1.0, %v11233_v33 }
0x117c   : > { %v11235_v10 = vpop.eup %11234  ;;  %11260 = vpow2.f32 %v4013_v32  ;;  %v4011_v48 = vmul.f32 1.442695, %v3981_v13 }
0x117d   : > { %v11237_v54 = vpop.eup %11236  ;;  %11262 = vrcp.f32 %v4021_v23  ;;  %v4048_v62 = vmul.f32 %v11235_v10, %v13122_v9 }
0x117e   : > { %v11239_v22 = vpop.eup %11238  ;;  %v4024_v8 = vadd.f32 1.0, %v11237_v54  ;;  %11264 = vpow2.f32 %v4011_v48 }
0x117f   : > { %v11241_v61 = vpop.eup %11240  ;;  %v4047_v51 = vmul.f32 %v11239_v22, %v13126_v42 }
0x1180   : > { %v11243_v36 = vpop.eup %11242  ;;  %v4023_v4 = vadd.f32 1.0, %v11241_v61  ;;  %11266 = vrcp.f32 %v4024_v8 }
0x1181   : > { %v11245_v52 = vpop.eup %11244  ;;  %10238 = vmatprep.mubr.msk.f32.mxu1 %vm395_vm0, %v4047_v51  ;;  %v4050_v23 = vmul.f32 %v11243_v36, %v13130_v26 }
0x1182   : > { %v11247_v24 = vpop.eup %11246  ;;  %11268 = vrcp.f32 %v4023_v4  ;;  %v4026_v1 = vadd.f32 1.0, %v11245_v52  ;;  %10239 = vmatmul.mubr.msk.f32.vlgmr.msra.gmra.mxu1 %vm395_vm0, %v4048_v62 }
0x1183   : > { %v11249_v33 = vpop.eup %11248  ;;  %v4049_v32 = vmul.f32 %v11247_v24, %v13134_v18 }
0x1184   : > { %v11251_v13 = vpop.eup %11250  ;;  %v4025_v42 = vadd.f32 1.0, %v11249_v33  ;;  %11270 = vrcp.f32 %v4026_v1 }
0x1185   : > { %v11253_v48 = vpop.eup %11252  ;;  %10241 = vmatprep.mubr.msk.f32.mxu1 %vm395_vm0, %v4049_v32  ;;  %v4052_v61 = vmul.f32 %v11251_v13, %v13138_v63 }
0x1186   : > { %v11255_v9 = vpop.eup %11254  ;;  %11272 = vrcp.f32 %v4025_v42  ;;  %v4028_v10 = vadd.f32 1.0, %v11253_v48  ;;  %10242 = vmatmul.mubr.msk.f32.gmra.mxu1 %vm395_vm0, %v4050_v23 }
0x1187   : > { %v11257_v54 = vpop.eup %11256  ;;  %v4051_v22 = vmul.f32 %v11255_v9, %v13142_v27 }
0x1188   : > { %v11259_v8 = vpop.eup %11258  ;;  %v4027_v18 = vadd.f32 1.0, %v11257_v54  ;;  %11274 = vrcp.f32 %v4028_v10 }
0x1189   : > { %v11261_v51 = vpop.eup %11260  ;;  %10244 = vmatprep.mubr.msk.f32.mxu1 %vm395_vm0, %v4051_v22  ;;  %v4054_v52 = vmul.f32 %v11259_v8, %v13146_v46 }
0x118a   : > { %v11263_v26 = vpop.eup %11262  ;;  %11276 = vrcp.f32 %v4027_v18  ;;  %v4030_v36 = vadd.f32 1.0, %v11261_v51  ;;  %10245 = vmatmul.mubr.msk.f32.gmra.mxu1 %vm395_vm0, %v4052_v61 }
0x118b   : > { %v11265_v62 = vpop.eup %11264  ;;  %v4053_v4 = vmul.f32 %v11263_v26, %v13150_v3 }
0x118c   : > { %v4029_v24 = vadd.f32 1.0, %v11265_v62  ;;  %11278 = vrcp.f32 %v4030_v36 }
0x118d   : > { %10247 = vmatprep.mubr.msk.f32.mxu1 %vm395_vm0, %v4053_v4  ;;  %v11267_v63 = vpop.eup %11266 }
0x118e   : > { %11280 = vrcp.f32 %v4029_v24  ;;  %10248 = vmatmul.mubr.msk.f32.gmra.mxu1 %vm395_vm0, %v4054_v52  ;;  %v4056_v33 = vmul.f32 %v11267_v63, %v13154_v25  ;;  %v764_v24 = vadd.f32 1e-08, %v14972_v17  ;;  %v13222_v63 = vadd.f32 1e-08, %v14971_v39 }
0x118f   : > { %v11269_v27 = vpop.eup %11268 }
0x1190   : > { %v4055_v1 = vmul.f32 %v11269_v27, %v13158_v15  ;;  %v13225_v27 = vadd.f32 1e-08, %v14970_v28  ;;  %vm866_vm6 = vcmp.eq.f32.partialorder %v764_v24, inf  ;;  %vm859_vm7 = vcmp.eq.f32.partialorder %v13222_v63, inf }
0x1191   : > { %v11271_v32 = vpop.eup %11270  ;;  %vm868_vm9 = vcmp.eq.f32.partialorder %v764_v24, 0.0  ;;  %vm861_vm10 = vcmp.eq.f32.partialorder %v13222_v63, 0.0 }
0x1192   : > { %10250 = vmatprep.mubr.msk.f32.mxu1 %vm395_vm0, %v4055_v1  ;;  %v4058_v3 = vmul.f32 %v11271_v32, %v13162_v55  ;;  %v13228_v1 = vadd.f32 1e-08, %v14969_v16  ;;  %v13236_v32 = vadd.f32 1e-08, %v12278_v47  ;;  %vm852_vm11 = vcmp.eq.f32.partialorder %v13225_v27, inf }
0x1193   : > { %v11273_v13 = vpop.eup %11272  ;;  %10251 = vmatmul.mubr.msk.f32.gmra.mxu1 %vm395_vm0, %v4056_v33  ;;  %v13232_v33 = vadd.f32 1e-08, %v14968_v6  ;;  %vm854_vm14 = vcmp.eq.f32.partialorder %v13225_v27, 0.0 }
0x1194   : > { %v4057_v46 = vmul.f32 %v11273_v13, %v13166_v20  ;;  %v13240_v13 = vadd.f32 1e-08, %v12272_v44  ;;  %vm845_vm12 = vcmp.eq.f32.partialorder %v13228_v1, inf  ;;  %vm847_vm13 = vcmp.eq.f32.partialorder %v13228_v1, 0.0 }
0x1195   : > { %v11275_v23 = vpop.eup %11274  ;;  %vm838_vm15 = vcmp.eq.f32.partialorder %v13232_v33, inf }
0x1196   : > { %10253 = vmatprep.mubr.msk.f32.mxu1 %vm395_vm0, %v4057_v46  ;;  %v4060_v25 = vmul.f32 %v11275_v23, %v13170_v59  ;;  %v13244_v46 = vadd.f32 1e-08, %v12268_v43  ;;  %v13248_v23 = vadd.f32 1e-08, %v12264_v41 }
0x1197   : > { %v11277_v42 = vpop.eup %11276  ;;  %10254 = vmatmul.mubr.msk.f32.gmra.mxu1 %vm395_vm0, %v4058_v3 }
0x1198   : > { %v4059_v15 = vmul.f32 %v11277_v42, %v13174_v7 }
0x1199   : > { %v11279_v48 = vpop.eup %11278 }
0x119a   : > { %10256 = vmatprep.mubr.msk.f32.mxu1 %vm395_vm0, %v4059_v15  ;;  %v4062_v55 = vmul.f32 %v11279_v48, %v13178_v0  ;;  %v13252_v15 = vadd.f32 1e-08, %v12246_v31 }
0x119b   : > { %v11281_v9 = vpop.eup %11280  ;;  %10257 = vmatmul.mubr.msk.f32.gmra.mxu1 %vm395_vm0, %v4060_v25  ;;  %v13255_v25 = vadd.f32 1e-08, %v12258_v40 }
0x119c   : > { %v4061_v20 = vmul.f32 %v11281_v9, %v13182_v53 }
0x119e   : > { %10259 = vmatprep.mubr.msk.f32.mxu1 %vm395_vm0, %v4061_v20  ;;  %v13259_v20 = vadd.f32 1e-08, %v12252_v38 }
0x119f   : > { %10260 = vmatmul.mubr.msk.f32.gmra.mxu1 %vm395_vm0, %v4062_v55 }
0x11a0   : > { %10305 = vmatprep.mubr.msk.f32.mxu1 %vm395_vm0, %v12952_v14  ;;  %v765_v14 = vadd.f32 1e-08, %v14973_v5 }
0x11a2   : > { %11282 = vrsqrt.f32 %v765_v14  ;;  %vm873_vm5 = vcmp.eq.f32.partialorder %v765_v14, inf  ;;  %vm875_vm8 = vcmp.eq.f32.partialorder %v765_v14, 0.0 }
0x11a3   : > { %11284 = vrsqrt.f32 %v764_v24 }
0x11a4   : > { %11286 = vrsqrt.f32 %v13222_v63 }
0x11a5   : > { %11288 = vrsqrt.f32 %v13225_v27 }
0x11a6   : > { %11290 = vrsqrt.f32 %v13228_v1 }
0x11a7   : > { %11292 = vrsqrt.f32 %v13232_v33 }
0x11a8   : > { %11294 = vrsqrt.f32 %v13236_v32 }
0x11a9   : > { %11296 = vrsqrt.f32 %v13240_v13 }
0x11aa   : > { %11298 = vrsqrt.f32 %v13244_v46 }
0x11ab   : > { %11300 = vrsqrt.f32 %v13248_v23 }
0x11ac   : > { %11302 = vrsqrt.f32 %v13252_v15 }
0x11ad   : > { %11304 = vrsqrt.f32 %v13255_v25 }
0x11ae   : > { %11306 = vrsqrt.f32 %v13259_v20 }
0x11af   : > { %v11283_v3 = vpop.eup %11282 }
0x11b0   : > { %v11285_v42 = vpop.eup %11284  ;;  %v872_v48 = vmul.f32 %v11283_v3, %v765_v14 }
0x11b1   : > { %v11287_v9 = vpop.eup %11286  ;;  %v865_v55 = vmul.f32 %v11285_v42, %v764_v24 }
0x1242   : > { %v10240_v7 = vpop.f32.mrf.mxu1 }
0x1244   : > { %v4181_v10 = vpop.f32.mrf.mxu1 }
0x1246   : > { %v10243_v59 = vpop.f32.mrf.mxu1 }
0x1248   : > { %v4191_v54 = vpop.f32.mrf.mxu1 }
0x124a   : > { %v10246_v22 = vpop.f32.mrf.mxu1 }
0x124c   : > { %v4201_v8 = vpop.f32.mrf.mxu1 }
0x124e   : > { %v10249_v61 = vpop.f32.mrf.mxu1 }
0x1250   : > { %v4211_v18 = vpop.f32.mrf.mxu1 }
0x1253   : > { %v10252_v51 = vpop.f32.mrf.mxu1 }
0x1255   : > { %v4221_v26 = vpop.f32.mrf.mxu1 }
0x1257   : > { %v10255_v53 = vpop.f32.mrf.mxu1 }
0x1259   : > { %v4231_v36 = vpop.f32.mrf.mxu1 }
0x125b   : > { %v10258_v0 = vpop.f32.mrf.mxu1 }
0x125d   : > { %v4241_v62 = vpop.f32.mrf.mxu1 }
0x125f   : > { %v10261_v4 = vpop.f32.mrf.mxu1 }
0x1260   : > { %4337 = vperm.xlu0 %10880, %v10261_v4  }
0x1261   : > { %v4251_v52 = vpop.f32.mrf.mxu1 }
0x1262   : > { %4332 = vperm.xlu1 %10881, %v4251_v52  }
0x1264   : > { %4327 = vperm.xlu0 %10880, %v10258_v0   ;;  %v869_v0 = vand.u32 2147483648, %v764_v24 }
0x1266   : > { %4322 = vperm.xlu1 %10881, %v4241_v62   ;;  %v862_v62 = vand.u32 2147483648, %v13222_v63 }
0x1268   : > { %4317 = vperm.xlu0 %10880, %v10255_v53  }
0x126a   : > { %4312 = vperm.xlu1 %10881, %v4231_v36  }
0x126c   : > { %4307 = vperm.xlu0 %10880, %v10252_v51   ;;  %v867_v51 = vsel %vm866_vm6, %v764_v24, %v865_v55  ;;  %v855_v55 = vand.u32 2147483648, %v13225_v27  ;;  %vm824_vm6 = vcmp.eq.f32.partialorder %v13240_v13, inf }
0x126e   : > { %4302 = vperm.xlu1 %10881, %v4221_v26  }
0x1270   : > { %4297 = vperm.xlu0 %10880, %v10249_v61   ;;  %v13272_v61 = vadd.f32 1e-08, %v12248_v35 }
0x1272   : > { %4292 = vperm.xlu1 %10881, %v4211_v18   ;;  %v876_v18 = vand.u32 2147483648, %v765_v14 }
0x1274   : > { %4287 = vperm.xlu0 %10880, %v10246_v22   ;;  %v858_v22 = vmul.f32 %v11287_v9, %v13222_v63 }
0x1276   : > { %4282 = vperm.xlu1 %10881, %v4201_v8   ;;  %v860_v4 = vsel %vm859_vm7, %v13222_v63, %v858_v22  ;;  %v848_v63 = vand.u32 2147483648, %v13228_v1  ;;  %vm833_vm7 = vcmp.eq.f32.partialorder %v13236_v32, 0.0 }
0x1277   : > { %v863_v9 = vsel %vm861_vm10, %v862_v62, %v860_v4  ;;  %vm826_vm10 = vcmp.eq.f32.partialorder %v13240_v13, 0.0 }
0x1278   : > { %4277 = vperm.xlu0 %10880, %v10243_v59   ;;  %v13267_v59 = vadd.f32 1e-08, %v12240_v29 }
0x127a   : > { %4272 = vperm.xlu1 %10881, %v4191_v54   ;;  %v874_v54 = vsel %vm873_vm5, %v765_v14, %v872_v48  ;;  %v870_v14 = vsel %vm868_vm9, %v869_v0, %v867_v51  ;;  %vm831_vm5 = vcmp.eq.f32.partialorder %v13236_v32, inf  ;;  %vm817_vm9 = vcmp.eq.f32.partialorder %v13244_v46, inf }
0x127b   : > { %v877_v36 = vsel %vm875_vm8, %v876_v18, %v874_v54  ;;  %vm840_vm8 = vcmp.eq.f32.partialorder %v13232_v33, 0.0 }
0x127c   : > { %4267 = vperm.xlu0 %10880, %v10240_v7   ;;  %v11289_v7 = vpop.eup %11288 }
0x127d   : > { %v11291_v8 = vpop.eup %11290  ;;  %v851_v26 = vmul.f32 %v11289_v7, %v13225_v27 }
0x127e   : > { %4262 = vperm.xlu1 %10881, %v4181_v10   ;;  %v13264_v10 = vadd.f32 1e-08, %v12244_v30  ;;  %v11293_v53 = vpop.eup %11292  ;;  %v844_v52 = vmul.f32 %v11291_v8, %v13228_v1 }
0x127f   : > { %v11295_v3 = vpop.eup %11294  ;;  %v853_v42 = vsel %vm852_vm11, %v13225_v27, %v851_v26  ;;  %v837_v48 = vmul.f32 %v11293_v53, %v13232_v33  ;;  %v841_v53 = vand.u32 2147483648, %v13232_v33  ;;  %vm810_vm11 = vcmp.eq.f32.partialorder %v13248_v23, inf }
0x1280   : > { %11308 = vrsqrt.f32 %v13264_v10  ;;  %v11297_v24 = vpop.eup %11296  ;;  %v846_v7 = vsel %vm845_vm12, %v13228_v1, %v844_v52  ;;  %v830_v54 = vmul.f32 %v11295_v3, %v13236_v32  ;;  %v856_v8 = vsel %vm854_vm14, %v855_v55, %v853_v42 }
0x1281   : > { %11310 = vrsqrt.f32 %v13272_v61  ;;  %v11299_v22 = vpop.eup %11298  ;;  %v839_v18 = vsel %vm838_vm15, %v13232_v33, %v837_v48  ;;  %v823_v51 = vmul.f32 %v11297_v24, %v13240_v13  ;;  %v849_v26 = vsel %vm847_vm13, %v848_v63, %v846_v7 }
0x1282   : > { %11312 = vrcp.f32 %v877_v36  ;;  %v11301_v27 = vpop.eup %11300  ;;  %v834_v36 = vand.u32 2147483648, %v13236_v32  ;;  %v832_v62 = vsel %vm831_vm5, %v13236_v32, %v830_v54  ;;  %v816_v4 = vmul.f32 %v11299_v22, %v13244_v46 }
0x1283   : > { %11314 = vrcp.f32 %v870_v14  ;;  %v11303_v0 = vpop.eup %11302  ;;  %v842_v3 = vsel %vm840_vm8, %v841_v53, %v839_v18  ;;  %v827_v14 = vand.u32 2147483648, %v13240_v13  ;;  %v825_v1 = vsel %vm824_vm6, %v13240_v13, %v823_v51 }
0x1284   : > { %11316 = vrsqrt.f32 %v13267_v59  ;;  %v11305_v52 = vpop.eup %11304  ;;  %v809_v42 = vmul.f32 %v11301_v27, %v13248_v23  ;;  %v835_v48 = vsel %vm833_vm7, %v834_v36, %v832_v62  ;;  %v820_v24 = vand.u32 2147483648, %v13244_v46 }
0x1285   : > { %11318 = vrcp.f32 %v863_v9  ;;  %v11307_v33 = vpop.eup %11306  ;;  %v818_v55 = vsel %vm817_vm9, %v13244_v46, %v816_v4  ;;  %vm819_vm12 = vcmp.eq.f32.partialorder %v13244_v46, 0.0  ;;  %v802_v63 = vmul.f32 %v11305_v52, %v13255_v25  ;;  %v14978_v4 = vld [vmem:[#allocation23_spill] sm:$0xff] }
0x1286   : > { %11320 = vrcp.f32 %v856_v8  ;;  %vm775_vm13 = vcmp.eq.f32.partialorder %v13252_v15, inf  ;;  %v828_v13 = vsel %vm826_vm10, %v827_v14, %v825_v1  ;;  %v813_v7 = vand.u32 2147483648, %v13248_v23 }
0x1287   : > { %11322 = vrcp.f32 %v849_v26  ;;  %vm803_vm14 = vcmp.eq.f32.partialorder %v13255_v25, inf  ;;  %vm789_vm15 = vcmp.eq.f32.partialorder %v13264_v10, inf  ;;  %v811_v54 = vsel %vm810_vm11, %v13248_v23, %v809_v42 }
0x1288   : > { %11324 = vrcp.f32 %v842_v3  ;;  %vm812_vm5 = vcmp.eq.f32.partialorder %v13248_v23, 0.0  ;;  %v795_v22 = vmul.f32 %v11307_v33, %v13259_v20  ;;  %vm768_vm6 = vcmp.eq.f32.partialorder %v13267_v59, inf }
0x1289   : > { %11326 = vrcp.f32 %v835_v48  ;;  %v821_v8 = vsel %vm819_vm12, %v820_v24, %v818_v55  ;;  %v806_v18 = vand.u32 2147483648, %v13255_v25  ;;  %vm796_vm7 = vcmp.eq.f32.partialorder %v13259_v20, inf  ;;  %v14979_v24 = vld [vmem:[#allocation24_spill] sm:$0xff] }
0x128a   : > { %vm791_vm8 = vcmp.eq.f32.partialorder %v13264_v10, 0.0  ;;  %11328 = vrcp.f32 %v828_v13  ;;  %v804_v51 = vsel %vm803_vm14, %v13255_v25, %v802_v63  ;;  %vm805_vm9 = vcmp.eq.f32.partialorder %v13255_v25, 0.0 }
0x128b   : > { %v814_v26 = vsel %vm812_vm5, %v813_v7, %v811_v54  ;;  %vm798_vm10 = vcmp.eq.f32.partialorder %v13259_v20, 0.0  ;;  %v799_v53 = vand.u32 2147483648, %v13259_v20  ;;  %11330 = vrcp.f32 %v821_v8  ;;  %v14980_v8 = vld [vmem:[#allocation21_spill] sm:$0xff] }
0x128c   : > { %v797_v3 = vsel %vm796_vm7, %v13259_v20, %v795_v22  ;;  %vm782_vm11 = vcmp.eq.f32.partialorder %v13272_v61, inf  ;;  %v807_v1 = vsel %vm805_vm9, %v806_v18, %v804_v51  ;;  %v792_v42 = vand.u32 2147483648, %v13264_v10 }
0x128d   : > { %v11309_v9 = vpop.eup %11308  ;;  %vm784_vm12 = vcmp.eq.f32.partialorder %v13272_v61, 0.0  ;;  %v774_v33 = vmul.f32 %v11303_v0, %v13252_v15  ;;  %11332 = vrcp.f32 %v814_v26  ;;  %v800_v7 = vsel %vm798_vm10, %v799_v53, %v797_v3 }
0x128e   : > { %v11311_v32 = vpop.eup %11310  ;;  %v788_v27 = vmul.f32 %v11309_v9, %v13264_v10  ;;  %v785_v54 = vand.u32 2147483648, %v13272_v61  ;;  %11334 = vrcp.f32 %v807_v1  ;;  %vm777_vm14 = vcmp.eq.f32.partialorder %v13252_v15, 0.0 }
0x128f   : > { %v11313_v46 = vpop.eup %11312  ;;  %v781_v36 = vmul.f32 %v11311_v32, %v13272_v61  ;;  %v776_v20 = vsel %vm775_vm13, %v13252_v15, %v774_v33  ;;  %v778_v26 = vand.u32 2147483648, %v13252_v15  ;;  %11336 = vrcp.f32 %v800_v7  ;;  %v14982_v33 = vld [vmem:[#allocation19_spill] sm:$0xff] }
0x1290   : > { %v11315_v23 = vpop.eup %11314  ;;  %v925_v52 = vmul.f32 %v11313_v46, %v14978_v4  ;;  %v790_v55 = vsel %vm789_vm15, %v13264_v10, %v788_v27  ;;  %vm770_vm13 = vcmp.eq.f32.partialorder %v13267_v59, 0.0  ;;  %vm4840_vm15 = vcmask 7168  }
0x1291   : > { %v11317_v62 = vpop.eup %11316  ;;  %v924_v9 = vmul.f32 %v11315_v23, %v14979_v24  ;;  %v783_v32 = vsel %vm782_vm11, %v13272_v61, %v781_v36  ;;  %v793_v27 = vsel %vm791_vm8, %v792_v42, %v790_v55  ;;  %v779_v61 = vsel %vm777_vm14, %v778_v26, %v776_v20  ;;  %v14985_v20 = vld [vmem:[#allocation18_spill] sm:$0xff] }
0x1292   : > { %v11319_v14 = vpop.eup %11318  ;;  %v767_v22 = vmul.f32 %v11317_v62, %v13267_v59  ;;  %v14981_v62 = vld [vmem:[#allocation22_spill] sm:$0xff]  ;;  %v786_v10 = vsel %vm784_vm12, %v785_v54, %v783_v32  ;;  %11338 = vrcp.f32 %v793_v27 }
0x1293   : > { %v11321_v63 = vpop.eup %11320  ;;  %v923_v18 = vmul.f32 %v11319_v14, %v14980_v8  ;;  %11340 = vrcp.f32 %v786_v10  ;;  %v14984_v8 = vld [vmem:[#allocation17_spill] sm:$0xff] }
0x1294   : > { %v11323_v51 = vpop.eup %11322  ;;  %v922_v4 = vmul.f32 %v11321_v63, %v14981_v62  ;;  %v769_v14 = vsel %vm768_vm6, %v13267_v59, %v767_v22  ;;  %11342 = vrcp.f32 %v779_v61  ;;  %v14988_v61 = vld [vmem:[#allocation13_spill] sm:$0xff] }
0x12db   : > { %v4338_v25 = vpop.permute.xlu0 %4337 }
0x12dc   : > { %v4355_v48 = vmul.f32 %v4338_v25, %v925_v52  ;;  %v11325_v52 = vpop.eup %11324  ;;  %v771_v25 = vand.u32 2147483648, %v13267_v59 }
0x12dd   : > { %v4333_v13 = vpop.permute.xlu1 %4332  ;;  %v11327_v24 = vpop.eup %11326 }
0x12de   : > { %v4371_v0 = vmul.f32 %v4355_v48, %v12515_v50  ;;  %v4354_v46 = vmul.f32 %v4333_v13, %v924_v9  ;;  %v921_v48 = vmul.f32 %v11323_v51, %v14982_v33  ;;  %v14983_v13 = vld [vmem:[#allocation20_spill] sm:$0xff]  ;;  %v11329_v32 = vpop.eup %11328  ;;  %v772_v22 = vsel %vm770_vm13, %v771_v25, %v769_v14 }
0x12df   : > { %v4328_v23 = vpop.permute.xlu0 %4327  ;;  %v920_v7 = vmul.f32 %v11325_v52, %v14983_v13  ;;  %v919_v15 = vmul.f32 %v11327_v24, %v14984_v8  ;;  %v918_v26 = vmul.f32 %v11329_v32, %v14985_v20  ;;  %11344 = vrcp.f32 %v772_v22 }
0x12e0   : > { %v4370_v53 = vmul.f32 %v4354_v46, %v12520_v34  ;;  %v4353_v36 = vmul.f32 %v4328_v23, %v923_v18  ;;  %10262 = vmatprep.subr.mxu0 %v4371_v0  ;;  %v11331_v18 = vpop.eup %11330 }
0x12e1   : > { %10263 = vmatpush3.msra.mxu0 %v4371_v0  ;;  %v4323_v3 = vpop.permute.xlu1 %4322 }
0x12e2   : > { %v4369_v1 = vmul.f32 %v4353_v36, %v12518_v56  ;;  %v4352_v42 = vmul.f32 %v4323_v3, %v922_v4  ;;  %10264 = vmatprep.subr.mxu0 %v4370_v53  ;;  %v14986_v4 = vld [vmem:[#allocation15_spill] sm:$0xff] }
0x12e3   : > { %v4318_v9 = vpop.permute.xlu0 %4317  ;;  %10265 = vmatpush3.msra.mxu0 %v4370_v53  ;;  %v11333_v53 = vpop.eup %11332  ;;  %v917_v52 = vmul.f32 %v11331_v18, %v14986_v4  ;;  %v14990_v18 = vld [vmem:[#allocation11_spill] sm:$0xff] }
0x12e4   : > { %v4368_v55 = vmul.f32 %v4352_v42, %v12522_v60  ;;  %v4351_v63 = vmul.f32 %v4318_v9, %v921_v48  ;;  %10266 = vmatprep.subr.mxu0 %v4369_v1  ;;  %v11335_v3 = vpop.eup %11334 }
0x12e5   : > { %10267 = vmatpush3.msra.mxu0 %v4369_v1  ;;  %v4313_v54 = vpop.permute.xlu1 %4312  ;;  %v14987_v1 = vld [vmem:[#allocation16_spill] sm:$0xff]  ;;  %v11337_v33 = vpop.eup %11336 }
0x12e6   : > { %v4367_v0 = vmul.f32 %v4351_v63, %v12524_v58  ;;  %v4350_v46 = vmul.f32 %v4313_v54, %v920_v7  ;;  %10268 = vmatprep.subr.mxu0 %v4368_v55  ;;  %v916_v42 = vmul.f32 %v11333_v53, %v14987_v1  ;;  %v11339_v63 = vpop.eup %11338  ;;  %v14989_v54 = vld [vmem:[#allocation14_spill] sm:$0xff]  ;;  %v14991_v53 = vld [vmem:[#allocation12_spill] sm:$0xff] }
0x12e7   : > { %v4308_v51 = vpop.permute.xlu0 %4307  ;;  %10269 = vmatpush3.msra.mxu0 %v4368_v55  ;;  %v915_v55 = vmul.f32 %v11335_v3, %v14988_v61  ;;  %v914_v22 = vmul.f32 %v11337_v33, %v14989_v54  ;;  %v14992_v3 = vld [vmem:[#allocation9_spill] sm:$0xff] }
0x12e8   : > { %v4366_v23 = vmul.f32 %v4350_v46, %v12526_v57  ;;  %v4349_v27 = vmul.f32 %v4308_v51, %v919_v15  ;;  %10270 = vmatprep.subr.mxu0 %v4367_v0  ;;  %v913_v51 = vmul.f32 %v11339_v63, %v14990_v18  ;;  %v14999_v18 = vld [vmem:[#allocation25_spill] sm:$0xff] }
0x12e9   : > { %10271 = vmatpush3.msra.mxu0 %v4367_v0  ;;  %v4303_v59 = vpop.permute.xlu1 %4302  ;;  %v11341_v0 = vpop.eup %11340 }
0x12ea   : > { %v4365_v36 = vmul.f32 %v4349_v27, %v12534_v12  ;;  %v4348_v62 = vmul.f32 %v4303_v59, %v918_v26  ;;  %10272 = vmatprep.subr.mxu0 %v4366_v23  ;;  %v912_v59 = vmul.f32 %v11341_v0, %v14991_v53  ;;  %v11848_v0 = vld [vmem:[%s14846_s4 + $0x8] sm:$0xff] }
0x12eb   : > { %v4298_v10 = vpop.permute.xlu0 %4297  ;;  %10273 = vmatpush3.msra.mxu0 %v4366_v23  ;;  %v11343_v23 = vpop.eup %11342 }
0x12ec   : > { %v4364_v14 = vmul.f32 %v4348_v62, %v12536_v2  ;;  %v4347_v25 = vmul.f32 %v4298_v10, %v917_v52  ;;  %10274 = vmatprep.subr.mxu0 %v4365_v36  ;;  %v911_v10 = vmul.f32 %v11343_v23, %v14992_v3 }
0x12ed   : > { %10275 = vmatpush3.msra.mxu0 %v4365_v36  ;;  %v4293_v48 = vpop.permute.xlu1 %4292  ;;  %v11345_v36 = vpop.eup %11344 }
0x12ee   : > { %v4363_v24 = vmul.f32 %v4347_v25, %v12544_v21  ;;  %v4346_v9 = vmul.f32 %v4293_v48, %v916_v42  ;;  %10276 = vmatprep.subr.mxu0 %v4364_v14  ;;  %v14993_v42 = vld [vmem:[#allocation10_spill] sm:$0xff] }
0x12ef   : > { %v4288_v13 = vpop.permute.xlu0 %4287  ;;  %10277 = vmatpush3.msra.mxu0 %v4364_v14  ;;  %v910_v33 = vmul.f32 %v11345_v36, %v14993_v42  ;;  %v13460_v42 = vld [vmem:[%s14845_s3 + $0x20] sm:$0xff] }
0x12f0   : > { %v4362_v7 = vmul.f32 %v4346_v9, %v12546_v49  ;;  %v4345_v32 = vmul.f32 %v4288_v13, %v915_v55  ;;  %10278 = vmatprep.subr.mxu0 %v4363_v24  ;;  %v14995_v55 = vld [vmem:[#allocation32_spill] sm:$0xff]  ;;  %v4860_v13 = vld [vmem:[#allocation2 + $0x230] sm:$0xff] }
0x12f1   : > { %10279 = vmatpush3.msra.mxu0 %v4363_v24  ;;  %v4283_v46 = vpop.permute.xlu1 %4282  ;;  %v14994_v24 = vld [vmem:[#allocation31_spill] sm:$0xff] }
0x12f2   : > { %v4361_v8 = vmul.f32 %v4345_v32, %v12554_v19  ;;  %v4344_v15 = vmul.f32 %v4283_v46, %v914_v22  ;;  %10280 = vmatprep.subr.mxu0 %v4362_v7  ;;  %v14997_v32 = vld [vmem:[#allocation27_spill] sm:$0xff]  ;;  %v4859_v22 = vld [vmem:[#allocation2 + $0x228] sm:$0xff]  ;;  %v4858_v46 = vld [vmem:[#allocation2 + $0x220] sm:$0xff] }
0x12f3   : > { %v4278_v27 = vpop.permute.xlu0 %4277  ;;  %10281 = vmatpush3.msra.mxu0 %v4362_v7  ;;  %v14996_v7 = vld [vmem:[#allocation5_spill] sm:$0xff] }
0x12f4   : > { %v4360_v20 = vmul.f32 %v4344_v15, %v12556_v37  ;;  %v4343_v26 = vmul.f32 %v4278_v27, %v913_v51  ;;  %10282 = vmatprep.subr.mxu0 %v4361_v8  ;;  %v13403_v54 = vmul.f32 %v14997_v32, %v14996_v7  ;;  %v14998_v15 = vld [vmem:[#allocation7_spill] sm:$0xff]  ;;  %v15001_v27 = vld [vmem:[#allocation8_spill] sm:$0xff] }
0x12f5   : > { %10283 = vmatpush3.msra.mxu0 %v4361_v8  ;;  %v4273_v62 = vpop.permute.xlu1 %4272  ;;  %v4857_v8 = vld [vmem:[#allocation2 + $0x218] sm:$0xff]  ;;  %v13412_v51 = vmul.f32 %v14999_v18, %v14998_v15  ;;  %v11864_v18 = vld [vmem:[%s14845_s3] sm:$0xff] }
0x12f6   : > { %v4359_v4 = vmul.f32 %v4343_v26, %v12564_v11  ;;  %v4342_v52 = vmul.f32 %v4273_v62, %v912_v59  ;;  %10284 = vmatprep.subr.mxu0 %v4360_v20  ;;  %v15003_v59 = vld [vmem:[#allocation6_spill] sm:$0xff]  ;;  %v13509_v32 = vld [vmem:[%s14845_s3 + $0x58] sm:$0xff] }
0x12f7   : > { %v4268_v14 = vpop.permute.xlu0 %4267  ;;  %10285 = vmatpush3.msra.mxu0 %v4360_v20  ;;  %15000 = vst [vmem:[#allocation28_spill] sm:$0xff] %v13412_v51 }
0x12f8   : > { %v4358_v25 = vmul.f32 %v4342_v52, %v12566_v45  ;;  %v4341_v1 = vmul.f32 %v4268_v14, %v911_v10  ;;  %10286 = vmatprep.subr.mxu0 %v4359_v4  ;;  %v13439_v14 = vld [vmem:[%s14845_s3 + $0x8] sm:$0xff] }
0x12f9   : > { %10287 = vmatpush3.msra.mxu0 %v4359_v4  ;;  %v4263_v48 = vpop.permute.xlu1 %4262 }
0x12fa   : > { %v4357_v9 = vmul.f32 %v4341_v1, %v14994_v24  ;;  %v4340_v61 = vmul.f32 %v4263_v48, %v910_v33  ;;  %10288 = vmatprep.subr.mxu0 %v4358_v25  ;;  %v13453_v1 = vld [vmem:[%s14845_s3 + $0x18] sm:$0xff]  ;;  %v13467_v33 = vld [vmem:[%s14845_s3 + $0x28] sm:$0xff]  ;;  %v13474_v48 = vld [vmem:[%s14845_s3 + $0x30] sm:$0xff] }
0x12fb   : > { %10289 = vmatpush3.msra.mxu0 %v4358_v25  ;;  %v13446_v25 = vld [vmem:[%s14845_s3 + $0x10] sm:$0xff] }
0x12fc   : > { %v4356_v63 = vmul.f32 %v4340_v61, %v14995_v55  ;;  %10290 = vmatprep.subr.mxu0 %v4357_v9  ;;  %v13488_v61 = vld [vmem:[%s14845_s3 + $0x40] sm:$0xff] }
0x12fd   : > { %10291 = vmatpush3.msra.mxu0 %v4357_v9  ;;  %v13481_v9 = vld [vmem:[%s14845_s3 + $0x38] sm:$0xff] }
0x12fe   : > { %10292 = vmatprep.subr.mxu0 %v4356_v63 }
0x12ff   : > { %10293 = vmatpush3.msra.mxu0 %v4356_v63  ;;  %v13495_v63 = vld [vmem:[%s14845_s3 + $0x48] sm:$0xff] }
0x1300   : > { %10295 = vmatmul.mubr.f32.vlgmr.msra.gmra.mxu0 %v11848_v0  ;;  %10329 = vmatprep.subr.mxu0 %v4860_v13  ;;  %v13523_v0 = vld [vmem:[%s14845_s3 + $0x68] sm:$0xff] }
0x1301   : > { %10330 = vmatpush3.msra.mxu0 %v4860_v13  ;;  %10337 = vmatprep.mubr.msk.f32.mxu0 %vm395_vm0, %v13403_v54  ;;  %v13502_v13 = vld [vmem:[%s14845_s3 + $0x50] sm:$0xff] }
0x1302   : > { %10331 = vmatprep.subr.mxu0 %v4859_v22 }
0x1303   : > { %10332 = vmatpush3.msra.mxu0 %v4859_v22  ;;  %v13516_v22 = vld [vmem:[%s14845_s3 + $0x60] sm:$0xff] }
0x1304   : > { %10333 = vmatprep.subr.mxu0 %v4858_v46 }
0x1305   : > { %10334 = vmatpush3.msra.mxu0 %v4858_v46  ;;  %v13530_v46 = vld [vmem:[%s14845_s3 + $0x70] sm:$0xff] }
0x1306   : > { %10335 = vmatprep.subr.mxu0 %v4857_v8 }
0x1307   : > { %10336 = vmatpush3.msra.mxu0 %v4857_v8  ;;  %v13537_v8 = vld [vmem:[%s14845_s3 + $0x78] sm:$0xff] }
0x1308   : > { %10338 = vmatmul.mubr.msk.f32.vlgmr.msra.gmra.mxu0 %vm395_vm0, %v13412_v51 }
0x13c0   : > { %v10296_v23 = vpop.f32.mrf.mxu0 }
0x13c1   : > { %v4448_v20 = vadd.f32 %v10296_v23, %v15001_v27 }
0x13c2   : > { %v4438_v26 = vpop.f32.mrf.mxu0 }
0x13c3   : > { %v13418_v53 = vmul.f32 %v4448_v20, %v14998_v15  ;;  %v4447_v36 = vadd.f32 %v4438_v26, %v15003_v59 }
0x13c5   : > { %15002 = vst [vmem:[#allocation26_spill] sm:$0xff] %v13418_v53  ;;  %v13422_v62 = vmul.f32 %v4447_v36, %v14996_v7  ;;  %v4454_v4 = vsub.f32 0.0, %v13418_v53 }
0x13c7   : > { %15004 = vst [vmem:[#allocation29_spill] sm:$0xff] %v13422_v62  ;;  %10297 = vmatprep.subr.mxu1 %v4454_v4  ;;  %v4453_v52 = vsub.f32 0.0, %v13422_v62 }
0x13c8   : > { %10298 = vmatpush3.msra.mxu1 %v4454_v4  ;;  %v13426_v3 = vpop.f32.mrf.mxu0 }
0x13c9   : > { %10299 = vmatprep.subr.mxu1 %v4453_v52 }
0x13ca   : > { %10300 = vmatpush3.msra.mxu1 %v4453_v52  ;;  %v13428_v10 = vpop.f32.mrf.mxu0 }
0x13cb   : > { %4944 = vrot.lane.b32.xlu0 %v13428_v10, %s11948_s13  ;;  %10301 = vmatprep.subr.mxu1 %v13418_v53 }
0x13cc   : > { %10302 = vmatpush3.msra.mxu1 %v13418_v53 }
0x13cd   : > { %10303 = vmatprep.subr.mxu1 %v13422_v62 }
0x13ce   : > { %10304 = vmatpush3.msra.mxu1 %v13422_v62 }
0x13cf   : > { %10306 = vmatmul.mubr.msk.f32.vlgmr.msra.gmra.mxu1 %vm395_vm0, %v13439_v14 }
0x13d0   : > { %10308 = vmatprep.mubr.msk.f32.mxu1 %vm395_vm0, %v13446_v25 }
0x13d3   : > { %10309 = vmatmul.mubr.msk.f32.gmra.mxu1 %vm395_vm0, %v13453_v1 }
0x13d4   : > { %10311 = vmatprep.mubr.msk.f32.mxu1 %vm395_vm0, %v13460_v42 }
0x13d7   : > { %10312 = vmatmul.mubr.msk.f32.gmra.mxu1 %vm395_vm0, %v13467_v33 }
0x13d8   : > { %10314 = vmatprep.mubr.msk.f32.mxu1 %vm395_vm0, %v13474_v48 }
0x13db   : > { %10315 = vmatmul.mubr.msk.f32.gmra.mxu1 %vm395_vm0, %v13481_v9 }
0x13dc   : > { %10317 = vmatprep.mubr.msk.f32.mxu1 %vm395_vm0, %v13488_v61 }
0x13df   : > { %10318 = vmatmul.mubr.msk.f32.gmra.mxu1 %vm395_vm0, %v13495_v63 }
0x13e0   : > { %10320 = vmatprep.mubr.msk.f32.mxu1 %vm395_vm0, %v13502_v13 }
0x13e3   : > { %10321 = vmatmul.mubr.msk.f32.gmra.mxu1 %vm395_vm0, %v13509_v32 }
0x13e4   : > { %10323 = vmatprep.mubr.msk.f32.mxu1 %vm395_vm0, %v13516_v22 }
0x13e7   : > { %10324 = vmatmul.mubr.msk.f32.gmra.mxu1 %vm395_vm0, %v13523_v0 }
0x13e8   : > { %10326 = vmatprep.mubr.msk.f32.mxu1 %vm395_vm0, %v13530_v46 }
0x13eb   : > { %10327 = vmatmul.mubr.msk.f32.gmra.mxu1 %vm395_vm0, %v13537_v8 }
0x13ec   : > { %10374 = vmatprep.mubr.msk.f32.mxu1 %vm395_vm0, %v11864_v18 }
0x148f   : > { %v13545_v23 = vpop.f32.mrf.mxu1 }
0x1490   : > { %15005 = vst [vmem:[#allocation30_spill] sm:$0xff] %v13545_v23  ;;  %v4601_v27 = vmul.f32 %v13545_v23, %v13545_v23 }
0x1491   : > { %v13549_v20 = vpop.f32.mrf.mxu1 }
0x1492   : > { %15006 = vst [vmem:[#allocation23_spill] sm:$0xff] %v13549_v20  ;;  %v4600_v26 = vmul.f32 %v13549_v20, %v13549_v20  ;;  %v4619_v59 = vsel %vm605_vm3, %v4601_v27, 0.0 }
0x1493   : > { %4620 = vadd.xlane.f32.xlu1 %v4619_v59  ;;  %v13554_v36 = vpop.f32.mrf.mxu1 }
0x1494   : > { %15007 = vst [vmem:[#allocation24_spill] sm:$0xff] %v13554_v36  ;;  %v4616_v4 = vsel %vm605_vm3, %v4600_v26, 0.0  ;;  %v4603_v52 = vmul.f32 %v13554_v36, %v13554_v36 }
0x1495   : > { %4617 = vadd.xlane.f32.xlu0 %v4616_v4  ;;  %v13559_v18 = vpop.f32.mrf.mxu1 }
0x1496   : > { %15008 = vst [vmem:[#allocation21_spill] sm:$0xff] %v13559_v18  ;;  %v4625_v62 = vsel %vm605_vm3, %v4603_v52, 0.0  ;;  %v4602_v53 = vmul.f32 %v13559_v18, %v13559_v18 }
0x1497   : > { %v13564_v23 = vpop.f32.mrf.mxu1 }
0x1498   : > { %15009 = vst [vmem:[#allocation22_spill] sm:$0xff] %v13564_v23  ;;  %v4622_v59 = vsel %vm605_vm3, %v4602_v53, 0.0 }
0x1499   : > { %4626 = vadd.xlane.f32.xlu0 %v4625_v62  ;;  %v13566_v27 = vpop.f32.mrf.mxu1  ;;  %v4950_v62 = vld [vmem:[#allocation2 + $0x238] sm:$0x3] }
0x149a   : > { %15010 = vst [vmem:[#allocation19_spill] sm:$0xff] %v13566_v27  ;;  %v4604_v26 = vmul.f32 %v13566_v27, %v13566_v27  ;;  %10340 = vmatprep.subr.msk.mxu0 %vm671_vm1, %v4950_v62 }
0x149b   : > { %v13571_v20 = vpop.f32.mrf.mxu1  ;;  %10341 = vmatpush3.msk.msra.mxu0 %vm671_vm1, %v4950_v62 }
0x149c   : > { %15011 = vst [vmem:[#allocation20_spill] sm:$0xff] %v13571_v20  ;;  %v4628_v52 = vsel %vm605_vm3, %v4604_v26, 0.0 }
0x149d   : > { %4623 = vadd.xlane.f32.xlu0 %v4622_v59  ;;  %v13573_v4 = vpop.f32.mrf.mxu1 }
0x149e   : > { %15012 = vst [vmem:[#allocation17_spill] sm:$0xff] %v13573_v4  ;;  %v4606_v18 = vmul.f32 %v13573_v4, %v13573_v4 }
0x149f   : > { %v13578_v36 = vpop.f32.mrf.mxu1 }
0x14a0   : > { %15013 = vst [vmem:[#allocation18_spill] sm:$0xff] %v13578_v36  ;;  %v4634_v27 = vsel %vm605_vm3, %v4606_v18, 0.0  ;;  %v4609_v59 = vmul.f32 %v13578_v36, %v13578_v36 }
0x14a1   : > { %4629 = vadd.xlane.f32.xlu0 %v4628_v52  ;;  %v13581_v53 = vpop.f32.mrf.mxu1 }
0x14a2   : > { %15014 = vst [vmem:[#allocation15_spill] sm:$0xff] %v13581_v53  ;;  %v4643_v4 = vsel %vm605_vm3, %v4609_v59, 0.0 }
0x14a3   : > { %v13587_v15 = vpop.f32.mrf.mxu1 }
0x14a4   : > { %15015 = vst [vmem:[#allocation16_spill] sm:$0xff] %v13587_v15  ;;  %4946 = vrot.lane.b32.xlu1 %v13426_v3, %s11948_s13  ;;  %v4611_v52 = vmul.f32 %v13587_v15, %v13587_v15 }
0x14a5   : > { %4635 = vadd.xlane.f32.xlu0 %v4634_v27  ;;  %v13591_v26 = vpop.f32.mrf.mxu1 }
0x14a6   : > { %15016 = vst [vmem:[#allocation13_spill] sm:$0xff] %v13591_v26  ;;  %v4649_v62 = vsel %vm605_vm3, %v4611_v52, 0.0  ;;  %v4607_v52 = vmul.f32 %v13571_v20, %v13571_v20  ;;  %v4945_v20 = vpop.permute.xlu0 %4944 }
0x14a7   : > { %v13596_v7 = vpop.f32.mrf.mxu1 }
0x14a8   : > { %15017 = vst [vmem:[#allocation14_spill] sm:$0xff] %v13596_v7  ;;  %v4613_v36 = vmul.f32 %v13596_v7, %v13596_v7 }
0x14a9   : > { %4644 = vadd.xlane.f32.xlu0 %v4643_v4  ;;  %v13598_v18 = vpop.f32.mrf.mxu1  ;;  %v4605_v4 = vmul.f32 %v13564_v23, %v13564_v23 }
0x14aa   : > { %15018 = vst [vmem:[#allocation11_spill] sm:$0xff] %v13598_v18  ;;  %v4655_v27 = vsel %vm605_vm3, %v4613_v36, 0.0  ;;  %v4637_v36 = vsel %vm605_vm3, %v4607_v52, 0.0 }
0x14ab   : > { %v13603_v51 = vpop.f32.mrf.mxu1  ;;  %v4631_v7 = vsel %vm605_vm3, %v4605_v4, 0.0 }
0x14ac   : > { %15019 = vst [vmem:[#allocation12_spill] sm:$0xff] %v13603_v51  ;;  %v4615_v59 = vmul.f32 %v13603_v51, %v13603_v51 }
0x14ad   : > { %4650 = vadd.xlane.f32.xlu0 %v4649_v62  ;;  %v4608_v62 = vmul.f32 %v13581_v53, %v13581_v53  ;;  %v13623_v4 = vpop.f32.mrf.mxu1 }
0x14ae   : > { %v4661_v15 = vsel %vm605_vm3, %v4615_v59, 0.0  ;;  %v4612_v59 = vmul.f32 %v13598_v18, %v13598_v18  ;;  %15020 = vst [vmem:[#allocation9_spill] sm:$0xff] %v13623_v4  ;;  %v4614_v52 = vmul.f32 %v13623_v4, %v13623_v4 }
0x14b1   : > { %4656 = vadd.xlane.f32.xlu0 %v4655_v27  ;;  %v4610_v27 = vmul.f32 %v13591_v26, %v13591_v26 }
0x14b3   : > { %v4646_v23 = vsel %vm605_vm3, %v4610_v27, 0.0 }
0x14b5   : > { %4662 = vadd.xlane.f32.xlu0 %v4661_v15  ;;  %v4640_v15 = vsel %vm605_vm3, %v4608_v62, 0.0 }
0x14c8   : > { %4632 = vadd.xlane.f32.xlu1 %v4631_v7  ;;  %v4652_v7 = vsel %vm605_vm3, %v4612_v59, 0.0 }
0x14cc   : > { %4638 = vadd.xlane.f32.xlu1 %v4637_v36  ;;  %v4658_v36 = vsel %vm605_vm3, %v4614_v52, 0.0 }
0x14d0   : > { %4641 = vadd.xlane.f32.xlu1 %v4640_v15 }
0x14d4   : > { %4647 = vadd.xlane.f32.xlu1 %v4646_v23 }
0x14d8   : > { %4653 = vadd.xlane.f32.xlu1 %v4652_v7 }
0x14dc   : > { %4659 = vadd.xlane.f32.xlu1 %v4658_v36  ;;  %v13810_v36 = vld [vmem:[#allocation2 + $0x240] ss:$0 sm:$0xff] }
0x151c   : > { %v13629_v62 = vpop.xlane.xlu1 %4620 }
0x151d   : > { %15021 = vst [vmem:[#allocation10_spill] sm:$0xff] %v13629_v62  ;;  %v13641_v59 = vsel %vm4840_vm15, %v13629_v62, %v12246_v31 }
0x151e   : > { %v13631_v15 = vpop.xlane.xlu0 %4617 }
0x151f   : > { %15022 = vst [vmem:[#allocation31_spill] sm:$0xff] %v13631_v15  ;;  %v13636_v23 = vsel %vm4840_vm15, %v13631_v15, %v12240_v29 }
0x1520   : > { %v4947_v27 = vpop.permute.xlu1 %4946  ;;  %10342 = vmatprep.mubr.msk.f32.mxu0 %vm666_vm2, %v13636_v23 }
0x1521   : > { %10366 = vmatprep.subr.mxu1 %v4947_v27  ;;  %10343 = vmatmul.mubr.msk.f32.vlgmr.msra.gmra.mxu0 %vm666_vm2, %v13641_v59 }
0x1522   : > { %10367 = vmatpush3.msra.mxu1 %v4947_v27  ;;  %v13647_v7 = vpop.xlane.xlu0 %4626 }
0x1523   : > { %15023 = vst [vmem:[#allocation32_spill] sm:$0xff] %v13647_v7  ;;  %10368 = vmatprep.subr.mxu1 %v4945_v20  ;;  %v13662_v52 = vsel %vm4840_vm15, %v13647_v7, %v12244_v30 }
0x1524   : > { %10369 = vmatpush3.msra.mxu1 %v4945_v20 }
0x1525   : > { %10370 = vmatprep.subr.mxu1 %v13426_v3 }
0x1526   : > { %10371 = vmatpush3.msra.mxu1 %v13426_v3  ;;  %v13651_v29 = vpop.xlane.xlu0 %4623 }
0x1527   : > { %15024 = vst [vmem:[#allocation27_spill] sm:$0xff] %v13651_v29  ;;  %v13656_v31 = vsel %vm4840_vm15, %v13651_v29, %v12248_v35  ;;  %10372 = vmatprep.subr.mxu1 %v13428_v10 }
0x1528   : > { %10345 = vmatprep.mubr.msk.f32.mxu0 %vm666_vm2, %v13656_v31  ;;  %10373 = vmatpush3.msra.mxu1 %v13428_v10 }
0x1529   : > { %10346 = vmatmul.mubr.msk.f32.gmra.mxu0 %vm666_vm2, %v13662_v52  ;;  %10375 = vmatmul.mubr.msk.f32.vlgmr.msra.gmra.mxu1 %vm395_vm0, %v13439_v14 }
0x152a   : > { %v13671_v35 = vpop.xlane.xlu0 %4629  ;;  %10377 = vmatprep.mubr.msk.f32.mxu1 %vm395_vm0, %v13446_v25 }
0x152b   : > { %15025 = vst [vmem:[#allocation25_spill] sm:$0xff] %v13671_v35  ;;  %v13678_v30 = vsel %vm4840_vm15, %v13671_v35, %v12252_v38  ;;  %v11865_v38 = vld [vmem:[%s14846_s4] sm:$0xff] }
0x152c   : > { %10348 = vmatprep.mubr.msk.f32.mxu0 %vm666_vm2, %v13678_v30 }
0x152d   : > { %10378 = vmatmul.mubr.msk.f32.gmra.mxu1 %vm395_vm0, %v13453_v1 }
0x152e   : > { %10380 = vmatprep.mubr.msk.f32.mxu1 %vm395_vm0, %v13460_v42  ;;  %v13711_v3 = vpop.xlane.xlu0 %4635 }
0x152f   : > { %15026 = vst [vmem:[#allocation8_spill] sm:$0xff] %v13711_v3  ;;  %v13725_v1 = vsel %vm4840_vm15, %v13711_v3, %v12264_v41 }
0x1531   : > { %10381 = vmatmul.mubr.msk.f32.gmra.mxu1 %vm395_vm0, %v13467_v33 }
0x1532   : > { %10383 = vmatprep.mubr.msk.f32.mxu1 %vm395_vm0, %v13474_v48  ;;  %v13715_v14 = vpop.xlane.xlu0 %4644 }
0x1533   : > { %15028 = vst [vmem:[#allocation33_spill] sm:$0xff] %v13715_v14 }
0x1535   : > { %10384 = vmatmul.mubr.msk.f32.gmra.mxu1 %vm395_vm0, %v13481_v9  ;;  %v13752_v9 = vsel %vm4840_vm15, %v13715_v14, %v12278_v47 }
0x1536   : > { %10386 = vmatprep.mubr.msk.f32.mxu1 %vm395_vm0, %v13488_v61 }
0x1539   : > { %10387 = vmatmul.mubr.msk.f32.gmra.mxu1 %vm395_vm0, %v13495_v63 }
0x153a   : > { %10389 = vmatprep.mubr.msk.f32.mxu1 %vm395_vm0, %v13502_v13 }
0x153d   : > { %10390 = vmatmul.mubr.msk.f32.gmra.mxu1 %vm395_vm0, %v13509_v32 }
0x153e   : > { %10392 = vmatprep.mubr.msk.f32.mxu1 %vm395_vm0, %v13516_v22  ;;  %v5412_v22 = vld [vmem:[#allocation2 + $0x260] sm:$0xff] }
0x153f   : > { %10398 = vmatprep.subr.mxu0 %v5412_v22 }
0x1540   : > { %10399 = vmatpush3.msra.mxu0 %v5412_v22 }
0x1541   : > { %10393 = vmatmul.mubr.msk.f32.gmra.mxu1 %vm395_vm0, %v13523_v0  ;;  %v5411_v0 = vld [vmem:[#allocation2 + $0x258] sm:$0xff] }
0x1542   : > { %10395 = vmatprep.mubr.msk.f32.mxu1 %vm395_vm0, %v13530_v46  ;;  %10400 = vmatprep.subr.mxu0 %v5411_v0  ;;  %v5410_v46 = vld [vmem:[#allocation2 + $0x250] sm:$0xff] }
0x1543   : > { %10401 = vmatpush3.msra.mxu0 %v5411_v0 }
0x1544   : > { %10402 = vmatprep.subr.mxu0 %v5410_v46 }
0x1545   : > { %10396 = vmatmul.mubr.msk.f32.gmra.mxu1 %vm395_vm0, %v13537_v8  ;;  %10403 = vmatpush3.msra.mxu0 %v5410_v46 }
0x1546   : > { %10462 = vmatprep.mubr.f32.mxu1 %v11865_v38 }
0x1551   : > { %v13713_v10 = vpop.xlane.xlu1 %4632 }
0x1552   : > { %15027 = vst [vmem:[#allocation6_spill] sm:$0xff] %v13713_v10  ;;  %v13720_v25 = vsel %vm4840_vm15, %v13713_v10, %v12258_v40  ;;  %v13740_v40 = vpop.xlane.xlu0 %4650 }
0x1553   : > { %10349 = vmatmul.mubr.msk.f32.gmra.mxu0 %vm666_vm2, %v13720_v25  ;;  %15030 = vst [vmem:[#allocation35_spill] sm:$0xff] %v13740_v40  ;;  %v13770_v47 = vsel %vm4840_vm15, %v13740_v40, %v14969_v16 }
0x1554   : > { %10351 = vmatprep.mubr.msk.f32.mxu0 %vm666_vm2, %v13725_v1  ;;  %15035 = vst [vmem:[#allocation40_spill] sm:$0xff] %v13770_v47 }
0x1555   : > { %v13731_v42 = vpop.xlane.xlu1 %4638 }
0x1556   : > { %15029 = vst [vmem:[#allocation34_spill] sm:$0xff] %v13731_v42  ;;  %v13736_v33 = vsel %vm4840_vm15, %v13731_v42, %v12268_v43  ;;  %v13760_v61 = vpop.xlane.xlu0 %4656 }
0x1557   : > { %10352 = vmatmul.mubr.msk.f32.gmra.mxu0 %vm666_vm2, %v13736_v33  ;;  %15033 = vst [vmem:[#allocation38_spill] sm:$0xff] %v13760_v61 }
0x1559   : > { %v13742_v41 = vpop.xlane.xlu1 %4641 }
0x155a   : > { %15031 = vst [vmem:[#allocation36_spill] sm:$0xff] %v13742_v41  ;;  %v13747_v48 = vsel %vm4840_vm15, %v13742_v41, %v12272_v44  ;;  %v13790_v16 = vpop.xlane.xlu0 %4662 }
0x155b   : > { %10354 = vmatprep.mubr.msk.f32.mxu0 %vm666_vm2, %v13747_v48  ;;  %15039 = vst [vmem:[#allocation44_spill] sm:$0xff] %v13790_v16 }
0x155c   : > { %10355 = vmatmul.mubr.msk.f32.gmra.mxu0 %vm666_vm2, %v13752_v9 }
0x155d   : > { %v13758_v43 = vpop.xlane.xlu1 %4647 }
0x155e   : > { %15032 = vst [vmem:[#allocation37_spill] sm:$0xff] %v13758_v43  ;;  %v13765_v44 = vsel %vm4840_vm15, %v13758_v43, %v14968_v6  ;;  %v13786_v6 = vsel %vm4840_vm15, %v13760_v61, %v14971_v39  ;;  %v13804_v39 = vsel %vm4840_vm15, %v13790_v16, %v14973_v5 }
0x155f   : > { %15034 = vst [vmem:[#allocation39_spill] sm:$0xff] %v13765_v44  ;;  %10357 = vmatprep.mubr.msk.f32.mxu0 %vm666_vm2, %v13765_v44  ;;  %15038 = vst [vmem:[#allocation43_spill] sm:$0xff] %v13786_v6 }
0x1560   : > { %10358 = vmatmul.mubr.msk.f32.gmra.mxu0 %vm666_vm2, %v13770_v47  ;;  %15042 = vst [vmem:[#allocation47_spill] sm:$0xff] %v13804_v39 }
0x1561   : > { %v13776_v63 = vpop.xlane.xlu1 %4653 }
0x1562   : > { %15036 = vst [vmem:[#allocation41_spill] sm:$0xff] %v13776_v63  ;;  %v13781_v13 = vsel %vm4840_vm15, %v13776_v63, %v14970_v28 }
0x1563   : > { %15037 = vst [vmem:[#allocation42_spill] sm:$0xff] %v13781_v13  ;;  %10360 = vmatprep.mubr.msk.f32.mxu0 %vm666_vm2, %v13781_v13 }
0x1564   : > { %10361 = vmatmul.mubr.msk.f32.gmra.mxu0 %vm666_vm2, %v13786_v6 }
0x1565   : > { %v13794_v32 = vpop.xlane.xlu1 %4659 }
0x1566   : > { %15040 = vst [vmem:[#allocation45_spill] sm:$0xff] %v13794_v32  ;;  %v13799_v28 = vsel %vm4840_vm15, %v13794_v32, %v14972_v17  ;;  %v5409_v17 = vld [vmem:[#allocation2 + $0x248] sm:$0xff] }
0x1567   : > { %15041 = vst [vmem:[#allocation46_spill] sm:$0xff] %v13799_v28  ;;  %10363 = vmatprep.mubr.msk.f32.mxu0 %vm666_vm2, %v13799_v28  ;;  %10404 = vmatprep.subr.mxu0 %v5409_v17 }
0x1568   : > { %10364 = vmatmul.mubr.msk.f32.gmra.mxu0 %vm666_vm2, %v13804_v39 }
0x1569   : > { %10405 = vmatpush3.msra.mxu0 %v5409_v17 }
0x15e1   : > { %v10344_v5 = vpop.f32.mrf.mxu0 }
0x15e3   : > { %v5068_v8 = vpop.f32.mrf.mxu0 }
0x15e9   : > { %v10376_v20 = vpop.f32.mrf.mxu1  ;;  %v10347_v38 = vpop.f32.mrf.mxu0 }
0x15ea   : > { %v5219_v27 = vadd.f32 %v10376_v20, %v10344_v5 }
0x15eb   : > { %v5213_v53 = vpop.f32.mrf.mxu1  ;;  %v5078_v46 = vpop.f32.mrf.mxu0 }
0x15ec   : > { %v5298_v26 = vadd.f32 %v13810_v36, %v5219_v27  ;;  %v5214_v22 = vadd.f32 %v5213_v53, %v5068_v8 }
0x15ed   : > { %v10379_v18 = vpop.f32.mrf.mxu1 }
0x15ee   : > { %v5314_v4 = vsub.f32 0.0, %v5298_v26  ;;  %v5297_v0 = vadd.f32 %v13810_v36, %v5214_v22  ;;  %v5229_v51 = vadd.f32 %v10379_v18, %v10347_v38 }
0x15ef   : > { %v5223_v15 = vpop.f32.mrf.mxu1 }
0x15f0   : > { %v5331_v29 = vmul.f32 1.442695, %v5314_v4  ;;  %v5313_v17 = vsub.f32 0.0, %v5297_v0  ;;  %v5300_v7 = vadd.f32 %v13810_v36, %v5229_v51  ;;  %v5224_v35 = vadd.f32 %v5223_v15, %v5078_v46 }
0x15f1   : > { %v10382_v22 = vpop.f32.mrf.mxu1 }
0x15f2   : > { %11346 = vpow2.f32 %v5331_v29  ;;  %v5329_v62 = vmul.f32 1.442695, %v5313_v17  ;;  %v5316_v5 = vsub.f32 0.0, %v5300_v7  ;;  %v5299_v20 = vadd.f32 %v13810_v36, %v5224_v35 }
0x15f3   : > { %v5233_v3 = vpop.f32.mrf.mxu1 }
0x15f4   : > { %11348 = vpow2.f32 %v5329_v62  ;;  %v5335_v27 = vmul.f32 1.442695, %v5316_v5  ;;  %v5315_v53 = vsub.f32 0.0, %v5299_v20 }
0x15f5   : > { %v10385_v46 = vpop.f32.mrf.mxu1 }
0x15f6   : > { %11350 = vpow2.f32 %v5335_v27  ;;  %v5333_v8 = vmul.f32 1.442695, %v5315_v53 }
0x15f7   : > { %v5243_v62 = vpop.f32.mrf.mxu1 }
0x15f8   : > { %11352 = vpow2.f32 %v5333_v8 }
0x15f9   : > { %v10388_v35 = vpop.f32.mrf.mxu1 }
0x15fb   : > { %v5253_v53 = vpop.f32.mrf.mxu1 }
0x15ff   : > { %v11347_v18 = vpop.eup %11346 }
0x1600   : > { %v5362_v38 = vadd.f32 1.0, %v11347_v18 }
0x1601   : > { %v11349_v10 = vpop.eup %11348 }
0x1602   : > { %v5361_v4 = vadd.f32 1.0, %v11349_v10  ;;  %11354 = vrcp.f32 %v5362_v38 }
0x1603   : > { %v11351_v42 = vpop.eup %11350 }
0x1604   : > { %11356 = vrcp.f32 %v5361_v4  ;;  %v5364_v51 = vadd.f32 1.0, %v11351_v42 }
0x1605   : > { %v11353_v15 = vpop.eup %11352 }
0x1606   : > { %v5363_v29 = vadd.f32 1.0, %v11353_v15  ;;  %11358 = vrcp.f32 %v5364_v51 }
0x1608   : > { %11360 = vrcp.f32 %v5363_v29  ;;  %v10391_v29 = vpop.f32.mrf.mxu1 }
0x160f   : > { %v11355_v17 = vpop.eup %11354 }
0x1610   : > { %v5394_v8 = vmul.f32 %v11355_v17, %v5298_v26 }
0x1611   : > { %v11357_v5 = vpop.eup %11356 }
0x1612   : > { %v5393_v27 = vmul.f32 %v11357_v5, %v5297_v0 }
0x1613   : > { %v10350_v18 = vpop.f32.mrf.mxu0  ;;  %v11359_v41 = vpop.eup %11358 }
0x1614   : > { %v5239_v10 = vadd.f32 %v10382_v22, %v10350_v18  ;;  %10406 = vmatprep.mubr.msk.f32.mxu0 %vm395_vm0, %v5393_v27  ;;  %v5396_v14 = vmul.f32 %v11359_v41, %v5300_v7  ;;  %v5263_v7 = vpop.f32.mrf.mxu1 }
0x1615   : > { %v11361_v38 = vpop.eup %11360  ;;  %v5088_v4 = vpop.f32.mrf.mxu0  ;;  %10407 = vmatmul.mubr.msk.f32.vlgmr.msra.gmra.mxu0 %vm395_vm0, %v5394_v8 }
0x1616   : > { %v5395_v42 = vmul.f32 %v11361_v38, %v5299_v20  ;;  %v13819_v51 = vadd.f32 %v13810_v36, %v5239_v10  ;;  %v5234_v15 = vadd.f32 %v5233_v3, %v5088_v4  ;;  %v10394_v4 = vpop.f32.mrf.mxu1 }
0x1617   : > { %v10353_v43 = vpop.f32.mrf.mxu0 }
0x1618   : > { %v5318_v0 = vsub.f32 0.0, %v13819_v51  ;;  %v13823_v26 = vadd.f32 %v13810_v36, %v5234_v15  ;;  %v5249_v22 = vadd.f32 %v10385_v46, %v10353_v43  ;;  %10409 = vmatprep.mubr.msk.f32.mxu0 %vm395_vm0, %v5395_v42 }
0x1619   : > { %v5098_v17 = vpop.f32.mrf.mxu0  ;;  %10410 = vmatmul.mubr.msk.f32.gmra.mxu0 %vm395_vm0, %v5396_v14 }
0x161a   : > { %v5339_v5 = vmul.f32 1.442695, %v5318_v0  ;;  %v5317_v20 = vsub.f32 0.0, %v13823_v26  ;;  %v13829_v27 = vadd.f32 %v13810_v36, %v5249_v22  ;;  %v5244_v3 = vadd.f32 %v5243_v62, %v5098_v17 }
0x161c   : > { %11362 = vpow2.f32 %v5339_v5  ;;  %v5337_v41 = vmul.f32 1.442695, %v5317_v20  ;;  %v5320_v8 = vsub.f32 0.0, %v13829_v27  ;;  %v13833_v18 = vadd.f32 %v13810_v36, %v5244_v3  ;;  %v10356_v43 = vpop.f32.mrf.mxu0  ;;  %v5273_v20 = vpop.f32.mrf.mxu1 }
0x161d   : > { %v5259_v46 = vadd.f32 %v10388_v35, %v10356_v43 }
0x161e   : > { %11364 = vpow2.f32 %v5337_v41  ;;  %v5343_v10 = vmul.f32 1.442695, %v5320_v8  ;;  %v5319_v14 = vsub.f32 0.0, %v13833_v18  ;;  %v5108_v38 = vpop.f32.mrf.mxu0 }
0x161f   : > { %v13837_v42 = vadd.f32 %v13810_v36, %v5259_v46  ;;  %v5254_v62 = vadd.f32 %v5253_v53, %v5108_v38 }
0x1620   : > { %11366 = vpow2.f32 %v5343_v10  ;;  %v5341_v15 = vmul.f32 1.442695, %v5319_v14  ;;  %v10359_v0 = vpop.f32.mrf.mxu0 }
0x1621   : > { %v5322_v22 = vsub.f32 0.0, %v13837_v42  ;;  %v13841_v17 = vadd.f32 %v13810_v36, %v5254_v62  ;;  %v5269_v5 = vadd.f32 %v10391_v29, %v10359_v0  ;;  %v10397_v62 = vpop.f32.mrf.mxu1 }
0x1622   : > { %11368 = vpow2.f32 %v5341_v15  ;;  %v5118_v35 = vpop.f32.mrf.mxu0 }
0x1623   : > { %v5347_v3 = vmul.f32 1.442695, %v5322_v22  ;;  %v5321_v41 = vsub.f32 0.0, %v13841_v17  ;;  %v13845_v8 = vadd.f32 %v13810_v36, %v5269_v5  ;;  %v5264_v43 = vadd.f32 %v5263_v7, %v5118_v35 }
0x1624   : > { %v10362_v53 = vpop.f32.mrf.mxu0 }
0x1625   : > { %11370 = vpow2.f32 %v5347_v3  ;;  %v5345_v46 = vmul.f32 1.442695, %v5321_v41  ;;  %v5324_v10 = vsub.f32 0.0, %v13845_v8  ;;  %v13849_v14 = vadd.f32 %v13810_v36, %v5264_v43 }
0x1626   : > { %v5279_v38 = vadd.f32 %v10394_v4, %v10362_v53  ;;  %v5128_v29 = vpop.f32.mrf.mxu0 }
0x1627   : > { %11372 = vpow2.f32 %v5345_v46  ;;  %v5351_v15 = vmul.f32 1.442695, %v5324_v10  ;;  %v5323_v0 = vsub.f32 0.0, %v13849_v14  ;;  %v5274_v22 = vadd.f32 %v5273_v20, %v5128_v29  ;;  %v5283_v46 = vpop.f32.mrf.mxu1 }
0x1628   : > { %v13853_v5 = vadd.f32 %v13810_v36, %v5279_v38  ;;  %v10365_v7 = vpop.f32.mrf.mxu0 }
0x1629   : > { %v11363_v35 = vpop.eup %11362  ;;  %11374 = vpow2.f32 %v5351_v15  ;;  %v5349_v3 = vmul.f32 1.442695, %v5323_v0  ;;  %v13856_v41 = vadd.f32 %v13810_v36, %v5274_v22  ;;  %v5289_v43 = vadd.f32 %v10397_v62, %v10365_v7 }
0x162a   : > { %v5366_v40 = vadd.f32 1.0, %v11363_v35  ;;  %v5326_v4 = vsub.f32 0.0, %v13853_v5  ;;  %v5138_v53 = vpop.f32.mrf.mxu0 }
0x162b   : > { %v11365_v10 = vpop.eup %11364  ;;  %11376 = vpow2.f32 %v5349_v3  ;;  %v5325_v20 = vsub.f32 0.0, %v13856_v41  ;;  %v13861_v38 = vadd.f32 %v13810_v36, %v5289_v43  ;;  %v5284_v29 = vadd.f32 %v5283_v46, %v5138_v53 }
0x162c   : > { %v5365_v63 = vadd.f32 1.0, %v11365_v10  ;;  %v5355_v15 = vmul.f32 1.442695, %v5326_v4  ;;  %11378 = vrcp.f32 %v5366_v40 }
0x162d   : > { %v11367_v0 = vpop.eup %11366  ;;  %v5353_v22 = vmul.f32 1.442695, %v5325_v20  ;;  %v5328_v62 = vsub.f32 0.0, %v13861_v38  ;;  %v13865_v7 = vadd.f32 %v13810_v36, %v5284_v29 }
0x162e   : > { %11380 = vrcp.f32 %v5365_v63  ;;  %v5368_v35 = vadd.f32 1.0, %v11367_v0 }
0x162f   : > { %v11369_v61 = vpop.eup %11368  ;;  %11382 = vpow2.f32 %v5355_v15  ;;  %v5359_v3 = vmul.f32 1.442695, %v5328_v62  ;;  %v5327_v32 = vsub.f32 0.0, %v13865_v7 }
0x1630   : > { %11384 = vrcp.f32 %v5368_v35  ;;  %v5367_v43 = vadd.f32 1.0, %v11369_v61 }
0x1631   : > { %11386 = vpow2.f32 %v5353_v22  ;;  %v5357_v53 = vmul.f32 1.442695, %v5327_v32 }
0x1632   : > { %v11371_v4 = vpop.eup %11370  ;;  %11388 = vrcp.f32 %v5367_v43 }
0x1633   : > { %v5370_v40 = vadd.f32 1.0, %v11371_v4  ;;  %11390 = vpow2.f32 %v5359_v3 }
0x1634   : > { %v11373_v46 = vpop.eup %11372  ;;  %11392 = vpow2.f32 %v5357_v53 }
0x1635   : > { %v5369_v10 = vadd.f32 1.0, %v11373_v46  ;;  %11394 = vrcp.f32 %v5370_v40 }
0x1636   : > { %v11375_v36 = vpop.eup %11374 }
0x1637   : > { %11396 = vrcp.f32 %v5369_v10  ;;  %v5372_v63 = vadd.f32 1.0, %v11375_v36 }
0x1638   : > { %v11377_v20 = vpop.eup %11376 }
0x1639   : > { %v5371_v29 = vadd.f32 1.0, %v11377_v20  ;;  %v11379_v15 = vpop.eup %11378  ;;  %11398 = vrcp.f32 %v5372_v63 }
0x163a   : > { %v5398_v62 = vmul.f32 %v11379_v15, %v13819_v51 }
0x163b   : > { %v11381_v0 = vpop.eup %11380  ;;  %11400 = vrcp.f32 %v5371_v29 }
0x163c   : > { %v11383_v61 = vpop.eup %11382  ;;  %v5397_v32 = vmul.f32 %v11381_v0, %v13823_v26 }
0x163d   : > { %v11385_v22 = vpop.eup %11384  ;;  %v5374_v35 = vadd.f32 1.0, %v11383_v61 }
0x163e   : > { %v11387_v3 = vpop.eup %11386  ;;  %10412 = vmatprep.mubr.msk.f32.mxu0 %vm395_vm0, %v5397_v32  ;;  %v5400_v10 = vmul.f32 %v11385_v22, %v13829_v27 }
0x163f   : > { %v11389_v43 = vpop.eup %11388  ;;  %v5373_v53 = vadd.f32 1.0, %v11387_v3  ;;  %10413 = vmatmul.mubr.msk.f32.gmra.mxu0 %vm395_vm0, %v5398_v62  ;;  %11402 = vrcp.f32 %v5374_v35 }
0x1640   : > { %v11391_v4 = vpop.eup %11390  ;;  %v5399_v40 = vmul.f32 %v11389_v43, %v13833_v18 }
0x1641   : > { %v11393_v46 = vpop.eup %11392  ;;  %11404 = vrcp.f32 %v5373_v53  ;;  %v5376_v26 = vadd.f32 1.0, %v11391_v4 }
0x1642   : > { %v5375_v36 = vadd.f32 1.0, %v11393_v46  ;;  %10415 = vmatprep.mubr.msk.f32.mxu0 %vm395_vm0, %v5399_v40  ;;  %v11395_v51 = vpop.eup %11394 }
0x1643   : > { %11406 = vrcp.f32 %v5376_v26  ;;  %10416 = vmatmul.mubr.msk.f32.gmra.mxu0 %vm395_vm0, %v5400_v10  ;;  %v5402_v29 = vmul.f32 %v11395_v51, %v13837_v42 }
0x1644   : > { %v11397_v63 = vpop.eup %11396  ;;  %11408 = vrcp.f32 %v5375_v36  ;;  %v8953_v36 = vld [vmem:[#allocation2 + $0x268] ss:$0 sm:$0xff] }
0x1645   : > { %v5401_v20 = vmul.f32 %v11397_v63, %v13841_v17 }
0x1646   : > { %v11399_v18 = vpop.eup %11398 }
0x1647   : > { %10418 = vmatprep.mubr.msk.f32.mxu0 %vm395_vm0, %v5401_v20  ;;  %v5404_v0 = vmul.f32 %v11399_v18, %v13845_v8 }
0x1648   : > { %v11401_v15 = vpop.eup %11400  ;;  %10419 = vmatmul.mubr.msk.f32.gmra.mxu0 %vm395_vm0, %v5402_v29 }
0x1649   : > { %v5403_v27 = vmul.f32 %v11401_v15, %v13849_v14 }
0x164b   : > { %10421 = vmatprep.mubr.msk.f32.mxu0 %vm395_vm0, %v5403_v27 }
0x164c   : > { %10422 = vmatmul.mubr.msk.f32.gmra.mxu0 %vm395_vm0, %v5404_v0  ;;  %v11403_v61 = vpop.eup %11402 }
0x164d   : > { %v5406_v42 = vmul.f32 %v11403_v61, %v13853_v5 }
0x164e   : > { %v11405_v32 = vpop.eup %11404 }
0x164f   : > { %v5405_v17 = vmul.f32 %v11405_v32, %v13856_v41 }
0x1650   : > { %v11407_v22 = vpop.eup %11406 }
0x1651   : > { %v11409_v62 = vpop.eup %11408  ;;  %10424 = vmatprep.mubr.msk.f32.mxu0 %vm395_vm0, %v5405_v17  ;;  %v5408_v8 = vmul.f32 %v11407_v22, %v13861_v38 }
0x1652   : > { %v5407_v35 = vmul.f32 %v11409_v62, %v13865_v7  ;;  %10425 = vmatmul.mubr.msk.f32.gmra.mxu0 %vm395_vm0, %v5406_v42 }
0x1654   : > { %10427 = vmatprep.mubr.msk.f32.mxu0 %vm395_vm0, %v5407_v35 }
0x1656   : > { %10428 = vmatmul.mubr.msk.f32.gmra.mxu0 %vm395_vm0, %v5408_v8 }
0x16d5   : > { %v13892_v14 = vpop.f32.mrf.mxu0 }
0x16d7   : > { %v13894_v3 = vpop.f32.mrf.mxu0 }
0x16d9   : > { %v10411_v41 = vpop.f32.mrf.mxu0 }
0x16db   : > { %v5542_v43 = vpop.f32.mrf.mxu0 }
0x16ff   : > { %v10414_v5 = vpop.f32.mrf.mxu0 }
0x1700   : > { %v13926_v28 = vadd.f32 %v10414_v5, %v8953_v36 }
0x1701   : > { %v5552_v53 = vpop.f32.mrf.mxu0 }
0x1703   : > { %v10417_v4 = vpop.f32.mrf.mxu0 }
0x1705   : > { %v5562_v40 = vpop.f32.mrf.mxu0 }
0x1706   : > { %v13921_v39 = vadd.f32 %v8953_v36, %v5562_v40 }
0x1708   : > { %v10420_v46 = vpop.f32.mrf.mxu0  ;;  %v5617_v40 = vsub.f32 0.0, %v13921_v39 }
0x1709   : > { %v13905_v27 = vadd.f32 %v10420_v46, %v8953_v36  ;;  %v13917_v46 = vadd.f32 %v10417_v4, %v8953_v36 }
0x170a   : > { %v5572_v7 = vpop.f32.mrf.mxu0 }
0x170b   : > { %v13912_v62 = vadd.f32 %v8953_v36, %v5572_v7  ;;  %v5618_v4 = vsub.f32 0.0, %v13917_v46 }
0x170c   : > { %v10423_v10 = vpop.f32.mrf.mxu0 }
0x170d   : > { %v13896_v38 = vadd.f32 %v10423_v10, %v8953_v36  ;;  %v5619_v7 = vsub.f32 0.0, %v13912_v62 }
0x170e   : > { %v5582_v26 = vpop.f32.mrf.mxu0 }
0x170f   : > { %v13898_v63 = vadd.f32 %v8953_v36, %v5582_v26  ;;  %v5622_v0 = vsub.f32 0.0, %v13896_v38 }
0x1711   : > { %v5621_v32 = vsub.f32 0.0, %v13898_v63 }
0x1712   : > { %v10426_v51 = vpop.f32.mrf.mxu0 }
0x1713   : > { %v13900_v20 = vadd.f32 %v10426_v51, %v8953_v36  ;;  %v5620_v51 = vsub.f32 0.0, %v13905_v27  ;;  %v5647_v16 = vmul.f32 1.442695, %v5621_v32  ;;  %v13931_v32 = vadd.f32 %v8953_v36, %v5552_v53 }
0x1714   : > { %v5592_v29 = vpop.f32.mrf.mxu0 }
0x1715   : > { %v5624_v18 = vsub.f32 0.0, %v13900_v20  ;;  %v13903_v15 = vadd.f32 %v8953_v36, %v5592_v29  ;;  %v5649_v29 = vmul.f32 1.442695, %v5622_v0  ;;  %v5645_v6 = vmul.f32 1.442695, %v5620_v51 }
0x1716   : > { %v10429_v61 = vpop.f32.mrf.mxu0  ;;  %v13929_v0 = vadd.f32 %v8953_v36, %v5542_v43  ;;  %v5615_v51 = vsub.f32 0.0, %v13931_v32 }
0x1717   : > { %v5653_v17 = vmul.f32 1.442695, %v5624_v18  ;;  %v5623_v22 = vsub.f32 0.0, %v13903_v15  ;;  %v13910_v42 = vadd.f32 %v10429_v61, %v8953_v36 }
0x1718   : > { %v5602_v35 = vpop.f32.mrf.mxu0  ;;  %v5613_v5 = vsub.f32 0.0, %v13929_v0 }
0x1719   : > { %v5651_v8 = vmul.f32 1.442695, %v5623_v22  ;;  %v5626_v10 = vsub.f32 0.0, %v13910_v42  ;;  %v13915_v26 = vadd.f32 %v8953_v36, %v5602_v35  ;;  %11410 = vpow2.f32 %v5653_v17 }
0x171a   : > { %v13924_v22 = vadd.f32 %v10411_v41, %v8953_v36  ;;  %v5643_v17 = vmul.f32 1.442695, %v5619_v7  ;;  %v5631_v7 = vmul.f32 1.442695, %v5613_v5 }
0x171b   : > { %11412 = vpow2.f32 %v5651_v8  ;;  %v5657_v18 = vmul.f32 1.442695, %v5626_v10  ;;  %v5625_v61 = vsub.f32 0.0, %v13915_v26  ;;  %v5616_v8 = vsub.f32 0.0, %v13926_v28 }
0x171c   : > { %v5614_v41 = vsub.f32 0.0, %v13924_v22  ;;  %v5641_v10 = vmul.f32 1.442695, %v5618_v4  ;;  %v5635_v4 = vmul.f32 1.442695, %v5615_v51 }
0x171d   : > { %11414 = vpow2.f32 %v5657_v18  ;;  %v5655_v35 = vmul.f32 1.442695, %v5625_v61  ;;  %v5637_v53 = vmul.f32 1.442695, %v5616_v8  ;;  %v13942_v61 = vadd.f32 %v8953_v36, %v13894_v3 }
0x171e   : > { %11416 = vpow2.f32 %v5649_v29  ;;  %v5639_v29 = vmul.f32 1.442695, %v5617_v40  ;;  %v5633_v43 = vmul.f32 1.442695, %v5614_v41 }
0x171f   : > { %11418 = vpow2.f32 %v5647_v16  ;;  %v13939_v16 = vadd.f32 %v13892_v14, %v8953_v36  ;;  %v5611_v14 = vsub.f32 0.0, %v13942_v61 }
0x1720   : > { %11420 = vpow2.f32 %v5655_v35 }
0x1721   : > { %11422 = vpow2.f32 %v5645_v6  ;;  %v5612_v6 = vsub.f32 0.0, %v13939_v16  ;;  %v5627_v47 = vmul.f32 1.442695, %v5611_v14 }
0x1722   : > { %11424 = vpow2.f32 %v5643_v17 }
0x1723   : > { %11426 = vpow2.f32 %v5641_v10  ;;  %v5629_v36 = vmul.f32 1.442695, %v5612_v6 }
0x1724   : > { %11428 = vpow2.f32 %v5639_v29 }
0x1725   : > { %11430 = vpow2.f32 %v5633_v43 }
0x1726   : > { %v11411_v18 = vpop.eup %11410  ;;  %11432 = vpow2.f32 %v5637_v53 }
0x1727   : > { %v5672_v40 = vadd.f32 1.0, %v11411_v18  ;;  %11434 = vpow2.f32 %v5631_v7 }
0x1728   : > { %v11413_v35 = vpop.eup %11412  ;;  %11436 = vpow2.f32 %v5635_v4 }
0x1729   : > { %v5671_v41 = vadd.f32 1.0, %v11413_v35 }
0x172a   : > { %v11415_v13 = vpop.eup %11414 }
0x172b   : > { %v11417_v17 = vpop.eup %11416  ;;  %v5674_v8 = vadd.f32 1.0, %v11415_v13 }
0x172c   : > { %v11419_v10 = vpop.eup %11418  ;;  %v5670_v5 = vadd.f32 1.0, %v11417_v17 }
0x172d   : > { %v11421_v3 = vpop.eup %11420  ;;  %11438 = vrcp.f32 %v5674_v8  ;;  %v5669_v43 = vadd.f32 1.0, %v11419_v10 }
0x172e   : > { %11440 = vrcp.f32 %v5672_v40  ;;  %v5673_v51 = vadd.f32 1.0, %v11421_v3  ;;  %v11423_v29 = vpop.eup %11422 }
0x172f   : > { %11442 = vrcp.f32 %v5671_v41  ;;  %v11425_v53 = vpop.eup %11424  ;;  %v5668_v18 = vadd.f32 1.0, %v11423_v29 }
0x1730   : > { %11444 = vrcp.f32 %v5673_v51  ;;  %v11427_v7 = vpop.eup %11426  ;;  %v5667_v13 = vadd.f32 1.0, %v11425_v53 }
0x1731   : > { %11446 = vpow2.f32 %v5629_v36  ;;  %v11429_v35 = vpop.eup %11428  ;;  %v5666_v6 = vadd.f32 1.0, %v11427_v7 }
0x1732   : > { %11448 = vrcp.f32 %v5670_v5  ;;  %v11431_v4 = vpop.eup %11430  ;;  %v5665_v8 = vadd.f32 1.0, %v11429_v35 }
0x1733   : > { %11450 = vpow2.f32 %v5627_v47  ;;  %v11433_v17 = vpop.eup %11432  ;;  %v5662_v53 = vadd.f32 1.0, %v11431_v4 }
0x1734   : > { %11452 = vrcp.f32 %v5669_v43  ;;  %v11435_v40 = vpop.eup %11434  ;;  %v5664_v10 = vadd.f32 1.0, %v11433_v17 }
0x1735   : > { %11454 = vrcp.f32 %v5668_v18  ;;  %v11437_v14 = vpop.eup %11436 }
0x1736   : > { %11456 = vrcp.f32 %v5667_v13  ;;  %v5663_v51 = vadd.f32 1.0, %v11437_v14 }
0x1737   : > { %11458 = vrcp.f32 %v5666_v6  ;;  %v5661_v6 = vadd.f32 1.0, %v11435_v40 }
0x1738   : > { %11460 = vrcp.f32 %v5665_v8 }
0x1739   : > { %11462 = vrcp.f32 %v5664_v10 }
0x173a   : > { %v11439_v41 = vpop.eup %11438  ;;  %11464 = vrcp.f32 %v5663_v51 }
0x173b   : > { %v11441_v3 = vpop.eup %11440  ;;  %v5706_v36 = vmul.f32 %v11439_v41, %v13910_v42  ;;  %11466 = vrcp.f32 %v5662_v53 }
0x173c   : > { %v11443_v5 = vpop.eup %11442  ;;  %v5704_v18 = vmul.f32 %v11441_v3, %v13900_v20  ;;  %11468 = vrcp.f32 %v5661_v6 }
0x173d   : > { %v11445_v47 = vpop.eup %11444  ;;  %v5722_v29 = vmul.f32 %v5706_v36, %v12515_v50  ;;  %v5703_v42 = vmul.f32 %v11443_v5, %v13903_v15 }
0x173e   : > { %v11447_v43 = vpop.eup %11446  ;;  %v5705_v7 = vmul.f32 %v11445_v47, %v13915_v26  ;;  %v5720_v20 = vmul.f32 %v5704_v18, %v12518_v56 }
0x173f   : > { %v11449_v13 = vpop.eup %11448  ;;  %10430 = vmatprep.subr.mxu1 %v5722_v29  ;;  %v5660_v14 = vadd.f32 1.0, %v11447_v43  ;;  %v5719_v15 = vmul.f32 %v5703_v42, %v12522_v60 }
0x1740   : > { %v11451_v35 = vpop.eup %11450  ;;  %10431 = vmatpush3.msra.mxu1 %v5722_v29  ;;  %v5721_v17 = vmul.f32 %v5705_v7, %v12520_v34  ;;  %v5702_v4 = vmul.f32 %v11449_v13, %v13896_v38 }
0x1741   : > { %v11453_v8 = vpop.eup %11452  ;;  %v5659_v26 = vadd.f32 1.0, %v11451_v35  ;;  %11470 = vrcp.f32 %v5660_v14 }
0x1742   : > { %10432 = vmatprep.subr.mxu1 %v5721_v17  ;;  %v11455_v41 = vpop.eup %11454  ;;  %v5701_v40 = vmul.f32 %v11453_v8, %v13898_v63  ;;  %v5718_v38 = vmul.f32 %v5702_v4, %v12524_v58 }
0x1743   : > { %10433 = vmatpush3.msra.mxu1 %v5721_v17  ;;  %v11457_v10 = vpop.eup %11456  ;;  %v5700_v3 = vmul.f32 %v11455_v41, %v13905_v27  ;;  %11472 = vrcp.f32 %v5659_v26  ;;  %v5814_v26 = vld [vmem:[#allocation2 + $0x2a0] sm:$0xff] }
0x1744   : > { %10434 = vmatprep.subr.mxu1 %v5720_v20  ;;  %v11459_v36 = vpop.eup %11458  ;;  %v5699_v5 = vmul.f32 %v11457_v10, %v13912_v62  ;;  %v5717_v51 = vmul.f32 %v5701_v40, %v12526_v57  ;;  %v5813_v40 = vld [vmem:[#allocation2 + $0x298] sm:$0xff]  ;;  %v5811_v10 = vld [vmem:[#allocation2 + $0x288] sm:$0xff] }
0x1745   : > { %10435 = vmatpush3.msra.mxu1 %v5720_v20  ;;  %v11461_v63 = vpop.eup %11460  ;;  %v5698_v47 = vmul.f32 %v11459_v36, %v13917_v46  ;;  %v5716_v29 = vmul.f32 %v5700_v3, %v12534_v12  ;;  %v5810_v3 = vld [vmem:[#allocation2 + $0x280] sm:$0xff]  ;;  %v5808_v36 = vld [vmem:[#allocation2 + $0x270] sm:$0xff] }
0x1746   : > { %10436 = vmatprep.subr.mxu1 %v5719_v15  ;;  %v11463_v43 = vpop.eup %11462  ;;  %v5697_v27 = vmul.f32 %v11461_v63, %v13921_v39  ;;  %v5715_v53 = vmul.f32 %v5699_v5, %v12536_v2 }
0x1747   : > { %10437 = vmatpush3.msra.mxu1 %v5719_v15  ;;  %v11465_v18 = vpop.eup %11464  ;;  %v5696_v62 = vmul.f32 %v11463_v43, %v13926_v28  ;;  %v5714_v7 = vmul.f32 %v5698_v47, %v12544_v21  ;;  %v5812_v15 = vld [vmem:[#allocation2 + $0x290] sm:$0xff]  ;;  %v15043_v43 = vld [vmem:[#allocation28_spill] sm:$0xff] }
0x1748   : > { %10438 = vmatprep.subr.mxu1 %v5718_v38  ;;  %v11467_v13 = vpop.eup %11466  ;;  %v5695_v46 = vmul.f32 %v11465_v18, %v13931_v32  ;;  %v5713_v35 = vmul.f32 %v5697_v27, %v12546_v49  ;;  %v5916_v18 = vld [vmem:[#allocation2 + $0x2c8] sm:$0xff] }
0x1749   : > { %10439 = vmatpush3.msra.mxu1 %v5718_v38  ;;  %v11469_v6 = vpop.eup %11468  ;;  %v5694_v39 = vmul.f32 %v11467_v13, %v13924_v22  ;;  %v5712_v42 = vmul.f32 %v5696_v62, %v12554_v19  ;;  %v5809_v38 = vld [vmem:[#allocation2 + $0x278] sm:$0xff]  ;;  %v5915_v62 = vld [vmem:[#allocation2 + $0x2c0] sm:$0xff] }
0x174a   : > { %10440 = vmatprep.subr.mxu1 %v5717_v51  ;;  %v5693_v28 = vmul.f32 %v11469_v6, %v13929_v0  ;;  %v5711_v8 = vmul.f32 %v5695_v46, %v12556_v37  ;;  %v6101_v13 = vld [vmem:[#allocation2 + $0x300] sm:$0x3]  ;;  %v8970_v46 = vld [vmem:[#allocation2 + $0x2b0] ss:$0 sm:$0xff] }
0x174b   : > { %10441 = vmatpush3.msra.mxu1 %v5717_v51  ;;  %v5710_v4 = vmul.f32 %v5694_v39, %v12564_v11 }
0x174c   : > { %10442 = vmatprep.subr.mxu1 %v5716_v29  ;;  %v5709_v20 = vmul.f32 %v5693_v28, %v12566_v45 }
0x174d   : > { %10443 = vmatpush3.msra.mxu1 %v5716_v29 }
0x174e   : > { %10444 = vmatprep.subr.mxu1 %v5715_v53  ;;  %v11471_v17 = vpop.eup %11470 }
0x174f   : > { %10445 = vmatpush3.msra.mxu1 %v5715_v53  ;;  %v5692_v32 = vmul.f32 %v11471_v17, %v13939_v16  ;;  %v11866_v16 = vld [vmem:[%s14846_s4 + $0x8] sm:$0xff]  ;;  %v5917_v53 = vld [vmem:[#allocation2 + $0x2d0] sm:$0xff] }
0x1750   : > { %10446 = vmatprep.subr.mxu1 %v5714_v7  ;;  %v11473_v14 = vpop.eup %11472 }
0x1751   : > { %10447 = vmatpush3.msra.mxu1 %v5714_v7  ;;  %v5691_v22 = vmul.f32 %v11473_v14, %v13942_v61  ;;  %v5708_v0 = vmul.f32 %v5692_v32, %v14994_v24  ;;  %v5815_v61 = vld [vmem:[#allocation2 + $0x2a8] sm:$0xff]  ;;  %v5914_v7 = vld [vmem:[#allocation2 + $0x2b8] sm:$0xff] }
0x1752   : > { %10448 = vmatprep.subr.mxu1 %v5713_v35  ;;  %10465 = vmatprep.subr.mxu0 %v5815_v61 }
0x1753   : > { %10449 = vmatpush3.msra.mxu1 %v5713_v35  ;;  %v5707_v41 = vmul.f32 %v5691_v22, %v14995_v55  ;;  %10466 = vmatpush3.msra.mxu0 %v5815_v61 }
0x1754   : > { %10450 = vmatprep.subr.mxu1 %v5712_v42  ;;  %10467 = vmatprep.subr.mxu0 %v5814_v26 }
0x1755   : > { %10451 = vmatpush3.msra.mxu1 %v5712_v42  ;;  %10468 = vmatpush3.msra.mxu0 %v5814_v26  ;;  %v15044_v26 = vld [vmem:[#allocation40_spill] sm:$0xff] }
0x1756   : > { %10452 = vmatprep.subr.mxu1 %v5711_v8  ;;  %10469 = vmatprep.subr.mxu0 %v5813_v40 }
0x1757   : > { %10453 = vmatpush3.msra.mxu1 %v5711_v8  ;;  %10470 = vmatpush3.msra.mxu0 %v5813_v40  ;;  %v15045_v40 = vld [vmem:[#allocation42_spill] sm:$0xff] }
0x1758   : > { %10454 = vmatprep.subr.mxu1 %v5710_v4  ;;  %10471 = vmatprep.subr.mxu0 %v5812_v15 }
0x1759   : > { %10455 = vmatpush3.msra.mxu1 %v5710_v4  ;;  %10472 = vmatpush3.msra.mxu0 %v5812_v15  ;;  %v15046_v15 = vld [vmem:[#allocation43_spill] sm:$0xff] }
0x175a   : > { %10456 = vmatprep.subr.mxu1 %v5709_v20  ;;  %10473 = vmatprep.subr.mxu0 %v5811_v10 }
0x175b   : > { %10457 = vmatpush3.msra.mxu1 %v5709_v20  ;;  %10474 = vmatpush3.msra.mxu0 %v5811_v10  ;;  %v15047_v10 = vld [vmem:[#allocation46_spill] sm:$0xff] }
0x175c   : > { %10458 = vmatprep.subr.mxu1 %v5708_v0  ;;  %10475 = vmatprep.subr.mxu0 %v5810_v3 }
0x175d   : > { %10459 = vmatpush3.msra.mxu1 %v5708_v0  ;;  %10476 = vmatpush3.msra.mxu0 %v5810_v3  ;;  %v15048_v3 = vld [vmem:[#allocation47_spill] sm:$0xff] }
0x175e   : > { %10460 = vmatprep.subr.mxu1 %v5707_v41  ;;  %10477 = vmatprep.subr.mxu0 %v5809_v38 }
0x175f   : > { %10461 = vmatpush3.msra.mxu1 %v5707_v41  ;;  %10478 = vmatpush3.msra.mxu0 %v5809_v38  ;;  %v6011_v38 = vld [vmem:[#allocation2 + $0x2f8] sm:$0xff] }
0x1760   : > { %10463 = vmatmul.mubr.f32.vlgmr.msra.gmra.mxu1 %v11866_v16  ;;  %10479 = vmatprep.subr.mxu0 %v5808_v36 }
0x1761   : > { %10480 = vmatpush3.msra.mxu0 %v5808_v36  ;;  %10484 = vmatprep.subr.mxu1 %v5917_v53  ;;  %v6010_v36 = vld [vmem:[#allocation2 + $0x2f0] sm:$0xff] }
0x1762   : > { %10485 = vmatpush3.msra.mxu1 %v5917_v53  ;;  %10495 = vmatprep.subr.mxu0 %v6011_v38 }
0x1763   : > { %10486 = vmatprep.subr.mxu1 %v5916_v18 }
0x1764   : > { %10487 = vmatpush3.msra.mxu1 %v5916_v18 }
0x1765   : > { %10488 = vmatprep.subr.mxu1 %v5915_v62 }
0x1766   : > { %10489 = vmatpush3.msra.mxu1 %v5915_v62 }
0x1767   : > { %10490 = vmatprep.subr.mxu1 %v5914_v7 }
0x1768   : > { %10491 = vmatpush3.msra.mxu1 %v5914_v7  ;;  %v15049_v7 = vld [vmem:[#allocation5_spill] sm:$0xff] }
0x1769   : > { %10506 = vmatprep.subr.msk.mxu1 %vm671_vm1, %v6101_v13 }
0x1820   : > { %v10464_v5 = vpop.f32.mrf.mxu1 }
0x1821   : > { %5802 = vrot.lane.b32.xlu0 %v10464_v5, %s11949_s23  ;;  %v6009_v5 = vld [vmem:[#allocation2 + $0x2e8] sm:$0xff] }
0x1822   : > { %v5789_v51 = vpop.f32.mrf.mxu1 }
0x1823   : > { %5800 = vrot.lane.b32.xlu1 %v5789_v51, %s11949_s23  ;;  %v6008_v51 = vld [vmem:[#allocation2 + $0x2e0] sm:$0xff] }
0x1893   : > { %v5803_v63 = vpop.permute.xlu0 %5802 }
0x1894   : > { %v5807_v27 = vsel %vm395_vm0, %v15043_v43, %v5803_v63  ;;  %v8973_v63 = vld [vmem:[#allocation2 + $0x2d8] ss:$0 sm:$0xff] }
0x1895   : > { %v5801_v47 = vpop.permute.xlu1 %5800 }
0x1896   : > { %v5806_v29 = vsel %vm395_vm0, %v13403_v54, %v5801_v47 }
0x1897   : > { %10481 = vmatprep.mubr.msk.f32.mxu0 %vm1970_vm4, %v5806_v29 }
0x1898   : > { %10482 = vmatmul.mubr.msk.f32.vlgmr.msra.gmra.mxu0 %vm1970_vm4, %v5807_v27 }
0x1899   : > { %10496 = vmatpush3.msra.mxu0 %v6011_v38  ;;  %v11880_v38 = vld [vmem:[%s14845_s3 + $0x68] sm:$0xff] }
0x189a   : > { %10497 = vmatprep.subr.mxu0 %v6010_v36 }
0x189b   : > { %10498 = vmatpush3.msra.mxu0 %v6010_v36  ;;  %v11881_v36 = vld [vmem:[%s14845_s3 + $0x70] sm:$0xff] }
0x189c   : > { %10499 = vmatprep.subr.mxu0 %v6009_v5 }
0x189d   : > { %10500 = vmatpush3.msra.mxu0 %v6009_v5  ;;  %v11882_v5 = vld [vmem:[%s14845_s3 + $0x78] sm:$0xff] }
0x189e   : > { %10501 = vmatprep.subr.mxu0 %v6008_v51 }
0x189f   : > { %10502 = vmatpush3.msra.mxu0 %v6008_v51  ;;  %v11883_v51 = vld [vmem:[%s14846_s4] sm:$0xff] }
0x1958   : > { %v10483_v35 = vpop.f32.mrf.mxu0 }
0x1959   : > { %v5899_v6 = vadd.f32 %v10483_v35, %v8970_v46 }
0x195a   : > { %v5893_v39 = vpop.f32.mrf.mxu0 }
0x195b   : > { %v5903_v42 = vsub.f32 0.0, %v5899_v6  ;;  %v5894_v17 = vadd.f32 %v8970_v46, %v5893_v39  ;;  %v15050_v46 = vld [vmem:[#allocation7_spill] sm:$0xff] }
0x195d   : > { %v5906_v28 = vmul.f32 1.442695, %v5903_v42  ;;  %v5902_v8 = vsub.f32 0.0, %v5894_v17 }
0x195f   : > { %11474 = vpow2.f32 %v5906_v28  ;;  %v5904_v14 = vmul.f32 1.442695, %v5902_v8  ;;  %v11869_v28 = vld [vmem:[%s14845_s3 + $0x10] sm:$0xff]  ;;  %v11870_v8 = vld [vmem:[%s14845_s3 + $0x18] sm:$0xff] }
0x1961   : > { %11476 = vpow2.f32 %v5904_v14  ;;  %v11871_v14 = vld [vmem:[%s14845_s3 + $0x20] sm:$0xff] }
0x196c   : > { %v11475_v32 = vpop.eup %11474 }
0x196d   : > { %v5909_v4 = vadd.f32 1.0, %v11475_v32  ;;  %v11872_v32 = vld [vmem:[%s14845_s3 + $0x28] sm:$0xff] }
0x196e   : > { %v11477_v22 = vpop.eup %11476 }
0x196f   : > { %v5908_v20 = vadd.f32 1.0, %v11477_v22  ;;  %11478 = vrcp.f32 %v5909_v4  ;;  %v11873_v4 = vld [vmem:[%s14845_s3 + $0x30] sm:$0xff]  ;;  %v11874_v22 = vld [vmem:[%s14845_s3 + $0x38] sm:$0xff] }
0x1971   : > { %11480 = vrcp.f32 %v5908_v20  ;;  %v11875_v20 = vld [vmem:[%s14845_s3 + $0x40] sm:$0xff] }
0x197c   : > { %v11479_v0 = vpop.eup %11478 }
0x197d   : > { %v5913_v61 = vmul.f32 %v11479_v0, %v5899_v6  ;;  %v11867_v6 = vld [vmem:[%s14845_s3] sm:$0xff]  ;;  %v11876_v0 = vld [vmem:[%s14845_s3 + $0x48] sm:$0xff] }
0x197e   : > { %v11481_v41 = vpop.eup %11480 }
0x197f   : > { %v5912_v16 = vmul.f32 %v11481_v41, %v5894_v17  ;;  %v11868_v17 = vld [vmem:[%s14845_s3 + $0x8] sm:$0xff]  ;;  %v11877_v41 = vld [vmem:[%s14845_s3 + $0x50] sm:$0xff] }
0x1981   : > { %10492 = vmatprep.mubr.msk.f32.mxu1 %vm395_vm0, %v5912_v16  ;;  %v11878_v16 = vld [vmem:[%s14845_s3 + $0x58] sm:$0xff] }
0x1982   : > { %10493 = vmatmul.mubr.msk.f32.vlgmr.msra.gmra.mxu1 %vm395_vm0, %v5913_v61  ;;  %v11879_v61 = vld [vmem:[%s14845_s3 + $0x60] sm:$0xff] }
0x1983   : > { %10508 = vmatprep.mubr.msk.f32.mxu1 %vm666_vm2, %v13636_v23  ;;  %10507 = vmatpush3.msk.msra.mxu1 %vm671_vm1, %v6101_v13 }
0x1986   : > { %10509 = vmatmul.mubr.msk.f32.vlgmr.msra.gmra.mxu1 %vm666_vm2, %v13641_v59 }
0x1987   : > { %10511 = vmatprep.mubr.msk.f32.mxu1 %vm666_vm2, %v13656_v31 }
0x198a   : > { %10512 = vmatmul.mubr.msk.f32.gmra.mxu1 %vm666_vm2, %v13662_v52 }
0x198b   : > { %10514 = vmatprep.mubr.msk.f32.mxu1 %vm666_vm2, %v13678_v30 }
0x198e   : > { %10515 = vmatmul.mubr.msk.f32.gmra.mxu1 %vm666_vm2, %v13720_v25 }
0x198f   : > { %10517 = vmatprep.mubr.msk.f32.mxu1 %vm666_vm2, %v13725_v1 }
0x1992   : > { %10518 = vmatmul.mubr.msk.f32.gmra.mxu1 %vm666_vm2, %v13736_v33 }
0x1993   : > { %10520 = vmatprep.mubr.msk.f32.mxu1 %vm666_vm2, %v13747_v48 }
0x1996   : > { %10521 = vmatmul.mubr.msk.f32.gmra.mxu1 %vm666_vm2, %v13752_v9 }
0x1997   : > { %10523 = vmatprep.mubr.msk.f32.mxu1 %vm666_vm2, %v13765_v44 }
0x199a   : > { %10524 = vmatmul.mubr.msk.f32.gmra.mxu1 %vm666_vm2, %v15044_v26 }
0x199b   : > { %10526 = vmatprep.mubr.msk.f32.mxu1 %vm666_vm2, %v15045_v40 }
0x199e   : > { %10527 = vmatmul.mubr.msk.f32.gmra.mxu1 %vm666_vm2, %v15046_v15 }
0x199f   : > { %10529 = vmatprep.mubr.msk.f32.mxu1 %vm666_vm2, %v15047_v10 }
0x19a2   : > { %10530 = vmatmul.mubr.msk.f32.gmra.mxu1 %vm666_vm2, %v15048_v3 }
0x1a42   : > { %v10494_v47 = vpop.f32.mrf.mxu1 }
0x1a43   : > { %v6001_v29 = vadd.f32 %v10494_v47, %v8973_v63  ;;  %v6514_v47 = vld [vmem:[#allocation2 + $0x320] sm:$0xff] }
0x1a44   : > { %v5995_v27 = vpop.f32.mrf.mxu1 }
0x1a45   : > { %v5996_v53 = vadd.f32 %v8973_v63, %v5995_v27  ;;  %v6005_v18 = vadd.f32 %v6001_v29, %v15043_v43  ;;  %v6515_v63 = vld [vmem:[#allocation2 + $0x328] sm:$0xff]  ;;  %v6513_v29 = vld [vmem:[#allocation2 + $0x318] sm:$0xff]  ;;  %v6512_v27 = vld [vmem:[#allocation2 + $0x310] sm:$0xff] }
0x1a46   : > { %10564 = vmatprep.subr.mxu1 %v6515_v63 }
0x1a47   : > { %v6004_v62 = vadd.f32 %v5996_v53, %v13403_v54  ;;  %v14031_v35 = vmul.f32 %v6005_v18, %v15050_v46  ;;  %10565 = vmatpush3.msra.mxu1 %v6515_v63  ;;  %v10510_v53 = vpop.f32.mrf.mxu1 }
0x1a48   : > { %10566 = vmatprep.subr.mxu1 %v6514_v47 }
0x1a49   : > { %v14028_v13 = vmul.f32 %v6004_v62, %v15049_v7  ;;  %10567 = vmatpush3.msra.mxu1 %v6514_v47  ;;  %v6171_v18 = vpop.f32.mrf.mxu1 }
0x1a4a   : > { %10568 = vmatprep.subr.mxu1 %v6513_v29 }
0x1a4b   : > { %10503 = vmatprep.mubr.msk.f32.mxu0 %vm395_vm0, %v14028_v13  ;;  %10569 = vmatpush3.msra.mxu1 %v6513_v29  ;;  %v10513_v62 = vpop.f32.mrf.mxu1 }
0x1a4c   : > { %10504 = vmatmul.mubr.msk.f32.vlgmr.msra.gmra.mxu0 %vm395_vm0, %v14031_v35  ;;  %10570 = vmatprep.subr.mxu1 %v6512_v27 }
0x1a4d   : > { %10540 = vmatprep.mubr.msk.f32.mxu0 %vm395_vm0, %v11867_v6  ;;  %10571 = vmatpush3.msra.mxu1 %v6512_v27  ;;  %v6181_v6 = vpop.f32.mrf.mxu1 }
0x1b0c   : > { %v10505_v43 = vpop.f32.mrf.mxu0 }
0x1b0d   : > { %6097 = vrot.lane.b32.xlu1 %v10505_v43, %s11948_s13 }
0x1b0e   : > { %v6084_v54 = vpop.f32.mrf.mxu0 }
0x1b11   : > { %6095 = vrot.lane.b32.xlu1 %v6084_v54, %s11948_s13 }
0x1b7f   : > { %v6098_v39 = vpop.permute.xlu1 %6097 }
0x1b80   : > { %10532 = vmatprep.subr.mxu0 %v6098_v39 }
0x1b81   : > { %10533 = vmatpush3.msra.mxu0 %v6098_v39 }
0x1b83   : > { %v6096_v42 = vpop.permute.xlu1 %6095 }
0x1b84   : > { %10534 = vmatprep.subr.mxu0 %v6096_v42 }
0x1b85   : > { %10535 = vmatpush3.msra.mxu0 %v6096_v42 }
0x1b86   : > { %10536 = vmatprep.subr.mxu0 %v10505_v43 }
0x1b87   : > { %10537 = vmatpush3.msra.mxu0 %v10505_v43  ;;  %v10516_v43 = vpop.f32.mrf.mxu1 }
0x1b88   : > { %10538 = vmatprep.subr.mxu0 %v6084_v54 }
0x1b89   : > { %10539 = vmatpush3.msra.mxu0 %v6084_v54  ;;  %v6191_v54 = vpop.f32.mrf.mxu1 }
0x1b8a   : > { %10541 = vmatmul.mubr.msk.f32.vlgmr.msra.gmra.mxu0 %vm395_vm0, %v11868_v17 }
0x1b8b   : > { %10543 = vmatprep.mubr.msk.f32.mxu0 %vm395_vm0, %v11869_v28  ;;  %v10519_v39 = vpop.f32.mrf.mxu1  ;;  %v14106_v28 = vld [vmem:[#allocation2 + $0x308] ss:$0 sm:$0xff] }
0x1b8d   : > { %v6201_v42 = vpop.f32.mrf.mxu1 }
0x1b8e   : > { %10544 = vmatmul.mubr.msk.f32.gmra.mxu0 %vm395_vm0, %v11870_v8 }
0x1b8f   : > { %10546 = vmatprep.mubr.msk.f32.mxu0 %vm395_vm0, %v11871_v14  ;;  %v10522_v14 = vpop.f32.mrf.mxu1 }
0x1b92   : > { %10547 = vmatmul.mubr.msk.f32.gmra.mxu0 %vm395_vm0, %v11872_v32 }
0x1b93   : > { %10549 = vmatprep.mubr.msk.f32.mxu0 %vm395_vm0, %v11873_v4 }
0x1b96   : > { %10550 = vmatmul.mubr.msk.f32.gmra.mxu0 %vm395_vm0, %v11874_v22 }
0x1b97   : > { %10552 = vmatprep.mubr.msk.f32.mxu0 %vm395_vm0, %v11875_v20 }
0x1b9a   : > { %10553 = vmatmul.mubr.msk.f32.gmra.mxu0 %vm395_vm0, %v11876_v0 }
0x1b9b   : > { %10555 = vmatprep.mubr.msk.f32.mxu0 %vm395_vm0, %v11877_v41 }
0x1b9e   : > { %10556 = vmatmul.mubr.msk.f32.gmra.mxu0 %vm395_vm0, %v11878_v16 }
0x1b9f   : > { %10558 = vmatprep.mubr.msk.f32.mxu0 %vm395_vm0, %v11879_v61  ;;  %v6211_v61 = vpop.f32.mrf.mxu1 }
0x1ba2   : > { %10559 = vmatmul.mubr.msk.f32.gmra.mxu0 %vm395_vm0, %v11880_v38 }
0x1ba3   : > { %10561 = vmatprep.mubr.msk.f32.mxu0 %vm395_vm0, %v11881_v36 }
0x1ba6   : > { %10562 = vmatmul.mubr.msk.f32.gmra.mxu0 %vm395_vm0, %v11882_v5 }
0x1ba7   : > { %10628 = vmatprep.mubr.f32.mxu0 %v11883_v51 }
0x1c4a   : > { %v10542_v17 = vpop.f32.mrf.mxu0 }
0x1c4b   : > { %v6322_v8 = vadd.f32 %v10542_v17, %v10510_v53 }
0x1c4c   : > { %v6316_v32 = vpop.f32.mrf.mxu0 }
0x1c4d   : > { %v14109_v4 = vadd.f32 %v14106_v28, %v6322_v8  ;;  %v6317_v22 = vadd.f32 %v6316_v32, %v6171_v18  ;;  %v10525_v18 = vpop.f32.mrf.mxu1 }
0x1c4e   : > { %v10545_v20 = vpop.f32.mrf.mxu0 }
0x1c4f   : > { %v6417_v0 = vsub.f32 0.0, %v14109_v4  ;;  %v14113_v41 = vadd.f32 %v14106_v28, %v6317_v22  ;;  %v6332_v16 = vadd.f32 %v10545_v20, %v10513_v62 }
0x1c50   : > { %v6326_v38 = vpop.f32.mrf.mxu0 }
0x1c51   : > { %v6434_v36 = vmul.f32 1.442695, %v6417_v0  ;;  %v6416_v5 = vsub.f32 0.0, %v14113_v41  ;;  %v14117_v51 = vadd.f32 %v14106_v28, %v6332_v16  ;;  %v6327_v63 = vadd.f32 %v6326_v38, %v6181_v6 }
0x1c52   : > { %v10548_v47 = vpop.f32.mrf.mxu0 }
0x1c53   : > { %11482 = vpow2.f32 %v6434_v36  ;;  %v6432_v29 = vmul.f32 1.442695, %v6416_v5  ;;  %v6419_v27 = vsub.f32 0.0, %v14117_v51  ;;  %v14121_v53 = vadd.f32 %v14106_v28, %v6327_v63  ;;  %v6221_v36 = vpop.f32.mrf.mxu1 }
0x1c54   : > { %v6342_v17 = vadd.f32 %v10548_v47, %v10516_v43  ;;  %v6336_v62 = vpop.f32.mrf.mxu0 }
0x1c55   : > { %11484 = vpow2.f32 %v6432_v29  ;;  %v6438_v8 = vmul.f32 1.442695, %v6419_v27  ;;  %v6418_v32 = vsub.f32 0.0, %v14121_v53  ;;  %v6337_v22 = vadd.f32 %v6336_v62, %v6191_v54 }
0x1c56   : > { %v14125_v20 = vadd.f32 %v14106_v28, %v6342_v17  ;;  %v10551_v6 = vpop.f32.mrf.mxu0 }
0x1c57   : > { %11486 = vpow2.f32 %v6438_v8  ;;  %v6436_v0 = vmul.f32 1.442695, %v6418_v32  ;;  %v14128_v16 = vadd.f32 %v14106_v28, %v6337_v22  ;;  %v6352_v38 = vadd.f32 %v10551_v6, %v10519_v39  ;;  %v10528_v32 = vpop.f32.mrf.mxu1 }
0x1c58   : > { %v6421_v5 = vsub.f32 0.0, %v14125_v20  ;;  %v6346_v43 = vpop.f32.mrf.mxu0 }
0x1c59   : > { %11488 = vpow2.f32 %v6436_v0  ;;  %v6420_v63 = vsub.f32 0.0, %v14128_v16  ;;  %v14133_v47 = vadd.f32 %v14106_v28, %v6352_v38  ;;  %v6347_v54 = vadd.f32 %v6346_v43, %v6201_v42  ;;  %v6231_v7 = vpop.f32.mrf.mxu1 }
0x1c5a   : > { %v6442_v29 = vmul.f32 1.442695, %v6421_v5  ;;  %v10554_v27 = vpop.f32.mrf.mxu0 }
0x1c5b   : > { %v6440_v17 = vmul.f32 1.442695, %v6420_v63  ;;  %v6423_v62 = vsub.f32 0.0, %v14133_v47  ;;  %v14137_v8 = vadd.f32 %v14106_v28, %v6347_v54  ;;  %v6362_v39 = vadd.f32 %v10554_v27, %v10522_v14 }
0x1c5c   : > { %11490 = vpow2.f32 %v6442_v29  ;;  %v6356_v22 = vpop.f32.mrf.mxu0 }
0x1c5d   : > { %11492 = vpow2.f32 %v6440_v17  ;;  %v6446_v6 = vmul.f32 1.442695, %v6423_v62  ;;  %v6422_v0 = vsub.f32 0.0, %v14137_v8  ;;  %v14141_v38 = vadd.f32 %v14106_v28, %v6362_v39 }
0x1c5e   : > { %v6357_v42 = vadd.f32 %v6356_v22, %v6211_v61  ;;  %v10557_v5 = vpop.f32.mrf.mxu0 }
0x1c5f   : > { %11494 = vpow2.f32 %v6446_v6  ;;  %v6444_v43 = vmul.f32 1.442695, %v6422_v0  ;;  %v6425_v63 = vsub.f32 0.0, %v14141_v38  ;;  %v6372_v46 = vadd.f32 %v10557_v5, %v10525_v18 }
0x1c60   : > { %v11483_v54 = vpop.eup %11482  ;;  %v14145_v14 = vadd.f32 %v14106_v28, %v6357_v42  ;;  %v6366_v29 = vpop.f32.mrf.mxu0 }
0x1c61   : > { %v6465_v27 = vadd.f32 1.0, %v11483_v54  ;;  %11496 = vpow2.f32 %v6444_v43  ;;  %v6450_v17 = vmul.f32 1.442695, %v6425_v63  ;;  %v14148_v62 = vadd.f32 %v14106_v28, %v6372_v46  ;;  %v10531_v42 = vpop.f32.mrf.mxu1 }
0x1c62   : > { %v11485_v39 = vpop.eup %11484  ;;  %v6424_v61 = vsub.f32 0.0, %v14145_v14  ;;  %v6367_v22 = vadd.f32 %v6366_v29, %v6221_v36  ;;  %v10560_v6 = vpop.f32.mrf.mxu0 }
0x1c63   : > { %11498 = vrcp.f32 %v6465_v27  ;;  %v6464_v0 = vadd.f32 1.0, %v11485_v39  ;;  %v6427_v18 = vsub.f32 0.0, %v14148_v62  ;;  %v6382_v5 = vadd.f32 %v10560_v6, %v10528_v32 }
0x1c64   : > { %v11487_v3 = vpop.eup %11486  ;;  %11500 = vpow2.f32 %v6450_v17  ;;  %v6448_v10 = vmul.f32 1.442695, %v6424_v61  ;;  %v14153_v43 = vadd.f32 %v14106_v28, %v6367_v22  ;;  %v6376_v63 = vpop.f32.mrf.mxu0 }
0x1c65   : > { %11502 = vrcp.f32 %v6464_v0  ;;  %v6467_v46 = vadd.f32 1.0, %v11487_v3  ;;  %v6454_v54 = vmul.f32 1.442695, %v6427_v18  ;;  %v14156_v15 = vadd.f32 %v14106_v28, %v6382_v5  ;;  %v6241_v22 = vpop.f32.mrf.mxu1 }
0x1c66   : > { %v11489_v36 = vpop.eup %11488  ;;  %11504 = vpow2.f32 %v6448_v10  ;;  %v6426_v29 = vsub.f32 0.0, %v14153_v43  ;;  %v6377_v27 = vadd.f32 %v6376_v63, %v6231_v7  ;;  %v10563_v32 = vpop.f32.mrf.mxu0 }
0x1c67   : > { %11506 = vrcp.f32 %v6467_v46  ;;  %v6466_v39 = vadd.f32 1.0, %v11489_v36  ;;  %v6429_v17 = vsub.f32 0.0, %v14156_v15  ;;  %v6392_v61 = vadd.f32 %v10563_v32, %v10531_v42 }
0x1c68   : > { %11508 = vpow2.f32 %v6454_v54  ;;  %v6452_v6 = vmul.f32 1.442695, %v6426_v29  ;;  %v14161_v3 = vadd.f32 %v14106_v28, %v6377_v27  ;;  %v6386_v0 = vpop.f32.mrf.mxu0 }
0x1c69   : > { %v11491_v18 = vpop.eup %11490  ;;  %11510 = vrcp.f32 %v6466_v39  ;;  %v6458_v5 = vmul.f32 1.442695, %v6429_v17  ;;  %v14164_v10 = vadd.f32 %v14106_v28, %v6392_v61  ;;  %v6387_v7 = vadd.f32 %v6386_v0, %v6241_v22 }
0x1c6a   : > { %v11493_v63 = vpop.eup %11492  ;;  %v6469_v46 = vadd.f32 1.0, %v11491_v18  ;;  %11512 = vpow2.f32 %v6452_v6  ;;  %v6428_v36 = vsub.f32 0.0, %v14161_v3 }
0x1c6b   : > { %v6468_v42 = vadd.f32 1.0, %v11493_v63  ;;  %11514 = vpow2.f32 %v6458_v5  ;;  %v6431_v54 = vsub.f32 0.0, %v14164_v10  ;;  %v14169_v29 = vadd.f32 %v14106_v28, %v6387_v7 }
0x1c6c   : > { %v11495_v27 = vpop.eup %11494  ;;  %11516 = vrcp.f32 %v6469_v46  ;;  %v6456_v32 = vmul.f32 1.442695, %v6428_v36 }
0x1c6d   : > { %11518 = vrcp.f32 %v6468_v42  ;;  %v6471_v39 = vadd.f32 1.0, %v11495_v27  ;;  %v6462_v17 = vmul.f32 1.442695, %v6431_v54  ;;  %v6430_v61 = vsub.f32 0.0, %v14169_v29 }
0x1c6e   : > { %v11497_v22 = vpop.eup %11496  ;;  %11520 = vpow2.f32 %v6456_v32 }
0x1c6f   : > { %11522 = vrcp.f32 %v6471_v39  ;;  %v6470_v6 = vadd.f32 1.0, %v11497_v22  ;;  %v6460_v0 = vmul.f32 1.442695, %v6430_v61 }
0x1c70   : > { %v11499_v18 = vpop.eup %11498  ;;  %11524 = vpow2.f32 %v6462_v17 }
0x1c71   : > { %v11501_v5 = vpop.eup %11500  ;;  %11526 = vrcp.f32 %v6470_v6  ;;  %v6497_v42 = vmul.f32 %v11499_v18, %v14109_v4 }
0x1c72   : > { %v11503_v63 = vpop.eup %11502  ;;  %v6473_v28 = vadd.f32 1.0, %v11501_v5  ;;  %11528 = vpow2.f32 %v6460_v0 }
0x1c73   : > { %v11505_v7 = vpop.eup %11504  ;;  %v6496_v46 = vmul.f32 %v11503_v63, %v14113_v41 }
0x1c74   : > { %v11507_v36 = vpop.eup %11506  ;;  %v6472_v54 = vadd.f32 1.0, %v11505_v7  ;;  %11530 = vrcp.f32 %v6473_v28 }
0x1c75   : > { %v11509_v27 = vpop.eup %11508  ;;  %10572 = vmatprep.mubr.msk.f32.mxu1 %vm395_vm0, %v6496_v46  ;;  %v6499_v6 = vmul.f32 %v11507_v36, %v14117_v51 }
0x1c76   : > { %v11511_v32 = vpop.eup %11510  ;;  %11532 = vrcp.f32 %v6472_v54  ;;  %v6475_v39 = vadd.f32 1.0, %v11509_v27  ;;  %10573 = vmatmul.mubr.msk.f32.vlgmr.msra.gmra.mxu1 %vm395_vm0, %v6497_v42 }
0x1c77   : > { %v11513_v17 = vpop.eup %11512  ;;  %v6498_v61 = vmul.f32 %v11511_v32, %v14121_v53 }
0x1c78   : > { %v11515_v22 = vpop.eup %11514  ;;  %v6474_v41 = vadd.f32 1.0, %v11513_v17  ;;  %11534 = vrcp.f32 %v6475_v39 }
0x1c79   : > { %v11517_v0 = vpop.eup %11516  ;;  %v6477_v4 = vadd.f32 1.0, %v11515_v22  ;;  %10575 = vmatprep.mubr.msk.f32.mxu1 %vm395_vm0, %v6498_v61 }
0x1c7a   : > { %v11519_v18 = vpop.eup %11518  ;;  %11536 = vrcp.f32 %v6474_v41  ;;  %10576 = vmatmul.mubr.msk.f32.gmra.mxu1 %vm395_vm0, %v6499_v6  ;;  %v6501_v7 = vmul.f32 %v11517_v0, %v14125_v20 }
0x1c7b   : > { %v11521_v5 = vpop.eup %11520  ;;  %v6500_v63 = vmul.f32 %v11519_v18, %v14128_v16  ;;  %11538 = vrcp.f32 %v6477_v4 }
0x1c7c   : > { %v11523_v28 = vpop.eup %11522  ;;  %v6476_v53 = vadd.f32 1.0, %v11521_v5 }
0x1c7d   : > { %v11525_v46 = vpop.eup %11524  ;;  %10578 = vmatprep.mubr.msk.f32.mxu1 %vm395_vm0, %v6500_v63  ;;  %v6503_v27 = vmul.f32 %v11523_v28, %v14133_v47 }
0x1c7e   : > { %v11527_v51 = vpop.eup %11526  ;;  %11540 = vrcp.f32 %v6476_v53  ;;  %v6479_v36 = vadd.f32 1.0, %v11525_v46  ;;  %10579 = vmatmul.mubr.msk.f32.gmra.mxu1 %vm395_vm0, %v6501_v7 }
0x1c7f   : > { %v11529_v42 = vpop.eup %11528  ;;  %v6502_v54 = vmul.f32 %v11527_v51, %v14137_v8 }
0x1c80   : > { %v6478_v32 = vadd.f32 1.0, %v11529_v42  ;;  %11542 = vrcp.f32 %v6479_v36 }
0x1c81   : > { %10581 = vmatprep.mubr.msk.f32.mxu1 %vm395_vm0, %v6502_v54  ;;  %v11531_v20 = vpop.eup %11530 }
0x1c82   : > { %11544 = vrcp.f32 %v6478_v32  ;;  %10582 = vmatmul.mubr.msk.f32.gmra.mxu1 %vm395_vm0, %v6503_v27  ;;  %v6505_v17 = vmul.f32 %v11531_v20, %v14141_v38 }
0x1c83   : > { %v11533_v16 = vpop.eup %11532 }
0x1c84   : > { %v6504_v39 = vmul.f32 %v11533_v16, %v14145_v14 }
0x1c85   : > { %v11535_v61 = vpop.eup %11534 }
0x1c86   : > { %10584 = vmatprep.mubr.msk.f32.mxu1 %vm395_vm0, %v6504_v39  ;;  %v6507_v8 = vmul.f32 %v11535_v61, %v14148_v62 }
0x1c87   : > { %v11537_v22 = vpop.eup %11536  ;;  %10585 = vmatmul.mubr.msk.f32.gmra.mxu1 %vm395_vm0, %v6505_v17 }
0x1c88   : > { %v6506_v47 = vmul.f32 %v11537_v22, %v14153_v43  ;;  %v11539_v6 = vpop.eup %11538 }
0x1c89   : > { %v6509_v38 = vmul.f32 %v11539_v6, %v14156_v15 }
0x1c8a   : > { %10587 = vmatprep.mubr.msk.f32.mxu1 %vm395_vm0, %v6506_v47 }
0x1c8b   : > { %v11541_v41 = vpop.eup %11540  ;;  %10588 = vmatmul.mubr.msk.f32.gmra.mxu1 %vm395_vm0, %v6507_v8 }
0x1c8c   : > { %v6508_v14 = vmul.f32 %v11541_v41, %v14161_v3 }
0x1c8d   : > { %v11543_v0 = vpop.eup %11542 }
0x1c8e   : > { %10590 = vmatprep.mubr.msk.f32.mxu1 %vm395_vm0, %v6508_v14  ;;  %v6511_v62 = vmul.f32 %v11543_v0, %v14164_v10 }
0x1c8f   : > { %v11545_v4 = vpop.eup %11544  ;;  %10591 = vmatmul.mubr.msk.f32.gmra.mxu1 %vm395_vm0, %v6509_v38 }
0x1c90   : > { %v6510_v43 = vmul.f32 %v11545_v4, %v14169_v29  ;;  %v9012_v29 = vld [vmem:[#allocation2 + $0x330] ss:$0 sm:$0xff] }
0x1c92   : > { %10593 = vmatprep.mubr.msk.f32.mxu1 %vm395_vm0, %v6510_v43 }
0x1c93   : > { %10594 = vmatmul.mubr.msk.f32.gmra.mxu1 %vm395_vm0, %v6511_v62 }
0x1d36   : > { %v14204_v18 = vpop.f32.mrf.mxu1 }
0x1d38   : > { %v14206_v5 = vpop.f32.mrf.mxu1 }
0x1d3a   : > { %v10577_v3 = vpop.f32.mrf.mxu1 }
0x1d3c   : > { %v6645_v15 = vpop.f32.mrf.mxu1 }
0x1d3e   : > { %v10580_v63 = vpop.f32.mrf.mxu1 }
0x1d40   : > { %v6655_v28 = vpop.f32.mrf.mxu1 }
0x1d42   : > { %v10583_v7 = vpop.f32.mrf.mxu1 }
0x1d43   : > { %v14226_v38 = vadd.f32 %v10583_v7, %v9012_v29 }
0x1d44   : > { %v6665_v53 = vpop.f32.mrf.mxu1 }
0x1d47   : > { %v10586_v46 = vpop.f32.mrf.mxu1 }
0x1d48   : > { %v14214_v20 = vadd.f32 %v10586_v46, %v9012_v29 }
0x1d49   : > { %v6675_v51 = vpop.f32.mrf.mxu1 }
0x1d4a   : > { %v14221_v8 = vadd.f32 %v9012_v29, %v6675_v51  ;;  %v6723_v0 = vsub.f32 0.0, %v14214_v20 }
0x1d4b   : > { %v10589_v36 = vpop.f32.mrf.mxu1 }
0x1d4c   : > { %v14208_v42 = vadd.f32 %v10589_v36, %v9012_v29 }
0x1d4d   : > { %v6685_v10 = vpop.f32.mrf.mxu1 }
0x1d4e   : > { %v14210_v54 = vadd.f32 %v9012_v29, %v6685_v10  ;;  %v6725_v16 = vsub.f32 0.0, %v14208_v42  ;;  %v14232_v10 = vadd.f32 %v9012_v29, %v6665_v53  ;;  %v14243_v53 = vadd.f32 %v9012_v29, %v6655_v28 }
0x1d4f   : > { %v10592_v27 = vpop.f32.mrf.mxu1 }
0x1d50   : > { %v14212_v32 = vadd.f32 %v10592_v27, %v9012_v29  ;;  %v6724_v22 = vsub.f32 0.0, %v14210_v54  ;;  %v6752_v4 = vmul.f32 1.442695, %v6725_v16  ;;  %v6722_v27 = vsub.f32 0.0, %v14221_v8 }
0x1d51   : > { %v6695_v39 = vpop.f32.mrf.mxu1  ;;  %v6721_v16 = vsub.f32 0.0, %v14226_v38 }
0x1d52   : > { %v6727_v17 = vsub.f32 0.0, %v14212_v32  ;;  %v14218_v61 = vadd.f32 %v9012_v29, %v6695_v39  ;;  %v6750_v51 = vmul.f32 1.442695, %v6724_v22  ;;  %v6720_v22 = vsub.f32 0.0, %v14232_v10 }
0x1d53   : > { %v10595_v47 = vpop.f32.mrf.mxu1 }
0x1d54   : > { %v6756_v6 = vmul.f32 1.442695, %v6727_v17  ;;  %v6726_v41 = vsub.f32 0.0, %v14218_v61  ;;  %v14224_v14 = vadd.f32 %v10595_v47, %v9012_v29  ;;  %v14236_v17 = vadd.f32 %v10577_v3, %v9012_v29 }
0x1d55   : > { %v6705_v43 = vpop.f32.mrf.mxu1  ;;  %v14238_v47 = vadd.f32 %v10580_v63, %v9012_v29 }
0x1d56   : > { %11546 = vpow2.f32 %v6756_v6  ;;  %v6754_v62 = vmul.f32 1.442695, %v6726_v41  ;;  %v6729_v46 = vsub.f32 0.0, %v14224_v14  ;;  %v14230_v36 = vadd.f32 %v9012_v29, %v6705_v43 }
0x1d57   : > { %v6748_v6 = vmul.f32 1.442695, %v6723_v0  ;;  %v14241_v43 = vadd.f32 %v9012_v29, %v6645_v15  ;;  %v6717_v3 = vsub.f32 0.0, %v14236_v17  ;;  %v6719_v63 = vsub.f32 0.0, %v14238_v47 }
0x1d58   : > { %11548 = vpow2.f32 %v6754_v62  ;;  %v6760_v39 = vmul.f32 1.442695, %v6729_v46  ;;  %v6728_v7 = vsub.f32 0.0, %v14230_v36  ;;  %v6746_v62 = vmul.f32 1.442695, %v6722_v27 }
0x1d59   : > { %11550 = vpow2.f32 %v6752_v4  ;;  %v6744_v46 = vmul.f32 1.442695, %v6721_v16  ;;  %v6716_v4 = vsub.f32 0.0, %v14241_v43  ;;  %v6718_v0 = vsub.f32 0.0, %v14243_v53 }
0x1d5a   : > { %11552 = vpow2.f32 %v6760_v39  ;;  %v6758_v41 = vmul.f32 1.442695, %v6728_v7  ;;  %v6742_v39 = vmul.f32 1.442695, %v6720_v22  ;;  %v14251_v15 = vadd.f32 %v14204_v18, %v9012_v29 }
0x1d5b   : > { %11554 = vpow2.f32 %v6750_v51  ;;  %v6736_v28 = vmul.f32 1.442695, %v6717_v3  ;;  %v6740_v51 = vmul.f32 1.442695, %v6719_v63  ;;  %v14254_v7 = vadd.f32 %v9012_v29, %v14206_v5 }
0x1d5c   : > { %11556 = vpow2.f32 %v6758_v41  ;;  %v6734_v41 = vmul.f32 1.442695, %v6716_v4  ;;  %v6738_v40 = vmul.f32 1.442695, %v6718_v0 }
0x1d5d   : > { %11558 = vpow2.f32 %v6748_v6  ;;  %v6715_v6 = vsub.f32 0.0, %v14251_v15  ;;  %v6714_v18 = vsub.f32 0.0, %v14254_v7 }
0x1d5e   : > { %11560 = vpow2.f32 %v6746_v62 }
0x1d5f   : > { %11562 = vpow2.f32 %v6744_v46  ;;  %v6732_v29 = vmul.f32 1.442695, %v6715_v6  ;;  %v6730_v44 = vmul.f32 1.442695, %v6714_v18 }
0x1d60   : > { %11564 = vpow2.f32 %v6742_v39 }
0x1d61   : > { %11566 = vpow2.f32 %v6736_v28 }
0x1d62   : > { %11568 = vpow2.f32 %v6740_v51 }
0x1d63   : > { %v11547_v27 = vpop.eup %11546  ;;  %11570 = vpow2.f32 %v6734_v41 }
0x1d64   : > { %v6775_v26 = vadd.f32 1.0, %v11547_v27  ;;  %11572 = vpow2.f32 %v6738_v40 }
0x1d65   : > { %v11549_v16 = vpop.eup %11548 }
0x1d66   : > { %v11551_v22 = vpop.eup %11550  ;;  %v6774_v3 = vadd.f32 1.0, %v11549_v16  ;;  %11574 = vrcp.f32 %v6775_v26 }
0x1d67   : > { %v11553_v62 = vpop.eup %11552  ;;  %v6773_v4 = vadd.f32 1.0, %v11551_v22 }
0x1d68   : > { %v11555_v63 = vpop.eup %11554  ;;  %v6777_v46 = vadd.f32 1.0, %v11553_v62 }
0x1d69   : > { %v11557_v5 = vpop.eup %11556  ;;  %v6772_v28 = vadd.f32 1.0, %v11555_v63 }
0x1d6a   : > { %11576 = vrcp.f32 %v6777_v46  ;;  %v6776_v0 = vadd.f32 1.0, %v11557_v5  ;;  %v11559_v39 = vpop.eup %11558 }
0x1d6b   : > { %11578 = vrcp.f32 %v6774_v3  ;;  %v11561_v51 = vpop.eup %11560  ;;  %v6771_v27 = vadd.f32 1.0, %v11559_v39 }
0x1d6c   : > { %11580 = vrcp.f32 %v6776_v0  ;;  %v11563_v41 = vpop.eup %11562  ;;  %v6770_v16 = vadd.f32 1.0, %v11561_v51 }
0x1d6d   : > { %11582 = vpow2.f32 %v6732_v29  ;;  %v11565_v40 = vpop.eup %11564  ;;  %v6769_v6 = vadd.f32 1.0, %v11563_v41 }
0x1d6e   : > { %11584 = vrcp.f32 %v6773_v4  ;;  %v11567_v62 = vpop.eup %11566  ;;  %v6768_v46 = vadd.f32 1.0, %v11565_v40 }
0x1d6f   : > { %11586 = vpow2.f32 %v6730_v44  ;;  %v11569_v26 = vpop.eup %11568  ;;  %v6765_v39 = vadd.f32 1.0, %v11567_v62 }
0x1d70   : > { %11588 = vrcp.f32 %v6772_v28  ;;  %v11571_v22 = vpop.eup %11570  ;;  %v6767_v63 = vadd.f32 1.0, %v11569_v26 }
0x1d71   : > { %11590 = vrcp.f32 %v6771_v27  ;;  %v11573_v18 = vpop.eup %11572  ;;  %v6764_v26 = vadd.f32 1.0, %v11571_v22 }
0x1d72   : > { %11592 = vrcp.f32 %v6770_v16  ;;  %v6766_v0 = vadd.f32 1.0, %v11573_v18 }
0x1d73   : > { %v11575_v3 = vpop.eup %11574  ;;  %11594 = vrcp.f32 %v6769_v6 }
0x1d74   : > { %11596 = vrcp.f32 %v6768_v46  ;;  %v6807_v51 = vmul.f32 %v11575_v3, %v14212_v32 }
0x1d75   : > { %11598 = vrcp.f32 %v6767_v63 }
0x1d76   : > { %11600 = vrcp.f32 %v6766_v0  ;;  %v6823_v32 = vmul.f32 %v6807_v51, %v12518_v56 }
0x1d77   : > { %v11577_v5 = vpop.eup %11576  ;;  %11602 = vrcp.f32 %v6765_v39 }
0x1d78   : > { %v11579_v29 = vpop.eup %11578  ;;  %v6809_v44 = vmul.f32 %v11577_v5, %v14224_v14  ;;  %11604 = vrcp.f32 %v6764_v26 }
0x1d79   : > { %v11581_v4 = vpop.eup %11580  ;;  %v6806_v6 = vmul.f32 %v11579_v29, %v14218_v61 }
0x1d7a   : > { %v11583_v28 = vpop.eup %11582  ;;  %v6808_v27 = vmul.f32 %v11581_v4, %v14230_v36  ;;  %v6825_v41 = vmul.f32 %v6809_v44, %v12515_v50 }
0x1d7b   : > { %v11585_v16 = vpop.eup %11584  ;;  %v6763_v62 = vadd.f32 1.0, %v11583_v28  ;;  %v6822_v61 = vmul.f32 %v6806_v6, %v12522_v60 }
0x1d7c   : > { %v11587_v40 = vpop.eup %11586  ;;  %10596 = vmatprep.subr.mxu0 %v6825_v41  ;;  %v6824_v46 = vmul.f32 %v6808_v27, %v12520_v34  ;;  %v6805_v18 = vmul.f32 %v11585_v16, %v14208_v42 }
0x1d7d   : > { %v11589_v14 = vpop.eup %11588  ;;  %10597 = vmatpush3.msra.mxu0 %v6825_v41  ;;  %v6762_v3 = vadd.f32 1.0, %v11587_v40  ;;  %11606 = vrcp.f32 %v6763_v62 }
0x1d7e   : > { %10598 = vmatprep.subr.mxu0 %v6824_v46  ;;  %v11591_v36 = vpop.eup %11590  ;;  %v6804_v22 = vmul.f32 %v11589_v14, %v14210_v54  ;;  %v6821_v42 = vmul.f32 %v6805_v18, %v12524_v58 }
0x1d7f   : > { %10599 = vmatpush3.msra.mxu0 %v6824_v46  ;;  %v11593_v63 = vpop.eup %11592  ;;  %v6803_v5 = vmul.f32 %v11591_v36, %v14214_v20  ;;  %11608 = vrcp.f32 %v6762_v3  ;;  %v6917_v3 = vld [vmem:[#allocation2 + $0x368] sm:$0xff] }
0x1d80   : > { %10600 = vmatprep.subr.mxu0 %v6823_v32  ;;  %v11595_v29 = vpop.eup %11594  ;;  %v6802_v0 = vmul.f32 %v11593_v63, %v14221_v8  ;;  %v6820_v44 = vmul.f32 %v6804_v22, %v12526_v57  ;;  %v6916_v22 = vld [vmem:[#allocation2 + $0x360] sm:$0xff]  ;;  %v6914_v63 = vld [vmem:[#allocation2 + $0x350] sm:$0xff] }
0x1d81   : > { %10601 = vmatpush3.msra.mxu0 %v6823_v32  ;;  %v11597_v54 = vpop.eup %11596  ;;  %v6801_v4 = vmul.f32 %v11595_v29, %v14226_v38  ;;  %v6819_v39 = vmul.f32 %v6803_v5, %v12534_v12  ;;  %v6913_v5 = vld [vmem:[#allocation2 + $0x348] sm:$0xff]  ;;  %v6911_v29 = vld [vmem:[#allocation2 + $0x338] sm:$0xff] }
0x1d82   : > { %10602 = vmatprep.subr.mxu0 %v6822_v61  ;;  %v11599_v28 = vpop.eup %11598  ;;  %v6800_v20 = vmul.f32 %v11597_v54, %v14232_v10  ;;  %v6818_v51 = vmul.f32 %v6802_v0, %v12536_v2 }
0x1d83   : > { %10603 = vmatpush3.msra.mxu0 %v6822_v61  ;;  %v11601_v27 = vpop.eup %11600  ;;  %v6799_v8 = vmul.f32 %v11599_v28, %v14238_v47  ;;  %v6817_v41 = vmul.f32 %v6801_v4, %v12544_v21  ;;  %v6915_v61 = vld [vmem:[#allocation2 + $0x358] sm:$0xff] }
0x1d84   : > { %10604 = vmatprep.subr.mxu0 %v6821_v42  ;;  %v11603_v16 = vpop.eup %11602  ;;  %v6798_v38 = vmul.f32 %v11601_v27, %v14243_v53  ;;  %v6816_v40 = vmul.f32 %v6800_v20, %v12546_v49  ;;  %v7020_v20 = vld [vmem:[#allocation2 + $0x398] sm:$0xff]  ;;  %v7018_v27 = vld [vmem:[#allocation2 + $0x388] sm:$0xff] }
0x1d85   : > { %10605 = vmatpush3.msra.mxu0 %v6821_v42  ;;  %v11605_v26 = vpop.eup %11604  ;;  %v6797_v10 = vmul.f32 %v11603_v16, %v14236_v17  ;;  %v6815_v6 = vmul.f32 %v6799_v8, %v12554_v19  ;;  %v6912_v42 = vld [vmem:[#allocation2 + $0x340] sm:$0xff]  ;;  %10650 = vmatprep.subr.mxu1 %v7020_v20  ;;  %v9029_v16 = vld [vmem:[#allocation2 + $0x378] ss:$0 sm:$0xff] }
0x1d86   : > { %10606 = vmatprep.subr.mxu0 %v6820_v44  ;;  %v6796_v47 = vmul.f32 %v11605_v26, %v14241_v43  ;;  %v6814_v14 = vmul.f32 %v6798_v38, %v12556_v37  ;;  %10651 = vmatpush3.msra.mxu1 %v7020_v20  ;;  %v7017_v8 = vld [vmem:[#allocation2 + $0x380] sm:$0xff]  ;;  %v11886_v20 = vld [vmem:[%s14845_s3 + $0x8] sm:$0xff] }
0x1d87   : > { %10607 = vmatpush3.msra.mxu0 %v6820_v44  ;;  %v6813_v18 = vmul.f32 %v6797_v10, %v12564_v11 }
0x1d88   : > { %10608 = vmatprep.subr.mxu0 %v6819_v39  ;;  %v6812_v32 = vmul.f32 %v6796_v47, %v12566_v45 }
0x1d89   : > { %10609 = vmatpush3.msra.mxu0 %v6819_v39 }
0x1d8a   : > { %10610 = vmatprep.subr.mxu0 %v6818_v51  ;;  %v11607_v46 = vpop.eup %11606 }
0x1d8b   : > { %10611 = vmatpush3.msra.mxu0 %v6818_v51  ;;  %v6795_v53 = vmul.f32 %v11607_v46, %v14251_v15  ;;  %v11884_v15 = vld [vmem:[%s14846_s4 + $0x8] sm:$0xff]  ;;  %v7019_v51 = vld [vmem:[#allocation2 + $0x390] sm:$0xff] }
0x1d8c   : > { %10612 = vmatprep.subr.mxu0 %v6817_v41  ;;  %v11609_v62 = vpop.eup %11608  ;;  %10652 = vmatprep.subr.mxu1 %v7019_v51 }
0x1d8d   : > { %10613 = vmatpush3.msra.mxu0 %v6817_v41  ;;  %v6794_v17 = vmul.f32 %v11609_v62, %v14254_v7  ;;  %v6811_v43 = vmul.f32 %v6795_v53, %v14994_v24  ;;  %v6918_v7 = vld [vmem:[#allocation2 + $0x370] sm:$0xff]  ;;  %10653 = vmatpush3.msra.mxu1 %v7019_v51  ;;  %v7204_v41 = vld [vmem:[#allocation2 + $0x3c8] sm:$0x3] }
0x1d8e   : > { %10614 = vmatprep.subr.mxu0 %v6816_v40  ;;  %10654 = vmatprep.subr.mxu1 %v7018_v27  ;;  %v11887_v51 = vld [vmem:[%s14845_s3 + $0x10] sm:$0xff] }
0x1d8f   : > { %10615 = vmatpush3.msra.mxu0 %v6816_v40  ;;  %v6810_v36 = vmul.f32 %v6794_v17, %v14995_v55  ;;  %10655 = vmatpush3.msra.mxu1 %v7018_v27  ;;  %v11888_v27 = vld [vmem:[%s14845_s3 + $0x18] sm:$0xff] }
0x1d90   : > { %10616 = vmatprep.subr.mxu0 %v6815_v6  ;;  %10656 = vmatprep.subr.mxu1 %v7017_v8 }
0x1d91   : > { %10617 = vmatpush3.msra.mxu0 %v6815_v6  ;;  %10657 = vmatpush3.msra.mxu1 %v7017_v8  ;;  %v11889_v8 = vld [vmem:[%s14845_s3 + $0x20] sm:$0xff] }
0x1d92   : > { %10618 = vmatprep.subr.mxu0 %v6814_v14  ;;  %10672 = vmatprep.subr.msk.mxu1 %vm671_vm1, %v7204_v41 }
0x1d93   : > { %10619 = vmatpush3.msra.mxu0 %v6814_v14 }
0x1d94   : > { %10620 = vmatprep.subr.mxu0 %v6813_v18 }
0x1d95   : > { %10621 = vmatpush3.msra.mxu0 %v6813_v18 }
0x1d96   : > { %10622 = vmatprep.subr.mxu0 %v6812_v32 }
0x1d97   : > { %10623 = vmatpush3.msra.mxu0 %v6812_v32 }
0x1d98   : > { %10624 = vmatprep.subr.mxu0 %v6811_v43 }
0x1d99   : > { %10625 = vmatpush3.msra.mxu0 %v6811_v43 }
0x1d9a   : > { %10626 = vmatprep.subr.mxu0 %v6810_v36 }
0x1d9b   : > { %10627 = vmatpush3.msra.mxu0 %v6810_v36 }
0x1d9c   : > { %10629 = vmatmul.mubr.f32.vlgmr.msra.gmra.mxu0 %v11884_v15  ;;  %10631 = vmatprep.subr.mxu0 %v6918_v7 }
0x1d9d   : > { %10632 = vmatpush3.msra.mxu0 %v6918_v7  ;;  %v9032_v7 = vld [vmem:[#allocation2 + $0x3a0] ss:$0 sm:$0xff] }
0x1d9e   : > { %10633 = vmatprep.subr.mxu0 %v6917_v3 }
0x1d9f   : > { %10634 = vmatpush3.msra.mxu0 %v6917_v3 }
0x1da0   : > { %10635 = vmatprep.subr.mxu0 %v6916_v22 }
0x1da1   : > { %10636 = vmatpush3.msra.mxu0 %v6916_v22 }
0x1da2   : > { %10637 = vmatprep.subr.mxu0 %v6915_v61 }
0x1da3   : > { %10638 = vmatpush3.msra.mxu0 %v6915_v61 }
0x1da4   : > { %10639 = vmatprep.subr.mxu0 %v6914_v63 }
0x1da5   : > { %10640 = vmatpush3.msra.mxu0 %v6914_v63 }
0x1da6   : > { %10641 = vmatprep.subr.mxu0 %v6913_v5 }
0x1da7   : > { %10642 = vmatpush3.msra.mxu0 %v6913_v5 }
0x1da8   : > { %10643 = vmatprep.subr.mxu0 %v6912_v42 }
0x1da9   : > { %10644 = vmatpush3.msra.mxu0 %v6912_v42 }
0x1daa   : > { %10645 = vmatprep.subr.mxu0 %v6911_v29 }
0x1dab   : > { %10646 = vmatpush3.msra.mxu0 %v6911_v29  ;;  %v15057_v29 = vld [vmem:[#allocation5_spill] sm:$0xff] }
0x1e5c   : > { %v10630_v0 = vpop.f32.mrf.mxu0 }
0x1e5d   : > { %6905 = vrot.lane.b32.xlu1 %v10630_v0, %s11949_s23 }
0x1e5e   : > { %v6892_v44 = vpop.f32.mrf.mxu0 }
0x1e5f   : > { %6903 = vrot.lane.b32.xlu0 %v6892_v44, %s11949_s23  ;;  %v15058_v44 = vld [vmem:[#allocation7_spill] sm:$0xff] }
0x1ecf   : > { %v6906_v54 = vpop.permute.xlu1 %6905 }
0x1ed0   : > { %v6910_v28 = vsel %vm395_vm0, %v14031_v35, %v6906_v54 }
0x1ed1   : > { %v6904_v4 = vpop.permute.xlu0 %6903 }
0x1ed2   : > { %v6909_v39 = vsel %vm395_vm0, %v14028_v13, %v6904_v4  ;;  %v11885_v4 = vld [vmem:[%s14845_s3] sm:$0xff] }
0x1ed3   : > { %10647 = vmatprep.mubr.msk.f32.mxu0 %vm1970_vm4, %v6909_v39 }
0x1ed4   : > { %10648 = vmatmul.mubr.msk.f32.vlgmr.msra.gmra.mxu0 %vm1970_vm4, %v6910_v28 }
0x1f94   : > { %v10649_v38 = vpop.f32.mrf.mxu0 }
0x1f95   : > { %v7002_v40 = vadd.f32 %v10649_v38, %v9029_v16  ;;  %v11892_v38 = vld [vmem:[%s14845_s3 + $0x38] sm:$0xff] }
0x1f96   : > { %v6996_v26 = vpop.f32.mrf.mxu0 }
0x1f97   : > { %v7006_v10 = vsub.f32 0.0, %v7002_v40  ;;  %v6997_v6 = vadd.f32 %v9029_v16, %v6996_v26  ;;  %v11891_v16 = vld [vmem:[%s14845_s3 + $0x30] sm:$0xff]  ;;  %v11894_v26 = vld [vmem:[%s14845_s3 + $0x48] sm:$0xff] }
0x1f99   : > { %v7009_v46 = vmul.f32 1.442695, %v7006_v10  ;;  %v7005_v47 = vsub.f32 0.0, %v6997_v6  ;;  %v11895_v10 = vld [vmem:[%s14845_s3 + $0x50] sm:$0xff] }
0x1f9b   : > { %11610 = vpow2.f32 %v7009_v46  ;;  %v7007_v14 = vmul.f32 1.442695, %v7005_v47  ;;  %v11897_v46 = vld [vmem:[%s14845_s3 + $0x60] sm:$0xff]  ;;  %v11898_v47 = vld [vmem:[%s14845_s3 + $0x68] sm:$0xff] }
0x1f9d   : > { %11612 = vpow2.f32 %v7007_v14  ;;  %v11899_v14 = vld [vmem:[%s14845_s3 + $0x70] sm:$0xff] }
0x1fa8   : > { %v11611_v62 = vpop.eup %11610 }
0x1fa9   : > { %v7012_v53 = vadd.f32 1.0, %v11611_v62  ;;  %v11900_v62 = vld [vmem:[%s14845_s3 + $0x78] sm:$0xff] }
0x1faa   : > { %v11613_v18 = vpop.eup %11612 }
0x1fab   : > { %v7011_v17 = vadd.f32 1.0, %v11613_v18  ;;  %11614 = vrcp.f32 %v7012_v53  ;;  %v7618_v53 = vld [vmem:[#allocation2 + $0x3f0] sm:$0xff]  ;;  %v7617_v18 = vld [vmem:[#allocation2 + $0x3e8] sm:$0xff] }
0x1fad   : > { %11616 = vrcp.f32 %v7011_v17  ;;  %v7616_v17 = vld [vmem:[#allocation2 + $0x3e0] sm:$0xff] }
0x1fb8   : > { %v11615_v32 = vpop.eup %11614 }
0x1fb9   : > { %v7016_v15 = vmul.f32 %v11615_v32, %v7002_v40  ;;  %v11893_v40 = vld [vmem:[%s14845_s3 + $0x40] sm:$0xff]  ;;  %v7615_v32 = vld [vmem:[#allocation2 + $0x3d8] sm:$0xff] }
0x1fba   : > { %v11617_v43 = vpop.eup %11616 }
0x1fbb   : > { %v7015_v36 = vmul.f32 %v11617_v43, %v6997_v6  ;;  %v11896_v6 = vld [vmem:[%s14845_s3 + $0x58] sm:$0xff] }
0x1fbd   : > { %10658 = vmatprep.mubr.msk.f32.mxu1 %vm395_vm0, %v7015_v36 }
0x1fbe   : > { %10659 = vmatmul.mubr.msk.f32.vlgmr.msra.gmra.mxu1 %vm395_vm0, %v7016_v15 }
0x1fbf   : > { %10674 = vmatprep.mubr.msk.f32.mxu1 %vm666_vm2, %v13636_v23  ;;  %10673 = vmatpush3.msk.msra.mxu1 %vm671_vm1, %v7204_v41  ;;  %v15051_v23 = vld [vmem:[#allocation39_spill] sm:$0xff]  ;;  %v11890_v41 = vld [vmem:[%s14845_s3 + $0x28] sm:$0xff] }
0x1fc0   : > { %10730 = vmatprep.subr.mxu1 %v7618_v53 }
0x1fc2   : > { %10675 = vmatmul.mubr.msk.f32.vlgmr.msra.gmra.mxu1 %vm666_vm2, %v13641_v59  ;;  %v15052_v59 = vld [vmem:[#allocation40_spill] sm:$0xff] }
0x1fc3   : > { %10677 = vmatprep.mubr.msk.f32.mxu1 %vm666_vm2, %v13656_v31  ;;  %v15053_v31 = vld [vmem:[#allocation42_spill] sm:$0xff]  ;;  %10731 = vmatpush3.msra.mxu1 %v7618_v53 }
0x1fc4   : > { %10732 = vmatprep.subr.mxu1 %v7617_v18 }
0x1fc5   : > { %10733 = vmatpush3.msra.mxu1 %v7617_v18 }
0x1fc6   : > { %10678 = vmatmul.mubr.msk.f32.gmra.mxu1 %vm666_vm2, %v13662_v52  ;;  %v15054_v52 = vld [vmem:[#allocation43_spill] sm:$0xff]  ;;  %10734 = vmatprep.subr.mxu1 %v7616_v17 }
0x1fc7   : > { %10680 = vmatprep.mubr.msk.f32.mxu1 %vm666_vm2, %v13678_v30  ;;  %v15055_v30 = vld [vmem:[#allocation46_spill] sm:$0xff]  ;;  %10735 = vmatpush3.msra.mxu1 %v7616_v17 }
0x1fc8   : > { %10736 = vmatprep.subr.mxu1 %v7615_v32 }
0x1fc9   : > { %10737 = vmatpush3.msra.mxu1 %v7615_v32 }
0x1fca   : > { %10681 = vmatmul.mubr.msk.f32.gmra.mxu1 %vm666_vm2, %v13720_v25  ;;  %v15056_v25 = vld [vmem:[#allocation47_spill] sm:$0xff] }
0x1fcb   : > { %10683 = vmatprep.mubr.msk.f32.mxu1 %vm666_vm2, %v13725_v1  ;;  %v7114_v1 = vld [vmem:[#allocation2 + $0x3c0] sm:$0xff] }
0x1fcc   : > { %10661 = vmatprep.subr.mxu0 %v7114_v1 }
0x1fcd   : > { %10662 = vmatpush3.msra.mxu0 %v7114_v1  ;;  %v14415_v1 = vld [vmem:[#allocation2 + $0x3d0] ss:$0 sm:$0xff] }
0x1fce   : > { %10684 = vmatmul.mubr.msk.f32.gmra.mxu1 %vm666_vm2, %v13736_v33  ;;  %v7113_v33 = vld [vmem:[#allocation2 + $0x3b8] sm:$0xff] }
0x1fcf   : > { %10686 = vmatprep.mubr.msk.f32.mxu1 %vm666_vm2, %v13747_v48  ;;  %10663 = vmatprep.subr.mxu0 %v7113_v33  ;;  %v7112_v48 = vld [vmem:[#allocation2 + $0x3b0] sm:$0xff] }
0x1fd0   : > { %10664 = vmatpush3.msra.mxu0 %v7113_v33 }
0x1fd1   : > { %10665 = vmatprep.subr.mxu0 %v7112_v48 }
0x1fd2   : > { %10687 = vmatmul.mubr.msk.f32.gmra.mxu1 %vm666_vm2, %v13752_v9  ;;  %10666 = vmatpush3.msra.mxu0 %v7112_v48  ;;  %v7111_v9 = vld [vmem:[#allocation2 + $0x3a8] sm:$0xff] }
0x1fd3   : > { %10689 = vmatprep.mubr.msk.f32.mxu1 %vm666_vm2, %v15051_v23  ;;  %10667 = vmatprep.subr.mxu0 %v7111_v9 }
0x1fd4   : > { %10668 = vmatpush3.msra.mxu0 %v7111_v9 }
0x1fd6   : > { %10690 = vmatmul.mubr.msk.f32.gmra.mxu1 %vm666_vm2, %v15052_v59 }
0x1fd7   : > { %10692 = vmatprep.mubr.msk.f32.mxu1 %vm666_vm2, %v15053_v31 }
0x1fda   : > { %10693 = vmatmul.mubr.msk.f32.gmra.mxu1 %vm666_vm2, %v15054_v52 }
0x1fdb   : > { %10695 = vmatprep.mubr.msk.f32.mxu1 %vm666_vm2, %v15055_v30 }
0x1fde   : > { %10696 = vmatmul.mubr.msk.f32.gmra.mxu1 %vm666_vm2, %v15056_v25 }
0x207e   : > { %v10660_v3 = vpop.f32.mrf.mxu1 }
0x207f   : > { %v7104_v22 = vadd.f32 %v10660_v3, %v9032_v7 }
0x2080   : > { %v7098_v61 = vpop.f32.mrf.mxu1 }
0x2081   : > { %v7099_v63 = vadd.f32 %v9032_v7, %v7098_v61  ;;  %v7108_v5 = vadd.f32 %v7104_v22, %v14031_v35 }
0x2082   : > { %v10676_v43 = vpop.f32.mrf.mxu1 }
0x2083   : > { %v7107_v42 = vadd.f32 %v7099_v63, %v14028_v13  ;;  %v14343_v54 = vmul.f32 %v7108_v5, %v15058_v44 }
0x2084   : > { %v7274_v36 = vpop.f32.mrf.mxu1 }
0x2085   : > { %v14340_v0 = vmul.f32 %v7107_v42, %v15057_v29 }
0x2086   : > { %v10679_v15 = vpop.f32.mrf.mxu1 }
0x2087   : > { %10669 = vmatprep.mubr.msk.f32.mxu0 %vm395_vm0, %v14340_v0 }
0x2088   : > { %10670 = vmatmul.mubr.msk.f32.vlgmr.msra.gmra.mxu0 %vm395_vm0, %v14343_v54  ;;  %v7284_v23 = vpop.f32.mrf.mxu1 }
0x2089   : > { %10706 = vmatprep.mubr.msk.f32.mxu0 %vm395_vm0, %v11885_v4 }
0x208a   : > { %v10682_v59 = vpop.f32.mrf.mxu1 }
0x208c   : > { %v7294_v31 = vpop.f32.mrf.mxu1 }
0x208e   : > { %v10685_v52 = vpop.f32.mrf.mxu1 }
0x2090   : > { %v7304_v30 = vpop.f32.mrf.mxu1 }
0x2092   : > { %v10688_v48 = vpop.f32.mrf.mxu1 }
0x2094   : > { %v7314_v42 = vpop.f32.mrf.mxu1 }
0x2148   : > { %v10671_v35 = vpop.f32.mrf.mxu0 }
0x2149   : > { %7200 = vrot.lane.b32.xlu0 %v10671_v35, %s11948_s13 }
0x214a   : > { %v7187_v13 = vpop.f32.mrf.mxu0 }
0x214b   : > { %7198 = vrot.lane.b32.xlu1 %v7187_v13, %s11948_s13 }
0x21bb   : > { %v7201_v39 = vpop.permute.xlu0 %7200 }
0x21bc   : > { %10698 = vmatprep.subr.mxu0 %v7201_v39 }
0x21bd   : > { %10699 = vmatpush3.msra.mxu0 %v7201_v39  ;;  %v7199_v28 = vpop.permute.xlu1 %7198 }
0x21be   : > { %10700 = vmatprep.subr.mxu0 %v7199_v28 }
0x21bf   : > { %10701 = vmatpush3.msra.mxu0 %v7199_v28 }
0x21c0   : > { %10702 = vmatprep.subr.mxu0 %v10671_v35 }
0x21c1   : > { %10703 = vmatpush3.msra.mxu0 %v10671_v35 }
0x21c2   : > { %10704 = vmatprep.subr.mxu0 %v7187_v13 }
0x21c3   : > { %10705 = vmatpush3.msra.mxu0 %v7187_v13 }
0x21c4   : > { %10707 = vmatmul.mubr.msk.f32.vlgmr.msra.gmra.mxu0 %vm395_vm0, %v11886_v20 }
0x21c5   : > { %10709 = vmatprep.mubr.msk.f32.mxu0 %vm395_vm0, %v11887_v51 }
0x21c8   : > { %10710 = vmatmul.mubr.msk.f32.gmra.mxu0 %vm395_vm0, %v11888_v27 }
0x21c9   : > { %10712 = vmatprep.mubr.msk.f32.mxu0 %vm395_vm0, %v11889_v8 }
0x21cc   : > { %10713 = vmatmul.mubr.msk.f32.gmra.mxu0 %vm395_vm0, %v11890_v41  ;;  %v10691_v41 = vpop.f32.mrf.mxu1 }
0x21cd   : > { %10715 = vmatprep.mubr.msk.f32.mxu0 %vm395_vm0, %v11891_v16 }
0x21ce   : > { %v7324_v53 = vpop.f32.mrf.mxu1 }
0x21d0   : > { %10716 = vmatmul.mubr.msk.f32.gmra.mxu0 %vm395_vm0, %v11892_v38 }
0x21d1   : > { %10718 = vmatprep.mubr.msk.f32.mxu0 %vm395_vm0, %v11893_v40 }
0x21d4   : > { %10719 = vmatmul.mubr.msk.f32.gmra.mxu0 %vm395_vm0, %v11894_v26 }
0x21d5   : > { %10721 = vmatprep.mubr.msk.f32.mxu0 %vm395_vm0, %v11895_v10 }
0x21d8   : > { %10722 = vmatmul.mubr.msk.f32.gmra.mxu0 %vm395_vm0, %v11896_v6 }
0x21d9   : > { %10724 = vmatprep.mubr.msk.f32.mxu0 %vm395_vm0, %v11897_v46 }
0x21dc   : > { %10725 = vmatmul.mubr.msk.f32.gmra.mxu0 %vm395_vm0, %v11898_v47 }
0x21dd   : > { %10727 = vmatprep.mubr.msk.f32.mxu0 %vm395_vm0, %v11899_v14 }
0x21e0   : > { %10728 = vmatmul.mubr.msk.f32.gmra.mxu0 %vm395_vm0, %v11900_v62 }
0x2284   : > { %v10708_v25 = vpop.f32.mrf.mxu0 }
0x2285   : > { %v7425_v33 = vadd.f32 %v10708_v25, %v10676_v43 }
0x2286   : > { %v7419_v9 = vpop.f32.mrf.mxu0 }
0x2287   : > { %v14418_v7 = vadd.f32 %v14415_v1, %v7425_v33  ;;  %v7420_v3 = vadd.f32 %v7419_v9, %v7274_v36  ;;  %v10694_v33 = vpop.f32.mrf.mxu1 }
0x2288   : > { %v10711_v22 = vpop.f32.mrf.mxu0 }
0x2289   : > { %v7520_v61 = vsub.f32 0.0, %v14418_v7  ;;  %v14422_v63 = vadd.f32 %v14415_v1, %v7420_v3  ;;  %v7435_v5 = vadd.f32 %v10711_v22, %v10679_v15 }
0x228a   : > { %v7429_v4 = vpop.f32.mrf.mxu0 }
0x228b   : > { %v7537_v35 = vmul.f32 1.442695, %v7520_v61  ;;  %v7519_v13 = vsub.f32 0.0, %v14422_v63  ;;  %v14426_v39 = vadd.f32 %v14415_v1, %v7435_v5  ;;  %v7430_v28 = vadd.f32 %v7429_v4, %v7284_v23 }
0x228c   : > { %v10714_v20 = vpop.f32.mrf.mxu0 }
0x228d   : > { %11618 = vpow2.f32 %v7537_v35  ;;  %v7535_v51 = vmul.f32 1.442695, %v7519_v13  ;;  %v7522_v27 = vsub.f32 0.0, %v14426_v39  ;;  %v14430_v8 = vadd.f32 %v14415_v1, %v7430_v28 }
0x228e   : > { %v7445_v16 = vadd.f32 %v10714_v20, %v10682_v59  ;;  %v7439_v38 = vpop.f32.mrf.mxu0  ;;  %v7334_v20 = vpop.f32.mrf.mxu1 }
0x228f   : > { %11620 = vpow2.f32 %v7535_v51  ;;  %v7541_v40 = vmul.f32 1.442695, %v7522_v27  ;;  %v7521_v26 = vsub.f32 0.0, %v14430_v8  ;;  %v7440_v10 = vadd.f32 %v7439_v38, %v7294_v31 }
0x2290   : > { %v14434_v6 = vadd.f32 %v14415_v1, %v7445_v16  ;;  %v10717_v46 = vpop.f32.mrf.mxu0 }
0x2291   : > { %11622 = vpow2.f32 %v7541_v40  ;;  %v7539_v47 = vmul.f32 1.442695, %v7521_v26  ;;  %v14437_v14 = vadd.f32 %v14415_v1, %v7440_v10  ;;  %v7455_v62 = vadd.f32 %v10717_v46, %v10685_v52 }
0x2292   : > { %v7524_v18 = vsub.f32 0.0, %v14434_v6  ;;  %v7449_v17 = vpop.f32.mrf.mxu0 }
0x2293   : > { %11624 = vpow2.f32 %v7539_v47  ;;  %v7523_v32 = vsub.f32 0.0, %v14437_v14  ;;  %v14442_v43 = vadd.f32 %v14415_v1, %v7455_v62  ;;  %v7450_v36 = vadd.f32 %v7449_v17, %v7304_v30 }
0x2294   : > { %v7545_v15 = vmul.f32 1.442695, %v7524_v18  ;;  %v10720_v23 = vpop.f32.mrf.mxu0  ;;  %v10697_v18 = vpop.f32.mrf.mxu1 }
0x2295   : > { %v7543_v59 = vmul.f32 1.442695, %v7523_v32  ;;  %v7526_v31 = vsub.f32 0.0, %v14442_v43  ;;  %v14446_v25 = vadd.f32 %v14415_v1, %v7450_v36  ;;  %v7465_v52 = vadd.f32 %v10720_v23, %v10688_v48 }
0x2296   : > { %11626 = vpow2.f32 %v7545_v15  ;;  %v7459_v9 = vpop.f32.mrf.mxu0 }
0x2297   : > { %11628 = vpow2.f32 %v7543_v59  ;;  %v7549_v3 = vmul.f32 1.442695, %v7526_v31  ;;  %v7525_v22 = vsub.f32 0.0, %v14446_v25  ;;  %v14450_v61 = vadd.f32 %v14415_v1, %v7465_v52 }
0x2298   : > { %v7460_v30 = vadd.f32 %v7459_v9, %v7314_v42  ;;  %v10723_v5 = vpop.f32.mrf.mxu0 }
0x2299   : > { %11630 = vpow2.f32 %v7549_v3  ;;  %v7547_v4 = vmul.f32 1.442695, %v7525_v22  ;;  %v7528_v35 = vsub.f32 0.0, %v14450_v61  ;;  %v7475_v13 = vadd.f32 %v10723_v5, %v10691_v41 }
0x229a   : > { %v11619_v28 = vpop.eup %11618  ;;  %v14454_v48 = vadd.f32 %v14415_v1, %v7460_v30  ;;  %v7469_v51 = vpop.f32.mrf.mxu0 }
0x229b   : > { %v7568_v27 = vadd.f32 1.0, %v11619_v28  ;;  %11632 = vpow2.f32 %v7547_v4  ;;  %v7553_v16 = vmul.f32 1.442695, %v7528_v35  ;;  %v14457_v38 = vadd.f32 %v14415_v1, %v7475_v13  ;;  %v7344_v30 = vpop.f32.mrf.mxu1 }
0x229c   : > { %v11621_v40 = vpop.eup %11620  ;;  %v7527_v42 = vsub.f32 0.0, %v14454_v48  ;;  %v7470_v26 = vadd.f32 %v7469_v51, %v7324_v53  ;;  %v10726_v10 = vpop.f32.mrf.mxu0 }
0x229d   : > { %11634 = vrcp.f32 %v7568_v27  ;;  %v7567_v46 = vadd.f32 1.0, %v11621_v40  ;;  %v7530_v41 = vsub.f32 0.0, %v14457_v38  ;;  %v7485_v47 = vadd.f32 %v10726_v10, %v10694_v33 }
0x229e   : > { %v11623_v62 = vpop.eup %11622  ;;  %11636 = vpow2.f32 %v7553_v16  ;;  %v7551_v17 = vmul.f32 1.442695, %v7527_v42  ;;  %v14462_v32 = vadd.f32 %v14415_v1, %v7470_v26  ;;  %v7479_v36 = vpop.f32.mrf.mxu0 }
0x229f   : > { %11638 = vrcp.f32 %v7567_v46  ;;  %v7570_v15 = vadd.f32 1.0, %v11623_v62  ;;  %v7557_v23 = vmul.f32 1.442695, %v7530_v41  ;;  %v14465_v59 = vadd.f32 %v14415_v1, %v7485_v47 }
0x22a0   : > { %v11625_v53 = vpop.eup %11624  ;;  %11640 = vpow2.f32 %v7551_v17  ;;  %v7529_v31 = vsub.f32 0.0, %v14462_v32  ;;  %v7480_v52 = vadd.f32 %v7479_v36, %v7334_v20  ;;  %v10729_v33 = vpop.f32.mrf.mxu0 }
0x22a1   : > { %11642 = vrcp.f32 %v7570_v15  ;;  %v7569_v9 = vadd.f32 1.0, %v11625_v53  ;;  %v7532_v3 = vsub.f32 0.0, %v14465_v59  ;;  %v7495_v22 = vadd.f32 %v10729_v33, %v10697_v18 }
0x22a2   : > { %11644 = vpow2.f32 %v7557_v23  ;;  %v7555_v5 = vmul.f32 1.442695, %v7529_v31  ;;  %v14470_v4 = vadd.f32 %v14415_v1, %v7480_v52  ;;  %v7489_v35 = vpop.f32.mrf.mxu0 }
0x22a3   : > { %v11627_v13 = vpop.eup %11626  ;;  %11646 = vrcp.f32 %v7569_v9  ;;  %v7561_v28 = vmul.f32 1.442695, %v7532_v3  ;;  %v14473_v51 = vadd.f32 %v14415_v1, %v7495_v22  ;;  %v7490_v20 = vadd.f32 %v7489_v35, %v7344_v30 }
0x22a4   : > { %v11629_v27 = vpop.eup %11628  ;;  %v7572_v16 = vadd.f32 1.0, %v11627_v13  ;;  %11648 = vpow2.f32 %v7555_v5  ;;  %v7531_v40 = vsub.f32 0.0, %v14470_v4 }
0x22a5   : > { %v7571_v42 = vadd.f32 1.0, %v11629_v27  ;;  %11650 = vpow2.f32 %v7561_v28  ;;  %v7534_v26 = vsub.f32 0.0, %v14473_v51  ;;  %v14478_v10 = vadd.f32 %v14415_v1, %v7490_v20 }
0x22a6   : > { %v11631_v46 = vpop.eup %11630  ;;  %11652 = vrcp.f32 %v7572_v16  ;;  %v7559_v41 = vmul.f32 1.442695, %v7531_v40 }
0x22a7   : > { %11654 = vrcp.f32 %v7571_v42  ;;  %v7574_v47 = vadd.f32 1.0, %v11631_v46  ;;  %v7565_v62 = vmul.f32 1.442695, %v7534_v26  ;;  %v7533_v18 = vsub.f32 0.0, %v14478_v10 }
0x22a8   : > { %v11633_v17 = vpop.eup %11632  ;;  %11656 = vpow2.f32 %v7559_v41 }
0x22a9   : > { %11658 = vrcp.f32 %v7574_v47  ;;  %v7573_v36 = vadd.f32 1.0, %v11633_v17  ;;  %v7563_v15 = vmul.f32 1.442695, %v7533_v18 }
0x22aa   : > { %v11635_v23 = vpop.eup %11634  ;;  %11660 = vpow2.f32 %v7565_v62 }
0x22ab   : > { %v11637_v53 = vpop.eup %11636  ;;  %11662 = vrcp.f32 %v7573_v36  ;;  %v7600_v3 = vmul.f32 %v11635_v23, %v14418_v7 }
0x22ac   : > { %v11639_v31 = vpop.eup %11638  ;;  %v7576_v1 = vadd.f32 1.0, %v11637_v53  ;;  %11664 = vpow2.f32 %v7563_v15 }
0x22ad   : > { %v11641_v52 = vpop.eup %11640  ;;  %v7599_v33 = vmul.f32 %v11639_v31, %v14422_v63 }
0x22ae   : > { %v11643_v9 = vpop.eup %11642  ;;  %v7575_v22 = vadd.f32 1.0, %v11641_v52  ;;  %11666 = vrcp.f32 %v7576_v1 }
0x22af   : > { %v11645_v30 = vpop.eup %11644  ;;  %10738 = vmatprep.mubr.msk.f32.mxu1 %vm395_vm0, %v7599_v33  ;;  %v7602_v27 = vmul.f32 %v11643_v9, %v14426_v39 }
0x22b0   : > { %v11647_v5 = vpop.eup %11646  ;;  %11668 = vrcp.f32 %v7575_v22  ;;  %v7578_v35 = vadd.f32 1.0, %v11645_v30  ;;  %10739 = vmatmul.mubr.msk.f32.vlgmr.msra.gmra.mxu1 %vm395_vm0, %v7600_v3  ;;  %v7915_v22 = vld [vmem:[#allocation2 + $0x410] sm:$0xff]  ;;  %v7914_v30 = vld [vmem:[#allocation2 + $0x408] sm:$0xff] }
0x22b1   : > { %v11649_v13 = vpop.eup %11648  ;;  %v7601_v28 = vmul.f32 %v11647_v5, %v14430_v8  ;;  %v14519_v5 = vld [vmem:[#allocation2 + $0x3f8] ss:$0 sm:$0xff] }
0x22b2   : > { %v11651_v20 = vpop.eup %11650  ;;  %v7577_v63 = vadd.f32 1.0, %v11649_v13  ;;  %11670 = vrcp.f32 %v7578_v35 }
0x22b3   : > { %v11653_v16 = vpop.eup %11652  ;;  %v7580_v7 = vadd.f32 1.0, %v11651_v20  ;;  %10741 = vmatprep.mubr.msk.f32.mxu1 %vm395_vm0, %v7601_v28 }
0x22b4   : > { %v11655_v40 = vpop.eup %11654  ;;  %11672 = vrcp.f32 %v7577_v63  ;;  %10742 = vmatmul.mubr.msk.f32.gmra.mxu1 %vm395_vm0, %v7602_v27  ;;  %v7604_v41 = vmul.f32 %v11653_v16, %v14434_v6 }
0x22b5   : > { %v11657_v42 = vpop.eup %11656  ;;  %v7603_v26 = vmul.f32 %v11655_v40, %v14437_v14  ;;  %11674 = vrcp.f32 %v7580_v7 }
0x22b6   : > { %v11659_v46 = vpop.eup %11658  ;;  %v7579_v8 = vadd.f32 1.0, %v11657_v42 }
0x22b7   : > { %v11661_v47 = vpop.eup %11660  ;;  %10744 = vmatprep.mubr.msk.f32.mxu1 %vm395_vm0, %v7603_v26  ;;  %v7606_v36 = vmul.f32 %v11659_v46, %v14442_v43 }
0x22b8   : > { %v11663_v39 = vpop.eup %11662  ;;  %11676 = vrcp.f32 %v7579_v8  ;;  %v7582_v62 = vadd.f32 1.0, %v11661_v47  ;;  %10745 = vmatmul.mubr.msk.f32.gmra.mxu1 %vm395_vm0, %v7604_v41 }
0x22b9   : > { %v11665_v18 = vpop.eup %11664  ;;  %v7605_v17 = vmul.f32 %v11663_v39, %v14446_v25 }
0x22ba   : > { %v7581_v15 = vadd.f32 1.0, %v11665_v18  ;;  %11678 = vrcp.f32 %v7582_v62 }
0x22bb   : > { %10747 = vmatprep.mubr.msk.f32.mxu1 %vm395_vm0, %v7605_v17  ;;  %v11667_v6 = vpop.eup %11666 }
0x22bc   : > { %11680 = vrcp.f32 %v7581_v15  ;;  %10748 = vmatmul.mubr.msk.f32.gmra.mxu1 %vm395_vm0, %v7606_v36  ;;  %v7608_v53 = vmul.f32 %v11667_v6, %v14450_v61 }
0x22bd   : > { %v11669_v14 = vpop.eup %11668 }
0x22be   : > { %v7607_v23 = vmul.f32 %v11669_v14, %v14454_v48 }
0x22bf   : > { %v11671_v31 = vpop.eup %11670 }
0x22c0   : > { %10750 = vmatprep.mubr.msk.f32.mxu1 %vm395_vm0, %v7607_v23  ;;  %v7610_v25 = vmul.f32 %v11671_v31, %v14457_v38 }
0x22c1   : > { %v11673_v1 = vpop.eup %11672  ;;  %10751 = vmatmul.mubr.msk.f32.gmra.mxu1 %vm395_vm0, %v7608_v53 }
0x22c2   : > { %v7609_v43 = vmul.f32 %v11673_v1, %v14462_v32  ;;  %v11675_v52 = vpop.eup %11674 }
0x22c3   : > { %v7612_v61 = vmul.f32 %v11675_v52, %v14465_v59  ;;  %v7916_v59 = vld [vmem:[#allocation2 + $0x418] sm:$0xff] }
0x22c4   : > { %10753 = vmatprep.mubr.msk.f32.mxu1 %vm395_vm0, %v7609_v43  ;;  %10762 = vmatprep.subr.mxu0 %v7916_v59 }
0x22c5   : > { %v11677_v33 = vpop.eup %11676  ;;  %10754 = vmatmul.mubr.msk.f32.gmra.mxu1 %vm395_vm0, %v7610_v25  ;;  %10763 = vmatpush3.msra.mxu0 %v7916_v59 }
0x22c6   : > { %v7611_v48 = vmul.f32 %v11677_v33, %v14470_v4  ;;  %v11901_v4 = vld [vmem:[%s14846_s4] sm:$0xff]  ;;  %10764 = vmatprep.subr.mxu0 %v7915_v22 }
0x22c7   : > { %v11679_v9 = vpop.eup %11678  ;;  %10765 = vmatpush3.msra.mxu0 %v7915_v22 }
0x22c8   : > { %10756 = vmatprep.mubr.msk.f32.mxu1 %vm395_vm0, %v7611_v48  ;;  %v7614_v38 = vmul.f32 %v11679_v9, %v14473_v51  ;;  %10766 = vmatprep.subr.mxu0 %v7914_v30  ;;  %v14516_v51 = vld [vmem:[#allocation2 + $0x438] sm:$0xff] }
0x22c9   : > { %v11681_v3 = vpop.eup %11680  ;;  %10757 = vmatmul.mubr.msk.f32.gmra.mxu1 %vm395_vm0, %v7612_v61  ;;  %10767 = vmatpush3.msra.mxu0 %v7914_v30 }
0x22ca   : > { %v7613_v32 = vmul.f32 %v11681_v3, %v14478_v10  ;;  %v7913_v10 = vld [vmem:[#allocation2 + $0x400] sm:$0xff] }
0x22cb   : > { %10768 = vmatprep.subr.mxu0 %v7913_v10 }
0x22cc   : > { %10759 = vmatprep.mubr.msk.f32.mxu1 %vm395_vm0, %v7613_v32  ;;  %10769 = vmatpush3.msra.mxu0 %v7913_v10 }
0x22cd   : > { %10760 = vmatmul.mubr.msk.f32.gmra.mxu1 %vm395_vm0, %v7614_v38  ;;  %10829 = vmatprep.subr.mxu0 %v14516_v51 }
0x22ce   : > { %10826 = vmatprep.mubr.f32.mxu1 %v11901_v4 }
0x2370   : > { %v10740_v35 = vpop.f32.mrf.mxu1 }
0x2371   : > { %v14522_v13 = vadd.f32 %v10740_v35, %v14519_v5 }
0x2372   : > { %v7738_v28 = vpop.f32.mrf.mxu1 }
0x2373   : > { %v7818_v20 = vsub.f32 0.0, %v14522_v13  ;;  %v14526_v27 = vadd.f32 %v14519_v5, %v7738_v28 }
0x2374   : > { %v10743_v63 = vpop.f32.mrf.mxu1 }
0x2375   : > { %v7835_v16 = vmul.f32 1.442695, %v7818_v20  ;;  %v7817_v7 = vsub.f32 0.0, %v14526_v27  ;;  %v14530_v40 = vadd.f32 %v10743_v63, %v14519_v5 }
0x2376   : > { %v7748_v42 = vpop.f32.mrf.mxu1 }
0x2377   : > { %11682 = vpow2.f32 %v7835_v16  ;;  %v7833_v26 = vmul.f32 1.442695, %v7817_v7  ;;  %v7820_v46 = vsub.f32 0.0, %v14530_v40  ;;  %v14534_v41 = vadd.f32 %v14519_v5, %v7748_v42 }
0x2378   : > { %v10746_v8 = vpop.f32.mrf.mxu1 }
0x2379   : > { %11684 = vpow2.f32 %v7833_v26  ;;  %v7839_v47 = vmul.f32 1.442695, %v7820_v46  ;;  %v7819_v39 = vsub.f32 0.0, %v14534_v41  ;;  %v14538_v62 = vadd.f32 %v10746_v8, %v14519_v5 }
0x237a   : > { %v7758_v18 = vpop.f32.mrf.mxu1 }
0x237b   : > { %11686 = vpow2.f32 %v7839_v47  ;;  %v7837_v17 = vmul.f32 1.442695, %v7819_v39  ;;  %v7822_v36 = vsub.f32 0.0, %v14538_v62  ;;  %v14542_v15 = vadd.f32 %v14519_v5, %v7758_v18 }
0x237c   : > { %v10749_v6 = vpop.f32.mrf.mxu1 }
0x237d   : > { %11688 = vpow2.f32 %v7837_v17  ;;  %v7843_v14 = vmul.f32 1.442695, %v7822_v36  ;;  %v7821_v23 = vsub.f32 0.0, %v14542_v15  ;;  %v14546_v53 = vadd.f32 %v10749_v6, %v14519_v5 }
0x237e   : > { %v7768_v31 = vpop.f32.mrf.mxu1 }
0x237f   : > { %11690 = vpow2.f32 %v7843_v14  ;;  %v7841_v1 = vmul.f32 1.442695, %v7821_v23  ;;  %v7824_v43 = vsub.f32 0.0, %v14546_v53  ;;  %v14550_v25 = vadd.f32 %v14519_v5, %v7768_v31 }
0x2381   : > { %11692 = vpow2.f32 %v7841_v1  ;;  %v7847_v52 = vmul.f32 1.442695, %v7824_v43  ;;  %v7823_v33 = vsub.f32 0.0, %v14550_v25  ;;  %v10752_v48 = vpop.f32.mrf.mxu1 }
0x2382   : > { %v14554_v61 = vadd.f32 %v10752_v48, %v14519_v5 }
0x2383   : > { %11694 = vpow2.f32 %v7847_v52  ;;  %v7845_v9 = vmul.f32 1.442695, %v7823_v33  ;;  %v7778_v3 = vpop.f32.mrf.mxu1 }
0x2384   : > { %v11683_v32 = vpop.eup %11682  ;;  %v7826_v38 = vsub.f32 0.0, %v14554_v61  ;;  %v14558_v4 = vadd.f32 %v14519_v5, %v7778_v3 }
0x2385   : > { %v7866_v59 = vadd.f32 1.0, %v11683_v32  ;;  %11696 = vpow2.f32 %v7845_v9  ;;  %v10755_v22 = vpop.f32.mrf.mxu1 }
0x2386   : > { %v11685_v30 = vpop.eup %11684  ;;  %v7851_v10 = vmul.f32 1.442695, %v7826_v38  ;;  %v7825_v35 = vsub.f32 0.0, %v14558_v4  ;;  %v14562_v28 = vadd.f32 %v10755_v22, %v14519_v5 }
0x2387   : > { %11698 = vrcp.f32 %v7866_v59  ;;  %v7865_v20 = vadd.f32 1.0, %v11685_v30  ;;  %v7788_v63 = vpop.f32.mrf.mxu1 }
0x2388   : > { %v11687_v16 = vpop.eup %11686  ;;  %11700 = vpow2.f32 %v7851_v10  ;;  %v7849_v7 = vmul.f32 1.442695, %v7825_v35  ;;  %v7828_v42 = vsub.f32 0.0, %v14562_v28  ;;  %v14566_v26 = vadd.f32 %v14519_v5, %v7788_v63 }
0x2389   : > { %11702 = vrcp.f32 %v7865_v20  ;;  %v7868_v46 = vadd.f32 1.0, %v11687_v16  ;;  %v10758_v8 = vpop.f32.mrf.mxu1 }
0x238a   : > { %v11689_v47 = vpop.eup %11688  ;;  %11704 = vpow2.f32 %v7849_v7  ;;  %v7855_v39 = vmul.f32 1.442695, %v7828_v42  ;;  %v7827_v18 = vsub.f32 0.0, %v14566_v26  ;;  %v14570_v17 = vadd.f32 %v10758_v8, %v14519_v5 }
0x238b   : > { %11706 = vrcp.f32 %v7868_v46  ;;  %v7867_v36 = vadd.f32 1.0, %v11689_v47  ;;  %v7798_v6 = vpop.f32.mrf.mxu1 }
0x238c   : > { %v11691_v14 = vpop.eup %11690  ;;  %11708 = vpow2.f32 %v7855_v39  ;;  %v7853_v23 = vmul.f32 1.442695, %v7827_v18  ;;  %v7830_v31 = vsub.f32 0.0, %v14570_v17  ;;  %v14574_v1 = vadd.f32 %v14519_v5, %v7798_v6 }
0x238d   : > { %11710 = vrcp.f32 %v7867_v36  ;;  %v7870_v43 = vadd.f32 1.0, %v11691_v14  ;;  %v10761_v52 = vpop.f32.mrf.mxu1 }
0x238e   : > { %v11693_v33 = vpop.eup %11692  ;;  %11712 = vpow2.f32 %v7853_v23  ;;  %v7859_v48 = vmul.f32 1.442695, %v7830_v31  ;;  %v7829_v9 = vsub.f32 0.0, %v14574_v1  ;;  %v14578_v3 = vadd.f32 %v10761_v52, %v14519_v5  ;;  %v8305_v31 = vld [vmem:[#allocation2 + $0x430] sm:$0xff] }
0x238f   : > { %11714 = vrcp.f32 %v7870_v43  ;;  %v7869_v32 = vadd.f32 1.0, %v11693_v33  ;;  %v7808_v38 = vpop.f32.mrf.mxu1 }
0x2390   : > { %v11695_v59 = vpop.eup %11694  ;;  %11716 = vpow2.f32 %v7859_v48  ;;  %v7857_v22 = vmul.f32 1.442695, %v7829_v9  ;;  %v7832_v30 = vsub.f32 0.0, %v14578_v3  ;;  %v14582_v10 = vadd.f32 %v14519_v5, %v7808_v38 }
0x2391   : > { %11718 = vrcp.f32 %v7869_v32  ;;  %v7872_v35 = vadd.f32 1.0, %v11695_v59  ;;  %v8303_v59 = vld [vmem:[#allocation2 + $0x420] sm:$0xff] }
0x2392   : > { %v11697_v20 = vpop.eup %11696  ;;  %11720 = vpow2.f32 %v7857_v22  ;;  %v7863_v63 = vmul.f32 1.442695, %v7832_v30  ;;  %v7831_v16 = vsub.f32 0.0, %v14582_v10 }
0x2393   : > { %11722 = vrcp.f32 %v7872_v35  ;;  %v7871_v7 = vadd.f32 1.0, %v11697_v20 }
0x2394   : > { %v11699_v42 = vpop.eup %11698  ;;  %11724 = vpow2.f32 %v7863_v63  ;;  %v7861_v46 = vmul.f32 1.442695, %v7831_v16 }
0x2395   : > { %v11701_v8 = vpop.eup %11700  ;;  %11726 = vrcp.f32 %v7871_v7  ;;  %v7898_v6 = vmul.f32 %v11699_v42, %v14522_v13 }
0x2396   : > { %v11703_v47 = vpop.eup %11702  ;;  %v7874_v39 = vadd.f32 1.0, %v11701_v8  ;;  %11728 = vpow2.f32 %v7861_v46 }
0x2397   : > { %v11705_v18 = vpop.eup %11704  ;;  %v7897_v5 = vmul.f32 %v11703_v47, %v14526_v27  ;;  %v8304_v27 = vld [vmem:[#allocation2 + $0x428] sm:$0xff] }
0x2398   : > { %v11707_v36 = vpop.eup %11706  ;;  %v7873_v14 = vadd.f32 1.0, %v11705_v18  ;;  %11730 = vrcp.f32 %v7874_v39 }
0x2399   : > { %v11709_v23 = vpop.eup %11708  ;;  %10770 = vmatprep.mubr.msk.f32.mxu0 %vm395_vm0, %v7897_v5  ;;  %v7900_v13 = vmul.f32 %v11707_v36, %v14530_v40 }
0x239a   : > { %v11711_v43 = vpop.eup %11710  ;;  %11732 = vrcp.f32 %v7873_v14  ;;  %v7876_v52 = vadd.f32 1.0, %v11709_v23  ;;  %10771 = vmatmul.mubr.msk.f32.vlgmr.msra.gmra.mxu0 %vm395_vm0, %v7898_v6 }
0x239b   : > { %v11713_v33 = vpop.eup %11712  ;;  %v7899_v48 = vmul.f32 %v11711_v43, %v14534_v41  ;;  %10830 = vmatpush3.msra.mxu0 %v14516_v51  ;;  %v8301_v43 = vmul.f32 %v14340_v0, %v15057_v29 }
0x239c   : > { %v11715_v9 = vpop.eup %11714  ;;  %v7875_v32 = vadd.f32 1.0, %v11713_v33  ;;  %10831 = vmatprep.subr.mxu0 %v8305_v31  ;;  %11734 = vrcp.f32 %v7876_v52 }
0x239d   : > { %v11717_v38 = vpop.eup %11716  ;;  %10773 = vmatprep.mubr.msk.f32.mxu0 %vm395_vm0, %v7899_v48  ;;  %10832 = vmatpush3.msra.mxu0 %v8305_v31  ;;  %v7902_v40 = vmul.f32 %v11715_v9, %v14538_v62 }
0x239e   : > { %v11719_v22 = vpop.eup %11718  ;;  %11736 = vrcp.f32 %v7875_v32  ;;  %v7878_v30 = vadd.f32 1.0, %v11717_v38  ;;  %10774 = vmatmul.mubr.msk.f32.gmra.mxu0 %vm395_vm0, %v7900_v13  ;;  %10833 = vmatprep.subr.mxu0 %v8304_v27 }
0x239f   : > { %v11721_v41 = vpop.eup %11720  ;;  %v7901_v51 = vmul.f32 %v11719_v22, %v14542_v15  ;;  %10834 = vmatpush3.msra.mxu0 %v8304_v27 }
0x23a0   : > { %v11723_v35 = vpop.eup %11722  ;;  %v7877_v20 = vadd.f32 1.0, %v11721_v41  ;;  %10835 = vmatprep.subr.mxu0 %v8303_v59  ;;  %11738 = vrcp.f32 %v7878_v30 }
0x23a1   : > { %v11725_v63 = vpop.eup %11724  ;;  %10776 = vmatprep.mubr.msk.f32.mxu0 %vm395_vm0, %v7901_v51  ;;  %10836 = vmatpush3.msra.mxu0 %v8303_v59  ;;  %v7904_v15 = vmul.f32 %v11723_v35, %v14546_v53  ;;  %v15060_v35 = vld [vmem:[#allocation45_spill] sm:$0xff] }
0x23a2   : > { %v11727_v16 = vpop.eup %11726  ;;  %11740 = vrcp.f32 %v7877_v20  ;;  %v7880_v7 = vadd.f32 1.0, %v11725_v63  ;;  %10777 = vmatmul.mubr.msk.f32.gmra.mxu0 %vm395_vm0, %v7902_v40  ;;  %v4678_v40 = vadd.f32 1e-08, %v15060_v35  ;;  %v15061_v20 = vld [vmem:[#allocation38_spill] sm:$0xff] }
0x23a3   : > { %v11729_v42 = vpop.eup %11728  ;;  %v7903_v46 = vmul.f32 %v11727_v16, %v14550_v25  ;;  %v14627_v63 = vadd.f32 1e-08, %v15061_v20  ;;  %v15062_v16 = vld [vmem:[#allocation41_spill] sm:$0xff] }
0x23a4   : > { %v7879_v8 = vadd.f32 1.0, %v11729_v42  ;;  %11742 = vrcp.f32 %v7880_v7  ;;  %v14630_v7 = vadd.f32 1e-08, %v15062_v16  ;;  %v15063_v42 = vld [vmem:[#allocation35_spill] sm:$0xff]  ;;  %vm4780_vm4 = vcmp.eq.f32.partialorder %v4678_v40, inf }
0x23a5   : > { %10779 = vmatprep.mubr.msk.f32.mxu0 %vm395_vm0, %v7903_v46  ;;  %v11731_v62 = vpop.eup %11730  ;;  %v14633_v46 = vadd.f32 1e-08, %v15063_v42  ;;  %vm4773_vm2 = vcmp.eq.f32.partialorder %v14627_v63, inf  ;;  %vm4782_vm5 = vcmp.eq.f32.partialorder %v4678_v40, 0.0  ;;  %vm4775_vm6 = vcmp.eq.f32.partialorder %v14627_v63, 0.0 }
0x23a6   : > { %11744 = vrcp.f32 %v7879_v8  ;;  %10780 = vmatmul.mubr.msk.f32.gmra.mxu0 %vm395_vm0, %v7904_v15  ;;  %v7906_v18 = vmul.f32 %v11731_v62, %v14554_v61  ;;  %v15064_v15 = vld [vmem:[#allocation37_spill] sm:$0xff]  ;;  %vm4766_vm8 = vcmp.eq.f32.partialorder %v14630_v7, inf  ;;  %vm4768_vm10 = vcmp.eq.f32.partialorder %v14630_v7, 0.0 }
0x23a7   : > { %v11733_v47 = vpop.eup %11732  ;;  %v14637_v8 = vadd.f32 1e-08, %v15064_v15  ;;  %v15065_v62 = vld [vmem:[#allocation33_spill] sm:$0xff]  ;;  %vm4759_vm7 = vcmp.eq.f32.partialorder %v14633_v46, inf  ;;  %vm4761_vm9 = vcmp.eq.f32.partialorder %v14633_v46, 0.0 }
0x23a8   : > { %v7905_v39 = vmul.f32 %v11733_v47, %v14558_v4  ;;  %v14641_v47 = vadd.f32 1e-08, %v15065_v62 }
0x23a9   : > { %v11735_v5 = vpop.eup %11734  ;;  %vm4752_vm12 = vcmp.eq.f32.partialorder %v14637_v8, inf  ;;  %vm4754_vm13 = vcmp.eq.f32.partialorder %v14637_v8, 0.0 }
0x23aa   : > { %10782 = vmatprep.mubr.msk.f32.mxu0 %vm395_vm0, %v7905_v39  ;;  %v7908_v25 = vmul.f32 %v11735_v5, %v14562_v28  ;;  %v15066_v39 = vld [vmem:[#allocation36_spill] sm:$0xff]  ;;  %v15067_v5 = vld [vmem:[#allocation34_spill] sm:$0xff]  ;;  %vm4745_vm11 = vcmp.eq.f32.partialorder %v14641_v47, inf  ;;  %vm4747_vm14 = vcmp.eq.f32.partialorder %v14641_v47, 0.0 }
0x23ab   : > { %v11737_v36 = vpop.eup %11736  ;;  %10783 = vmatmul.mubr.msk.f32.gmra.mxu0 %vm395_vm0, %v7906_v18  ;;  %v14645_v18 = vadd.f32 1e-08, %v15066_v39 }
0x23ac   : > { %v7907_v53 = vmul.f32 %v11737_v36, %v14566_v26  ;;  %v14650_v36 = vadd.f32 1e-08, %v15067_v5  ;;  %v4769_v5 = vand.u32 2147483648, %v14630_v7 }
0x23ad   : > { %v11739_v6 = vpop.eup %11738 }
0x23ae   : > { %10785 = vmatprep.mubr.msk.f32.mxu0 %vm395_vm0, %v7907_v53  ;;  %v7910_v61 = vmul.f32 %v11739_v6, %v14570_v17  ;;  %v8302_v17 = vmul.f32 %v14343_v54, %v15058_v44  ;;  %v15059_v54 = vld [vmem:[#allocation44_spill] sm:$0xff] }
0x23af   : > { %v11741_v14 = vpop.eup %11740  ;;  %10786 = vmatmul.mubr.msk.f32.gmra.mxu0 %vm395_vm0, %v7908_v25  ;;  %v4679_v51 = vadd.f32 1e-08, %v15059_v54  ;;  %v15068_v25 = vld [vmem:[#allocation8_spill] sm:$0xff]  ;;  %v4783_v54 = vand.u32 2147483648, %v4678_v40 }
0x23b0   : > { %v7909_v4 = vmul.f32 %v11741_v14, %v14574_v1  ;;  %v14653_v6 = vadd.f32 1e-08, %v15068_v25 }
0x23b1   : > { %v11743_v23 = vpop.eup %11742  ;;  %11746 = vrsqrt.f32 %v4679_v51  ;;  %vm4789_vm1 = vcmp.eq.f32.partialorder %v4679_v51, 0.0 }
0x23b2   : > { %10788 = vmatprep.mubr.msk.f32.mxu0 %vm395_vm0, %v7909_v4  ;;  %v7912_v28 = vmul.f32 %v11743_v23, %v14578_v3  ;;  %11748 = vrsqrt.f32 %v4678_v40 }
0x23b3   : > { %v11745_v31 = vpop.eup %11744  ;;  %10789 = vmatmul.mubr.msk.f32.gmra.mxu0 %vm395_vm0, %v7910_v61  ;;  %11750 = vrsqrt.f32 %v14627_v63  ;;  %v15069_v61 = vld [vmem:[#allocation6_spill] sm:$0xff] }
0x23b4   : > { %v7911_v26 = vmul.f32 %v11745_v31, %v14582_v10  ;;  %11752 = vrsqrt.f32 %v14630_v7  ;;  %v14657_v23 = vadd.f32 1e-08, %v15069_v61 }
0x23b5   : > { %11754 = vrsqrt.f32 %v14633_v46 }
0x23b6   : > { %10791 = vmatprep.mubr.msk.f32.mxu0 %vm395_vm0, %v7911_v26  ;;  %11756 = vrsqrt.f32 %v14637_v8  ;;  %v15070_v26 = vld [vmem:[#allocation10_spill] sm:$0xff] }
0x23b7   : > { %10792 = vmatmul.mubr.msk.f32.gmra.mxu0 %vm395_vm0, %v7912_v28  ;;  %11758 = vrsqrt.f32 %v14641_v47  ;;  %v14661_v28 = vadd.f32 1e-08, %v15070_v26 }
0x23b8   : > { %10837 = vmatprep.mubr.msk.f32.mxu0 %vm395_vm0, %v8301_v43  ;;  %11760 = vrsqrt.f32 %v14645_v18  ;;  %v15071_v43 = vld [vmem:[#allocation25_spill] sm:$0xff] }
0x23b9   : > { %11762 = vrsqrt.f32 %v14650_v36 }
0x23ba   : > { %11764 = vrsqrt.f32 %v14653_v6 }
0x23bb   : > { %10838 = vmatmul.mubr.msk.f32.vlgmr.msra.gmra.mxu0 %vm395_vm0, %v8302_v17  ;;  %vm4787_vm0 = vcmp.eq.f32.partialorder %v4679_v51, inf  ;;  %v14664_v17 = vadd.f32 1e-08, %v15071_v43  ;;  %11766 = vrsqrt.f32 %v14657_v23  ;;  %v4748_v43 = vand.u32 2147483648, %v14641_v47 }
0x23bc   : > { %11768 = vrsqrt.f32 %v14661_v28 }
0x23bd   : > { %11770 = vrsqrt.f32 %v14664_v17 }
0x23be   : > { %v11747_v53 = vpop.eup %11746 }
0x23bf   : > { %v11749_v14 = vpop.eup %11748  ;;  %v4786_v4 = vmul.f32 %v11747_v53, %v4679_v51 }
0x23c0   : > { %v11751_v31 = vpop.eup %11750 }
0x245a   : > { %v10772_v1 = vpop.f32.mrf.mxu0 }
0x245c   : > { %v8031_v52 = vpop.f32.mrf.mxu0 }
0x245e   : > { %v10775_v33 = vpop.f32.mrf.mxu0 }
0x2460   : > { %v8041_v10 = vpop.f32.mrf.mxu0 }
0x2462   : > { %v10778_v48 = vpop.f32.mrf.mxu0 }
0x2464   : > { %v8051_v3 = vpop.f32.mrf.mxu0 }
0x2466   : > { %v10781_v27 = vpop.f32.mrf.mxu0 }
0x2468   : > { %v8061_v9 = vpop.f32.mrf.mxu0 }
0x246b   : > { %v10784_v0 = vpop.f32.mrf.mxu0 }
0x246d   : > { %v8071_v13 = vpop.f32.mrf.mxu0 }
0x246f   : > { %v10787_v32 = vpop.f32.mrf.mxu0 }
0x2471   : > { %v8081_v38 = vpop.f32.mrf.mxu0 }
0x2473   : > { %v10790_v59 = vpop.f32.mrf.mxu0 }
0x2475   : > { %v8091_v22 = vpop.f32.mrf.mxu0 }
0x2477   : > { %v10793_v30 = vpop.f32.mrf.mxu0 }
0x2478   : > { %8187 = vperm.xlu0 %10880, %v10793_v30  }
0x2479   : > { %v8101_v41 = vpop.f32.mrf.mxu0 }
0x247a   : > { %8182 = vperm.xlu1 %10881, %v8101_v41   ;;  %v4776_v41 = vand.u32 2147483648, %v14627_v63 }
0x247c   : > { %8177 = vperm.xlu0 %10880, %v10790_v59  }
0x247e   : > { %8172 = vperm.xlu1 %10881, %v8091_v22  }
0x2480   : > { %8167 = vperm.xlu0 %10880, %v10787_v32   ;;  %v15074_v32 = vld [vmem:[#allocation31_spill] sm:$0xff] }
0x2482   : > { %8162 = vperm.xlu1 %10881, %v8081_v38   ;;  %v14678_v38 = vadd.f32 1e-08, %v15074_v32 }
0x2484   : > { %8157 = vperm.xlu0 %10880, %v10784_v0   ;;  %v15073_v0 = vld [vmem:[#allocation27_spill] sm:$0xff] }
0x2486   : > { %8152 = vperm.xlu1 %10881, %v8071_v13   ;;  %v14674_v13 = vadd.f32 1e-08, %v15073_v0 }
0x2488   : > { %8147 = vperm.xlu0 %10880, %v10781_v27   ;;  %v4788_v27 = vsel %vm4787_vm0, %v4679_v51, %v4786_v4  ;;  %vm4738_vm0 = vcmp.eq.f32.partialorder %v14645_v18, inf }
0x248a   : > { %8142 = vperm.xlu1 %10881, %v8061_v9  }
0x248c   : > { %8137 = vperm.xlu0 %10880, %v10778_v48   ;;  %v4790_v48 = vand.u32 2147483648, %v4679_v51 }
0x248e   : > { %8132 = vperm.xlu1 %10881, %v8051_v3   ;;  %v4772_v3 = vmul.f32 %v11751_v31, %v14627_v63  ;;  %v4791_v51 = vsel %vm4789_vm1, %v4790_v48, %v4788_v27  ;;  %vm4724_vm1 = vcmp.eq.f32.partialorder %v14653_v6, inf }
0x2490   : > { %8127 = vperm.xlu0 %10880, %v10775_v33   ;;  %v15072_v33 = vld [vmem:[#allocation32_spill] sm:$0xff]  ;;  %v4774_v20 = vsel %vm4773_vm2, %v14627_v63, %v4772_v3  ;;  %vm4731_vm2 = vcmp.eq.f32.partialorder %v14650_v36, inf }
0x2491   : > { %v4777_v53 = vsel %vm4775_vm6, %v4776_v41, %v4774_v20  ;;  %vm4689_vm6 = vcmp.eq.f32.partialorder %v14661_v28, inf }
0x2492   : > { %8122 = vperm.xlu1 %10881, %v8041_v10   ;;  %v14668_v10 = vadd.f32 1e-08, %v15072_v33 }
0x2494   : > { %8117 = vperm.xlu0 %10880, %v10772_v1   ;;  %v4779_v1 = vmul.f32 %v11749_v14, %v4678_v40  ;;  %11772 = vrsqrt.f32 %v14668_v10  ;;  %vm4703_vm15 = vcmp.eq.f32.partialorder %v14668_v10, inf }
0x2495   : > { %11774 = vrsqrt.f32 %v14674_v13 }
0x2496   : > { %8112 = vperm.xlu1 %10881, %v8031_v52   ;;  %v11753_v52 = vpop.eup %11752  ;;  %v4781_v22 = vsel %vm4780_vm4, %v4678_v40, %v4779_v1  ;;  %11776 = vrcp.f32 %v4791_v51  ;;  %v4762_v40 = vand.u32 2147483648, %v14633_v46  ;;  %vm4740_vm4 = vcmp.eq.f32.partialorder %v14645_v18, 0.0 }
0x2497   : > { %v11755_v9 = vpop.eup %11754  ;;  %v4765_v59 = vmul.f32 %v11753_v52, %v14630_v7  ;;  %v4784_v42 = vsel %vm4782_vm5, %v4783_v54, %v4781_v22  ;;  %v4727_v54 = vand.u32 2147483648, %v14653_v6  ;;  %v4734_v51 = vand.u32 2147483648, %v14650_v36 }
0x2498   : > { %v11757_v30 = vpop.eup %11756  ;;  %v4758_v35 = vmul.f32 %v11755_v9, %v14633_v46  ;;  %11778 = vrcp.f32 %v4784_v42  ;;  %v4706_v9 = vand.u32 2147483648, %v14668_v10  ;;  %vm4726_vm5 = vcmp.eq.f32.partialorder %v14653_v6, 0.0 }
0x2499   : > { %v11759_v16 = vpop.eup %11758  ;;  %v4751_v15 = vmul.f32 %v11757_v30, %v14637_v8  ;;  %v4767_v62 = vsel %vm4766_vm8, %v14630_v7, %v4765_v59  ;;  %11780 = vrsqrt.f32 %v14678_v38  ;;  %v4755_v7 = vand.u32 2147483648, %v14637_v8 }
0x249a   : > { %v11761_v39 = vpop.eup %11760  ;;  %v4744_v63 = vmul.f32 %v11759_v16, %v14641_v47  ;;  %v4760_v25 = vsel %vm4759_vm7, %v14633_v46, %v4758_v35  ;;  %v4770_v4 = vsel %vm4768_vm10, %v4769_v5, %v4767_v62  ;;  %11782 = vrcp.f32 %v4777_v53 }
0x249b   : > { %v11763_v14 = vpop.eup %11762  ;;  %v4737_v61 = vmul.f32 %v11761_v39, %v14645_v18  ;;  %v4753_v31 = vsel %vm4752_vm12, %v14637_v8, %v4751_v15  ;;  %v4763_v1 = vsel %vm4761_vm9, %v4762_v40, %v4760_v25  ;;  %11784 = vrcp.f32 %v4770_v4  ;;  %v15075_v25 = vld [vmem:[#allocation12_spill] sm:$0xff] }
0x249c   : > { %v11765_v26 = vpop.eup %11764  ;;  %v4730_v52 = vmul.f32 %v11763_v14, %v14650_v36  ;;  %v4746_v33 = vsel %vm4745_vm11, %v14641_v47, %v4744_v63  ;;  %v4756_v3 = vsel %vm4754_vm13, %v4755_v7, %v4753_v31  ;;  %11786 = vrcp.f32 %v4763_v1  ;;  %v15076_v1 = vld [vmem:[#allocation9_spill] sm:$0xff] }
0x249d   : > { %v11767_v48 = vpop.eup %11766  ;;  %v4723_v46 = vmul.f32 %v11765_v26, %v14653_v6  ;;  %v4739_v0 = vsel %vm4738_vm0, %v14645_v18, %v4737_v61  ;;  %v4741_v8 = vand.u32 2147483648, %v14645_v18  ;;  %v4749_v59 = vsel %vm4747_vm14, %v4748_v43, %v4746_v33 }
0x249e   : > { %v11769_v27 = vpop.eup %11768  ;;  %v4716_v30 = vmul.f32 %v11767_v48, %v14657_v23  ;;  %11788 = vrcp.f32 %v4756_v3  ;;  %v4732_v41 = vsel %vm4731_vm2, %v14650_v36, %v4730_v52  ;;  %vm4733_vm7 = vcmp.eq.f32.partialorder %v14650_v36, 0.0 }
0x249f   : > { %v11771_v32 = vpop.eup %11770  ;;  %v4742_v35 = vsel %vm4740_vm4, %v4741_v8, %v4739_v0  ;;  %11790 = vrcp.f32 %v4749_v59  ;;  %v4725_v18 = vsel %vm4724_vm1, %v14653_v6, %v4723_v46  ;;  %vm4696_vm8 = vcmp.eq.f32.partialorder %v14674_v13, inf  ;;  %v15077_v8 = vld [vmem:[#allocation14_spill] sm:$0xff] }
0x24a0   : > { %v4709_v47 = vmul.f32 %v11771_v32, %v14664_v17  ;;  %vm4710_vm9 = vcmp.eq.f32.partialorder %v14664_v17, inf  ;;  %vm4717_vm10 = vcmp.eq.f32.partialorder %v14657_v23, inf  ;;  %v4735_v42 = vsel %vm4733_vm7, %v4734_v51, %v4732_v41  ;;  %v15078_v51 = vld [vmem:[#allocation11_spill] sm:$0xff] }
0x24a1   : > { %v11773_v22 = vpop.eup %11772  ;;  %v4713_v62 = vand.u32 2147483648, %v14664_v17  ;;  %11792 = vrcp.f32 %v4742_v35  ;;  %v4718_v39 = vsel %vm4717_vm10, %v14657_v23, %v4716_v30  ;;  %v4720_v5 = vand.u32 2147483648, %v14657_v23 }
0x24a2   : > { %v11775_v20 = vpop.eup %11774  ;;  %v4702_v15 = vmul.f32 %v11773_v22, %v14668_v10  ;;  %v4728_v53 = vsel %vm4726_vm5, %v4727_v54, %v4725_v18  ;;  %vm4712_vm11 = vcmp.eq.f32.partialorder %v14664_v17, 0.0  ;;  %11794 = vrcp.f32 %v4735_v42  ;;  %v15079_v42 = vld [vmem:[#allocation16_spill] sm:$0xff] }
0x24a3   : > { %v11777_v16 = vpop.eup %11776  ;;  %v4695_v40 = vmul.f32 %v11775_v20, %v14674_v13  ;;  %vm4719_vm12 = vcmp.eq.f32.partialorder %v14657_v23, 0.0  ;;  %v4711_v4 = vsel %vm4710_vm9, %v14664_v17, %v4709_v47  ;;  %v4688_v31 = vmul.f32 %v11769_v27, %v14661_v28 }
0x24a4   : > { %v4839_v14 = vmul.f32 %v11777_v16, %v15075_v25  ;;  %v4699_v26 = vand.u32 2147483648, %v14674_v13  ;;  %v4721_v6 = vsel %vm4719_vm12, %v4720_v5, %v4718_v39  ;;  %vm4705_vm14 = vcmp.eq.f32.partialorder %v14668_v10, 0.0  ;;  %v15080_v5 = vld [vmem:[#allocation13_spill] sm:$0xff] }
0x24a5   : > { %v11779_v36 = vpop.eup %11778  ;;  %11796 = vrcp.f32 %v4728_v53  ;;  %v4704_v23 = vsel %vm4703_vm15, %v14668_v10, %v4702_v15  ;;  %v4714_v27 = vsel %vm4712_vm11, %v4713_v62, %v4711_v4  ;;  %v4697_v46 = vsel %vm4696_vm8, %v14674_v13, %v4695_v40 }
0x24a6   : > { %v11781_v63 = vpop.eup %11780  ;;  %v4838_v52 = vmul.f32 %v11779_v36, %v15076_v1  ;;  %vm4698_vm13 = vcmp.eq.f32.partialorder %v14674_v13, 0.0  ;;  %11798 = vrcp.f32 %v4721_v6  ;;  %vm4682_vm15 = vcmp.eq.f32.partialorder %v14678_v38, inf  ;;  %v15082_v6 = vld [vmem:[#allocation15_spill] sm:$0xff] }
0x24a7   : > { %v11783_v61 = vpop.eup %11782  ;;  %v4681_v48 = vmul.f32 %v11781_v63, %v14678_v38  ;;  %v4707_v17 = vsel %vm4705_vm14, %v4706_v9, %v4704_v23  ;;  %v4690_v41 = vsel %vm4689_vm6, %v14661_v28, %v4688_v31  ;;  %11800 = vrcp.f32 %v4714_v27 }
0x24a8   : > { %v11785_v33 = vpop.eup %11784  ;;  %v4837_v59 = vmul.f32 %v11783_v61, %v15077_v8  ;;  %v4692_v47 = vand.u32 2147483648, %v14661_v28  ;;  %v4700_v10 = vsel %vm4698_vm13, %v4699_v26, %v4697_v46  ;;  %vm4691_vm0 = vcmp.eq.f32.partialorder %v14661_v28, 0.0  ;;  %v15081_v61 = vld [vmem:[#allocation18_spill] sm:$0xff] }
0x24a9   : > { %v11787_v22 = vpop.eup %11786  ;;  %v4836_v35 = vmul.f32 %v11785_v33, %v15078_v51  ;;  %v4683_v9 = vsel %vm4682_vm15, %v14678_v38, %v4681_v48  ;;  %11802 = vrcp.f32 %v4707_v17  ;;  %v4685_v39 = vand.u32 2147483648, %v14678_v38  ;;  %v15083_v33 = vld [vmem:[#allocation20_spill] sm:$0xff] }
0x24aa   : > { %v4835_v15 = vmul.f32 %v11787_v22, %v15079_v42  ;;  %v4693_v40 = vsel %vm4691_vm0, %v4692_v47, %v4690_v41  ;;  %vm4684_vm1 = vcmp.eq.f32.partialorder %v14678_v38, 0.0  ;;  %11804 = vrcp.f32 %v4700_v10 }
0x24ab   : > { %v11789_v20 = vpop.eup %11788  ;;  %v4686_v25 = vsel %vm4684_vm1, %v4685_v39, %v4683_v9  ;;  %11806 = vrcp.f32 %v4693_v40  ;;  %vm8397_vm2 = vcmask 130048   ;;  %vm8584_vm4 = vcmask 72704  }
0x24ac   : > { %v11791_v62 = vpop.eup %11790  ;;  %v4834_v53 = vmul.f32 %v11789_v20, %v15080_v5  ;;  %11808 = vrcp.f32 %v4686_v25 }
0x24ad   : > { %v4833_v31 = vmul.f32 %v11791_v62, %v15081_v61  ;;  %v11902_v61 = vld [vmem:[%s14846_s4 + $0x8] sm:$0xff] }
0x24f3   : > { %v8188_v43 = vpop.permute.xlu0 %8187 }
0x24f4   : > { %v8205_v7 = vmul.f32 %v8188_v43, %v4839_v14 }
0x24f5   : > { %v8183_v3 = vpop.permute.xlu1 %8182 }
0x24f6   : > { %v8221_v0 = vmul.f32 %v8205_v7, %v12515_v50  ;;  %v8204_v32 = vmul.f32 %v8183_v3, %v4838_v52 }
0x24f7   : > { %v8178_v30 = vpop.permute.xlu0 %8177 }
0x24f8   : > { %v8220_v54 = vmul.f32 %v8204_v32, %v12520_v34  ;;  %v8203_v50 = vmul.f32 %v8178_v30, %v4837_v59  ;;  %10794 = vmatprep.subr.mxu1 %v8221_v0 }
0x24f9   : > { %10795 = vmatpush3.msra.mxu1 %v8221_v0  ;;  %v8173_v18 = vpop.permute.xlu1 %8172  ;;  %v15084_v0 = vld [vmem:[#allocation17_spill] sm:$0xff] }
0x24fa   : > { %v8219_v16 = vmul.f32 %v8203_v50, %v12518_v56  ;;  %v8202_v34 = vmul.f32 %v8173_v18, %v4836_v35  ;;  %10796 = vmatprep.subr.mxu1 %v8220_v54  ;;  %v11793_v56 = vpop.eup %11792 }
0x24fb   : > { %v8168_v36 = vpop.permute.xlu0 %8167  ;;  %10797 = vmatpush3.msra.mxu1 %v8220_v54  ;;  %v11795_v26 = vpop.eup %11794  ;;  %v4832_v7 = vmul.f32 %v11793_v56, %v15082_v6 }
0x24fc   : > { %v8218_v13 = vmul.f32 %v8202_v34, %v12522_v60  ;;  %v8201_v28 = vmul.f32 %v8168_v36, %v4835_v15  ;;  %10798 = vmatprep.subr.mxu1 %v8219_v16  ;;  %v11797_v1 = vpop.eup %11796  ;;  %v4831_v48 = vmul.f32 %v11795_v26, %v15083_v33 }
0x24fd   : > { %10799 = vmatpush3.msra.mxu1 %v8219_v16  ;;  %v8163_v63 = vpop.permute.xlu1 %8162  ;;  %v11799_v3 = vpop.eup %11798  ;;  %v4830_v32 = vmul.f32 %v11797_v1, %v15084_v0 }
0x24fe   : > { %v8217_v14 = vmul.f32 %v8201_v28, %v12524_v58  ;;  %v8200_v4 = vmul.f32 %v8163_v63, %v4834_v53  ;;  %10800 = vmatprep.subr.mxu1 %v8218_v13  ;;  %v11801_v8 = vpop.eup %11800 }
0x24ff   : > { %v8158_v38 = vpop.permute.xlu0 %8157  ;;  %10801 = vmatpush3.msra.mxu1 %v8218_v13  ;;  %v11803_v41 = vpop.eup %11802 }
0x2500   : > { %v8216_v60 = vmul.f32 %v8200_v4, %v12526_v57  ;;  %v8199_v43 = vmul.f32 %v8158_v38, %v4833_v31  ;;  %10802 = vmatprep.subr.mxu1 %v8217_v14  ;;  %v11805_v20 = vpop.eup %11804  ;;  %v11904_v31 = vld [vmem:[%s12026_s15] sm:$0xff]  ;;  %v15091_v38 = vld [vmem:[#allocation26_spill] sm:$0xff] }
0x2501   : > { %10803 = vmatpush3.msra.mxu1 %v8217_v14  ;;  %v8153_v52 = vpop.permute.xlu1 %8152  ;;  %v11807_v16 = vpop.eup %11806 }
0x2502   : > { %v8215_v58 = vmul.f32 %v8199_v43, %v12534_v12  ;;  %v8198_v23 = vmul.f32 %v8153_v52, %v4832_v7  ;;  %10804 = vmatprep.subr.mxu1 %v8216_v60  ;;  %v15085_v12 = vld [vmem:[#allocation22_spill] sm:$0xff]  ;;  %v11809_v39 = vpop.eup %11808  ;;  %v15092_v7 = vld [vmem:[#allocation29_spill] sm:$0xff] }
0x2503   : > { %v8148_v27 = vpop.permute.xlu0 %8147  ;;  %10805 = vmatpush3.msra.mxu1 %v8216_v60  ;;  %v4829_v17 = vmul.f32 %v11799_v3, %v15085_v12 }
0x2504   : > { %v8214_v46 = vmul.f32 %v8198_v23, %v12536_v2  ;;  %v8197_v57 = vmul.f32 %v8148_v27, %v4831_v48  ;;  %10806 = vmatprep.subr.mxu1 %v8215_v58  ;;  %v15086_v2 = vld [vmem:[#allocation19_spill] sm:$0xff] }
0x2505   : > { %10807 = vmatpush3.msra.mxu1 %v8215_v58  ;;  %v8143_v59 = vpop.permute.xlu1 %8142  ;;  %v4828_v35 = vmul.f32 %v11801_v8, %v15086_v2 }
0x2506   : > { %v8213_v22 = vmul.f32 %v8197_v57, %v12544_v21  ;;  %v8196_v30 = vmul.f32 %v8143_v59, %v4830_v32  ;;  %10808 = vmatprep.subr.mxu1 %v8214_v46  ;;  %v15087_v21 = vld [vmem:[#allocation24_spill] sm:$0xff] }
0x2507   : > { %v8138_v54 = vpop.permute.xlu0 %8137  ;;  %10809 = vmatpush3.msra.mxu1 %v8214_v46  ;;  %v4827_v9 = vmul.f32 %v11803_v41, %v15087_v21  ;;  %v10839_v46 = vpop.f32.mrf.mxu0  ;;  %v9104_v57 = vld [vmem:[#allocation2 + $0x440] ss:$0 sm:$0xff] }
0x2508   : > { %v8212_v50 = vmul.f32 %v8196_v30, %v12546_v49  ;;  %v8195_v51 = vmul.f32 %v8138_v54, %v4829_v17  ;;  %10810 = vmatprep.subr.mxu1 %v8213_v22  ;;  %v15088_v49 = vld [vmem:[#allocation21_spill] sm:$0xff]  ;;  %v8390_v32 = vadd.f32 %v10839_v46, %v9104_v57 }
0x2509   : > { %10811 = vmatpush3.msra.mxu1 %v8213_v22  ;;  %v8133_v47 = vpop.permute.xlu1 %8132  ;;  %v4826_v62 = vmul.f32 %v11805_v20, %v15088_v49  ;;  %v8384_v0 = vpop.f32.mrf.mxu0 }
0x250a   : > { %v8211_v18 = vmul.f32 %v8195_v51, %v12554_v19  ;;  %v8194_v10 = vmul.f32 %v8133_v47, %v4828_v35  ;;  %10812 = vmatprep.subr.mxu1 %v8212_v50  ;;  %v15089_v19 = vld [vmem:[#allocation30_spill] sm:$0xff]  ;;  %v8385_v59 = vadd.f32 %v9104_v57, %v8384_v0  ;;  %v8394_v30 = vmul.f32 %v8390_v32, %v15058_v44 }
0x250b   : > { %v8128_v34 = vpop.permute.xlu0 %8127  ;;  %10813 = vmatpush3.msra.mxu1 %v8212_v50  ;;  %v4825_v28 = vmul.f32 %v11807_v16, %v15089_v19 }
0x250c   : > { %v8210_v42 = vmul.f32 %v8194_v10, %v12556_v37  ;;  %v8193_v15 = vmul.f32 %v8128_v34, %v4827_v9  ;;  %10814 = vmatprep.subr.mxu1 %v8211_v18  ;;  %v15090_v37 = vld [vmem:[#allocation23_spill] sm:$0xff]  ;;  %v8393_v12 = vmul.f32 %v8385_v59, %v15057_v29 }
0x250d   : > { %10815 = vmatpush3.msra.mxu1 %v8211_v18  ;;  %v8123_v36 = vpop.permute.xlu1 %8122  ;;  %v4824_v63 = vmul.f32 %v11809_v39, %v15090_v37 }
0x250e   : > { %v8209_v40 = vmul.f32 %v8193_v15, %v12564_v11  ;;  %v8192_v13 = vmul.f32 %v8123_v36, %v4826_v62  ;;  %10816 = vmatprep.subr.mxu1 %v8210_v42 }
0x250f   : > { %v8118_v5 = vpop.permute.xlu0 %8117  ;;  %10817 = vmatpush3.msra.mxu1 %v8210_v42 }
0x2510   : > { %v8208_v53 = vmul.f32 %v8192_v13, %v12566_v45  ;;  %v8191_v56 = vmul.f32 %v8118_v5, %v4825_v28  ;;  %10818 = vmatprep.subr.mxu1 %v8209_v40  ;;  %v359_v45 = vld [vmem:[%s14847_s5] sm:$0xff] }
0x2511   : > { %10819 = vmatpush3.msra.mxu1 %v8209_v40  ;;  %v8113_v25 = vpop.permute.xlu1 %8112 }
0x2512   : > { %v8207_v14 = vmul.f32 %v8191_v56, %v14994_v24  ;;  %v8190_v4 = vmul.f32 %v8113_v25, %v4824_v63  ;;  %10820 = vmatprep.subr.mxu1 %v8208_v53  ;;  %v11903_v24 = vld [vmem:[%s12026_s15 + $0x8] sm:$0xff]  ;;  %s11950_s15 = smov 3  }
0x2513   : > { %10821 = vmatpush3.msra.mxu1 %v8208_v53 }
0x2514   : > { %v8206_v11 = vmul.f32 %v8190_v4, %v14995_v55  ;;  %10822 = vmatprep.subr.mxu1 %v8207_v14  ;;  %v360_v55 = vld [vmem:[%s14847_s5 + $0x8] sm:$0xff] }
0x2515   : > { %10823 = vmatpush3.msra.mxu1 %v8207_v14 }
0x2516   : > { %10824 = vmatprep.subr.mxu1 %v8206_v11 }
0x2517   : > { %10825 = vmatpush3.msra.mxu1 %v8206_v11 }
0x2518   : > { %10827 = vmatmul.mubr.f32.vlgmr.msra.gmra.mxu1 %v11902_v61  ;;  %10840 = vmatprep.subr.mxu1 %v11903_v24 }
0x2519   : > { %10841 = vmatpush3.msra.mxu1 %v11903_v24  ;;  %10844 = vmatprep.mubr.msk.f32.mxu1 %vm8397_vm2, %v359_v45 }
0x251a   : > { %10842 = vmatprep.subr.mxu1 %v11904_v31 }
0x251b   : > { %10843 = vmatpush3.msra.mxu1 %v11904_v31 }
0x251c   : > { %10845 = vmatmul.mubr.msk.f32.vlgmr.msra.gmra.mxu1 %vm8397_vm2, %v360_v55 }
0x251d   : > { %10851 = vmatprep.mubr.msk.f32.mxu1 %vm8397_vm2, %v359_v45 }
0x25d8   : > { %v10828_v26 = vpop.f32.mrf.mxu1 }
0x25d9   : > { %v8298_v60 = vadd.f32 %v10828_v26, %v15091_v38 }
0x25da   : > { %v8288_v43 = vpop.f32.mrf.mxu1 }
0x25db   : > { %v8300_v6 = vmul.f32 %v8298_v60, %v15058_v44  ;;  %v8297_v1 = vadd.f32 %v8288_v43, %v15092_v7 }
0x25dc   : > { %v10846_v52 = vpop.f32.mrf.mxu1 }
0x25dd   : > { %v8299_v58 = vmul.f32 %v8297_v1, %v15057_v29  ;;  %v8480_v23 = vmax.f32 %v10846_v52, 1.0  ;;  %v8396_v33 = vmul.f32 %v8300_v6, %v15058_v44 }
0x25de   : > { %v8470_v48 = vpop.f32.mrf.mxu1 }
0x25df   : > { %11810 = vrcp.f32 %v8480_v23  ;;  %v8479_v3 = vmax.f32 %v8470_v48, 1.0  ;;  %10847 = vmatprep.subr.mxu1 %v8396_v33  ;;  %v8395_v27 = vmul.f32 %v8299_v58, %v15057_v29 }
0x25e0   : > { %10848 = vmatpush3.msra.mxu1 %v8396_v33 }
0x25e1   : > { %11812 = vrcp.f32 %v8479_v3  ;;  %10849 = vmatprep.subr.mxu1 %v8395_v27 }
0x25e2   : > { %10850 = vmatpush3.msra.mxu1 %v8395_v27 }
0x25e3   : > { %10852 = vmatmul.mubr.msk.f32.vlgmr.msra.gmra.mxu1 %vm8397_vm2, %v360_v55 }
0x25ec   : > { %v11811_v8 = vpop.eup %11810 }
0x25ed   : > { %8565 = vperm.xlu1 %10881, %v11811_v8  }
0x25ee   : > { %v11813_v22 = vpop.eup %11812 }
0x25ef   : > { %8560 = vperm.xlu0 %10880, %v11813_v22  }
0x25f1   : > { %8578 = vrot.lane.b32.xlu1 %v8394_v30, %s11950_s15 }
0x25f3   : > { %8576 = vrot.lane.b32.xlu0 %v8393_v12, %s11950_s15 }
0x2668   : > { %v8566_v17 = vpop.permute.xlu1 %8565 }
0x266a   : > { %v8561_v50 = vpop.permute.xlu0 %8560 }
0x266c   : > { %v8579_v21 = vpop.permute.xlu1 %8578 }
0x266e   : > { %v8577_v10 = vpop.permute.xlu0 %8576 }
0x26a3   : > { %v10853_v41 = vpop.f32.mrf.mxu1 }
0x26a4   : > { %v8569_v54 = vmul.f32 %v10853_v41, %v8566_v17 }
0x26a5   : > { %v8547_v51 = vpop.f32.mrf.mxu1 }
0x26a6   : > { %v8571_v2 = vmul.f32 %v8569_v54, %v15058_v44  ;;  %v8568_v35 = vmul.f32 %v8561_v50, %v8547_v51 }
0x26a8   : > { %v8570_v20 = vmul.f32 %v8568_v35, %v15057_v29  ;;  %v8573_v47 = vsub.f32 %v8396_v33, %v8571_v2 }
0x26aa   : > { %v8572_v18 = vsub.f32 %v8395_v27, %v8570_v20  ;;  %v8583_v16 = vsel %vm605_vm3, %v8573_v47, %v8579_v21 }
0x26ab   : > { %8586 = vst.msk [vmem:[%s339_s22 + $0x8] sm:$0xff] %vm8584_vm4, %v8583_v16 }
0x26ac   : > { %v8582_v9 = vsel %vm605_vm3, %v8572_v18, %v8577_v10 }
0x26ad   : > { %8585 = vst.msk [vmem:[%s339_s22] sm:$0xff] %vm8584_vm4, %v8582_v9 }
0x26ae PF: > { %s18_s24 = sadd.s32 1, %s11941_s24  }
0x26af   : > { %p15_p2 = scmp.ge.s32.totalorder %s18_s24, 4  }
0x26b1   :  { %17 = sbr.rel (!%p15_p2) target bundleno = 1 (0x1), region = 89 }
0x26b6   :  { %8609 = vsyncpa [#allocation3], 1 }
0x26b7   :  { %8611 = vsyncpa [#allocation3 + $0x1], 1 }

</bundles_post_ra>
